<compile_context>
chip_gen: v6e
topology: v6e:2x2x1
jax: 0.10.0
libtpu: 0.0.40
codegen_flags: <defaults>
</compile_context>

<pallas_src>
import functools

import jax
import jax.numpy as jnp
import numpy as np
from jax import lax
from jax.experimental import pallas as pl
from jax.experimental.pallas import tpu as pltpu


# ----------------------------------------------------------------------------
# Pallas kernel factory: one bidirectional LSTM layer, both directions fused.
# Grid = (nb, n): bi walks batch tiles ("parallel"), ci walks time chunks ("arbitrary").
#   forward  direction -> gate chunk ci       (local time 0 .. Tc-1)
#   backward direction -> gate chunk n-1-ci   (local time Tc-1 .. 0)
# Input-side gate pre-activations gx = x @ W_ih + b are precomputed outside (XLA, bf16).
# ----------------------------------------------------------------------------
def _make_bilstm_kernel(Tc, Hp, fuse_rec):
    def body(gxf_ref, gxb_ref, whh_refs, len_ref, outf_ref, outb_ref, hfin_ref,
             hfb_sc, cfb_sc):
        ci = pl.program_id(1)          # time-chunk axis
        n = pl.num_programs(1)
        lens = len_ref[...]            # (Bt, 1) int32

        # Re-init keyed on the TIME axis so every batch tile starts from zero state.
        @pl.when(ci == 0)
        def _():
            hfb_sc[...] = jnp.zeros_like(hfb_sc)
            cfb_sc[...] = jnp.zeros_like(cfb_sc)

        def cell(gates, c_prev):                      # PyTorch gate order i|f|g|o, f32 math
            i_g = jax.nn.sigmoid(gates[:, 0 * Hp:1 * Hp])   # 128-lane aligned slices
            f_g = jax.nn.sigmoid(gates[:, 1 * Hp:2 * Hp])
            g_g = jnp.tanh(gates[:, 2 * Hp:3 * Hp])
            o_g = jax.nn.sigmoid(gates[:, 3 * Hp:4 * Hp])
            c_new = f_g * c_prev + i_g * g_g
            h_new = o_g * jnp.tanh(c_new)
            return h_new, c_new

        def step(t, carry):
            tl = Tc - 1 - t
            h_prev = hfb_sc[...]                      # (Bt, 2Hp) f32, [h_f | h_b]
            c_prev = cfb_sc[...]

            # Recurrent matmul(s): bf16 operands, f32 accumulation.
            if fuse_rec:
                # One K=2Hp dot against block-diag(W_hh_f, W_hh_b) -> [gates_f | gates_b].
                gall = jnp.dot(h_prev.astype(jnp.bfloat16), whh_refs[0][...],
                               preferred_element_type=jnp.float32)
                rec_f = gall[:, 0:4 * Hp]
                rec_b = gall[:, 4 * Hp:8 * Hp]
            else:
                rec_f = jnp.dot(h_prev[:, 0:Hp].astype(jnp.bfloat16), whh_refs[0][...],
                                preferred_element_type=jnp.float32)
                rec_b = jnp.dot(h_prev[:, Hp:2 * Hp].astype(jnp.bfloat16), whh_refs[1][...],
                                preferred_element_type=jnp.float32)

            # ---- forward direction: global time ci*Tc + t -----------------------
            gates_f = gxf_ref[t].astype(jnp.float32) + rec_f
            hf_n, cf_n = cell(gates_f, c_prev[:, 0:Hp])
            valid_f = lens > (ci * Tc + t)            # (Bt, 1) packed-sequence mask
            hfb_sc[:, 0:Hp] = jnp.where(valid_f, hf_n, h_prev[:, 0:Hp])
            cfb_sc[:, 0:Hp] = jnp.where(valid_f, cf_n, c_prev[:, 0:Hp])
            outf_ref[t] = jnp.where(valid_f, hf_n, 0.0).astype(outf_ref.dtype)

            # ---- backward direction: chunk n-1-ci, walked back-to-front ---------
            gates_b = gxb_ref[tl].astype(jnp.float32) + rec_b
            hb_n, cb_n = cell(gates_b, c_prev[:, Hp:2 * Hp])
            valid_b = lens > ((n - 1 - ci) * Tc + tl)
            hfb_sc[:, Hp:2 * Hp] = jnp.where(valid_b, hb_n, h_prev[:, Hp:2 * Hp])
            cfb_sc[:, Hp:2 * Hp] = jnp.where(valid_b, cb_n, c_prev[:, Hp:2 * Hp])
            outb_ref[tl] = jnp.where(valid_b, hb_n, 0.0).astype(outb_ref.dtype)
            return carry

        # Unrolled fori_loop: LLO scheduling visibility with bounded vreg live ranges.
        lax.fori_loop(0, Tc, step, 0, unroll=True)

        # Final hidden [h_f | h_b] written once, on this batch tile's last time chunk.
        @pl.when(ci == n - 1)
        def _():
            hfin_ref[...] = hfb_sc[...]

    if fuse_rec:
        def kernel(gxf, gxb, whh, lens, outf, outb, hfin, hfb, cfb):
            body(gxf, gxb, (whh,), lens, outf, outb, hfin, hfb, cfb)
    else:
        def kernel(gxf, gxb, whhf, whhb, lens, outf, outb, hfin, hfb, cfb):
            body(gxf, gxb, (whhf, whhb), lens, outf, outb, hfin, hfb, cfb)
    return kernel


def bilstm_layer(gx, lens_col, w_hh_parts, *, Hp, Tc, Bt):
    """gx: (T_pad, Bp, 8*Hp) bf16 precomputed x @ W_ih + b for both directions (fwd | bwd).

    w_hh_parts: (block_diag(2Hp, 8Hp),) when fused (Hp==128), else (W_hh_f, W_hh_b) each
    (Hp, 4Hp); all bf16.  Returns bf16 per-step outputs (fwd, bwd) and f32 final hidden.
    """
    T_pad, Bp, _ = gx.shape
    assert T_pad % Tc == 0 and Bp % Bt == 0
    n = T_pad // Tc
    nb = Bp // Bt
    fuse_rec = len(w_hh_parts) == 1
    kernel = _make_bilstm_kernel(Tc, Hp, fuse_rec)

    resident = dict(pipeline_mode=pl.Buffered(1))     # single-buffer constant-index blocks
    if fuse_rec:
        w_specs = [pl.BlockSpec((2 * Hp, 8 * Hp), lambda bi, ci: (0, 0), **resident)]
    else:
        w_specs = [pl.BlockSpec((Hp, 4 * Hp), lambda bi, ci: (0, 0), **resident),
                   pl.BlockSpec((Hp, 4 * Hp), lambda bi, ci: (0, 0), **resident)]

    out_f, out_b, h_fin = pl.pallas_call(
        kernel,
        out_shape=(jax.ShapeDtypeStruct((T_pad, Bp, Hp), jnp.bfloat16),
                   jax.ShapeDtypeStruct((T_pad, Bp, Hp), jnp.bfloat16),
                   jax.ShapeDtypeStruct((Bp, 2 * Hp), jnp.float32)),
        grid_spec=pltpu.PrefetchScalarGridSpec(
            num_scalar_prefetch=0,
            grid=(nb, n),
            in_specs=[
                # Same gx array passed twice with different windows:
                #   fwd gate chunk ci (cols 0:4Hp), bwd gate chunk n-1-ci (cols 4Hp:8Hp).
                pl.BlockSpec((Tc, Bt, 4 * Hp), lambda bi, ci: (ci, bi, 0)),
                pl.BlockSpec((Tc, Bt, 4 * Hp), lambda bi, ci: (n - 1 - ci, bi, 1)),
                *w_specs,                                                  # resident W_hh
                pl.BlockSpec((Bt, 1), lambda bi, ci: (bi, 0), **resident),  # lengths
            ],
            out_specs=(
                pl.BlockSpec((Tc, Bt, Hp), lambda bi, ci: (ci, bi, 0)),
                pl.BlockSpec((Tc, Bt, Hp), lambda bi, ci: (n - 1 - ci, bi, 0)),
                pl.BlockSpec((Bt, 2 * Hp), lambda bi, ci: (bi, 0)),         # resident accum
            ),
            scratch_shapes=[pltpu.VMEM((Bt, 2 * Hp), jnp.float32),          # [h_f | h_b]
                            pltpu.VMEM((Bt, 2 * Hp), jnp.float32)],         # [c_f | c_b]
        ),
        compiler_params=pltpu.CompilerParams(
            dimension_semantics=("parallel", "arbitrary"),   # batch tiles || , time serial
            vmem_limit_bytes=48 * 1024 * 1024),              # headroom; fits v7x's 64 MiB
    )(gx, gx, *w_hh_parts, lens_col)
    return out_f, out_b, h_fin


# ----------------------------------------------------------------------------
# Parameter re-layout: pad hidden size to a lane-dense multiple of 128; cast the
# matmul weights to bf16.  Padded hidden units get zero in/rec weights and zero
# bias, so with zero initial h/c they stay exactly zero (zeros are exact in bf16).
# ----------------------------------------------------------------------------
def _round_up(x, m):
    return ((x + m - 1) // m) * m


def _pad_gate_cols(w, H, Hp):
    """(..., 4H) -> (..., 4Hp): each PyTorch gate block (i|f|g|o) placed at g*Hp."""
    if Hp == H:
        return w
    blocks = []
    for g in range(4):
        blk = w[..., g * H:(g + 1) * H]
        pad = jnp.zeros(blk.shape[:-1] + (Hp - H,), blk.dtype)
        blocks.append(jnp.concatenate([blk, pad], axis=-1))
    return jnp.concatenate(blocks, axis=-1)


def _pad_rows(w, H, Hp):
    """(H, ...) -> (Hp, ...) with zero row padding."""
    if Hp == H:
        return w
    return jnp.concatenate([w, jnp.zeros((Hp - H,) + w.shape[1:], w.dtype)], axis=0)


def prepare_padded_params(params, hidden_dim):
    H = hidden_dim
    Hp = _round_up(max(H, 128), 128)
    fuse_rec = (Hp == 128)   # K=2Hp=256 exactly fills the 256-deep v6e/v7x MXU
    pp = {"embedding": params["embedding"],
          "fc_w": params["fc_w"], "fc_b": params["fc_b"], "lstm": []}
    for li, lp in enumerate(params["lstm"]):
        wih_f = _pad_gate_cols(lp["w_ih_f"], H, Hp)          # (D_in, 4Hp)
        wih_b = _pad_gate_cols(lp["w_ih_b"], H, Hp)
        whh_f = _pad_rows(_pad_gate_cols(lp["w_hh_f"], H, Hp), H, Hp)   # (Hp, 4Hp)
        whh_b = _pad_rows(_pad_gate_cols(lp["w_hh_b"], H, Hp), H, Hp)
        entry = {"b_cat": jnp.concatenate([_pad_gate_cols(lp["b_f"], H, Hp),
                                           _pad_gate_cols(lp["b_b"], H, Hp)], axis=-1)}
        if fuse_rec:
            bd = jnp.zeros((2 * Hp, 8 * Hp), jnp.float32)
            bd = bd.at[:Hp, :4 * Hp].set(whh_f).at[Hp:, 4 * Hp:].set(whh_b)
            entry["w_hh"] = (bd.astype(jnp.bfloat16),)                  # block-diag, bf16
        else:
            entry["w_hh"] = (whh_f.astype(jnp.bfloat16), whh_b.astype(jnp.bfloat16))
        if li == 0:
            entry["w_ih_cat"] = jnp.concatenate([wih_f, wih_b],
                                                axis=-1).astype(jnp.bfloat16)   # (E, 8Hp)
        else:
            # Layer input is [out_f (Hp lanes) | out_b (Hp lanes)]; split each direction's
            # W_ih (2H, 4Hp) into fwd-input / bwd-input halves, pad rows to Hp.
            entry["w_ih_top"] = jnp.concatenate(
                [_pad_rows(wih_f[:H], H, Hp), _pad_rows(wih_b[:H], H, Hp)],
                axis=-1).astype(jnp.bfloat16)
            entry["w_ih_bot"] = jnp.concatenate(
                [_pad_rows(wih_f[H:], H, Hp), _pad_rows(wih_b[H:], H, Hp)],
                axis=-1).astype(jnp.bfloat16)
        pp["lstm"].append(entry)
    return pp, Hp


# ----------------------------------------------------------------------------
# Forward pass (embedding gather, gate precompute and fc head in XLA;
# recurrence in the fused Pallas kernel).
# ----------------------------------------------------------------------------
@functools.partial(jax.jit, static_argnames=("H", "Hp", "seq_chunk"))
def lstm_classifier_forward(pp, input_ids, lengths, *, H, Hp, seq_chunk):
    emb = jnp.take(pp["embedding"], input_ids, axis=0)       # (B, T, E) gather
    B, T, _ = emb.shape
    Tc = seq_chunk
    T_pad = _round_up(T, Tc)
    Bp = _round_up(B, 16)                 # 16 = bf16 sublane packing -> unmasked stores
    x = jnp.transpose(emb, (1, 0, 2)).astype(jnp.bfloat16)   # time-major (T, B, E) bf16
    x = jnp.pad(x, ((0, T_pad - T), (0, Bp - B), (0, 0)))    # pad time + dummy batch rows
    lens_col = jnp.pad(lengths.astype(jnp.int32), (0, Bp - B)).reshape(Bp, 1)  # dummies: len 0
    Bt = Bp // 2 if Bp >= 32 else Bp      # 2 batch tiles -> v7x megacore when batch allows

    out_f = out_b = h_fin = None
    for li, lp in enumerate(pp["lstm"]):
        if li == 0:
            # Fused (T*B, E) @ (E, 8Hp) input-gate precompute for both directions.
            gx = jnp.einsum("tbe,eg->tbg", x, lp["w_ih_cat"],
                            preferred_element_type=jnp.float32) + lp["b_cat"]
        else:
            # Next-layer input is (out_f | out_b); two matmuls avoid materializing the concat.
            gx = (jnp.einsum("tbh,hg->tbg", out_f, lp["w_ih_top"],
                             preferred_element_type=jnp.float32)
                  + jnp.einsum("tbh,hg->tbg", out_b, lp["w_ih_bot"],
                               preferred_element_type=jnp.float32)
                  + lp["b_cat"])
        gx = gx.astype(jnp.bfloat16)      # halve the streamed HBM/VMEM traffic
        out_f, out_b, h_fin = bilstm_layer(gx, lens_col, lp["w_hh"], Hp=Hp, Tc=Tc, Bt=Bt)

    # hidden = cat(hidden[-2], hidden[-1]); drop dummy rows & lane padding; fc head in XLA.
    h_fin = h_fin[:B]
    hidden = jnp.concatenate([h_fin[:, 0:H], h_fin[:, Hp:Hp + H]], axis=-1)
    return hidden @ pp["fc_w"] + pp["fc_b"]


# ----------------------------------------------------------------------------
# Pure-JAX f32 reference (lax.scan, logical/unpadded params) for validation
# ----------------------------------------------------------------------------
def reverse_padded(x_btd, lengths):
    B, T, _ = x_btd.shape
    j = jnp.arange(T)[None, :]
    L = lengths[:, None]
    idx = jnp.where(j < L, L - 1 - j, j)
    rev = jnp.take_along_axis(x_btd, idx[:, :, None], axis=1)
    return jnp.where((j < L)[:, :, None], rev, 0.0)


def _ref_direction(x_btd, lengths, w_ih, w_hh, b):
    B, T, _ = x_btd.shape
    H = w_hh.shape[0]

    def step(carry, inp):
        h, c = carry
        x_t, t = inp
        gates = x_t @ w_ih + h @ w_hh + b
        i_g, f_g, g_g, o_g = jnp.split(gates, 4, axis=-1)
        c_new = jax.nn.sigmoid(f_g) * c + jax.nn.sigmoid(i_g) * jnp.tanh(g_g)
        h_new = jax.nn.sigmoid(o_g) * jnp.tanh(c_new)
        valid = (lengths > t)[:, None]
        h_u = jnp.where(valid, h_new, h)
        c_u = jnp.where(valid, c_new, c)
        return (h_u, c_u), jnp.where(valid, h_new, 0.0)

    init = (jnp.zeros((B, H), jnp.float32), jnp.zeros((B, H), jnp.float32))
    (h_fin, _), outs = lax.scan(step, init,
                                (jnp.transpose(x_btd, (1, 0, 2)), jnp.arange(T)))
    return jnp.transpose(outs, (1, 0, 2)), h_fin


def ref_forward(params, input_ids, lengths):
    x = jnp.take(params["embedding"], input_ids, axis=0)
    h_f = h_b = None
    for p in params["lstm"]:
        out_f, h_f = _ref_direction(x, lengths, p["w_ih_f"], p["w_hh_f"], p["b_f"])
        x_rev = reverse_padded(x, lengths)
        out_b_rev, h_b = _ref_direction(x_rev, lengths, p["w_ih_b"], p["w_hh_b"], p["b_b"])
        out_b = reverse_padded(out_b_rev, lengths)
        x = jnp.concatenate([out_f, out_b], axis=-1)
    hidden = jnp.concatenate([h_f, h_b], axis=-1)
    return hidden @ params["fc_w"] + params["fc_b"]


# ----------------------------------------------------------------------------
# Deterministic parameter init (logical, unpadded shapes)
# ----------------------------------------------------------------------------
def init_params(key, vocab_size, n_classes, embedding_dim, hidden_dim, n_layers):
    keys = iter(jax.random.split(key, 64))
    H = hidden_dim

    def w(shape, scale=0.1):
        return (scale * jax.random.normal(next(keys), shape)).astype(jnp.float32)

    def bias():
        b = w((1, 4 * H), 0.05)
        return b.at[:, H:2 * H].set(1.0)        # unit_forget_bias=True

    params = {"embedding": w((vocab_size, embedding_dim), 0.5), "lstm": []}
    d_in = embedding_dim
    for _ in range(n_layers):
        params["lstm"].append({
            "w_ih_f": w((d_in, 4 * H)), "w_hh_f": w((H, 4 * H)), "b_f": bias(),
            "w_ih_b": w((d_in, 4 * H)), "w_hh_b": w((H, 4 * H)), "b_b": bias(),
        })
        d_in = 2 * H                            # bidirectional stacking
    params["fc_w"] = w((2 * H, n_classes))
    params["fc_b"] = w((1, n_classes))
    return params


if __name__ == "__main__":
    VOCAB, N_CLASSES = 100, 5
    E = H = 32
    N_LAYERS = 2
    B, T = 2, 8

    key = jax.random.PRNGKey(0)
    k_ids, k_param = jax.random.split(key)
    params = init_params(k_param, VOCAB, N_CLASSES, E, H, N_LAYERS)
    padded_params, Hp = prepare_padded_params(params, H)     # H=32 -> Hp=128 (lane-dense)

    input_ids = jax.random.randint(k_ids, (B, T), 0, VOCAB, dtype=jnp.int32)
    text_lengths = jnp.array([8, 5], dtype=jnp.int32)        # sorted desc (pack_padded_sequence)

    logits = lstm_classifier_forward(padded_params, input_ids, text_lengths,
                                     H=H, Hp=Hp, seq_chunk=4)
    logits = jax.block_until_ready(logits)

    ref = jax.block_until_ready(ref_forward(params, input_ids, text_lengths))
    assert logits.shape == (B, N_CLASSES)
    # Tolerance loosened vs the pure-f32 version: gx / outputs / matmul operands are bf16
    # (expected precision loss per the perf review, not a correctness bug).
    np.testing.assert_allclose(np.asarray(logits), np.asarray(ref), atol=3e-2, rtol=3e-2)
    print("KERNEL_OK")
</pallas_src>

<mosaic_0001>
module attributes {stable_mosaic.version = 11 : i64} {
  func.func @kernel(%arg0: i32, %arg1: i32, %arg2: memref<4x16x512xbf16, #tpu.memory_space<vmem>>, %arg3: memref<4x16x512xbf16, #tpu.memory_space<vmem>>, %arg4: memref<256x1024xbf16, #tpu.memory_space<vmem>>, %arg5: memref<16x1xi32, #tpu.memory_space<vmem>>, %arg6: memref<4x16x128xbf16, #tpu.memory_space<vmem>>, %arg7: memref<4x16x128xbf16, #tpu.memory_space<vmem>>, %arg8: memref<16x256xf32, #tpu.memory_space<vmem>>, %arg9: memref<16x256xf32, #tpu.memory_space<vmem>>, %arg10: memref<16x256xf32, #tpu.memory_space<vmem>>) attributes {dimension_semantics = [#tpu.dimension_semantics<parallel>, #tpu.dimension_semantics<arbitrary>], iteration_bounds = array<i64: 1, 2>, scalar_prefetch = 0 : i64, scratch_operands = 2 : i64, tpu.core_type = #tpu.core_type<tc>, window_params = [{transform_indices = @transform_0, window_bounds = array<i64: 4, 16, 512>}, {transform_indices = @transform_1, window_bounds = array<i64: 4, 16, 512>}, {pipeline_mode = #tpu.pipeline_mode<synchronous>, transform_indices = @transform_2, window_bounds = array<i64: 256, 1024>}, {pipeline_mode = #tpu.pipeline_mode<synchronous>, transform_indices = @transform_3, window_bounds = array<i64: 16, 1>}, {transform_indices = @transform_4, window_bounds = array<i64: 4, 16, 128>}, {transform_indices = @transform_5, window_bounds = array<i64: 4, 16, 128>}, {transform_indices = @transform_6, window_bounds = array<i64: 16, 256>}]} {
    %c0 = arith.constant 0 : index
    %c0_0 = arith.constant 0 : index
    %0 = vector.load %arg5[%c0, %c0_0] : memref<16x1xi32, #tpu.memory_space<vmem>>, vector<16x1xi32>
    %c0_i32 = arith.constant 0 : i32
    %1 = arith.cmpi eq, %arg1, %c0_i32 : i32
    %2 = arith.extui %1 : i1 to i32
    %c0_i32_1 = arith.constant 0 : i32
    %3 = arith.cmpi ne, %2, %c0_i32_1 : i32
    scf.if %3 {
      %cst_143 = arith.constant 0.000000e+00 : f32
      %475 = vector.broadcast %cst_143 : f32 to vector<16x256xf32>
      %c0_144 = arith.constant 0 : index
      %c0_145 = arith.constant 0 : index
      %476 = vector.load %arg9[%c0_144, %c0_145] : memref<16x256xf32, #tpu.memory_space<vmem>>, vector<16x256xf32>
      tpu.vector_store %arg9[%c0_144, %c0_145], %475 {strides = array<i32>} : memref<16x256xf32, #tpu.memory_space<vmem>>, vector<16x256xf32>,
      %cst_146 = arith.constant 0.000000e+00 : f32
      %477 = vector.broadcast %cst_146 : f32 to vector<16x256xf32>
      %c0_147 = arith.constant 0 : index
      %c0_148 = arith.constant 0 : index
      %478 = vector.load %arg10[%c0_147, %c0_148] : memref<16x256xf32, #tpu.memory_space<vmem>>, vector<16x256xf32>
      tpu.vector_store %arg10[%c0_147, %c0_148], %477 {strides = array<i32>} : memref<16x256xf32, #tpu.memory_space<vmem>>, vector<16x256xf32>,
    } else {
    }
    %c0_i32_2 = arith.constant 0 : i32
    %c3_i32 = arith.constant 3 : i32
    %4 = arith.subi %c3_i32, %c0_i32_2 : i32
    %c0_3 = arith.constant 0 : index
    %c0_4 = arith.constant 0 : index
    %5 = vector.load %arg9[%c0_3, %c0_4] : memref<16x256xf32, #tpu.memory_space<vmem>>, vector<16x256xf32>
    %c0_5 = arith.constant 0 : index
    %c0_6 = arith.constant 0 : index
    %6 = vector.load %arg10[%c0_5, %c0_6] : memref<16x256xf32, #tpu.memory_space<vmem>>, vector<16x256xf32>
    %7 = arith.truncf %5 : vector<16x256xf32> to vector<16x256xbf16>
    %c0_7 = arith.constant 0 : index
    %c0_8 = arith.constant 0 : index
    %8 = vector.load %arg4[%c0_7, %c0_8] : memref<256x1024xbf16, #tpu.memory_space<vmem>>, vector<256x1024xbf16>
    %cst = arith.constant dense<0.000000e+00> : vector<16x1024xf32>
    %9 = tpu.matmul %7, %8, %cst {dimension_numbers = #tpu.dot_dimension_numbers<[1], [0], [0], [1], [0, 0, 1, 1], [], []>} : vector<16x256xbf16>, vector<256x1024xbf16>, vector<16x1024xf32> -> vector<16x1024xf32>
    %10 = vector.extract_strided_slice %9 {offsets = [0, 0], sizes = [16, 512], strides = [1, 1]} : vector<16x1024xf32> to vector<16x512xf32>
    %11 = vector.extract_strided_slice %9 {offsets = [0, 512], sizes = [16, 512], strides = [1, 1]} : vector<16x1024xf32> to vector<16x512xf32>
    %12 = arith.index_cast %c0_i32_2 : i32 to index
    %c0_9 = arith.constant 0 : index
    %c0_10 = arith.constant 0 : index
    %13 = vector.load %arg2[%12, %c0_9, %c0_10] : memref<4x16x512xbf16, #tpu.memory_space<vmem>>, vector<1x16x512xbf16>
    %14 = vector.shape_cast %13 : vector<1x16x512xbf16> to vector<16x512xbf16>
    %15 = arith.extf %14 : vector<16x512xbf16> to vector<16x512xf32>
    %16 = arith.addf %15, %10 : vector<16x512xf32>
    %17 = vector.extract_strided_slice %6 {offsets = [0, 0], sizes = [16, 128], strides = [1, 1]} : vector<16x256xf32> to vector<16x128xf32>
    %18 = vector.extract_strided_slice %16 {offsets = [0, 0], sizes = [16, 128], strides = [1, 1]} : vector<16x512xf32> to vector<16x128xf32>
    %19 = arith.negf %18 : vector<16x128xf32>
    %20 = math.exp %19 : vector<16x128xf32>
    %cst_11 = arith.constant 1.000000e+00 : f32
    %21 = vector.broadcast %cst_11 : f32 to vector<16x128xf32>
    %22 = arith.addf %21, %20 : vector<16x128xf32>
    %23 = arith.divf %21, %22 : vector<16x128xf32>
    %24 = vector.extract_strided_slice %16 {offsets = [0, 128], sizes = [16, 128], strides = [1, 1]} : vector<16x512xf32> to vector<16x128xf32>
    %25 = arith.negf %24 : vector<16x128xf32>
    %26 = math.exp %25 : vector<16x128xf32>
    %cst_12 = arith.constant 1.000000e+00 : f32
    %27 = vector.broadcast %cst_12 : f32 to vector<16x128xf32>
    %28 = arith.addf %27, %26 : vector<16x128xf32>
    %29 = arith.divf %27, %28 : vector<16x128xf32>
    %30 = vector.extract_strided_slice %16 {offsets = [0, 256], sizes = [16, 128], strides = [1, 1]} : vector<16x512xf32> to vector<16x128xf32>
    %31 = math.tanh %30 : vector<16x128xf32>
    %32 = vector.extract_strided_slice %16 {offsets = [0, 384], sizes = [16, 128], strides = [1, 1]} : vector<16x512xf32> to vector<16x128xf32>
    %33 = arith.negf %32 : vector<16x128xf32>
    %34 = math.exp %33 : vector<16x128xf32>
    %cst_13 = arith.constant 1.000000e+00 : f32
    %35 = vector.broadcast %cst_13 : f32 to vector<16x128xf32>
    %36 = arith.addf %35, %34 : vector<16x128xf32>
    %37 = arith.divf %35, %36 : vector<16x128xf32>
    %38 = arith.mulf %29, %17 : vector<16x128xf32>
    %39 = arith.mulf %23, %31 : vector<16x128xf32>
    %40 = arith.addf %38, %39 : vector<16x128xf32>
    %41 = math.tanh %40 : vector<16x128xf32>
    %42 = arith.mulf %37, %41 : vector<16x128xf32>
    %c4_i32 = arith.constant 4 : i32
    %43 = arith.muli %arg1, %c4_i32 : i32
    %44 = arith.addi %43, %c0_i32_2 : i32
    %45 = vector.broadcast %44 : i32 to vector<16x1xi32>
    %46 = arith.cmpi sgt, %0, %45 : vector<16x1xi32>
    %47 = vector.extract_strided_slice %5 {offsets = [0, 0], sizes = [16, 128], strides = [1, 1]} : vector<16x256xf32> to vector<16x128xf32>
    %48 = vector.shape_cast %46 : vector<16x1xi1> to vector<16x1xi1>
    %49 = vector.broadcast %48 : vector<16x1xi1> to vector<16x128xi1>
    %50 = arith.select %49, %42, %47 : vector<16x128xi1>, vector<16x128xf32>
    %c0_14 = arith.constant 0 : index
    %c0_15 = arith.constant 0 : index
    %51 = vector.load %arg9[%c0_14, %c0_15] : memref<16x256xf32, #tpu.memory_space<vmem>>, vector<16x128xf32>
    tpu.vector_store %arg9[%c0_14, %c0_15], %50 {strides = array<i32>} : memref<16x256xf32, #tpu.memory_space<vmem>>, vector<16x128xf32>,
    %52 = vector.extract_strided_slice %6 {offsets = [0, 0], sizes = [16, 128], strides = [1, 1]} : vector<16x256xf32> to vector<16x128xf32>
    %53 = vector.shape_cast %46 : vector<16x1xi1> to vector<16x1xi1>
    %54 = vector.broadcast %53 : vector<16x1xi1> to vector<16x128xi1>
    %55 = arith.select %54, %40, %52 : vector<16x128xi1>, vector<16x128xf32>
    %c0_16 = arith.constant 0 : index
    %c0_17 = arith.constant 0 : index
    %56 = vector.load %arg10[%c0_16, %c0_17] : memref<16x256xf32, #tpu.memory_space<vmem>>, vector<16x128xf32>
    tpu.vector_store %arg10[%c0_16, %c0_17], %55 {strides = array<i32>} : memref<16x256xf32, #tpu.memory_space<vmem>>, vector<16x128xf32>,
    %cst_18 = arith.constant 0.000000e+00 : f32
    %57 = vector.shape_cast %46 : vector<16x1xi1> to vector<16x1xi1>
    %58 = vector.broadcast %57 : vector<16x1xi1> to vector<16x128xi1>
    %59 = vector.broadcast %cst_18 : f32 to vector<16x128xf32>
    %60 = arith.select %58, %42, %59 : vector<16x128xi1>, vector<16x128xf32>
    %61 = arith.truncf %60 : vector<16x128xf32> to vector<16x128xbf16>
    %62 = arith.index_cast %c0_i32_2 : i32 to index
    %c0_19 = arith.constant 0 : index
    %c0_20 = arith.constant 0 : index
    %63 = vector.load %arg6[%62, %c0_19, %c0_20] : memref<4x16x128xbf16, #tpu.memory_space<vmem>>, vector<1x16x128xbf16>
    %64 = vector.shape_cast %63 : vector<1x16x128xbf16> to vector<16x128xbf16>
    %65 = vector.shape_cast %61 : vector<16x128xbf16> to vector<1x16x128xbf16>
    tpu.vector_store %arg6[%62, %c0_19, %c0_20], %65 {strides = array<i32>} : memref<4x16x128xbf16, #tpu.memory_space<vmem>>, vector<1x16x128xbf16>,
    %66 = arith.index_cast %4 : i32 to index
    %c0_21 = arith.constant 0 : index
    %c0_22 = arith.constant 0 : index
    %67 = vector.load %arg3[%66, %c0_21, %c0_22] : memref<4x16x512xbf16, #tpu.memory_space<vmem>>, vector<1x16x512xbf16>
    %68 = vector.shape_cast %67 : vector<1x16x512xbf16> to vector<16x512xbf16>
    %69 = arith.extf %68 : vector<16x512xbf16> to vector<16x512xf32>
    %70 = arith.addf %69, %11 : vector<16x512xf32>
    %71 = vector.extract_strided_slice %6 {offsets = [0, 128], sizes = [16, 128], strides = [1, 1]} : vector<16x256xf32> to vector<16x128xf32>
    %72 = vector.extract_strided_slice %70 {offsets = [0, 0], sizes = [16, 128], strides = [1, 1]} : vector<16x512xf32> to vector<16x128xf32>
    %73 = arith.negf %72 : vector<16x128xf32>
    %74 = math.exp %73 : vector<16x128xf32>
    %cst_23 = arith.constant 1.000000e+00 : f32
    %75 = vector.broadcast %cst_23 : f32 to vector<16x128xf32>
    %76 = arith.addf %75, %74 : vector<16x128xf32>
    %77 = arith.divf %75, %76 : vector<16x128xf32>
    %78 = vector.extract_strided_slice %70 {offsets = [0, 128], sizes = [16, 128], strides = [1, 1]} : vector<16x512xf32> to vector<16x128xf32>
    %79 = arith.negf %78 : vector<16x128xf32>
    %80 = math.exp %79 : vector<16x128xf32>
    %cst_24 = arith.constant 1.000000e+00 : f32
    %81 = vector.broadcast %cst_24 : f32 to vector<16x128xf32>
    %82 = arith.addf %81, %80 : vector<16x128xf32>
    %83 = arith.divf %81, %82 : vector<16x128xf32>
    %84 = vector.extract_strided_slice %70 {offsets = [0, 256], sizes = [16, 128], strides = [1, 1]} : vector<16x512xf32> to vector<16x128xf32>
    %85 = math.tanh %84 : vector<16x128xf32>
    %86 = vector.extract_strided_slice %70 {offsets = [0, 384], sizes = [16, 128], strides = [1, 1]} : vector<16x512xf32> to vector<16x128xf32>
    %87 = arith.negf %86 : vector<16x128xf32>
    %88 = math.exp %87 : vector<16x128xf32>
    %cst_25 = arith.constant 1.000000e+00 : f32
    %89 = vector.broadcast %cst_25 : f32 to vector<16x128xf32>
    %90 = arith.addf %89, %88 : vector<16x128xf32>
    %91 = arith.divf %89, %90 : vector<16x128xf32>
    %92 = arith.mulf %83, %71 : vector<16x128xf32>
    %93 = arith.mulf %77, %85 : vector<16x128xf32>
    %94 = arith.addf %92, %93 : vector<16x128xf32>
    %95 = math.tanh %94 : vector<16x128xf32>
    %96 = arith.mulf %91, %95 : vector<16x128xf32>
    %c1_i32 = arith.constant 1 : i32
    %97 = arith.subi %c1_i32, %arg1 : i32
    %c4_i32_26 = arith.constant 4 : i32
    %98 = arith.muli %97, %c4_i32_26 : i32
    %99 = arith.addi %98, %4 : i32
    %100 = vector.broadcast %99 : i32 to vector<16x1xi32>
    %101 = arith.cmpi sgt, %0, %100 : vector<16x1xi32>
    %102 = vector.extract_strided_slice %5 {offsets = [0, 128], sizes = [16, 128], strides = [1, 1]} : vector<16x256xf32> to vector<16x128xf32>
    %103 = vector.shape_cast %101 : vector<16x1xi1> to vector<16x1xi1>
    %104 = vector.broadcast %103 : vector<16x1xi1> to vector<16x128xi1>
    %105 = arith.select %104, %96, %102 : vector<16x128xi1>, vector<16x128xf32>
    %c0_27 = arith.constant 0 : index
    %c128 = arith.constant 128 : index
    %106 = vector.load %arg9[%c0_27, %c128] : memref<16x256xf32, #tpu.memory_space<vmem>>, vector<16x128xf32>
    tpu.vector_store %arg9[%c0_27, %c128], %105 {strides = array<i32>} : memref<16x256xf32, #tpu.memory_space<vmem>>, vector<16x128xf32>,
    %107 = vector.extract_strided_slice %6 {offsets = [0, 128], sizes = [16, 128], strides = [1, 1]} : vector<16x256xf32> to vector<16x128xf32>
    %108 = vector.shape_cast %101 : vector<16x1xi1> to vector<16x1xi1>
    %109 = vector.broadcast %108 : vector<16x1xi1> to vector<16x128xi1>
    %110 = arith.select %109, %94, %107 : vector<16x128xi1>, vector<16x128xf32>
    %c0_28 = arith.constant 0 : index
    %c128_29 = arith.constant 128 : index
    %111 = vector.load %arg10[%c0_28, %c128_29] : memref<16x256xf32, #tpu.memory_space<vmem>>, vector<16x128xf32>
    tpu.vector_store %arg10[%c0_28, %c128_29], %110 {strides = array<i32>} : memref<16x256xf32, #tpu.memory_space<vmem>>, vector<16x128xf32>,
    %cst_30 = arith.constant 0.000000e+00 : f32
    %112 = vector.shape_cast %101 : vector<16x1xi1> to vector<16x1xi1>
    %113 = vector.broadcast %112 : vector<16x1xi1> to vector<16x128xi1>
    %114 = vector.broadcast %cst_30 : f32 to vector<16x128xf32>
    %115 = arith.select %113, %96, %114 : vector<16x128xi1>, vector<16x128xf32>
    %116 = arith.truncf %115 : vector<16x128xf32> to vector<16x128xbf16>
    %117 = arith.index_cast %4 : i32 to index
    %c0_31 = arith.constant 0 : index
    %c0_32 = arith.constant 0 : index
    %118 = vector.load %arg7[%117, %c0_31, %c0_32] : memref<4x16x128xbf16, #tpu.memory_space<vmem>>, vector<1x16x128xbf16>
    %119 = vector.shape_cast %118 : vector<1x16x128xbf16> to vector<16x128xbf16>
    %120 = vector.shape_cast %116 : vector<16x128xbf16> to vector<1x16x128xbf16>
    tpu.vector_store %arg7[%117, %c0_31, %c0_32], %120 {strides = array<i32>} : memref<4x16x128xbf16, #tpu.memory_space<vmem>>, vector<1x16x128xbf16>,
    %c1_i32_33 = arith.constant 1 : i32
    %c3_i32_34 = arith.constant 3 : i32
    %121 = arith.subi %c3_i32_34, %c1_i32_33 : i32
    %c0_35 = arith.constant 0 : index
    %c0_36 = arith.constant 0 : index
    %122 = vector.load %arg9[%c0_35, %c0_36] : memref<16x256xf32, #tpu.memory_space<vmem>>, vector<16x256xf32>
    %c0_37 = arith.constant 0 : index
    %c0_38 = arith.constant 0 : index
    %123 = vector.load %arg10[%c0_37, %c0_38] : memref<16x256xf32, #tpu.memory_space<vmem>>, vector<16x256xf32>
    %124 = arith.truncf %122 : vector<16x256xf32> to vector<16x256xbf16>
    %c0_39 = arith.constant 0 : index
    %c0_40 = arith.constant 0 : index
    %125 = vector.load %arg4[%c0_39, %c0_40] : memref<256x1024xbf16, #tpu.memory_space<vmem>>, vector<256x1024xbf16>
    %cst_41 = arith.constant dense<0.000000e+00> : vector<16x1024xf32>
    %126 = tpu.matmul %124, %125, %cst_41 {dimension_numbers = #tpu.dot_dimension_numbers<[1], [0], [0], [1], [0, 0, 1, 1], [], []>} : vector<16x256xbf16>, vector<256x1024xbf16>, vector<16x1024xf32> -> vector<16x1024xf32>
    %127 = vector.extract_strided_slice %126 {offsets = [0, 0], sizes = [16, 512], strides = [1, 1]} : vector<16x1024xf32> to vector<16x512xf32>
    %128 = vector.extract_strided_slice %126 {offsets = [0, 512], sizes = [16, 512], strides = [1, 1]} : vector<16x1024xf32> to vector<16x512xf32>
    %129 = arith.index_cast %c1_i32_33 : i32 to index
    %c0_42 = arith.constant 0 : index
    %c0_43 = arith.constant 0 : index
    %130 = vector.load %arg2[%129, %c0_42, %c0_43] : memref<4x16x512xbf16, #tpu.memory_space<vmem>>, vector<1x16x512xbf16>
    %131 = vector.shape_cast %130 : vector<1x16x512xbf16> to vector<16x512xbf16>
    %132 = arith.extf %131 : vector<16x512xbf16> to vector<16x512xf32>
    %133 = arith.addf %132, %127 : vector<16x512xf32>
    %134 = vector.extract_strided_slice %123 {offsets = [0, 0], sizes = [16, 128], strides = [1, 1]} : vector<16x256xf32> to vector<16x128xf32>
    %135 = vector.extract_strided_slice %133 {offsets = [0, 0], sizes = [16, 128], strides = [1, 1]} : vector<16x512xf32> to vector<16x128xf32>
    %136 = arith.negf %135 : vector<16x128xf32>
    %137 = math.exp %136 : vector<16x128xf32>
    %cst_44 = arith.constant 1.000000e+00 : f32
    %138 = vector.broadcast %cst_44 : f32 to vector<16x128xf32>
    %139 = arith.addf %138, %137 : vector<16x128xf32>
    %140 = arith.divf %138, %139 : vector<16x128xf32>
    %141 = vector.extract_strided_slice %133 {offsets = [0, 128], sizes = [16, 128], strides = [1, 1]} : vector<16x512xf32> to vector<16x128xf32>
    %142 = arith.negf %141 : vector<16x128xf32>
    %143 = math.exp %142 : vector<16x128xf32>
    %cst_45 = arith.constant 1.000000e+00 : f32
    %144 = vector.broadcast %cst_45 : f32 to vector<16x128xf32>
    %145 = arith.addf %144, %143 : vector<16x128xf32>
    %146 = arith.divf %144, %145 : vector<16x128xf32>
    %147 = vector.extract_strided_slice %133 {offsets = [0, 256], sizes = [16, 128], strides = [1, 1]} : vector<16x512xf32> to vector<16x128xf32>
    %148 = math.tanh %147 : vector<16x128xf32>
    %149 = vector.extract_strided_slice %133 {offsets = [0, 384], sizes = [16, 128], strides = [1, 1]} : vector<16x512xf32> to vector<16x128xf32>
    %150 = arith.negf %149 : vector<16x128xf32>
    %151 = math.exp %150 : vector<16x128xf32>
    %cst_46 = arith.constant 1.000000e+00 : f32
    %152 = vector.broadcast %cst_46 : f32 to vector<16x128xf32>
    %153 = arith.addf %152, %151 : vector<16x128xf32>
    %154 = arith.divf %152, %153 : vector<16x128xf32>
    %155 = arith.mulf %146, %134 : vector<16x128xf32>
    %156 = arith.mulf %140, %148 : vector<16x128xf32>
    %157 = arith.addf %155, %156 : vector<16x128xf32>
    %158 = math.tanh %157 : vector<16x128xf32>
    %159 = arith.mulf %154, %158 : vector<16x128xf32>
    %c4_i32_47 = arith.constant 4 : i32
    %160 = arith.muli %arg1, %c4_i32_47 : i32
    %161 = arith.addi %160, %c1_i32_33 : i32
    %162 = vector.broadcast %161 : i32 to vector<16x1xi32>
    %163 = arith.cmpi sgt, %0, %162 : vector<16x1xi32>
    %164 = vector.extract_strided_slice %122 {offsets = [0, 0], sizes = [16, 128], strides = [1, 1]} : vector<16x256xf32> to vector<16x128xf32>
    %165 = vector.shape_cast %163 : vector<16x1xi1> to vector<16x1xi1>
    %166 = vector.broadcast %165 : vector<16x1xi1> to vector<16x128xi1>
    %167 = arith.select %166, %159, %164 : vector<16x128xi1>, vector<16x128xf32>
    %c0_48 = arith.constant 0 : index
    %c0_49 = arith.constant 0 : index
    %168 = vector.load %arg9[%c0_48, %c0_49] : memref<16x256xf32, #tpu.memory_space<vmem>>, vector<16x128xf32>
    tpu.vector_store %arg9[%c0_48, %c0_49], %167 {strides = array<i32>} : memref<16x256xf32, #tpu.memory_space<vmem>>, vector<16x128xf32>,
    %169 = vector.extract_strided_slice %123 {offsets = [0, 0], sizes = [16, 128], strides = [1, 1]} : vector<16x256xf32> to vector<16x128xf32>
    %170 = vector.shape_cast %163 : vector<16x1xi1> to vector<16x1xi1>
    %171 = vector.broadcast %170 : vector<16x1xi1> to vector<16x128xi1>
    %172 = arith.select %171, %157, %169 : vector<16x128xi1>, vector<16x128xf32>
    %c0_50 = arith.constant 0 : index
    %c0_51 = arith.constant 0 : index
    %173 = vector.load %arg10[%c0_50, %c0_51] : memref<16x256xf32, #tpu.memory_space<vmem>>, vector<16x128xf32>
    tpu.vector_store %arg10[%c0_50, %c0_51], %172 {strides = array<i32>} : memref<16x256xf32, #tpu.memory_space<vmem>>, vector<16x128xf32>,
    %cst_52 = arith.constant 0.000000e+00 : f32
    %174 = vector.shape_cast %163 : vector<16x1xi1> to vector<16x1xi1>
    %175 = vector.broadcast %174 : vector<16x1xi1> to vector<16x128xi1>
    %176 = vector.broadcast %cst_52 : f32 to vector<16x128xf32>
    %177 = arith.select %175, %159, %176 : vector<16x128xi1>, vector<16x128xf32>
    %178 = arith.truncf %177 : vector<16x128xf32> to vector<16x128xbf16>
    %179 = arith.index_cast %c1_i32_33 : i32 to index
    %c0_53 = arith.constant 0 : index
    %c0_54 = arith.constant 0 : index
    %180 = vector.load %arg6[%179, %c0_53, %c0_54] : memref<4x16x128xbf16, #tpu.memory_space<vmem>>, vector<1x16x128xbf16>
    %181 = vector.shape_cast %180 : vector<1x16x128xbf16> to vector<16x128xbf16>
    %182 = vector.shape_cast %178 : vector<16x128xbf16> to vector<1x16x128xbf16>
    tpu.vector_store %arg6[%179, %c0_53, %c0_54], %182 {strides = array<i32>} : memref<4x16x128xbf16, #tpu.memory_space<vmem>>, vector<1x16x128xbf16>,
    %183 = arith.index_cast %121 : i32 to index
    %c0_55 = arith.constant 0 : index
    %c0_56 = arith.constant 0 : index
    %184 = vector.load %arg3[%183, %c0_55, %c0_56] : memref<4x16x512xbf16, #tpu.memory_space<vmem>>, vector<1x16x512xbf16>
    %185 = vector.shape_cast %184 : vector<1x16x512xbf16> to vector<16x512xbf16>
    %186 = arith.extf %185 : vector<16x512xbf16> to vector<16x512xf32>
    %187 = arith.addf %186, %128 : vector<16x512xf32>
    %188 = vector.extract_strided_slice %123 {offsets = [0, 128], sizes = [16, 128], strides = [1, 1]} : vector<16x256xf32> to vector<16x128xf32>
    %189 = vector.extract_strided_slice %187 {offsets = [0, 0], sizes = [16, 128], strides = [1, 1]} : vector<16x512xf32> to vector<16x128xf32>
    %190 = arith.negf %189 : vector<16x128xf32>
    %191 = math.exp %190 : vector<16x128xf32>
    %cst_57 = arith.constant 1.000000e+00 : f32
    %192 = vector.broadcast %cst_57 : f32 to vector<16x128xf32>
    %193 = arith.addf %192, %191 : vector<16x128xf32>
    %194 = arith.divf %192, %193 : vector<16x128xf32>
    %195 = vector.extract_strided_slice %187 {offsets = [0, 128], sizes = [16, 128], strides = [1, 1]} : vector<16x512xf32> to vector<16x128xf32>
    %196 = arith.negf %195 : vector<16x128xf32>
    %197 = math.exp %196 : vector<16x128xf32>
    %cst_58 = arith.constant 1.000000e+00 : f32
    %198 = vector.broadcast %cst_58 : f32 to vector<16x128xf32>
    %199 = arith.addf %198, %197 : vector<16x128xf32>
    %200 = arith.divf %198, %199 : vector<16x128xf32>
    %201 = vector.extract_strided_slice %187 {offsets = [0, 256], sizes = [16, 128], strides = [1, 1]} : vector<16x512xf32> to vector<16x128xf32>
    %202 = math.tanh %201 : vector<16x128xf32>
    %203 = vector.extract_strided_slice %187 {offsets = [0, 384], sizes = [16, 128], strides = [1, 1]} : vector<16x512xf32> to vector<16x128xf32>
    %204 = arith.negf %203 : vector<16x128xf32>
    %205 = math.exp %204 : vector<16x128xf32>
    %cst_59 = arith.constant 1.000000e+00 : f32
    %206 = vector.broadcast %cst_59 : f32 to vector<16x128xf32>
    %207 = arith.addf %206, %205 : vector<16x128xf32>
    %208 = arith.divf %206, %207 : vector<16x128xf32>
    %209 = arith.mulf %200, %188 : vector<16x128xf32>
    %210 = arith.mulf %194, %202 : vector<16x128xf32>
    %211 = arith.addf %209, %210 : vector<16x128xf32>
    %212 = math.tanh %211 : vector<16x128xf32>
    %213 = arith.mulf %208, %212 : vector<16x128xf32>
    %c1_i32_60 = arith.constant 1 : i32
    %214 = arith.subi %c1_i32_60, %arg1 : i32
    %c4_i32_61 = arith.constant 4 : i32
    %215 = arith.muli %214, %c4_i32_61 : i32
    %216 = arith.addi %215, %121 : i32
    %217 = vector.broadcast %216 : i32 to vector<16x1xi32>
    %218 = arith.cmpi sgt, %0, %217 : vector<16x1xi32>
    %219 = vector.extract_strided_slice %122 {offsets = [0, 128], sizes = [16, 128], strides = [1, 1]} : vector<16x256xf32> to vector<16x128xf32>
    %220 = vector.shape_cast %218 : vector<16x1xi1> to vector<16x1xi1>
    %221 = vector.broadcast %220 : vector<16x1xi1> to vector<16x128xi1>
    %222 = arith.select %221, %213, %219 : vector<16x128xi1>, vector<16x128xf32>
    %c0_62 = arith.constant 0 : index
    %c128_63 = arith.constant 128 : index
    %223 = vector.load %arg9[%c0_62, %c128_63] : memref<16x256xf32, #tpu.memory_space<vmem>>, vector<16x128xf32>
    tpu.vector_store %arg9[%c0_62, %c128_63], %222 {strides = array<i32>} : memref<16x256xf32, #tpu.memory_space<vmem>>, vector<16x128xf32>,
    %224 = vector.extract_strided_slice %123 {offsets = [0, 128], sizes = [16, 128], strides = [1, 1]} : vector<16x256xf32> to vector<16x128xf32>
    %225 = vector.shape_cast %218 : vector<16x1xi1> to vector<16x1xi1>
    %226 = vector.broadcast %225 : vector<16x1xi1> to vector<16x128xi1>
    %227 = arith.select %226, %211, %224 : vector<16x128xi1>, vector<16x128xf32>
    %c0_64 = arith.constant 0 : index
    %c128_65 = arith.constant 128 : index
    %228 = vector.load %arg10[%c0_64, %c128_65] : memref<16x256xf32, #tpu.memory_space<vmem>>, vector<16x128xf32>
    tpu.vector_store %arg10[%c0_64, %c128_65], %227 {strides = array<i32>} : memref<16x256xf32, #tpu.memory_space<vmem>>, vector<16x128xf32>,
    %cst_66 = arith.constant 0.000000e+00 : f32
    %229 = vector.shape_cast %218 : vector<16x1xi1> to vector<16x1xi1>
    %230 = vector.broadcast %229 : vector<16x1xi1> to vector<16x128xi1>
    %231 = vector.broadcast %cst_66 : f32 to vector<16x128xf32>
    %232 = arith.select %230, %213, %231 : vector<16x128xi1>, vector<16x128xf32>
    %233 = arith.truncf %232 : vector<16x128xf32> to vector<16x128xbf16>
    %234 = arith.index_cast %121 : i32 to index
    %c0_67 = arith.constant 0 : index
    %c0_68 = arith.constant 0 : index
    %235 = vector.load %arg7[%234, %c0_67, %c0_68] : memref<4x16x128xbf16, #tpu.memory_space<vmem>>, vector<1x16x128xbf16>
    %236 = vector.shape_cast %235 : vector<1x16x128xbf16> to vector<16x128xbf16>
    %237 = vector.shape_cast %233 : vector<16x128xbf16> to vector<1x16x128xbf16>
    tpu.vector_store %arg7[%234, %c0_67, %c0_68], %237 {strides = array<i32>} : memref<4x16x128xbf16, #tpu.memory_space<vmem>>, vector<1x16x128xbf16>,
    %c2_i32 = arith.constant 2 : i32
    %c3_i32_69 = arith.constant 3 : i32
    %238 = arith.subi %c3_i32_69, %c2_i32 : i32
    %c0_70 = arith.constant 0 : index
    %c0_71 = arith.constant 0 : index
    %239 = vector.load %arg9[%c0_70, %c0_71] : memref<16x256xf32, #tpu.memory_space<vmem>>, vector<16x256xf32>
    %c0_72 = arith.constant 0 : index
    %c0_73 = arith.constant 0 : index
    %240 = vector.load %arg10[%c0_72, %c0_73] : memref<16x256xf32, #tpu.memory_space<vmem>>, vector<16x256xf32>
    %241 = arith.truncf %239 : vector<16x256xf32> to vector<16x256xbf16>
    %c0_74 = arith.constant 0 : index
    %c0_75 = arith.constant 0 : index
    %242 = vector.load %arg4[%c0_74, %c0_75] : memref<256x1024xbf16, #tpu.memory_space<vmem>>, vector<256x1024xbf16>
    %cst_76 = arith.constant dense<0.000000e+00> : vector<16x1024xf32>
    %243 = tpu.matmul %241, %242, %cst_76 {dimension_numbers = #tpu.dot_dimension_numbers<[1], [0], [0], [1], [0, 0, 1, 1], [], []>} : vector<16x256xbf16>, vector<256x1024xbf16>, vector<16x1024xf32> -> vector<16x1024xf32>
    %244 = vector.extract_strided_slice %243 {offsets = [0, 0], sizes = [16, 512], strides = [1, 1]} : vector<16x1024xf32> to vector<16x512xf32>
    %245 = vector.extract_strided_slice %243 {offsets = [0, 512], sizes = [16, 512], strides = [1, 1]} : vector<16x1024xf32> to vector<16x512xf32>
    %246 = arith.index_cast %c2_i32 : i32 to index
    %c0_77 = arith.constant 0 : index
    %c0_78 = arith.constant 0 : index
    %247 = vector.load %arg2[%246, %c0_77, %c0_78] : memref<4x16x512xbf16, #tpu.memory_space<vmem>>, vector<1x16x512xbf16>
    %248 = vector.shape_cast %247 : vector<1x16x512xbf16> to vector<16x512xbf16>
    %249 = arith.extf %248 : vector<16x512xbf16> to vector<16x512xf32>
    %250 = arith.addf %249, %244 : vector<16x512xf32>
    %251 = vector.extract_strided_slice %240 {offsets = [0, 0], sizes = [16, 128], strides = [1, 1]} : vector<16x256xf32> to vector<16x128xf32>
    %252 = vector.extract_strided_slice %250 {offsets = [0, 0], sizes = [16, 128], strides = [1, 1]} : vector<16x512xf32> to vector<16x128xf32>
    %253 = arith.negf %252 : vector<16x128xf32>
    %254 = math.exp %253 : vector<16x128xf32>
    %cst_79 = arith.constant 1.000000e+00 : f32
    %255 = vector.broadcast %cst_79 : f32 to vector<16x128xf32>
    %256 = arith.addf %255, %254 : vector<16x128xf32>
    %257 = arith.divf %255, %256 : vector<16x128xf32>
    %258 = vector.extract_strided_slice %250 {offsets = [0, 128], sizes = [16, 128], strides = [1, 1]} : vector<16x512xf32> to vector<16x128xf32>
    %259 = arith.negf %258 : vector<16x128xf32>
    %260 = math.exp %259 : vector<16x128xf32>
    %cst_80 = arith.constant 1.000000e+00 : f32
    %261 = vector.broadcast %cst_80 : f32 to vector<16x128xf32>
    %262 = arith.addf %261, %260 : vector<16x128xf32>
    %263 = arith.divf %261, %262 : vector<16x128xf32>
    %264 = vector.extract_strided_slice %250 {offsets = [0, 256], sizes = [16, 128], strides = [1, 1]} : vector<16x512xf32> to vector<16x128xf32>
    %265 = math.tanh %264 : vector<16x128xf32>
    %266 = vector.extract_strided_slice %250 {offsets = [0, 384], sizes = [16, 128], strides = [1, 1]} : vector<16x512xf32> to vector<16x128xf32>
    %267 = arith.negf %266 : vector<16x128xf32>
    %268 = math.exp %267 : vector<16x128xf32>
    %cst_81 = arith.constant 1.000000e+00 : f32
    %269 = vector.broadcast %cst_81 : f32 to vector<16x128xf32>
    %270 = arith.addf %269, %268 : vector<16x128xf32>
    %271 = arith.divf %269, %270 : vector<16x128xf32>
    %272 = arith.mulf %263, %251 : vector<16x128xf32>
    %273 = arith.mulf %257, %265 : vector<16x128xf32>
    %274 = arith.addf %272, %273 : vector<16x128xf32>
    %275 = math.tanh %274 : vector<16x128xf32>
    %276 = arith.mulf %271, %275 : vector<16x128xf32>
    %c4_i32_82 = arith.constant 4 : i32
    %277 = arith.muli %arg1, %c4_i32_82 : i32
    %278 = arith.addi %277, %c2_i32 : i32
    %279 = vector.broadcast %278 : i32 to vector<16x1xi32>
    %280 = arith.cmpi sgt, %0, %279 : vector<16x1xi32>
    %281 = vector.extract_strided_slice %239 {offsets = [0, 0], sizes = [16, 128], strides = [1, 1]} : vector<16x256xf32> to vector<16x128xf32>
    %282 = vector.shape_cast %280 : vector<16x1xi1> to vector<16x1xi1>
    %283 = vector.broadcast %282 : vector<16x1xi1> to vector<16x128xi1>
    %284 = arith.select %283, %276, %281 : vector<16x128xi1>, vector<16x128xf32>
    %c0_83 = arith.constant 0 : index
    %c0_84 = arith.constant 0 : index
    %285 = vector.load %arg9[%c0_83, %c0_84] : memref<16x256xf32, #tpu.memory_space<vmem>>, vector<16x128xf32>
    tpu.vector_store %arg9[%c0_83, %c0_84], %284 {strides = array<i32>} : memref<16x256xf32, #tpu.memory_space<vmem>>, vector<16x128xf32>,
    %286 = vector.extract_strided_slice %240 {offsets = [0, 0], sizes = [16, 128], strides = [1, 1]} : vector<16x256xf32> to vector<16x128xf32>
    %287 = vector.shape_cast %280 : vector<16x1xi1> to vector<16x1xi1>
    %288 = vector.broadcast %287 : vector<16x1xi1> to vector<16x128xi1>
    %289 = arith.select %288, %274, %286 : vector<16x128xi1>, vector<16x128xf32>
    %c0_85 = arith.constant 0 : index
    %c0_86 = arith.constant 0 : index
    %290 = vector.load %arg10[%c0_85, %c0_86] : memref<16x256xf32, #tpu.memory_space<vmem>>, vector<16x128xf32>
    tpu.vector_store %arg10[%c0_85, %c0_86], %289 {strides = array<i32>} : memref<16x256xf32, #tpu.memory_space<vmem>>, vector<16x128xf32>,
    %cst_87 = arith.constant 0.000000e+00 : f32
    %291 = vector.shape_cast %280 : vector<16x1xi1> to vector<16x1xi1>
    %292 = vector.broadcast %291 : vector<16x1xi1> to vector<16x128xi1>
    %293 = vector.broadcast %cst_87 : f32 to vector<16x128xf32>
    %294 = arith.select %292, %276, %293 : vector<16x128xi1>, vector<16x128xf32>
    %295 = arith.truncf %294 : vector<16x128xf32> to vector<16x128xbf16>
    %296 = arith.index_cast %c2_i32 : i32 to index
    %c0_88 = arith.constant 0 : index
    %c0_89 = arith.constant 0 : index
    %297 = vector.load %arg6[%296, %c0_88, %c0_89] : memref<4x16x128xbf16, #tpu.memory_space<vmem>>, vector<1x16x128xbf16>
    %298 = vector.shape_cast %297 : vector<1x16x128xbf16> to vector<16x128xbf16>
    %299 = vector.shape_cast %295 : vector<16x128xbf16> to vector<1x16x128xbf16>
    tpu.vector_store %arg6[%296, %c0_88, %c0_89], %299 {strides = array<i32>} : memref<4x16x128xbf16, #tpu.memory_space<vmem>>, vector<1x16x128xbf16>,
    %300 = arith.index_cast %238 : i32 to index
    %c0_90 = arith.constant 0 : index
    %c0_91 = arith.constant 0 : index
    %301 = vector.load %arg3[%300, %c0_90, %c0_91] : memref<4x16x512xbf16, #tpu.memory_space<vmem>>, vector<1x16x512xbf16>
    %302 = vector.shape_cast %301 : vector<1x16x512xbf16> to vector<16x512xbf16>
    %303 = arith.extf %302 : vector<16x512xbf16> to vector<16x512xf32>
    %304 = arith.addf %303, %245 : vector<16x512xf32>
    %305 = vector.extract_strided_slice %240 {offsets = [0, 128], sizes = [16, 128], strides = [1, 1]} : vector<16x256xf32> to vector<16x128xf32>
    %306 = vector.extract_strided_slice %304 {offsets = [0, 0], sizes = [16, 128], strides = [1, 1]} : vector<16x512xf32> to vector<16x128xf32>
    %307 = arith.negf %306 : vector<16x128xf32>
    %308 = math.exp %307 : vector<16x128xf32>
    %cst_92 = arith.constant 1.000000e+00 : f32
    %309 = vector.broadcast %cst_92 : f32 to vector<16x128xf32>
    %310 = arith.addf %309, %308 : vector<16x128xf32>
    %311 = arith.divf %309, %310 : vector<16x128xf32>
    %312 = vector.extract_strided_slice %304 {offsets = [0, 128], sizes = [16, 128], strides = [1, 1]} : vector<16x512xf32> to vector<16x128xf32>
    %313 = arith.negf %312 : vector<16x128xf32>
    %314 = math.exp %313 : vector<16x128xf32>
    %cst_93 = arith.constant 1.000000e+00 : f32
    %315 = vector.broadcast %cst_93 : f32 to vector<16x128xf32>
    %316 = arith.addf %315, %314 : vector<16x128xf32>
    %317 = arith.divf %315, %316 : vector<16x128xf32>
    %318 = vector.extract_strided_slice %304 {offsets = [0, 256], sizes = [16, 128], strides = [1, 1]} : vector<16x512xf32> to vector<16x128xf32>
    %319 = math.tanh %318 : vector<16x128xf32>
    %320 = vector.extract_strided_slice %304 {offsets = [0, 384], sizes = [16, 128], strides = [1, 1]} : vector<16x512xf32> to vector<16x128xf32>
    %321 = arith.negf %320 : vector<16x128xf32>
    %322 = math.exp %321 : vector<16x128xf32>
    %cst_94 = arith.constant 1.000000e+00 : f32
    %323 = vector.broadcast %cst_94 : f32 to vector<16x128xf32>
    %324 = arith.addf %323, %322 : vector<16x128xf32>
    %325 = arith.divf %323, %324 : vector<16x128xf32>
    %326 = arith.mulf %317, %305 : vector<16x128xf32>
    %327 = arith.mulf %311, %319 : vector<16x128xf32>
    %328 = arith.addf %326, %327 : vector<16x128xf32>
    %329 = math.tanh %328 : vector<16x128xf32>
    %330 = arith.mulf %325, %329 : vector<16x128xf32>
    %c1_i32_95 = arith.constant 1 : i32
    %331 = arith.subi %c1_i32_95, %arg1 : i32
    %c4_i32_96 = arith.constant 4 : i32
    %332 = arith.muli %331, %c4_i32_96 : i32
    %333 = arith.addi %332, %238 : i32
    %334 = vector.broadcast %333 : i32 to vector<16x1xi32>
    %335 = arith.cmpi sgt, %0, %334 : vector<16x1xi32>
    %336 = vector.extract_strided_slice %239 {offsets = [0, 128], sizes = [16, 128], strides = [1, 1]} : vector<16x256xf32> to vector<16x128xf32>
    %337 = vector.shape_cast %335 : vector<16x1xi1> to vector<16x1xi1>
    %338 = vector.broadcast %337 : vector<16x1xi1> to vector<16x128xi1>
    %339 = arith.select %338, %330, %336 : vector<16x128xi1>, vector<16x128xf32>
    %c0_97 = arith.constant 0 : index
    %c128_98 = arith.constant 128 : index
    %340 = vector.load %arg9[%c0_97, %c128_98] : memref<16x256xf32, #tpu.memory_space<vmem>>, vector<16x128xf32>
    tpu.vector_store %arg9[%c0_97, %c128_98], %339 {strides = array<i32>} : memref<16x256xf32, #tpu.memory_space<vmem>>, vector<16x128xf32>,
    %341 = vector.extract_strided_slice %240 {offsets = [0, 128], sizes = [16, 128], strides = [1, 1]} : vector<16x256xf32> to vector<16x128xf32>
    %342 = vector.shape_cast %335 : vector<16x1xi1> to vector<16x1xi1>
    %343 = vector.broadcast %342 : vector<16x1xi1> to vector<16x128xi1>
    %344 = arith.select %343, %328, %341 : vector<16x128xi1>, vector<16x128xf32>
    %c0_99 = arith.constant 0 : index
    %c128_100 = arith.constant 128 : index
    %345 = vector.load %arg10[%c0_99, %c128_100] : memref<16x256xf32, #tpu.memory_space<vmem>>, vector<16x128xf32>
    tpu.vector_store %arg10[%c0_99, %c128_100], %344 {strides = array<i32>} : memref<16x256xf32, #tpu.memory_space<vmem>>, vector<16x128xf32>,
    %cst_101 = arith.constant 0.000000e+00 : f32
    %346 = vector.shape_cast %335 : vector<16x1xi1> to vector<16x1xi1>
    %347 = vector.broadcast %346 : vector<16x1xi1> to vector<16x128xi1>
    %348 = vector.broadcast %cst_101 : f32 to vector<16x128xf32>
    %349 = arith.select %347, %330, %348 : vector<16x128xi1>, vector<16x128xf32>
    %350 = arith.truncf %349 : vector<16x128xf32> to vector<16x128xbf16>
    %351 = arith.index_cast %238 : i32 to index
    %c0_102 = arith.constant 0 : index
    %c0_103 = arith.constant 0 : index
    %352 = vector.load %arg7[%351, %c0_102, %c0_103] : memref<4x16x128xbf16, #tpu.memory_space<vmem>>, vector<1x16x128xbf16>
    %353 = vector.shape_cast %352 : vector<1x16x128xbf16> to vector<16x128xbf16>
    %354 = vector.shape_cast %350 : vector<16x128xbf16> to vector<1x16x128xbf16>
    tpu.vector_store %arg7[%351, %c0_102, %c0_103], %354 {strides = array<i32>} : memref<4x16x128xbf16, #tpu.memory_space<vmem>>, vector<1x16x128xbf16>,
    %c3_i32_104 = arith.constant 3 : i32
    %c3_i32_105 = arith.constant 3 : i32
    %355 = arith.subi %c3_i32_105, %c3_i32_104 : i32
    %c0_106 = arith.constant 0 : index
    %c0_107 = arith.constant 0 : index
    %356 = vector.load %arg9[%c0_106, %c0_107] : memref<16x256xf32, #tpu.memory_space<vmem>>, vector<16x256xf32>
    %c0_108 = arith.constant 0 : index
    %c0_109 = arith.constant 0 : index
    %357 = vector.load %arg10[%c0_108, %c0_109] : memref<16x256xf32, #tpu.memory_space<vmem>>, vector<16x256xf32>
    %358 = arith.truncf %356 : vector<16x256xf32> to vector<16x256xbf16>
    %c0_110 = arith.constant 0 : index
    %c0_111 = arith.constant 0 : index
    %359 = vector.load %arg4[%c0_110, %c0_111] : memref<256x1024xbf16, #tpu.memory_space<vmem>>, vector<256x1024xbf16>
    %cst_112 = arith.constant dense<0.000000e+00> : vector<16x1024xf32>
    %360 = tpu.matmul %358, %359, %cst_112 {dimension_numbers = #tpu.dot_dimension_numbers<[1], [0], [0], [1], [0, 0, 1, 1], [], []>} : vector<16x256xbf16>, vector<256x1024xbf16>, vector<16x1024xf32> -> vector<16x1024xf32>
    %361 = vector.extract_strided_slice %360 {offsets = [0, 0], sizes = [16, 512], strides = [1, 1]} : vector<16x1024xf32> to vector<16x512xf32>
    %362 = vector.extract_strided_slice %360 {offsets = [0, 512], sizes = [16, 512], strides = [1, 1]} : vector<16x1024xf32> to vector<16x512xf32>
    %363 = arith.index_cast %c3_i32_104 : i32 to index
    %c0_113 = arith.constant 0 : index
    %c0_114 = arith.constant 0 : index
    %364 = vector.load %arg2[%363, %c0_113, %c0_114] : memref<4x16x512xbf16, #tpu.memory_space<vmem>>, vector<1x16x512xbf16>
    %365 = vector.shape_cast %364 : vector<1x16x512xbf16> to vector<16x512xbf16>
    %366 = arith.extf %365 : vector<16x512xbf16> to vector<16x512xf32>
    %367 = arith.addf %366, %361 : vector<16x512xf32>
    %368 = vector.extract_strided_slice %357 {offsets = [0, 0], sizes = [16, 128], strides = [1, 1]} : vector<16x256xf32> to vector<16x128xf32>
    %369 = vector.extract_strided_slice %367 {offsets = [0, 0], sizes = [16, 128], strides = [1, 1]} : vector<16x512xf32> to vector<16x128xf32>
    %370 = arith.negf %369 : vector<16x128xf32>
    %371 = math.exp %370 : vector<16x128xf32>
    %cst_115 = arith.constant 1.000000e+00 : f32
    %372 = vector.broadcast %cst_115 : f32 to vector<16x128xf32>
    %373 = arith.addf %372, %371 : vector<16x128xf32>
    %374 = arith.divf %372, %373 : vector<16x128xf32>
    %375 = vector.extract_strided_slice %367 {offsets = [0, 128], sizes = [16, 128], strides = [1, 1]} : vector<16x512xf32> to vector<16x128xf32>
    %376 = arith.negf %375 : vector<16x128xf32>
    %377 = math.exp %376 : vector<16x128xf32>
    %cst_116 = arith.constant 1.000000e+00 : f32
    %378 = vector.broadcast %cst_116 : f32 to vector<16x128xf32>
    %379 = arith.addf %378, %377 : vector<16x128xf32>
    %380 = arith.divf %378, %379 : vector<16x128xf32>
    %381 = vector.extract_strided_slice %367 {offsets = [0, 256], sizes = [16, 128], strides = [1, 1]} : vector<16x512xf32> to vector<16x128xf32>
    %382 = math.tanh %381 : vector<16x128xf32>
    %383 = vector.extract_strided_slice %367 {offsets = [0, 384], sizes = [16, 128], strides = [1, 1]} : vector<16x512xf32> to vector<16x128xf32>
    %384 = arith.negf %383 : vector<16x128xf32>
    %385 = math.exp %384 : vector<16x128xf32>
    %cst_117 = arith.constant 1.000000e+00 : f32
    %386 = vector.broadcast %cst_117 : f32 to vector<16x128xf32>
    %387 = arith.addf %386, %385 : vector<16x128xf32>
    %388 = arith.divf %386, %387 : vector<16x128xf32>
    %389 = arith.mulf %380, %368 : vector<16x128xf32>
    %390 = arith.mulf %374, %382 : vector<16x128xf32>
    %391 = arith.addf %389, %390 : vector<16x128xf32>
    %392 = math.tanh %391 : vector<16x128xf32>
    %393 = arith.mulf %388, %392 : vector<16x128xf32>
    %c4_i32_118 = arith.constant 4 : i32
    %394 = arith.muli %arg1, %c4_i32_118 : i32
    %395 = arith.addi %394, %c3_i32_104 : i32
    %396 = vector.broadcast %395 : i32 to vector<16x1xi32>
    %397 = arith.cmpi sgt, %0, %396 : vector<16x1xi32>
    %398 = vector.extract_strided_slice %356 {offsets = [0, 0], sizes = [16, 128], strides = [1, 1]} : vector<16x256xf32> to vector<16x128xf32>
    %399 = vector.shape_cast %397 : vector<16x1xi1> to vector<16x1xi1>
    %400 = vector.broadcast %399 : vector<16x1xi1> to vector<16x128xi1>
    %401 = arith.select %400, %393, %398 : vector<16x128xi1>, vector<16x128xf32>
    %c0_119 = arith.constant 0 : index
    %c0_120 = arith.constant 0 : index
    %402 = vector.load %arg9[%c0_119, %c0_120] : memref<16x256xf32, #tpu.memory_space<vmem>>, vector<16x128xf32>
    tpu.vector_store %arg9[%c0_119, %c0_120], %401 {strides = array<i32>} : memref<16x256xf32, #tpu.memory_space<vmem>>, vector<16x128xf32>,
    %403 = vector.extract_strided_slice %357 {offsets = [0, 0], sizes = [16, 128], strides = [1, 1]} : vector<16x256xf32> to vector<16x128xf32>
    %404 = vector.shape_cast %397 : vector<16x1xi1> to vector<16x1xi1>
    %405 = vector.broadcast %404 : vector<16x1xi1> to vector<16x128xi1>
    %406 = arith.select %405, %391, %403 : vector<16x128xi1>, vector<16x128xf32>
    %c0_121 = arith.constant 0 : index
    %c0_122 = arith.constant 0 : index
    %407 = vector.load %arg10[%c0_121, %c0_122] : memref<16x256xf32, #tpu.memory_space<vmem>>, vector<16x128xf32>
    tpu.vector_store %arg10[%c0_121, %c0_122], %406 {strides = array<i32>} : memref<16x256xf32, #tpu.memory_space<vmem>>, vector<16x128xf32>,
    %cst_123 = arith.constant 0.000000e+00 : f32
    %408 = vector.shape_cast %397 : vector<16x1xi1> to vector<16x1xi1>
    %409 = vector.broadcast %408 : vector<16x1xi1> to vector<16x128xi1>
    %410 = vector.broadcast %cst_123 : f32 to vector<16x128xf32>
    %411 = arith.select %409, %393, %410 : vector<16x128xi1>, vector<16x128xf32>
    %412 = arith.truncf %411 : vector<16x128xf32> to vector<16x128xbf16>
    %413 = arith.index_cast %c3_i32_104 : i32 to index
    %c0_124 = arith.constant 0 : index
    %c0_125 = arith.constant 0 : index
    %414 = vector.load %arg6[%413, %c0_124, %c0_125] : memref<4x16x128xbf16, #tpu.memory_space<vmem>>, vector<1x16x128xbf16>
    %415 = vector.shape_cast %414 : vector<1x16x128xbf16> to vector<16x128xbf16>
    %416 = vector.shape_cast %412 : vector<16x128xbf16> to vector<1x16x128xbf16>
    tpu.vector_store %arg6[%413, %c0_124, %c0_125], %416 {strides = array<i32>} : memref<4x16x128xbf16, #tpu.memory_space<vmem>>, vector<1x16x128xbf16>,
    %417 = arith.index_cast %355 : i32 to index
    %c0_126 = arith.constant 0 : index
    %c0_127 = arith.constant 0 : index
    %418 = vector.load %arg3[%417, %c0_126, %c0_127] : memref<4x16x512xbf16, #tpu.memory_space<vmem>>, vector<1x16x512xbf16>
    %419 = vector.shape_cast %418 : vector<1x16x512xbf16> to vector<16x512xbf16>
    %420 = arith.extf %419 : vector<16x512xbf16> to vector<16x512xf32>
    %421 = arith.addf %420, %362 : vector<16x512xf32>
    %422 = vector.extract_strided_slice %357 {offsets = [0, 128], sizes = [16, 128], strides = [1, 1]} : vector<16x256xf32> to vector<16x128xf32>
    %423 = vector.extract_strided_slice %421 {offsets = [0, 0], sizes = [16, 128], strides = [1, 1]} : vector<16x512xf32> to vector<16x128xf32>
    %424 = arith.negf %423 : vector<16x128xf32>
    %425 = math.exp %424 : vector<16x128xf32>
    %cst_128 = arith.constant 1.000000e+00 : f32
    %426 = vector.broadcast %cst_128 : f32 to vector<16x128xf32>
    %427 = arith.addf %426, %425 : vector<16x128xf32>
    %428 = arith.divf %426, %427 : vector<16x128xf32>
    %429 = vector.extract_strided_slice %421 {offsets = [0, 128], sizes = [16, 128], strides = [1, 1]} : vector<16x512xf32> to vector<16x128xf32>
    %430 = arith.negf %429 : vector<16x128xf32>
    %431 = math.exp %430 : vector<16x128xf32>
    %cst_129 = arith.constant 1.000000e+00 : f32
    %432 = vector.broadcast %cst_129 : f32 to vector<16x128xf32>
    %433 = arith.addf %432, %431 : vector<16x128xf32>
    %434 = arith.divf %432, %433 : vector<16x128xf32>
    %435 = vector.extract_strided_slice %421 {offsets = [0, 256], sizes = [16, 128], strides = [1, 1]} : vector<16x512xf32> to vector<16x128xf32>
    %436 = math.tanh %435 : vector<16x128xf32>
    %437 = vector.extract_strided_slice %421 {offsets = [0, 384], sizes = [16, 128], strides = [1, 1]} : vector<16x512xf32> to vector<16x128xf32>
    %438 = arith.negf %437 : vector<16x128xf32>
    %439 = math.exp %438 : vector<16x128xf32>
    %cst_130 = arith.constant 1.000000e+00 : f32
    %440 = vector.broadcast %cst_130 : f32 to vector<16x128xf32>
    %441 = arith.addf %440, %439 : vector<16x128xf32>
    %442 = arith.divf %440, %441 : vector<16x128xf32>
    %443 = arith.mulf %434, %422 : vector<16x128xf32>
    %444 = arith.mulf %428, %436 : vector<16x128xf32>
    %445 = arith.addf %443, %444 : vector<16x128xf32>
    %446 = math.tanh %445 : vector<16x128xf32>
    %447 = arith.mulf %442, %446 : vector<16x128xf32>
    %c1_i32_131 = arith.constant 1 : i32
    %448 = arith.subi %c1_i32_131, %arg1 : i32
    %c4_i32_132 = arith.constant 4 : i32
    %449 = arith.muli %448, %c4_i32_132 : i32
    %450 = arith.addi %449, %355 : i32
    %451 = vector.broadcast %450 : i32 to vector<16x1xi32>
    %452 = arith.cmpi sgt, %0, %451 : vector<16x1xi32>
    %453 = vector.extract_strided_slice %356 {offsets = [0, 128], sizes = [16, 128], strides = [1, 1]} : vector<16x256xf32> to vector<16x128xf32>
    %454 = vector.shape_cast %452 : vector<16x1xi1> to vector<16x1xi1>
    %455 = vector.broadcast %454 : vector<16x1xi1> to vector<16x128xi1>
    %456 = arith.select %455, %447, %453 : vector<16x128xi1>, vector<16x128xf32>
    %c0_133 = arith.constant 0 : index
    %c128_134 = arith.constant 128 : index
    %457 = vector.load %arg9[%c0_133, %c128_134] : memref<16x256xf32, #tpu.memory_space<vmem>>, vector<16x128xf32>
    tpu.vector_store %arg9[%c0_133, %c128_134], %456 {strides = array<i32>} : memref<16x256xf32, #tpu.memory_space<vmem>>, vector<16x128xf32>,
    %458 = vector.extract_strided_slice %357 {offsets = [0, 128], sizes = [16, 128], strides = [1, 1]} : vector<16x256xf32> to vector<16x128xf32>
    %459 = vector.shape_cast %452 : vector<16x1xi1> to vector<16x1xi1>
    %460 = vector.broadcast %459 : vector<16x1xi1> to vector<16x128xi1>
    %461 = arith.select %460, %445, %458 : vector<16x128xi1>, vector<16x128xf32>
    %c0_135 = arith.constant 0 : index
    %c128_136 = arith.constant 128 : index
    %462 = vector.load %arg10[%c0_135, %c128_136] : memref<16x256xf32, #tpu.memory_space<vmem>>, vector<16x128xf32>
    tpu.vector_store %arg10[%c0_135, %c128_136], %461 {strides = array<i32>} : memref<16x256xf32, #tpu.memory_space<vmem>>, vector<16x128xf32>,
    %cst_137 = arith.constant 0.000000e+00 : f32
    %463 = vector.shape_cast %452 : vector<16x1xi1> to vector<16x1xi1>
    %464 = vector.broadcast %463 : vector<16x1xi1> to vector<16x128xi1>
    %465 = vector.broadcast %cst_137 : f32 to vector<16x128xf32>
    %466 = arith.select %464, %447, %465 : vector<16x128xi1>, vector<16x128xf32>
    %467 = arith.truncf %466 : vector<16x128xf32> to vector<16x128xbf16>
    %468 = arith.index_cast %355 : i32 to index
    %c0_138 = arith.constant 0 : index
    %c0_139 = arith.constant 0 : index
    %469 = vector.load %arg7[%468, %c0_138, %c0_139] : memref<4x16x128xbf16, #tpu.memory_space<vmem>>, vector<1x16x128xbf16>
    %470 = vector.shape_cast %469 : vector<1x16x128xbf16> to vector<16x128xbf16>
    %471 = vector.shape_cast %467 : vector<16x128xbf16> to vector<1x16x128xbf16>
    tpu.vector_store %arg7[%468, %c0_138, %c0_139], %471 {strides = array<i32>} : memref<4x16x128xbf16, #tpu.memory_space<vmem>>, vector<1x16x128xbf16>,
    %c4_i32_140 = arith.constant 4 : i32
    %c1_i32_141 = arith.constant 1 : i32
    %472 = arith.cmpi eq, %arg1, %c1_i32_141 : i32
    %473 = arith.extui %472 : i1 to i32
    %c0_i32_142 = arith.constant 0 : i32
    %474 = arith.cmpi ne, %473, %c0_i32_142 : i32
    scf.if %474 {
      %c0_143 = arith.constant 0 : index
      %c0_144 = arith.constant 0 : index
      %475 = vector.load %arg9[%c0_143, %c0_144] : memref<16x256xf32, #tpu.memory_space<vmem>>, vector<16x256xf32>
      %c0_145 = arith.constant 0 : index
      %c0_146 = arith.constant 0 : index
      %476 = vector.load %arg8[%c0_145, %c0_146] : memref<16x256xf32, #tpu.memory_space<vmem>>, vector<16x256xf32>
      tpu.vector_store %arg8[%c0_145, %c0_146], %475 {strides = array<i32>} : memref<16x256xf32, #tpu.memory_space<vmem>>, vector<16x256xf32>,
    } else {
    }
    return
  }
  func.func @transform_0(%arg0: i32, %arg1: i32) -> (i32, i32, i32) {
    %c0_i32 = arith.constant 0 : i32
    %c0_i32_0 = arith.constant 0 : i32
    return %arg1, %arg0, %c0_i32 : i32, i32, i32
  }
  func.func @transform_1(%arg0: i32, %arg1: i32) -> (i32, i32, i32) {
    %c1_i32 = arith.constant 1 : i32
    %0 = arith.subi %c1_i32, %arg1 : i32
    %c1_i32_0 = arith.constant 1 : i32
    %c0_i32 = arith.constant 0 : i32
    return %0, %arg0, %c1_i32_0 : i32, i32, i32
  }
  func.func @transform_2(%arg0: i32, %arg1: i32) -> (i32, i32) {
    %c0_i32 = arith.constant 0 : i32
    %c0_i32_0 = arith.constant 0 : i32
    %c0_i32_1 = arith.constant 0 : i32
    return %c0_i32, %c0_i32_0 : i32, i32
  }
  func.func @transform_3(%arg0: i32, %arg1: i32) -> (i32, i32) {
    %c0_i32 = arith.constant 0 : i32
    %c0_i32_0 = arith.constant 0 : i32
    return %arg0, %c0_i32 : i32, i32
  }
  func.func @transform_4(%arg0: i32, %arg1: i32) -> (i32, i32, i32) {
    %c0_i32 = arith.constant 0 : i32
    %c0_i32_0 = arith.constant 0 : i32
    return %arg1, %arg0, %c0_i32 : i32, i32, i32
  }
  func.func @transform_5(%arg0: i32, %arg1: i32) -> (i32, i32, i32) {
    %c1_i32 = arith.constant 1 : i32
    %0 = arith.subi %c1_i32, %arg1 : i32
    %c0_i32 = arith.constant 0 : i32
    %c0_i32_0 = arith.constant 0 : i32
    return %0, %arg0, %c0_i32 : i32, i32, i32
  }
  func.func @transform_6(%arg0: i32, %arg1: i32) -> (i32, i32) {
    %c0_i32 = arith.constant 0 : i32
    %c0_i32_0 = arith.constant 0 : i32
    return %arg0, %c0_i32 : i32, i32
  }
}

module attributes {stable_mosaic.version = 11 : i64} {
  func.func @kernel(%arg0: i32, %arg1: i32, %arg2: memref<4x16x512xbf16, #tpu.memory_space<vmem>>, %arg3: memref<4x16x512xbf16, #tpu.memory_space<vmem>>, %arg4: memref<256x1024xbf16, #tpu.memory_space<vmem>>, %arg5: memref<16x1xi32, #tpu.memory_space<vmem>>, %arg6: memref<4x16x128xbf16, #tpu.memory_space<vmem>>, %arg7: memref<4x16x128xbf16, #tpu.memory_space<vmem>>, %arg8: memref<16x256xf32, #tpu.memory_space<vmem>>, %arg9: memref<16x256xf32, #tpu.memory_space<vmem>>, %arg10: memref<16x256xf32, #tpu.memory_space<vmem>>) attributes {dimension_semantics = [#tpu.dimension_semantics<parallel>, #tpu.dimension_semantics<arbitrary>], iteration_bounds = array<i64: 1, 2>, scalar_prefetch = 0 : i64, scratch_operands = 2 : i64, tpu.core_type = #tpu.core_type<tc>, window_params = [{transform_indices = @transform_0, window_bounds = array<i64: 4, 16, 512>}, {transform_indices = @transform_1, window_bounds = array<i64: 4, 16, 512>}, {pipeline_mode = #tpu.pipeline_mode<synchronous>, transform_indices = @transform_2, window_bounds = array<i64: 256, 1024>}, {pipeline_mode = #tpu.pipeline_mode<synchronous>, transform_indices = @transform_3, window_bounds = array<i64: 16, 1>}, {transform_indices = @transform_4, window_bounds = array<i64: 4, 16, 128>}, {transform_indices = @transform_5, window_bounds = array<i64: 4, 16, 128>}, {transform_indices = @transform_6, window_bounds = array<i64: 16, 256>}]} {
    %c0 = arith.constant 0 : index
    %c0_0 = arith.constant 0 : index
    %0 = vector.load %arg5[%c0, %c0_0] : memref<16x1xi32, #tpu.memory_space<vmem>>, vector<16x1xi32>
    %c0_i32 = arith.constant 0 : i32
    %1 = arith.cmpi eq, %arg1, %c0_i32 : i32
    %2 = arith.extui %1 : i1 to i32
    %c0_i32_1 = arith.constant 0 : i32
    %3 = arith.cmpi ne, %2, %c0_i32_1 : i32
    scf.if %3 {
      %cst_143 = arith.constant 0.000000e+00 : f32
      %475 = vector.broadcast %cst_143 : f32 to vector<16x256xf32>
      %c0_144 = arith.constant 0 : index
      %c0_145 = arith.constant 0 : index
      %476 = vector.load %arg9[%c0_144, %c0_145] : memref<16x256xf32, #tpu.memory_space<vmem>>, vector<16x256xf32>
      tpu.vector_store %arg9[%c0_144, %c0_145], %475 {strides = array<i32>} : memref<16x256xf32, #tpu.memory_space<vmem>>, vector<16x256xf32>,
      %cst_146 = arith.constant 0.000000e+00 : f32
      %477 = vector.broadcast %cst_146 : f32 to vector<16x256xf32>
      %c0_147 = arith.constant 0 : index
      %c0_148 = arith.constant 0 : index
      %478 = vector.load %arg10[%c0_147, %c0_148] : memref<16x256xf32, #tpu.memory_space<vmem>>, vector<16x256xf32>
      tpu.vector_store %arg10[%c0_147, %c0_148], %477 {strides = array<i32>} : memref<16x256xf32, #tpu.memory_space<vmem>>, vector<16x256xf32>,
    } else {
    }
    %c0_i32_2 = arith.constant 0 : i32
    %c3_i32 = arith.constant 3 : i32
    %4 = arith.subi %c3_i32, %c0_i32_2 : i32
    %c0_3 = arith.constant 0 : index
    %c0_4 = arith.constant 0 : index
    %5 = vector.load %arg9[%c0_3, %c0_4] : memref<16x256xf32, #tpu.memory_space<vmem>>, vector<16x256xf32>
    %c0_5 = arith.constant 0 : index
    %c0_6 = arith.constant 0 : index
    %6 = vector.load %arg10[%c0_5, %c0_6] : memref<16x256xf32, #tpu.memory_space<vmem>>, vector<16x256xf32>
    %7 = arith.truncf %5 : vector<16x256xf32> to vector<16x256xbf16>
    %c0_7 = arith.constant 0 : index
    %c0_8 = arith.constant 0 : index
    %8 = vector.load %arg4[%c0_7, %c0_8] : memref<256x1024xbf16, #tpu.memory_space<vmem>>, vector<256x1024xbf16>
    %cst = arith.constant dense<0.000000e+00> : vector<16x1024xf32>
    %9 = tpu.matmul %7, %8, %cst {dimension_numbers = #tpu.dot_dimension_numbers<[1], [0], [0], [1], [0, 0, 1, 1], [], []>} : vector<16x256xbf16>, vector<256x1024xbf16>, vector<16x1024xf32> -> vector<16x1024xf32>
    %10 = vector.extract_strided_slice %9 {offsets = [0, 0], sizes = [16, 512], strides = [1, 1]} : vector<16x1024xf32> to vector<16x512xf32>
    %11 = vector.extract_strided_slice %9 {offsets = [0, 512], sizes = [16, 512], strides = [1, 1]} : vector<16x1024xf32> to vector<16x512xf32>
    %12 = arith.index_cast %c0_i32_2 : i32 to index
    %c0_9 = arith.constant 0 : index
    %c0_10 = arith.constant 0 : index
    %13 = vector.load %arg2[%12, %c0_9, %c0_10] : memref<4x16x512xbf16, #tpu.memory_space<vmem>>, vector<1x16x512xbf16>
    %14 = vector.shape_cast %13 : vector<1x16x512xbf16> to vector<16x512xbf16>
    %15 = arith.extf %14 : vector<16x512xbf16> to vector<16x512xf32>
    %16 = arith.addf %15, %10 : vector<16x512xf32>
    %17 = vector.extract_strided_slice %6 {offsets = [0, 0], sizes = [16, 128], strides = [1, 1]} : vector<16x256xf32> to vector<16x128xf32>
    %18 = vector.extract_strided_slice %16 {offsets = [0, 0], sizes = [16, 128], strides = [1, 1]} : vector<16x512xf32> to vector<16x128xf32>
    %19 = arith.negf %18 : vector<16x128xf32>
    %20 = math.exp %19 : vector<16x128xf32>
    %cst_11 = arith.constant 1.000000e+00 : f32
    %21 = vector.broadcast %cst_11 : f32 to vector<16x128xf32>
    %22 = arith.addf %21, %20 : vector<16x128xf32>
    %23 = arith.divf %21, %22 : vector<16x128xf32>
    %24 = vector.extract_strided_slice %16 {offsets = [0, 128], sizes = [16, 128], strides = [1, 1]} : vector<16x512xf32> to vector<16x128xf32>
    %25 = arith.negf %24 : vector<16x128xf32>
    %26 = math.exp %25 : vector<16x128xf32>
    %cst_12 = arith.constant 1.000000e+00 : f32
    %27 = vector.broadcast %cst_12 : f32 to vector<16x128xf32>
    %28 = arith.addf %27, %26 : vector<16x128xf32>
    %29 = arith.divf %27, %28 : vector<16x128xf32>
    %30 = vector.extract_strided_slice %16 {offsets = [0, 256], sizes = [16, 128], strides = [1, 1]} : vector<16x512xf32> to vector<16x128xf32>
    %31 = math.tanh %30 : vector<16x128xf32>
    %32 = vector.extract_strided_slice %16 {offsets = [0, 384], sizes = [16, 128], strides = [1, 1]} : vector<16x512xf32> to vector<16x128xf32>
    %33 = arith.negf %32 : vector<16x128xf32>
    %34 = math.exp %33 : vector<16x128xf32>
    %cst_13 = arith.constant 1.000000e+00 : f32
    %35 = vector.broadcast %cst_13 : f32 to vector<16x128xf32>
    %36 = arith.addf %35, %34 : vector<16x128xf32>
    %37 = arith.divf %35, %36 : vector<16x128xf32>
    %38 = arith.mulf %29, %17 : vector<16x128xf32>
    %39 = arith.mulf %23, %31 : vector<16x128xf32>
    %40 = arith.addf %38, %39 : vector<16x128xf32>
    %41 = math.tanh %40 : vector<16x128xf32>
    %42 = arith.mulf %37, %41 : vector<16x128xf32>
    %c4_i32 = arith.constant 4 : i32
    %43 = arith.muli %arg1, %c4_i32 : i32
    %44 = arith.addi %43, %c0_i32_2 : i32
    %45 = vector.broadcast %44 : i32 to vector<16x1xi32>
    %46 = arith.cmpi sgt, %0, %45 : vector<16x1xi32>
    %47 = vector.extract_strided_slice %5 {offsets = [0, 0], sizes = [16, 128], strides = [1, 1]} : vector<16x256xf32> to vector<16x128xf32>
    %48 = vector.shape_cast %46 : vector<16x1xi1> to vector<16x1xi1>
    %49 = vector.broadcast %48 : vector<16x1xi1> to vector<16x128xi1>
    %50 = arith.select %49, %42, %47 : vector<16x128xi1>, vector<16x128xf32>
    %c0_14 = arith.constant 0 : index
    %c0_15 = arith.constant 0 : index
    %51 = vector.load %arg9[%c0_14, %c0_15] : memref<16x256xf32, #tpu.memory_space<vmem>>, vector<16x128xf32>
    tpu.vector_store %arg9[%c0_14, %c0_15], %50 {strides = array<i32>} : memref<16x256xf32, #tpu.memory_space<vmem>>, vector<16x128xf32>,
    %52 = vector.extract_strided_slice %6 {offsets = [0, 0], sizes = [16, 128], strides = [1, 1]} : vector<16x256xf32> to vector<16x128xf32>
    %53 = vector.shape_cast %46 : vector<16x1xi1> to vector<16x1xi1>
    %54 = vector.broadcast %53 : vector<16x1xi1> to vector<16x128xi1>
    %55 = arith.select %54, %40, %52 : vector<16x128xi1>, vector<16x128xf32>
    %c0_16 = arith.constant 0 : index
    %c0_17 = arith.constant 0 : index
    %56 = vector.load %arg10[%c0_16, %c0_17] : memref<16x256xf32, #tpu.memory_space<vmem>>, vector<16x128xf32>
    tpu.vector_store %arg10[%c0_16, %c0_17], %55 {strides = array<i32>} : memref<16x256xf32, #tpu.memory_space<vmem>>, vector<16x128xf32>,
    %cst_18 = arith.constant 0.000000e+00 : f32
    %57 = vector.shape_cast %46 : vector<16x1xi1> to vector<16x1xi1>
    %58 = vector.broadcast %57 : vector<16x1xi1> to vector<16x128xi1>
    %59 = vector.broadcast %cst_18 : f32 to vector<16x128xf32>
    %60 = arith.select %58, %42, %59 : vector<16x128xi1>, vector<16x128xf32>
    %61 = arith.truncf %60 : vector<16x128xf32> to vector<16x128xbf16>
    %62 = arith.index_cast %c0_i32_2 : i32 to index
    %c0_19 = arith.constant 0 : index
    %c0_20 = arith.constant 0 : index
    %63 = vector.load %arg6[%62, %c0_19, %c0_20] : memref<4x16x128xbf16, #tpu.memory_space<vmem>>, vector<1x16x128xbf16>
    %64 = vector.shape_cast %63 : vector<1x16x128xbf16> to vector<16x128xbf16>
    %65 = vector.shape_cast %61 : vector<16x128xbf16> to vector<1x16x128xbf16>
    tpu.vector_store %arg6[%62, %c0_19, %c0_20], %65 {strides = array<i32>} : memref<4x16x128xbf16, #tpu.memory_space<vmem>>, vector<1x16x128xbf16>,
    %66 = arith.index_cast %4 : i32 to index
    %c0_21 = arith.constant 0 : index
    %c0_22 = arith.constant 0 : index
    %67 = vector.load %arg3[%66, %c0_21, %c0_22] : memref<4x16x512xbf16, #tpu.memory_space<vmem>>, vector<1x16x512xbf16>
    %68 = vector.shape_cast %67 : vector<1x16x512xbf16> to vector<16x512xbf16>
    %69 = arith.extf %68 : vector<16x512xbf16> to vector<16x512xf32>
    %70 = arith.addf %69, %11 : vector<16x512xf32>
    %71 = vector.extract_strided_slice %6 {offsets = [0, 128], sizes = [16, 128], strides = [1, 1]} : vector<16x256xf32> to vector<16x128xf32>
    %72 = vector.extract_strided_slice %70 {offsets = [0, 0], sizes = [16, 128], strides = [1, 1]} : vector<16x512xf32> to vector<16x128xf32>
    %73 = arith.negf %72 : vector<16x128xf32>
    %74 = math.exp %73 : vector<16x128xf32>
    %cst_23 = arith.constant 1.000000e+00 : f32
    %75 = vector.broadcast %cst_23 : f32 to vector<16x128xf32>
    %76 = arith.addf %75, %74 : vector<16x128xf32>
    %77 = arith.divf %75, %76 : vector<16x128xf32>
    %78 = vector.extract_strided_slice %70 {offsets = [0, 128], sizes = [16, 128], strides = [1, 1]} : vector<16x512xf32> to vector<16x128xf32>
    %79 = arith.negf %78 : vector<16x128xf32>
    %80 = math.exp %79 : vector<16x128xf32>
    %cst_24 = arith.constant 1.000000e+00 : f32
    %81 = vector.broadcast %cst_24 : f32 to vector<16x128xf32>
    %82 = arith.addf %81, %80 : vector<16x128xf32>
    %83 = arith.divf %81, %82 : vector<16x128xf32>
    %84 = vector.extract_strided_slice %70 {offsets = [0, 256], sizes = [16, 128], strides = [1, 1]} : vector<16x512xf32> to vector<16x128xf32>
    %85 = math.tanh %84 : vector<16x128xf32>
    %86 = vector.extract_strided_slice %70 {offsets = [0, 384], sizes = [16, 128], strides = [1, 1]} : vector<16x512xf32> to vector<16x128xf32>
    %87 = arith.negf %86 : vector<16x128xf32>
    %88 = math.exp %87 : vector<16x128xf32>
    %cst_25 = arith.constant 1.000000e+00 : f32
    %89 = vector.broadcast %cst_25 : f32 to vector<16x128xf32>
    %90 = arith.addf %89, %88 : vector<16x128xf32>
    %91 = arith.divf %89, %90 : vector<16x128xf32>
    %92 = arith.mulf %83, %71 : vector<16x128xf32>
    %93 = arith.mulf %77, %85 : vector<16x128xf32>
    %94 = arith.addf %92, %93 : vector<16x128xf32>
    %95 = math.tanh %94 : vector<16x128xf32>
    %96 = arith.mulf %91, %95 : vector<16x128xf32>
    %c1_i32 = arith.constant 1 : i32
    %97 = arith.subi %c1_i32, %arg1 : i32
    %c4_i32_26 = arith.constant 4 : i32
    %98 = arith.muli %97, %c4_i32_26 : i32
    %99 = arith.addi %98, %4 : i32
    %100 = vector.broadcast %99 : i32 to vector<16x1xi32>
    %101 = arith.cmpi sgt, %0, %100 : vector<16x1xi32>
    %102 = vector.extract_strided_slice %5 {offsets = [0, 128], sizes = [16, 128], strides = [1, 1]} : vector<16x256xf32> to vector<16x128xf32>
    %103 = vector.shape_cast %101 : vector<16x1xi1> to vector<16x1xi1>
    %104 = vector.broadcast %103 : vector<16x1xi1> to vector<16x128xi1>
    %105 = arith.select %104, %96, %102 : vector<16x128xi1>, vector<16x128xf32>
    %c0_27 = arith.constant 0 : index
    %c128 = arith.constant 128 : index
    %106 = vector.load %arg9[%c0_27, %c128] : memref<16x256xf32, #tpu.memory_space<vmem>>, vector<16x128xf32>
    tpu.vector_store %arg9[%c0_27, %c128], %105 {strides = array<i32>} : memref<16x256xf32, #tpu.memory_space<vmem>>, vector<16x128xf32>,
    %107 = vector.extract_strided_slice %6 {offsets = [0, 128], sizes = [16, 128], strides = [1, 1]} : vector<16x256xf32> to vector<16x128xf32>
    %108 = vector.shape_cast %101 : vector<16x1xi1> to vector<16x1xi1>
    %109 = vector.broadcast %108 : vector<16x1xi1> to vector<16x128xi1>
    %110 = arith.select %109, %94, %107 : vector<16x128xi1>, vector<16x128xf32>
    %c0_28 = arith.constant 0 : index
    %c128_29 = arith.constant 128 : index
    %111 = vector.load %arg10[%c0_28, %c128_29] : memref<16x256xf32, #tpu.memory_space<vmem>>, vector<16x128xf32>
    tpu.vector_store %arg10[%c0_28, %c128_29], %110 {strides = array<i32>} : memref<16x256xf32, #tpu.memory_space<vmem>>, vector<16x128xf32>,
    %cst_30 = arith.constant 0.000000e+00 : f32
    %112 = vector.shape_cast %101 : vector<16x1xi1> to vector<16x1xi1>
    %113 = vector.broadcast %112 : vector<16x1xi1> to vector<16x128xi1>
    %114 = vector.broadcast %cst_30 : f32 to vector<16x128xf32>
    %115 = arith.select %113, %96, %114 : vector<16x128xi1>, vector<16x128xf32>
    %116 = arith.truncf %115 : vector<16x128xf32> to vector<16x128xbf16>
    %117 = arith.index_cast %4 : i32 to index
    %c0_31 = arith.constant 0 : index
    %c0_32 = arith.constant 0 : index
    %118 = vector.load %arg7[%117, %c0_31, %c0_32] : memref<4x16x128xbf16, #tpu.memory_space<vmem>>, vector<1x16x128xbf16>
    %119 = vector.shape_cast %118 : vector<1x16x128xbf16> to vector<16x128xbf16>
    %120 = vector.shape_cast %116 : vector<16x128xbf16> to vector<1x16x128xbf16>
    tpu.vector_store %arg7[%117, %c0_31, %c0_32], %120 {strides = array<i32>} : memref<4x16x128xbf16, #tpu.memory_space<vmem>>, vector<1x16x128xbf16>,
    %c1_i32_33 = arith.constant 1 : i32
    %c3_i32_34 = arith.constant 3 : i32
    %121 = arith.subi %c3_i32_34, %c1_i32_33 : i32
    %c0_35 = arith.constant 0 : index
    %c0_36 = arith.constant 0 : index
    %122 = vector.load %arg9[%c0_35, %c0_36] : memref<16x256xf32, #tpu.memory_space<vmem>>, vector<16x256xf32>
    %c0_37 = arith.constant 0 : index
    %c0_38 = arith.constant 0 : index
    %123 = vector.load %arg10[%c0_37, %c0_38] : memref<16x256xf32, #tpu.memory_space<vmem>>, vector<16x256xf32>
    %124 = arith.truncf %122 : vector<16x256xf32> to vector<16x256xbf16>
    %c0_39 = arith.constant 0 : index
    %c0_40 = arith.constant 0 : index
    %125 = vector.load %arg4[%c0_39, %c0_40] : memref<256x1024xbf16, #tpu.memory_space<vmem>>, vector<256x1024xbf16>
    %cst_41 = arith.constant dense<0.000000e+00> : vector<16x1024xf32>
    %126 = tpu.matmul %124, %125, %cst_41 {dimension_numbers = #tpu.dot_dimension_numbers<[1], [0], [0], [1], [0, 0, 1, 1], [], []>} : vector<16x256xbf16>, vector<256x1024xbf16>, vector<16x1024xf32> -> vector<16x1024xf32>
    %127 = vector.extract_strided_slice %126 {offsets = [0, 0], sizes = [16, 512], strides = [1, 1]} : vector<16x1024xf32> to vector<16x512xf32>
    %128 = vector.extract_strided_slice %126 {offsets = [0, 512], sizes = [16, 512], strides = [1, 1]} : vector<16x1024xf32> to vector<16x512xf32>
    %129 = arith.index_cast %c1_i32_33 : i32 to index
    %c0_42 = arith.constant 0 : index
    %c0_43 = arith.constant 0 : index
    %130 = vector.load %arg2[%129, %c0_42, %c0_43] : memref<4x16x512xbf16, #tpu.memory_space<vmem>>, vector<1x16x512xbf16>
    %131 = vector.shape_cast %130 : vector<1x16x512xbf16> to vector<16x512xbf16>
    %132 = arith.extf %131 : vector<16x512xbf16> to vector<16x512xf32>
    %133 = arith.addf %132, %127 : vector<16x512xf32>
    %134 = vector.extract_strided_slice %123 {offsets = [0, 0], sizes = [16, 128], strides = [1, 1]} : vector<16x256xf32> to vector<16x128xf32>
    %135 = vector.extract_strided_slice %133 {offsets = [0, 0], sizes = [16, 128], strides = [1, 1]} : vector<16x512xf32> to vector<16x128xf32>
    %136 = arith.negf %135 : vector<16x128xf32>
    %137 = math.exp %136 : vector<16x128xf32>
    %cst_44 = arith.constant 1.000000e+00 : f32
    %138 = vector.broadcast %cst_44 : f32 to vector<16x128xf32>
    %139 = arith.addf %138, %137 : vector<16x128xf32>
    %140 = arith.divf %138, %139 : vector<16x128xf32>
    %141 = vector.extract_strided_slice %133 {offsets = [0, 128], sizes = [16, 128], strides = [1, 1]} : vector<16x512xf32> to vector<16x128xf32>
    %142 = arith.negf %141 : vector<16x128xf32>
    %143 = math.exp %142 : vector<16x128xf32>
    %cst_45 = arith.constant 1.000000e+00 : f32
    %144 = vector.broadcast %cst_45 : f32 to vector<16x128xf32>
    %145 = arith.addf %144, %143 : vector<16x128xf32>
    %146 = arith.divf %144, %145 : vector<16x128xf32>
    %147 = vector.extract_strided_slice %133 {offsets = [0, 256], sizes = [16, 128], strides = [1, 1]} : vector<16x512xf32> to vector<16x128xf32>
    %148 = math.tanh %147 : vector<16x128xf32>
    %149 = vector.extract_strided_slice %133 {offsets = [0, 384], sizes = [16, 128], strides = [1, 1]} : vector<16x512xf32> to vector<16x128xf32>
    %150 = arith.negf %149 : vector<16x128xf32>
    %151 = math.exp %150 : vector<16x128xf32>
    %cst_46 = arith.constant 1.000000e+00 : f32
    %152 = vector.broadcast %cst_46 : f32 to vector<16x128xf32>
    %153 = arith.addf %152, %151 : vector<16x128xf32>
    %154 = arith.divf %152, %153 : vector<16x128xf32>
    %155 = arith.mulf %146, %134 : vector<16x128xf32>
    %156 = arith.mulf %140, %148 : vector<16x128xf32>
    %157 = arith.addf %155, %156 : vector<16x128xf32>
    %158 = math.tanh %157 : vector<16x128xf32>
    %159 = arith.mulf %154, %158 : vector<16x128xf32>
    %c4_i32_47 = arith.constant 4 : i32
    %160 = arith.muli %arg1, %c4_i32_47 : i32
    %161 = arith.addi %160, %c1_i32_33 : i32
    %162 = vector.broadcast %161 : i32 to vector<16x1xi32>
    %163 = arith.cmpi sgt, %0, %162 : vector<16x1xi32>
    %164 = vector.extract_strided_slice %122 {offsets = [0, 0], sizes = [16, 128], strides = [1, 1]} : vector<16x256xf32> to vector<16x128xf32>
    %165 = vector.shape_cast %163 : vector<16x1xi1> to vector<16x1xi1>
    %166 = vector.broadcast %165 : vector<16x1xi1> to vector<16x128xi1>
    %167 = arith.select %166, %159, %164 : vector<16x128xi1>, vector<16x128xf32>
    %c0_48 = arith.constant 0 : index
    %c0_49 = arith.constant 0 : index
    %168 = vector.load %arg9[%c0_48, %c0_49] : memref<16x256xf32, #tpu.memory_space<vmem>>, vector<16x128xf32>
    tpu.vector_store %arg9[%c0_48, %c0_49], %167 {strides = array<i32>} : memref<16x256xf32, #tpu.memory_space<vmem>>, vector<16x128xf32>,
    %169 = vector.extract_strided_slice %123 {offsets = [0, 0], sizes = [16, 128], strides = [1, 1]} : vector<16x256xf32> to vector<16x128xf32>
    %170 = vector.shape_cast %163 : vector<16x1xi1> to vector<16x1xi1>
    %171 = vector.broadcast %170 : vector<16x1xi1> to vector<16x128xi1>
    %172 = arith.select %171, %157, %169 : vector<16x128xi1>, vector<16x128xf32>
    %c0_50 = arith.constant 0 : index
    %c0_51 = arith.constant 0 : index
    %173 = vector.load %arg10[%c0_50, %c0_51] : memref<16x256xf32, #tpu.memory_space<vmem>>, vector<16x128xf32>
    tpu.vector_store %arg10[%c0_50, %c0_51], %172 {strides = array<i32>} : memref<16x256xf32, #tpu.memory_space<vmem>>, vector<16x128xf32>,
    %cst_52 = arith.constant 0.000000e+00 : f32
    %174 = vector.shape_cast %163 : vector<16x1xi1> to vector<16x1xi1>
    %175 = vector.broadcast %174 : vector<16x1xi1> to vector<16x128xi1>
    %176 = vector.broadcast %cst_52 : f32 to vector<16x128xf32>
    %177 = arith.select %175, %159, %176 : vector<16x128xi1>, vector<16x128xf32>
    %178 = arith.truncf %177 : vector<16x128xf32> to vector<16x128xbf16>
    %179 = arith.index_cast %c1_i32_33 : i32 to index
    %c0_53 = arith.constant 0 : index
    %c0_54 = arith.constant 0 : index
    %180 = vector.load %arg6[%179, %c0_53, %c0_54] : memref<4x16x128xbf16, #tpu.memory_space<vmem>>, vector<1x16x128xbf16>
    %181 = vector.shape_cast %180 : vector<1x16x128xbf16> to vector<16x128xbf16>
    %182 = vector.shape_cast %178 : vector<16x128xbf16> to vector<1x16x128xbf16>
    tpu.vector_store %arg6[%179, %c0_53, %c0_54], %182 {strides = array<i32>} : memref<4x16x128xbf16, #tpu.memory_space<vmem>>, vector<1x16x128xbf16>,
    %183 = arith.index_cast %121 : i32 to index
    %c0_55 = arith.constant 0 : index
    %c0_56 = arith.constant 0 : index
    %184 = vector.load %arg3[%183, %c0_55, %c0_56] : memref<4x16x512xbf16, #tpu.memory_space<vmem>>, vector<1x16x512xbf16>
    %185 = vector.shape_cast %184 : vector<1x16x512xbf16> to vector<16x512xbf16>
    %186 = arith.extf %185 : vector<16x512xbf16> to vector<16x512xf32>
    %187 = arith.addf %186, %128 : vector<16x512xf32>
    %188 = vector.extract_strided_slice %123 {offsets = [0, 128], sizes = [16, 128], strides = [1, 1]} : vector<16x256xf32> to vector<16x128xf32>
    %189 = vector.extract_strided_slice %187 {offsets = [0, 0], sizes = [16, 128], strides = [1, 1]} : vector<16x512xf32> to vector<16x128xf32>
    %190 = arith.negf %189 : vector<16x128xf32>
    %191 = math.exp %190 : vector<16x128xf32>
    %cst_57 = arith.constant 1.000000e+00 : f32
    %192 = vector.broadcast %cst_57 : f32 to vector<16x128xf32>
    %193 = arith.addf %192, %191 : vector<16x128xf32>
    %194 = arith.divf %192, %193 : vector<16x128xf32>
    %195 = vector.extract_strided_slice %187 {offsets = [0, 128], sizes = [16, 128], strides = [1, 1]} : vector<16x512xf32> to vector<16x128xf32>
    %196 = arith.negf %195 : vector<16x128xf32>
    %197 = math.exp %196 : vector<16x128xf32>
    %cst_58 = arith.constant 1.000000e+00 : f32
    %198 = vector.broadcast %cst_58 : f32 to vector<16x128xf32>
    %199 = arith.addf %198, %197 : vector<16x128xf32>
    %200 = arith.divf %198, %199 : vector<16x128xf32>
    %201 = vector.extract_strided_slice %187 {offsets = [0, 256], sizes = [16, 128], strides = [1, 1]} : vector<16x512xf32> to vector<16x128xf32>
    %202 = math.tanh %201 : vector<16x128xf32>
    %203 = vector.extract_strided_slice %187 {offsets = [0, 384], sizes = [16, 128], strides = [1, 1]} : vector<16x512xf32> to vector<16x128xf32>
    %204 = arith.negf %203 : vector<16x128xf32>
    %205 = math.exp %204 : vector<16x128xf32>
    %cst_59 = arith.constant 1.000000e+00 : f32
    %206 = vector.broadcast %cst_59 : f32 to vector<16x128xf32>
    %207 = arith.addf %206, %205 : vector<16x128xf32>
    %208 = arith.divf %206, %207 : vector<16x128xf32>
    %209 = arith.mulf %200, %188 : vector<16x128xf32>
    %210 = arith.mulf %194, %202 : vector<16x128xf32>
    %211 = arith.addf %209, %210 : vector<16x128xf32>
    %212 = math.tanh %211 : vector<16x128xf32>
    %213 = arith.mulf %208, %212 : vector<16x128xf32>
    %c1_i32_60 = arith.constant 1 : i32
    %214 = arith.subi %c1_i32_60, %arg1 : i32
    %c4_i32_61 = arith.constant 4 : i32
    %215 = arith.muli %214, %c4_i32_61 : i32
    %216 = arith.addi %215, %121 : i32
    %217 = vector.broadcast %216 : i32 to vector<16x1xi32>
    %218 = arith.cmpi sgt, %0, %217 : vector<16x1xi32>
    %219 = vector.extract_strided_slice %122 {offsets = [0, 128], sizes = [16, 128], strides = [1, 1]} : vector<16x256xf32> to vector<16x128xf32>
    %220 = vector.shape_cast %218 : vector<16x1xi1> to vector<16x1xi1>
    %221 = vector.broadcast %220 : vector<16x1xi1> to vector<16x128xi1>
    %222 = arith.select %221, %213, %219 : vector<16x128xi1>, vector<16x128xf32>
    %c0_62 = arith.constant 0 : index
    %c128_63 = arith.constant 128 : index
    %223 = vector.load %arg9[%c0_62, %c128_63] : memref<16x256xf32, #tpu.memory_space<vmem>>, vector<16x128xf32>
    tpu.vector_store %arg9[%c0_62, %c128_63], %222 {strides = array<i32>} : memref<16x256xf32, #tpu.memory_space<vmem>>, vector<16x128xf32>,
    %224 = vector.extract_strided_slice %123 {offsets = [0, 128], sizes = [16, 128], strides = [1, 1]} : vector<16x256xf32> to vector<16x128xf32>
    %225 = vector.shape_cast %218 : vector<16x1xi1> to vector<16x1xi1>
    %226 = vector.broadcast %225 : vector<16x1xi1> to vector<16x128xi1>
    %227 = arith.select %226, %211, %224 : vector<16x128xi1>, vector<16x128xf32>
    %c0_64 = arith.constant 0 : index
    %c128_65 = arith.constant 128 : index
    %228 = vector.load %arg10[%c0_64, %c128_65] : memref<16x256xf32, #tpu.memory_space<vmem>>, vector<16x128xf32>
    tpu.vector_store %arg10[%c0_64, %c128_65], %227 {strides = array<i32>} : memref<16x256xf32, #tpu.memory_space<vmem>>, vector<16x128xf32>,
    %cst_66 = arith.constant 0.000000e+00 : f32
    %229 = vector.shape_cast %218 : vector<16x1xi1> to vector<16x1xi1>
    %230 = vector.broadcast %229 : vector<16x1xi1> to vector<16x128xi1>
    %231 = vector.broadcast %cst_66 : f32 to vector<16x128xf32>
    %232 = arith.select %230, %213, %231 : vector<16x128xi1>, vector<16x128xf32>
    %233 = arith.truncf %232 : vector<16x128xf32> to vector<16x128xbf16>
    %234 = arith.index_cast %121 : i32 to index
    %c0_67 = arith.constant 0 : index
    %c0_68 = arith.constant 0 : index
    %235 = vector.load %arg7[%234, %c0_67, %c0_68] : memref<4x16x128xbf16, #tpu.memory_space<vmem>>, vector<1x16x128xbf16>
    %236 = vector.shape_cast %235 : vector<1x16x128xbf16> to vector<16x128xbf16>
    %237 = vector.shape_cast %233 : vector<16x128xbf16> to vector<1x16x128xbf16>
    tpu.vector_store %arg7[%234, %c0_67, %c0_68], %237 {strides = array<i32>} : memref<4x16x128xbf16, #tpu.memory_space<vmem>>, vector<1x16x128xbf16>,
    %c2_i32 = arith.constant 2 : i32
    %c3_i32_69 = arith.constant 3 : i32
    %238 = arith.subi %c3_i32_69, %c2_i32 : i32
    %c0_70 = arith.constant 0 : index
    %c0_71 = arith.constant 0 : index
    %239 = vector.load %arg9[%c0_70, %c0_71] : memref<16x256xf32, #tpu.memory_space<vmem>>, vector<16x256xf32>
    %c0_72 = arith.constant 0 : index
    %c0_73 = arith.constant 0 : index
    %240 = vector.load %arg10[%c0_72, %c0_73] : memref<16x256xf32, #tpu.memory_space<vmem>>, vector<16x256xf32>
    %241 = arith.truncf %239 : vector<16x256xf32> to vector<16x256xbf16>
    %c0_74 = arith.constant 0 : index
    %c0_75 = arith.constant 0 : index
    %242 = vector.load %arg4[%c0_74, %c0_75] : memref<256x1024xbf16, #tpu.memory_space<vmem>>, vector<256x1024xbf16>
    %cst_76 = arith.constant dense<0.000000e+00> : vector<16x1024xf32>
    %243 = tpu.matmul %241, %242, %cst_76 {dimension_numbers = #tpu.dot_dimension_numbers<[1], [0], [0], [1], [0, 0, 1, 1], [], []>} : vector<16x256xbf16>, vector<256x1024xbf16>, vector<16x1024xf32> -> vector<16x1024xf32>
    %244 = vector.extract_strided_slice %243 {offsets = [0, 0], sizes = [16, 512], strides = [1, 1]} : vector<16x1024xf32> to vector<16x512xf32>
    %245 = vector.extract_strided_slice %243 {offsets = [0, 512], sizes = [16, 512], strides = [1, 1]} : vector<16x1024xf32> to vector<16x512xf32>
    %246 = arith.index_cast %c2_i32 : i32 to index
    %c0_77 = arith.constant 0 : index
    %c0_78 = arith.constant 0 : index
    %247 = vector.load %arg2[%246, %c0_77, %c0_78] : memref<4x16x512xbf16, #tpu.memory_space<vmem>>, vector<1x16x512xbf16>
    %248 = vector.shape_cast %247 : vector<1x16x512xbf16> to vector<16x512xbf16>
    %249 = arith.extf %248 : vector<16x512xbf16> to vector<16x512xf32>
    %250 = arith.addf %249, %244 : vector<16x512xf32>
    %251 = vector.extract_strided_slice %240 {offsets = [0, 0], sizes = [16, 128], strides = [1, 1]} : vector<16x256xf32> to vector<16x128xf32>
    %252 = vector.extract_strided_slice %250 {offsets = [0, 0], sizes = [16, 128], strides = [1, 1]} : vector<16x512xf32> to vector<16x128xf32>
    %253 = arith.negf %252 : vector<16x128xf32>
    %254 = math.exp %253 : vector<16x128xf32>
    %cst_79 = arith.constant 1.000000e+00 : f32
    %255 = vector.broadcast %cst_79 : f32 to vector<16x128xf32>
    %256 = arith.addf %255, %254 : vector<16x128xf32>
    %257 = arith.divf %255, %256 : vector<16x128xf32>
    %258 = vector.extract_strided_slice %250 {offsets = [0, 128], sizes = [16, 128], strides = [1, 1]} : vector<16x512xf32> to vector<16x128xf32>
    %259 = arith.negf %258 : vector<16x128xf32>
    %260 = math.exp %259 : vector<16x128xf32>
    %cst_80 = arith.constant 1.000000e+00 : f32
    %261 = vector.broadcast %cst_80 : f32 to vector<16x128xf32>
    %262 = arith.addf %261, %260 : vector<16x128xf32>
    %263 = arith.divf %261, %262 : vector<16x128xf32>
    %264 = vector.extract_strided_slice %250 {offsets = [0, 256], sizes = [16, 128], strides = [1, 1]} : vector<16x512xf32> to vector<16x128xf32>
    %265 = math.tanh %264 : vector<16x128xf32>
    %266 = vector.extract_strided_slice %250 {offsets = [0, 384], sizes = [16, 128], strides = [1, 1]} : vector<16x512xf32> to vector<16x128xf32>
    %267 = arith.negf %266 : vector<16x128xf32>
    %268 = math.exp %267 : vector<16x128xf32>
    %cst_81 = arith.constant 1.000000e+00 : f32
    %269 = vector.broadcast %cst_81 : f32 to vector<16x128xf32>
    %270 = arith.addf %269, %268 : vector<16x128xf32>
    %271 = arith.divf %269, %270 : vector<16x128xf32>
    %272 = arith.mulf %263, %251 : vector<16x128xf32>
    %273 = arith.mulf %257, %265 : vector<16x128xf32>
    %274 = arith.addf %272, %273 : vector<16x128xf32>
    %275 = math.tanh %274 : vector<16x128xf32>
    %276 = arith.mulf %271, %275 : vector<16x128xf32>
    %c4_i32_82 = arith.constant 4 : i32
    %277 = arith.muli %arg1, %c4_i32_82 : i32
    %278 = arith.addi %277, %c2_i32 : i32
    %279 = vector.broadcast %278 : i32 to vector<16x1xi32>
    %280 = arith.cmpi sgt, %0, %279 : vector<16x1xi32>
    %281 = vector.extract_strided_slice %239 {offsets = [0, 0], sizes = [16, 128], strides = [1, 1]} : vector<16x256xf32> to vector<16x128xf32>
    %282 = vector.shape_cast %280 : vector<16x1xi1> to vector<16x1xi1>
    %283 = vector.broadcast %282 : vector<16x1xi1> to vector<16x128xi1>
    %284 = arith.select %283, %276, %281 : vector<16x128xi1>, vector<16x128xf32>
    %c0_83 = arith.constant 0 : index
    %c0_84 = arith.constant 0 : index
    %285 = vector.load %arg9[%c0_83, %c0_84] : memref<16x256xf32, #tpu.memory_space<vmem>>, vector<16x128xf32>
    tpu.vector_store %arg9[%c0_83, %c0_84], %284 {strides = array<i32>} : memref<16x256xf32, #tpu.memory_space<vmem>>, vector<16x128xf32>,
    %286 = vector.extract_strided_slice %240 {offsets = [0, 0], sizes = [16, 128], strides = [1, 1]} : vector<16x256xf32> to vector<16x128xf32>
    %287 = vector.shape_cast %280 : vector<16x1xi1> to vector<16x1xi1>
    %288 = vector.broadcast %287 : vector<16x1xi1> to vector<16x128xi1>
    %289 = arith.select %288, %274, %286 : vector<16x128xi1>, vector<16x128xf32>
    %c0_85 = arith.constant 0 : index
    %c0_86 = arith.constant 0 : index
    %290 = vector.load %arg10[%c0_85, %c0_86] : memref<16x256xf32, #tpu.memory_space<vmem>>, vector<16x128xf32>
    tpu.vector_store %arg10[%c0_85, %c0_86], %289 {strides = array<i32>} : memref<16x256xf32, #tpu.memory_space<vmem>>, vector<16x128xf32>,
    %cst_87 = arith.constant 0.000000e+00 : f32
    %291 = vector.shape_cast %280 : vector<16x1xi1> to vector<16x1xi1>
    %292 = vector.broadcast %291 : vector<16x1xi1> to vector<16x128xi1>
    %293 = vector.broadcast %cst_87 : f32 to vector<16x128xf32>
    %294 = arith.select %292, %276, %293 : vector<16x128xi1>, vector<16x128xf32>
    %295 = arith.truncf %294 : vector<16x128xf32> to vector<16x128xbf16>
    %296 = arith.index_cast %c2_i32 : i32 to index
    %c0_88 = arith.constant 0 : index
    %c0_89 = arith.constant 0 : index
    %297 = vector.load %arg6[%296, %c0_88, %c0_89] : memref<4x16x128xbf16, #tpu.memory_space<vmem>>, vector<1x16x128xbf16>
    %298 = vector.shape_cast %297 : vector<1x16x128xbf16> to vector<16x128xbf16>
    %299 = vector.shape_cast %295 : vector<16x128xbf16> to vector<1x16x128xbf16>
    tpu.vector_store %arg6[%296, %c0_88, %c0_89], %299 {strides = array<i32>} : memref<4x16x128xbf16, #tpu.memory_space<vmem>>, vector<1x16x128xbf16>,
    %300 = arith.index_cast %238 : i32 to index
    %c0_90 = arith.constant 0 : index
    %c0_91 = arith.constant 0 : index
    %301 = vector.load %arg3[%300, %c0_90, %c0_91] : memref<4x16x512xbf16, #tpu.memory_space<vmem>>, vector<1x16x512xbf16>
    %302 = vector.shape_cast %301 : vector<1x16x512xbf16> to vector<16x512xbf16>
    %303 = arith.extf %302 : vector<16x512xbf16> to vector<16x512xf32>
    %304 = arith.addf %303, %245 : vector<16x512xf32>
    %305 = vector.extract_strided_slice %240 {offsets = [0, 128], sizes = [16, 128], strides = [1, 1]} : vector<16x256xf32> to vector<16x128xf32>
    %306 = vector.extract_strided_slice %304 {offsets = [0, 0], sizes = [16, 128], strides = [1, 1]} : vector<16x512xf32> to vector<16x128xf32>
    %307 = arith.negf %306 : vector<16x128xf32>
    %308 = math.exp %307 : vector<16x128xf32>
    %cst_92 = arith.constant 1.000000e+00 : f32
    %309 = vector.broadcast %cst_92 : f32 to vector<16x128xf32>
    %310 = arith.addf %309, %308 : vector<16x128xf32>
    %311 = arith.divf %309, %310 : vector<16x128xf32>
    %312 = vector.extract_strided_slice %304 {offsets = [0, 128], sizes = [16, 128], strides = [1, 1]} : vector<16x512xf32> to vector<16x128xf32>
    %313 = arith.negf %312 : vector<16x128xf32>
    %314 = math.exp %313 : vector<16x128xf32>
    %cst_93 = arith.constant 1.000000e+00 : f32
    %315 = vector.broadcast %cst_93 : f32 to vector<16x128xf32>
    %316 = arith.addf %315, %314 : vector<16x128xf32>
    %317 = arith.divf %315, %316 : vector<16x128xf32>
    %318 = vector.extract_strided_slice %304 {offsets = [0, 256], sizes = [16, 128], strides = [1, 1]} : vector<16x512xf32> to vector<16x128xf32>
    %319 = math.tanh %318 : vector<16x128xf32>
    %320 = vector.extract_strided_slice %304 {offsets = [0, 384], sizes = [16, 128], strides = [1, 1]} : vector<16x512xf32> to vector<16x128xf32>
    %321 = arith.negf %320 : vector<16x128xf32>
    %322 = math.exp %321 : vector<16x128xf32>
    %cst_94 = arith.constant 1.000000e+00 : f32
    %323 = vector.broadcast %cst_94 : f32 to vector<16x128xf32>
    %324 = arith.addf %323, %322 : vector<16x128xf32>
    %325 = arith.divf %323, %324 : vector<16x128xf32>
    %326 = arith.mulf %317, %305 : vector<16x128xf32>
    %327 = arith.mulf %311, %319 : vector<16x128xf32>
    %328 = arith.addf %326, %327 : vector<16x128xf32>
    %329 = math.tanh %328 : vector<16x128xf32>
    %330 = arith.mulf %325, %329 : vector<16x128xf32>
    %c1_i32_95 = arith.constant 1 : i32
    %331 = arith.subi %c1_i32_95, %arg1 : i32
    %c4_i32_96 = arith.constant 4 : i32
    %332 = arith.muli %331, %c4_i32_96 : i32
    %333 = arith.addi %332, %238 : i32
    %334 = vector.broadcast %333 : i32 to vector<16x1xi32>
    %335 = arith.cmpi sgt, %0, %334 : vector<16x1xi32>
    %336 = vector.extract_strided_slice %239 {offsets = [0, 128], sizes = [16, 128], strides = [1, 1]} : vector<16x256xf32> to vector<16x128xf32>
    %337 = vector.shape_cast %335 : vector<16x1xi1> to vector<16x1xi1>
    %338 = vector.broadcast %337 : vector<16x1xi1> to vector<16x128xi1>
    %339 = arith.select %338, %330, %336 : vector<16x128xi1>, vector<16x128xf32>
    %c0_97 = arith.constant 0 : index
    %c128_98 = arith.constant 128 : index
    %340 = vector.load %arg9[%c0_97, %c128_98] : memref<16x256xf32, #tpu.memory_space<vmem>>, vector<16x128xf32>
    tpu.vector_store %arg9[%c0_97, %c128_98], %339 {strides = array<i32>} : memref<16x256xf32, #tpu.memory_space<vmem>>, vector<16x128xf32>,
    %341 = vector.extract_strided_slice %240 {offsets = [0, 128], sizes = [16, 128], strides = [1, 1]} : vector<16x256xf32> to vector<16x128xf32>
    %342 = vector.shape_cast %335 : vector<16x1xi1> to vector<16x1xi1>
    %343 = vector.broadcast %342 : vector<16x1xi1> to vector<16x128xi1>
    %344 = arith.select %343, %328, %341 : vector<16x128xi1>, vector<16x128xf32>
    %c0_99 = arith.constant 0 : index
    %c128_100 = arith.constant 128 : index
    %345 = vector.load %arg10[%c0_99, %c128_100] : memref<16x256xf32, #tpu.memory_space<vmem>>, vector<16x128xf32>
    tpu.vector_store %arg10[%c0_99, %c128_100], %344 {strides = array<i32>} : memref<16x256xf32, #tpu.memory_space<vmem>>, vector<16x128xf32>,
    %cst_101 = arith.constant 0.000000e+00 : f32
    %346 = vector.shape_cast %335 : vector<16x1xi1> to vector<16x1xi1>
    %347 = vector.broadcast %346 : vector<16x1xi1> to vector<16x128xi1>
    %348 = vector.broadcast %cst_101 : f32 to vector<16x128xf32>
    %349 = arith.select %347, %330, %348 : vector<16x128xi1>, vector<16x128xf32>
    %350 = arith.truncf %349 : vector<16x128xf32> to vector<16x128xbf16>
    %351 = arith.index_cast %238 : i32 to index
    %c0_102 = arith.constant 0 : index
    %c0_103 = arith.constant 0 : index
    %352 = vector.load %arg7[%351, %c0_102, %c0_103] : memref<4x16x128xbf16, #tpu.memory_space<vmem>>, vector<1x16x128xbf16>
    %353 = vector.shape_cast %352 : vector<1x16x128xbf16> to vector<16x128xbf16>
    %354 = vector.shape_cast %350 : vector<16x128xbf16> to vector<1x16x128xbf16>
    tpu.vector_store %arg7[%351, %c0_102, %c0_103], %354 {strides = array<i32>} : memref<4x16x128xbf16, #tpu.memory_space<vmem>>, vector<1x16x128xbf16>,
    %c3_i32_104 = arith.constant 3 : i32
    %c3_i32_105 = arith.constant 3 : i32
    %355 = arith.subi %c3_i32_105, %c3_i32_104 : i32
    %c0_106 = arith.constant 0 : index
    %c0_107 = arith.constant 0 : index
    %356 = vector.load %arg9[%c0_106, %c0_107] : memref<16x256xf32, #tpu.memory_space<vmem>>, vector<16x256xf32>
    %c0_108 = arith.constant 0 : index
    %c0_109 = arith.constant 0 : index
    %357 = vector.load %arg10[%c0_108, %c0_109] : memref<16x256xf32, #tpu.memory_space<vmem>>, vector<16x256xf32>
    %358 = arith.truncf %356 : vector<16x256xf32> to vector<16x256xbf16>
    %c0_110 = arith.constant 0 : index
    %c0_111 = arith.constant 0 : index
    %359 = vector.load %arg4[%c0_110, %c0_111] : memref<256x1024xbf16, #tpu.memory_space<vmem>>, vector<256x1024xbf16>
    %cst_112 = arith.constant dense<0.000000e+00> : vector<16x1024xf32>
    %360 = tpu.matmul %358, %359, %cst_112 {dimension_numbers = #tpu.dot_dimension_numbers<[1], [0], [0], [1], [0, 0, 1, 1], [], []>} : vector<16x256xbf16>, vector<256x1024xbf16>, vector<16x1024xf32> -> vector<16x1024xf32>
    %361 = vector.extract_strided_slice %360 {offsets = [0, 0], sizes = [16, 512], strides = [1, 1]} : vector<16x1024xf32> to vector<16x512xf32>
    %362 = vector.extract_strided_slice %360 {offsets = [0, 512], sizes = [16, 512], strides = [1, 1]} : vector<16x1024xf32> to vector<16x512xf32>
    %363 = arith.index_cast %c3_i32_104 : i32 to index
    %c0_113 = arith.constant 0 : index
    %c0_114 = arith.constant 0 : index
    %364 = vector.load %arg2[%363, %c0_113, %c0_114] : memref<4x16x512xbf16, #tpu.memory_space<vmem>>, vector<1x16x512xbf16>
    %365 = vector.shape_cast %364 : vector<1x16x512xbf16> to vector<16x512xbf16>
    %366 = arith.extf %365 : vector<16x512xbf16> to vector<16x512xf32>
    %367 = arith.addf %366, %361 : vector<16x512xf32>
    %368 = vector.extract_strided_slice %357 {offsets = [0, 0], sizes = [16, 128], strides = [1, 1]} : vector<16x256xf32> to vector<16x128xf32>
    %369 = vector.extract_strided_slice %367 {offsets = [0, 0], sizes = [16, 128], strides = [1, 1]} : vector<16x512xf32> to vector<16x128xf32>
    %370 = arith.negf %369 : vector<16x128xf32>
    %371 = math.exp %370 : vector<16x128xf32>
    %cst_115 = arith.constant 1.000000e+00 : f32
    %372 = vector.broadcast %cst_115 : f32 to vector<16x128xf32>
    %373 = arith.addf %372, %371 : vector<16x128xf32>
    %374 = arith.divf %372, %373 : vector<16x128xf32>
    %375 = vector.extract_strided_slice %367 {offsets = [0, 128], sizes = [16, 128], strides = [1, 1]} : vector<16x512xf32> to vector<16x128xf32>
    %376 = arith.negf %375 : vector<16x128xf32>
    %377 = math.exp %376 : vector<16x128xf32>
    %cst_116 = arith.constant 1.000000e+00 : f32
    %378 = vector.broadcast %cst_116 : f32 to vector<16x128xf32>
    %379 = arith.addf %378, %377 : vector<16x128xf32>
    %380 = arith.divf %378, %379 : vector<16x128xf32>
    %381 = vector.extract_strided_slice %367 {offsets = [0, 256], sizes = [16, 128], strides = [1, 1]} : vector<16x512xf32> to vector<16x128xf32>
    %382 = math.tanh %381 : vector<16x128xf32>
    %383 = vector.extract_strided_slice %367 {offsets = [0, 384], sizes = [16, 128], strides = [1, 1]} : vector<16x512xf32> to vector<16x128xf32>
    %384 = arith.negf %383 : vector<16x128xf32>
    %385 = math.exp %384 : vector<16x128xf32>
    %cst_117 = arith.constant 1.000000e+00 : f32
    %386 = vector.broadcast %cst_117 : f32 to vector<16x128xf32>
    %387 = arith.addf %386, %385 : vector<16x128xf32>
    %388 = arith.divf %386, %387 : vector<16x128xf32>
    %389 = arith.mulf %380, %368 : vector<16x128xf32>
    %390 = arith.mulf %374, %382 : vector<16x128xf32>
    %391 = arith.addf %389, %390 : vector<16x128xf32>
    %392 = math.tanh %391 : vector<16x128xf32>
    %393 = arith.mulf %388, %392 : vector<16x128xf32>
    %c4_i32_118 = arith.constant 4 : i32
    %394 = arith.muli %arg1, %c4_i32_118 : i32
    %395 = arith.addi %394, %c3_i32_104 : i32
    %396 = vector.broadcast %395 : i32 to vector<16x1xi32>
    %397 = arith.cmpi sgt, %0, %396 : vector<16x1xi32>
    %398 = vector.extract_strided_slice %356 {offsets = [0, 0], sizes = [16, 128], strides = [1, 1]} : vector<16x256xf32> to vector<16x128xf32>
    %399 = vector.shape_cast %397 : vector<16x1xi1> to vector<16x1xi1>
    %400 = vector.broadcast %399 : vector<16x1xi1> to vector<16x128xi1>
    %401 = arith.select %400, %393, %398 : vector<16x128xi1>, vector<16x128xf32>
    %c0_119 = arith.constant 0 : index
    %c0_120 = arith.constant 0 : index
    %402 = vector.load %arg9[%c0_119, %c0_120] : memref<16x256xf32, #tpu.memory_space<vmem>>, vector<16x128xf32>
    tpu.vector_store %arg9[%c0_119, %c0_120], %401 {strides = array<i32>} : memref<16x256xf32, #tpu.memory_space<vmem>>, vector<16x128xf32>,
    %403 = vector.extract_strided_slice %357 {offsets = [0, 0], sizes = [16, 128], strides = [1, 1]} : vector<16x256xf32> to vector<16x128xf32>
    %404 = vector.shape_cast %397 : vector<16x1xi1> to vector<16x1xi1>
    %405 = vector.broadcast %404 : vector<16x1xi1> to vector<16x128xi1>
    %406 = arith.select %405, %391, %403 : vector<16x128xi1>, vector<16x128xf32>
    %c0_121 = arith.constant 0 : index
    %c0_122 = arith.constant 0 : index
    %407 = vector.load %arg10[%c0_121, %c0_122] : memref<16x256xf32, #tpu.memory_space<vmem>>, vector<16x128xf32>
    tpu.vector_store %arg10[%c0_121, %c0_122], %406 {strides = array<i32>} : memref<16x256xf32, #tpu.memory_space<vmem>>, vector<16x128xf32>,
    %cst_123 = arith.constant 0.000000e+00 : f32
    %408 = vector.shape_cast %397 : vector<16x1xi1> to vector<16x1xi1>
    %409 = vector.broadcast %408 : vector<16x1xi1> to vector<16x128xi1>
    %410 = vector.broadcast %cst_123 : f32 to vector<16x128xf32>
    %411 = arith.select %409, %393, %410 : vector<16x128xi1>, vector<16x128xf32>
    %412 = arith.truncf %411 : vector<16x128xf32> to vector<16x128xbf16>
    %413 = arith.index_cast %c3_i32_104 : i32 to index
    %c0_124 = arith.constant 0 : index
    %c0_125 = arith.constant 0 : index
    %414 = vector.load %arg6[%413, %c0_124, %c0_125] : memref<4x16x128xbf16, #tpu.memory_space<vmem>>, vector<1x16x128xbf16>
    %415 = vector.shape_cast %414 : vector<1x16x128xbf16> to vector<16x128xbf16>
    %416 = vector.shape_cast %412 : vector<16x128xbf16> to vector<1x16x128xbf16>
    tpu.vector_store %arg6[%413, %c0_124, %c0_125], %416 {strides = array<i32>} : memref<4x16x128xbf16, #tpu.memory_space<vmem>>, vector<1x16x128xbf16>,
    %417 = arith.index_cast %355 : i32 to index
    %c0_126 = arith.constant 0 : index
    %c0_127 = arith.constant 0 : index
    %418 = vector.load %arg3[%417, %c0_126, %c0_127] : memref<4x16x512xbf16, #tpu.memory_space<vmem>>, vector<1x16x512xbf16>
    %419 = vector.shape_cast %418 : vector<1x16x512xbf16> to vector<16x512xbf16>
    %420 = arith.extf %419 : vector<16x512xbf16> to vector<16x512xf32>
    %421 = arith.addf %420, %362 : vector<16x512xf32>
    %422 = vector.extract_strided_slice %357 {offsets = [0, 128], sizes = [16, 128], strides = [1, 1]} : vector<16x256xf32> to vector<16x128xf32>
    %423 = vector.extract_strided_slice %421 {offsets = [0, 0], sizes = [16, 128], strides = [1, 1]} : vector<16x512xf32> to vector<16x128xf32>
    %424 = arith.negf %423 : vector<16x128xf32>
    %425 = math.exp %424 : vector<16x128xf32>
    %cst_128 = arith.constant 1.000000e+00 : f32
    %426 = vector.broadcast %cst_128 : f32 to vector<16x128xf32>
    %427 = arith.addf %426, %425 : vector<16x128xf32>
    %428 = arith.divf %426, %427 : vector<16x128xf32>
    %429 = vector.extract_strided_slice %421 {offsets = [0, 128], sizes = [16, 128], strides = [1, 1]} : vector<16x512xf32> to vector<16x128xf32>
    %430 = arith.negf %429 : vector<16x128xf32>
    %431 = math.exp %430 : vector<16x128xf32>
    %cst_129 = arith.constant 1.000000e+00 : f32
    %432 = vector.broadcast %cst_129 : f32 to vector<16x128xf32>
    %433 = arith.addf %432, %431 : vector<16x128xf32>
    %434 = arith.divf %432, %433 : vector<16x128xf32>
    %435 = vector.extract_strided_slice %421 {offsets = [0, 256], sizes = [16, 128], strides = [1, 1]} : vector<16x512xf32> to vector<16x128xf32>
    %436 = math.tanh %435 : vector<16x128xf32>
    %437 = vector.extract_strided_slice %421 {offsets = [0, 384], sizes = [16, 128], strides = [1, 1]} : vector<16x512xf32> to vector<16x128xf32>
    %438 = arith.negf %437 : vector<16x128xf32>
    %439 = math.exp %438 : vector<16x128xf32>
    %cst_130 = arith.constant 1.000000e+00 : f32
    %440 = vector.broadcast %cst_130 : f32 to vector<16x128xf32>
    %441 = arith.addf %440, %439 : vector<16x128xf32>
    %442 = arith.divf %440, %441 : vector<16x128xf32>
    %443 = arith.mulf %434, %422 : vector<16x128xf32>
    %444 = arith.mulf %428, %436 : vector<16x128xf32>
    %445 = arith.addf %443, %444 : vector<16x128xf32>
    %446 = math.tanh %445 : vector<16x128xf32>
    %447 = arith.mulf %442, %446 : vector<16x128xf32>
    %c1_i32_131 = arith.constant 1 : i32
    %448 = arith.subi %c1_i32_131, %arg1 : i32
    %c4_i32_132 = arith.constant 4 : i32
    %449 = arith.muli %448, %c4_i32_132 : i32
    %450 = arith.addi %449, %355 : i32
    %451 = vector.broadcast %450 : i32 to vector<16x1xi32>
    %452 = arith.cmpi sgt, %0, %451 : vector<16x1xi32>
    %453 = vector.extract_strided_slice %356 {offsets = [0, 128], sizes = [16, 128], strides = [1, 1]} : vector<16x256xf32> to vector<16x128xf32>
    %454 = vector.shape_cast %452 : vector<16x1xi1> to vector<16x1xi1>
    %455 = vector.broadcast %454 : vector<16x1xi1> to vector<16x128xi1>
    %456 = arith.select %455, %447, %453 : vector<16x128xi1>, vector<16x128xf32>
    %c0_133 = arith.constant 0 : index
    %c128_134 = arith.constant 128 : index
    %457 = vector.load %arg9[%c0_133, %c128_134] : memref<16x256xf32, #tpu.memory_space<vmem>>, vector<16x128xf32>
    tpu.vector_store %arg9[%c0_133, %c128_134], %456 {strides = array<i32>} : memref<16x256xf32, #tpu.memory_space<vmem>>, vector<16x128xf32>,
    %458 = vector.extract_strided_slice %357 {offsets = [0, 128], sizes = [16, 128], strides = [1, 1]} : vector<16x256xf32> to vector<16x128xf32>
    %459 = vector.shape_cast %452 : vector<16x1xi1> to vector<16x1xi1>
    %460 = vector.broadcast %459 : vector<16x1xi1> to vector<16x128xi1>
    %461 = arith.select %460, %445, %458 : vector<16x128xi1>, vector<16x128xf32>
    %c0_135 = arith.constant 0 : index
    %c128_136 = arith.constant 128 : index
    %462 = vector.load %arg10[%c0_135, %c128_136] : memref<16x256xf32, #tpu.memory_space<vmem>>, vector<16x128xf32>
    tpu.vector_store %arg10[%c0_135, %c128_136], %461 {strides = array<i32>} : memref<16x256xf32, #tpu.memory_space<vmem>>, vector<16x128xf32>,
    %cst_137 = arith.constant 0.000000e+00 : f32
    %463 = vector.shape_cast %452 : vector<16x1xi1> to vector<16x1xi1>
    %464 = vector.broadcast %463 : vector<16x1xi1> to vector<16x128xi1>
    %465 = vector.broadcast %cst_137 : f32 to vector<16x128xf32>
    %466 = arith.select %464, %447, %465 : vector<16x128xi1>, vector<16x128xf32>
    %467 = arith.truncf %466 : vector<16x128xf32> to vector<16x128xbf16>
    %468 = arith.index_cast %355 : i32 to index
    %c0_138 = arith.constant 0 : index
    %c0_139 = arith.constant 0 : index
    %469 = vector.load %arg7[%468, %c0_138, %c0_139] : memref<4x16x128xbf16, #tpu.memory_space<vmem>>, vector<1x16x128xbf16>
    %470 = vector.shape_cast %469 : vector<1x16x128xbf16> to vector<16x128xbf16>
    %471 = vector.shape_cast %467 : vector<16x128xbf16> to vector<1x16x128xbf16>
    tpu.vector_store %arg7[%468, %c0_138, %c0_139], %471 {strides = array<i32>} : memref<4x16x128xbf16, #tpu.memory_space<vmem>>, vector<1x16x128xbf16>,
    %c4_i32_140 = arith.constant 4 : i32
    %c1_i32_141 = arith.constant 1 : i32
    %472 = arith.cmpi eq, %arg1, %c1_i32_141 : i32
    %473 = arith.extui %472 : i1 to i32
    %c0_i32_142 = arith.constant 0 : i32
    %474 = arith.cmpi ne, %473, %c0_i32_142 : i32
    scf.if %474 {
      %c0_143 = arith.constant 0 : index
      %c0_144 = arith.constant 0 : index
      %475 = vector.load %arg9[%c0_143, %c0_144] : memref<16x256xf32, #tpu.memory_space<vmem>>, vector<16x256xf32>
      %c0_145 = arith.constant 0 : index
      %c0_146 = arith.constant 0 : index
      %476 = vector.load %arg8[%c0_145, %c0_146] : memref<16x256xf32, #tpu.memory_space<vmem>>, vector<16x256xf32>
      tpu.vector_store %arg8[%c0_145, %c0_146], %475 {strides = array<i32>} : memref<16x256xf32, #tpu.memory_space<vmem>>, vector<16x256xf32>,
    } else {
    }
    return
  }
  func.func @transform_0(%arg0: i32, %arg1: i32) -> (i32, i32, i32) {
    %c0_i32 = arith.constant 0 : i32
    %c0_i32_0 = arith.constant 0 : i32
    return %arg1, %arg0, %c0_i32 : i32, i32, i32
  }
  func.func @transform_1(%arg0: i32, %arg1: i32) -> (i32, i32, i32) {
    %c1_i32 = arith.constant 1 : i32
    %0 = arith.subi %c1_i32, %arg1 : i32
    %c1_i32_0 = arith.constant 1 : i32
    %c0_i32 = arith.constant 0 : i32
    return %0, %arg0, %c1_i32_0 : i32, i32, i32
  }
  func.func @transform_2(%arg0: i32, %arg1: i32) -> (i32, i32) {
    %c0_i32 = arith.constant 0 : i32
    %c0_i32_0 = arith.constant 0 : i32
    %c0_i32_1 = arith.constant 0 : i32
    return %c0_i32, %c0_i32_0 : i32, i32
  }
  func.func @transform_3(%arg0: i32, %arg1: i32) -> (i32, i32) {
    %c0_i32 = arith.constant 0 : i32
    %c0_i32_0 = arith.constant 0 : i32
    return %arg0, %c0_i32 : i32, i32
  }
  func.func @transform_4(%arg0: i32, %arg1: i32) -> (i32, i32, i32) {
    %c0_i32 = arith.constant 0 : i32
    %c0_i32_0 = arith.constant 0 : i32
    return %arg1, %arg0, %c0_i32 : i32, i32, i32
  }
  func.func @transform_5(%arg0: i32, %arg1: i32) -> (i32, i32, i32) {
    %c1_i32 = arith.constant 1 : i32
    %0 = arith.subi %c1_i32, %arg1 : i32
    %c0_i32 = arith.constant 0 : i32
    %c0_i32_0 = arith.constant 0 : i32
    return %0, %arg0, %c0_i32 : i32, i32, i32
  }
  func.func @transform_6(%arg0: i32, %arg1: i32) -> (i32, i32) {
    %c0_i32 = arith.constant 0 : i32
    %c0_i32_0 = arith.constant 0 : i32
    return %arg0, %c0_i32 : i32, i32
  }
}

</mosaic_0001>

<bundles_post_ra>
// kernel: lstm_classifier_forward.3
= control target key start
LH: loop header
LB: loop body
LE: loop exit
PB: predicated region body
PF: predicated region fallthrough
CT: control target
= control target key end

     0   :  { %s8747_s0 = inlined_call_operand.vmem [shape: bf16[8,16,1024], index: 0, kind: input, shape index: {}, may-alias: {0,1}]   ;;  %s8748_s1 = inlined_call_operand.vmem [shape: bf16[8,16,1024], index: 1, kind: input, shape index: {}, may-alias: {0,1}]   ;;  %s8749_s2 = inlined_call_operand.vmem [shape: bf16[256,1024], index: 2, kind: input, shape index: {}]   ;;  %s8750_s3 = inlined_call_operand.vmem [shape: s32[16,1], index: 3, kind: input, shape index: {}]   ;;  %s8751_s4 = inlined_call_operand.hbm [shape: bf16[8,16,128], index: 4, kind: output, shape index: {0}]   ;;  %s8752_s5 = inlined_call_operand.hbm [shape: bf16[8,16,128], index: 5, kind: output, shape index: {1}]   ;;  %s8753_s6 = inlined_call_operand.vmem [shape: f32[16,256], index: 6, kind: output, shape index: {2}]  }
   0x1   :  { %8762 = sst [smem:[#allocation19_spill]] %s8747_s0 }
   0x2   :  { %8763 = sst [smem:[#allocation20_spill]] %s8748_s1 }
   0x3   :  { %8764 = sst [smem:[#allocation21_spill]] %s8750_s3 }
   0x4   :  { %12 = vsyncpa [#allocation7], 0 }
   0x5   :  { %14 = vsyncpa [#allocation7 + $0x1], 0 }
   0x6   :  { %15 = vsyncpa [#allocation9], 0 }
   0x7   :  { %17 = vsyncpa [#allocation9 + $0x1], 0  ;;  %s6597_s21 = smov 0   ;;  %s6599_s22 = smov 0  }
   0x8   :  { %s6601_s23 = smov 0   ;;  %s6603_s24 = smov 0  }
   0x9   :  { %s6605_s25 = smov 0   ;;  %s6607_s26 = smov 0  }
   0xa   :  { %s6609_s27 = smov 0   ;;  %s6611_s28 = smov 0  }
   0xb   :  { %s6613_s29 = smov 0  }
   0xc LB: > { %8765 = sst [smem:[#allocation12_spill]] %s6534_s24  ;;  %s5346_s30 = sadd.s32 4294967295, %s6554_s29   ;;  %s6554_s29 = sphi %s6613_s29, %s23_s29   ;;  %s6550_s28 = sphi %s6611_s28, %s8791_s28   ;;  %s6546_s27 = sphi %s6609_s27, %s8790_s27   ;;  %s6542_s26 = sphi %s6607_s26, %s8789_s26   ;;  %s6538_s25 = sphi %s6605_s25, %s8788_s25   ;;  %s6534_s24 = sphi %s6603_s24, %s8787_s24   ;;  %s6530_s23 = sphi %s6601_s23, %s8793_s23   ;;  %s6526_s22 = sphi %s6599_s22, %s8785_s22   ;;  %s6522_s21 = sphi %s6597_s21, %s8792_s21  }
   0xd   : > { %8766 = sst [smem:[#allocation13_spill]] %s6538_s25  ;;  %s5347_s7 = sadd.s32 4294967294, %s6554_s29  }
   0xe   : > { %8767 = sst [smem:[#allocation14_spill]] %s6542_s26  ;;  %s32_s8 = sadd.s32 1, %s6550_s28 }
   0xf   : > { %8768 = sst [smem:[#allocation15_spill]] %s6550_s28  ;;  %s44_s9 = sadd.s32 1, %s6542_s26 }
  0x10   : > { %p33_p0 = scmp.ge.s32.totalorder %s32_s8, 2  ;;  %p51_p1 = scmp.ne.s32.totalorder %s6542_s26, %s6538_s25 }
  0x11   : > { %p52_p2 = scmp.eq.s32.totalorder %s6554_s29, 0  ;;  %s8754_s10 = ssub.s32 1, %s6550_s28 }
  0x12   : > { %s8795_s8 = smov (%p33_p0, %s32_s8), 0  ;;  %s74_s12 = sadd.s32 1, %s6534_s24 }
  0x13   : > { %8769 = sst [smem:[#allocation16_spill]] %s8795_s8  ;;  %p6657_p3 = por %p52_p2, %p51_p1 }
  0x14   : > { %s39_s13 = ssub.s32 %s6550_s28, %s8795_s8  ;;  %s68_s14 = ssub.s32 1, %s8795_s8 }
  0x15   : > { %p42_p4 = scmp.eq.s32.totalorder %s39_s13, 0  ;;  %s69_s15 = ssub.s32 %s8754_s10, %s68_s14 }
  0x16   : > { %p72_p5 = scmp.eq.s32.totalorder %s69_s15, 0  ;;  %p81_p6 = scmp.ne.s32.totalorder %s6534_s24, %s6530_s23 }
  0x17   : > { %s6670_s16 = scalar_select %p42_p4, %s6542_s26, %s44_s9  }
  0x18   : > { %s6673_s17 = scalar_select %p72_p5, %s6534_s24, %s74_s12  }
  0x19   : > { %8771 = sst [smem:[#allocation17_spill]] %s6670_s16  ;;  %p6677_p7 = por %p81_p6, %p52_p2 }
  0x1a   : > { %8772 = sst [smem:[#allocation18_spill]] %s6673_s17  ;;  %p160_p8 = scmp.eq.s32.totalorder %s5346_s30, 1 }
  0x1b   : > { %p165_p9 = scmp.ne.s32.totalorder %s6538_s25, %s6526_s22  ;;  %p166_p10 = scmp.eq.s32.totalorder %s5347_s7, 1 }
  0x1c   : > { %p6686_p11 = por %p160_p8, %p51_p1  ;;  %p6690_p12 = por %p160_p8, %p81_p6 }
  0x1d   : > { %p6694_p13 = por %p166_p10, %p165_p9  ;;  %p195_p0 = scmp.ne.s32.totalorder %s6530_s23, %s6522_s21 }
  0x1e   : > { %p8761_p4 = scmp.ge.s32.totalorder %s6554_s29, 2 }
  0x1f   : > { %p6700_p2 = por %p195_p0, %p166_p10 }
  0x20   : > { %250 = sbr.rel (%p8761_p4) target bundleno = 73 (0x49), region = 24 }
  0x25   : > { %253 = sbr.rel (!%p6657_p3) target bundleno = 55 (0x37), region = 28  ;;  %s255_s30 = sand.u32 (%p6657_p3), 1, %s6542_s26  }
  0x26   : > { %s6008_s7 = sshll.u32 (%p6657_p3), %s6550_s28, 8  ;;  %s5351_s13 = sshll.u32 (%p6657_p3), %s255_s30, 7 }
  0x27   : > { %s8778_s0 = sld [smem:[#allocation19_spill]] (%p6657_p3)  ;;  %s257_s11 = scalar_lea.vmem (%p6657_p3), [#allocation4], %s5351_s13 }
  0x2d   : > { %s6714_s10 = scalar_lea.vmem %s8778_s0, %s6008_s7 }
  0x2e   : > { %v277_v0 = vld [vmem:[%s6714_s10] sm:$0xff]  ;;  %v279_v1 = vld [vmem:[%s6714_s10 + $0x8] sm:$0xff] }
  0x2f   : > { %v281_v2 = vld [vmem:[%s6714_s10 + $0x20] sm:$0xff]  ;;  %278 = vst [vmem:[%s257_s11] sm:$0xff] %v277_v0  ;;  %280 = vst [vmem:[%s257_s11 + $0x8] sm:$0xff] %v279_v1  ;;  %v283_v3 = vld [vmem:[%s6714_s10 + $0x28] sm:$0xff] }
  0x30   : > { %282 = vst [vmem:[%s257_s11 + $0x10] sm:$0xff] %v281_v2  ;;  %v285_v4 = vld [vmem:[%s6714_s10 + $0x40] sm:$0xff]  ;;  %v287_v5 = vld [vmem:[%s6714_s10 + $0x48] sm:$0xff]  ;;  %284 = vst [vmem:[%s257_s11 + $0x18] sm:$0xff] %v283_v3 }
  0x31   : > { %286 = vst [vmem:[%s257_s11 + $0x20] sm:$0xff] %v285_v4  ;;  %288 = vst [vmem:[%s257_s11 + $0x28] sm:$0xff] %v287_v5  ;;  %v289_v6 = vld [vmem:[%s6714_s10 + $0x60] sm:$0xff]  ;;  %v291_v7 = vld [vmem:[%s6714_s10 + $0x68] sm:$0xff] }
  0x32   : > { %v293_v8 = vld [vmem:[%s6714_s10 + $0x80] sm:$0xff]  ;;  %290 = vst [vmem:[%s257_s11 + $0x30] sm:$0xff] %v289_v6  ;;  %292 = vst [vmem:[%s257_s11 + $0x38] sm:$0xff] %v291_v7  ;;  %v295_v9 = vld [vmem:[%s6714_s10 + $0x88] sm:$0xff] }
  0x33   : > { %294 = vst [vmem:[%s257_s11 + $0x40] sm:$0xff] %v293_v8  ;;  %v297_v10 = vld [vmem:[%s6714_s10 + $0xa0] sm:$0xff]  ;;  %v299_v11 = vld [vmem:[%s6714_s10 + $0xa8] sm:$0xff]  ;;  %296 = vst [vmem:[%s257_s11 + $0x48] sm:$0xff] %v295_v9 }
  0x34   : > { %298 = vst [vmem:[%s257_s11 + $0x50] sm:$0xff] %v297_v10  ;;  %300 = vst [vmem:[%s257_s11 + $0x58] sm:$0xff] %v299_v11  ;;  %v301_v12 = vld [vmem:[%s6714_s10 + $0xc0] sm:$0xff]  ;;  %v303_v13 = vld [vmem:[%s6714_s10 + $0xc8] sm:$0xff] }
  0x35   : > { %v305_v14 = vld [vmem:[%s6714_s10 + $0xe0] sm:$0xff]  ;;  %302 = vst [vmem:[%s257_s11 + $0x60] sm:$0xff] %v301_v12  ;;  %304 = vst [vmem:[%s257_s11 + $0x68] sm:$0xff] %v303_v13  ;;  %v307_v15 = vld [vmem:[%s6714_s10 + $0xe8] sm:$0xff] }
  0x36   : > { %306 = vst [vmem:[%s257_s11 + $0x70] sm:$0xff] %v305_v14  ;;  %308 = vst [vmem:[%s257_s11 + $0x78] sm:$0xff] %v307_v15 }
  0x37 PF: > { %314 = sbr.rel (!%p6677_p7) target bundleno = 73 (0x49), region = 51  ;;  %s316_s30 = sand.u32 (%p6677_p7), 1, %s6534_s24  }
  0x38   : > { %s8779_s7 = ssub.s32 (%p6677_p7), 1, %s6550_s28  ;;  %s5355_s14 = sshll.u32 (%p6677_p7), %s316_s30, 7 }
  0x39   : > { %s6009_s13 = sshll.u32 (%p6677_p7), %s8779_s7, 8  ;;  %s8780_s1 = sld [smem:[#allocation20_spill]] (%p6677_p7) }
  0x3a   : > { %s318_s10 = scalar_lea.vmem (%p6677_p7), [#allocation5], %s5355_s14 }
  0x3f   : > { %s6740_s8 = scalar_lea.vmem %s8780_s1, %s6009_s13 }
  0x40   : > { %v5358_v16 = vld [vmem:[%s6740_s8 + $0x10] sm:$0xff]  ;;  %v5359_v17 = vld [vmem:[%s6740_s8 + $0x18] sm:$0xff] }
  0x41   : > { %v5360_v18 = vld [vmem:[%s6740_s8 + $0x30] sm:$0xff]  ;;  %341 = vst [vmem:[%s318_s10] sm:$0xff] %v5358_v16  ;;  %343 = vst [vmem:[%s318_s10 + $0x8] sm:$0xff] %v5359_v17  ;;  %v5361_v19 = vld [vmem:[%s6740_s8 + $0x38] sm:$0xff] }
  0x42   : > { %345 = vst [vmem:[%s318_s10 + $0x10] sm:$0xff] %v5360_v18  ;;  %v5362_v20 = vld [vmem:[%s6740_s8 + $0x50] sm:$0xff]  ;;  %v5363_v21 = vld [vmem:[%s6740_s8 + $0x58] sm:$0xff]  ;;  %347 = vst [vmem:[%s318_s10 + $0x18] sm:$0xff] %v5361_v19 }
  0x43   : > { %349 = vst [vmem:[%s318_s10 + $0x20] sm:$0xff] %v5362_v20  ;;  %351 = vst [vmem:[%s318_s10 + $0x28] sm:$0xff] %v5363_v21  ;;  %v5364_v22 = vld [vmem:[%s6740_s8 + $0x70] sm:$0xff]  ;;  %v5365_v23 = vld [vmem:[%s6740_s8 + $0x78] sm:$0xff] }
  0x44   : > { %v5366_v24 = vld [vmem:[%s6740_s8 + $0x90] sm:$0xff]  ;;  %353 = vst [vmem:[%s318_s10 + $0x30] sm:$0xff] %v5364_v22  ;;  %355 = vst [vmem:[%s318_s10 + $0x38] sm:$0xff] %v5365_v23  ;;  %v5367_v25 = vld [vmem:[%s6740_s8 + $0x98] sm:$0xff] }
  0x45   : > { %357 = vst [vmem:[%s318_s10 + $0x40] sm:$0xff] %v5366_v24  ;;  %v5368_v26 = vld [vmem:[%s6740_s8 + $0xb0] sm:$0xff]  ;;  %v5369_v27 = vld [vmem:[%s6740_s8 + $0xb8] sm:$0xff]  ;;  %359 = vst [vmem:[%s318_s10 + $0x48] sm:$0xff] %v5367_v25 }
  0x46   : > { %361 = vst [vmem:[%s318_s10 + $0x50] sm:$0xff] %v5368_v26  ;;  %363 = vst [vmem:[%s318_s10 + $0x58] sm:$0xff] %v5369_v27  ;;  %v5370_v28 = vld [vmem:[%s6740_s8 + $0xd0] sm:$0xff]  ;;  %v5371_v29 = vld [vmem:[%s6740_s8 + $0xd8] sm:$0xff] }
  0x47   : > { %v5372_v30 = vld [vmem:[%s6740_s8 + $0xf0] sm:$0xff]  ;;  %365 = vst [vmem:[%s318_s10 + $0x60] sm:$0xff] %v5370_v28  ;;  %367 = vst [vmem:[%s318_s10 + $0x68] sm:$0xff] %v5371_v29  ;;  %v5373_v31 = vld [vmem:[%s6740_s8 + $0xf8] sm:$0xff] }
  0x48   : > { %369 = vst [vmem:[%s318_s10 + $0x70] sm:$0xff] %v5372_v30  ;;  %371 = vst [vmem:[%s318_s10 + $0x78] sm:$0xff] %v5373_v31 }
  0x49 PF: > { %p5374_p1 = scmp.ge.s32.totalorder %s6554_s29, 1  ;;  %p376_p3 = scmp.lt.s32.totalorder %s6554_s29, 3 }
  0x4b   : > { %p377_p5 = pnand %p5374_p1, %p376_p3 }
  0x4c   : > { %s6761_s0 = sand.u32 (!%p377_p5), 1, %s6538_s25   ;;  %s6764_s18 = sand.u32 (!%p377_p5), 1, %s6530_s23  }
  0x4d   : > { %380 = sbr.rel (%p377_p5) target bundleno = 1500 (0x5dc), region = 74  ;;  %s8781_s3 = sld [smem:[#allocation21_spill]] (!%p377_p5) }
  0x4e   : > { %s5375_s13 = sshll.u32 (!%p377_p5), %s6761_s0, 7  ;;  %s5376_s14 = sshll.u32 (!%p377_p5), %s6764_s18, 7 }
  0x4f   : > { %s5377_s15 = sshll.u32 (!%p377_p5), %s6761_s0, 5  ;;  %s5378_s10 = sshll.u32 (!%p377_p5), %s6764_s18, 5 }
  0x50   : > { %s6780_s1 = scalar_lea.vmem (!%p377_p5), [#allocation4], %s5375_s13  ;;  %s6782_s28 = scalar_lea.vmem (!%p377_p5), [#allocation5], %s5376_s14 }
  0x51   : > { %s6784_s16 = scalar_lea.vmem (!%p377_p5), [#allocation6], %s5377_s15  ;;  %s6786_s11 = scalar_lea.vmem (!%p377_p5), [#allocation8], %s5378_s10 }
  0x52   : > { %p5379_p6 = scmp.ne.s32.totalorder %s6546_s27, 0 }
  0x53   : > { %v6769_v32 = vld [vmem:[%s8781_s3] sm:$0xff]  ;;  %v6774_v33 = vld [vmem:[%s8781_s3 + $0x8] sm:$0xff] }
  0x54   : > { %467 = sbr.rel (%p5379_p6) target bundleno = 94 (0x5e), region = 86 }
  0x59   : > { %v6556_v34 = vmov 0.0  }
  0x5a   : > { %468 = vst [vmem:[#allocation2 + $0x10] sm:$0xff] %v6556_v34  ;;  %469 = vst [vmem:[#allocation2] sm:$0xff] %v6556_v34 }
  0x5b   : > { %470 = vst [vmem:[#allocation2 + $0x18] sm:$0xff] %v6556_v34  ;;  %471 = vst [vmem:[#allocation2 + $0x8] sm:$0xff] %v6556_v34 }
  0x5c   : > { %472 = vst [vmem:[#allocation3] sm:$0xff] %v6556_v34  ;;  %473 = vst [vmem:[#allocation3 + $0x18] sm:$0xff] %v6556_v34 }
  0x5d   : > { %474 = vst [vmem:[#allocation3 + $0x8] sm:$0xff] %v6556_v34  ;;  %475 = vst [vmem:[#allocation3 + $0x10] sm:$0xff] %v6556_v34 }
  0x5e PF: > { %v542_v35 = vld [vmem:[%s8749_s2 + $0x1c0] sm:$0xff]  ;;  %v543_v44 = vld [vmem:[%s8749_s2 + $0x1c8] sm:$0xff]  ;;  %s6832_s17 = sshll.u32 %s6546_s27, 2  ;;  %s8758_s10 = ssub.s32 1, %s6546_s27  ;;  %v6557_v0 = vmov 0  }
  0x5f   : > { %v546_v36 = vld [vmem:[%s8749_s2 + $0x1e0] sm:$0xff]  ;;  %v547_v45 = vld [vmem:[%s8749_s2 + $0x1e8] sm:$0xff]  ;;  %s6837_s30 = sshll.u32 %s8758_s10, 2  ;;  %v1495_v60 = vstv %s6832_s17  ;;  %6165 = vset.pattern.permute.xlu1 %v6557_v0  ;;  %6164 = vset.pattern.permute.xlu0 %v6557_v0  ;;  %s2653_s25 = sadd.s32 1, %s6832_s17 }
  0x60   : > { %v534_v37 = vld [vmem:[%s8749_s2 + $0x180] sm:$0xff]  ;;  %v5437_v38 = vcombine.high %v542_v35, %v546_v36  ;;  %v5436_v39 = vcombine.low %v542_v35, %v546_v36  ;;  %v5439_v47 = vcombine.high %v543_v44, %v547_v45  ;;  %v5438_v48 = vcombine.low %v543_v44, %v547_v45  ;;  %v535_v49 = vld [vmem:[%s8749_s2 + $0x188] sm:$0xff]  ;;  %s1599_s15 = sadd.s32 3, %s6837_s30  ;;  %s3915_s26 = sadd.s32 1, %s6837_s30 }
  0x61   : > { %v538_v40 = vld [vmem:[%s8749_s2 + $0x1a0] sm:$0xff]  ;;  %v539_v50 = vld [vmem:[%s8749_s2 + $0x1a8] sm:$0xff]  ;;  %vm1496_vm0 = vcmp.gt.s32.totalorder %v6769_v32, %v1495_v60  ;;  %vm1497_vm1 = vcmp.gt.s32.totalorder %v6774_v33, %v1495_v60  ;;  %v1600_v7 = vstv %s1599_s15  ;;  %s2757_s15 = sadd.s32 2, %s6837_s30  ;;  %v2654_v35 = vstv %s2653_s25  ;;  %s3811_s10 = sadd.s32 2, %s6832_s17 }
  0x62   : > { %v5429_v41 = vcombine.high %v534_v37, %v538_v40  ;;  %v526_v42 = vld [vmem:[%s8749_s2 + $0x140] sm:$0xff]  ;;  %1254 = vmatprep.subr.bf16.mxu0 %v5437_v38  ;;  %v5428_v46 = vcombine.low %v534_v37, %v538_v40  ;;  %v5431_v52 = vcombine.high %v535_v49, %v539_v50  ;;  %v527_v53 = vld [vmem:[%s8749_s2 + $0x148] sm:$0xff]  ;;  %1297 = vmatprep.subr.bf16.mxu1 %v5439_v47  ;;  %v1498_v6 = vsel %vm1496_vm0, 1, %v6557_v0  ;;  %s4969_s24 = sadd.s32 3, %s6832_s17  ;;  %p5994_p7 = scmp.ne.s32.totalorder %s6546_s27, 1 }
  0x63   : > { %v530_v43 = vld [vmem:[%s8749_s2 + $0x160] sm:$0xff]  ;;  %1255 = vmatpush1.bf16.msra.mxu0 %v5436_v39  ;;  %v531_v54 = vld [vmem:[%s8749_s2 + $0x168] sm:$0xff]  ;;  %1298 = vmatpush1.bf16.msra.mxu1 %v5438_v48  ;;  %v5430_v57 = vcombine.low %v535_v49, %v539_v50  ;;  %v1499_v13 = vsel %vm1497_vm1, 1, %v6557_v0  ;;  %vm1601_vm2 = vcmp.gt.s32.totalorder %v6769_v32, %v1600_v7  ;;  %vm1602_vm3 = vcmp.gt.s32.totalorder %v6774_v33, %v1600_v7 }
  0x64   : > { %1256 = vmatprep.subr.bf16.mxu0 %v5429_v41  ;;  %v5421_v51 = vcombine.high %v526_v42, %v530_v43  ;;  %v518_v55 = vld [vmem:[%s8749_s2 + $0x100] sm:$0xff]  ;;  %v5420_v58 = vcombine.low %v526_v42, %v530_v43  ;;  %1299 = vmatprep.subr.bf16.mxu1 %v5431_v52  ;;  %v5423_v59 = vcombine.high %v527_v53, %v531_v54  ;;  %v519_v62 = vld [vmem:[%s8749_s2 + $0x108] sm:$0xff]  ;;  %v1603_v17 = vsel %vm1601_vm2, 1, %v6557_v0 }
  0x65   : > { %v522_v56 = vld [vmem:[%s8749_s2 + $0x120] sm:$0xff]  ;;  %v523_v63 = vld [vmem:[%s8749_s2 + $0x128] sm:$0xff]  ;;  %v5422_v3 = vcombine.low %v527_v53, %v531_v54  ;;  %1501 = vperm.xlu1 %6165, %v1498_v6   ;;  %1606 = vperm.xlu0 %6164, %v1603_v17   ;;  %v2758_v26 = vstv %s2757_s15  ;;  %v1604_v38 = vsel %vm1602_vm3, 1, %v6557_v0  ;;  %vm2656_vm6 = vcmp.gt.s32.totalorder %v6774_v33, %v2654_v35 }
  0x66   : > { %v5413_v61 = vcombine.high %v518_v55, %v522_v56  ;;  %v510_v1 = vld [vmem:[%s8749_s2 + $0xc0] sm:$0xff]  ;;  %v5412_v4 = vcombine.low %v518_v55, %v522_v56  ;;  %v5415_v5 = vcombine.high %v519_v62, %v523_v63  ;;  %v511_v9 = vld [vmem:[%s8749_s2 + $0xc8] sm:$0xff]  ;;  %v5414_v14 = vcombine.low %v519_v62, %v523_v63 }
  0x67   : > { %1257 = vmatpush1.bf16.msra.mxu0 %v5428_v46  ;;  %v514_v2 = vld [vmem:[%s8749_s2 + $0xe0] sm:$0xff]  ;;  %1300 = vmatpush1.bf16.msra.mxu1 %v5430_v57  ;;  %v515_v10 = vld [vmem:[%s8749_s2 + $0xe8] sm:$0xff]  ;;  %vm2760_vm4 = vcmp.gt.s32.totalorder %v6774_v33, %v2758_v26  ;;  %vm2759_vm5 = vcmp.gt.s32.totalorder %v6769_v32, %v2758_v26  ;;  %v3916_v46 = vstv %s3915_s26  ;;  %vm2655_vm7 = vcmp.gt.s32.totalorder %v6769_v32, %v2654_v35 }
  0x68   : > { %1258 = vmatprep.subr.bf16.mxu0 %v5421_v51  ;;  %1301 = vmatprep.subr.bf16.mxu1 %v5423_v59  ;;  %v5405_v8 = vcombine.high %v510_v1, %v514_v2  ;;  %v502_v11 = vld [vmem:[%s8749_s2 + $0x80] sm:$0xff]  ;;  %v5404_v15 = vcombine.low %v510_v1, %v514_v2  ;;  %v5407_v16 = vcombine.high %v511_v9, %v515_v10  ;;  %v503_v19 = vld [vmem:[%s8749_s2 + $0x88] sm:$0xff]  ;;  %v2762_v40 = vsel %vm2760_vm4, 1, %v6557_v0 }
  0x69   : > { %v506_v12 = vld [vmem:[%s8749_s2 + $0xa0] sm:$0xff]  ;;  %v507_v20 = vld [vmem:[%s8749_s2 + $0xa8] sm:$0xff]  ;;  %1504 = vperm.xlu1 %6165, %v1499_v13   ;;  %v5406_v23 = vcombine.low %v511_v9, %v515_v10  ;;  %1609 = vperm.xlu0 %6164, %v1604_v38   ;;  %v2761_v49 = vsel %vm2759_vm5, 1, %v6557_v0  ;;  %v2658_v51 = vsel %vm2656_vm6, 1, %v6557_v0  ;;  %vm3918_vm8 = vcmp.gt.s32.totalorder %v6774_v33, %v3916_v46 }
  0x6a   : > { %v5397_v18 = vcombine.high %v502_v11, %v506_v12  ;;  %v494_v21 = vld [vmem:[%s8749_s2 + $0x40] sm:$0xff]  ;;  %v479_v25 = vld [vmem:[#allocation2 + $0x8] sm:$0xff]  ;;  %v5396_v27 = vcombine.low %v502_v11, %v506_v12  ;;  %v5399_v28 = vcombine.high %v503_v19, %v507_v20  ;;  %v5398_v39 = vcombine.low %v503_v19, %v507_v20 }
  0x6b   : > { %1259 = vmatpush1.bf16.msra.mxu0 %v5420_v58  ;;  %1302 = vmatpush1.bf16.msra.mxu1 %v5422_v3  ;;  %v498_v22 = vld [vmem:[%s8749_s2 + $0x60] sm:$0xff]  ;;  %v495_v31 = vld [vmem:[%s8749_s2 + $0x48] sm:$0xff]  ;;  %v2657_v59 = vsel %vm2655_vm7, 1, %v6557_v0  ;;  %vm3917_vm9 = vcmp.gt.s32.totalorder %v6769_v32, %v3916_v46  ;;  %v3812_v1 = vstv %s3811_s10  ;;  %v4970_v11 = vstv %s4969_s24 }
  0x6c   : > { %1260 = vmatprep.subr.bf16.mxu0 %v5413_v61  ;;  %1303 = vmatprep.subr.bf16.mxu1 %v5415_v5  ;;  %v477_v24 = vld [vmem:[#allocation2] sm:$0xff]  ;;  %v5389_v30 = vcombine.high %v494_v21, %v498_v22  ;;  %v499_v34 = vld [vmem:[%s8749_s2 + $0x68] sm:$0xff]  ;;  %v5388_v41 = vcombine.low %v494_v21, %v498_v22  ;;  %v3920_v61 = vsel %vm3918_vm8, 1, %v6557_v0  ;;  %v3919_v7 = vsel %vm3917_vm9, 1, %v6557_v0 }
  0x6d   : > { %v6888_v29 = vpack.c.bf16 %v479_v25, %v477_v24  ;;  %v486_v36 = vld [vmem:[%s8749_s2] sm:$0xff]  ;;  %v5391_v42 = vcombine.high %v495_v31, %v499_v34  ;;  %v487_v44 = vld [vmem:[%s8749_s2 + $0x8] sm:$0xff]  ;;  %2767 = vperm.xlu1 %6165, %v2762_v40   ;;  %v5390_v50 = vcombine.low %v495_v31, %v499_v34  ;;  %2764 = vperm.xlu0 %6164, %v2761_v49   ;;  %v5072_v22 = vstv %s6837_s30 }
  0x6e   : > { %v490_v37 = vld [vmem:[%s8749_s2 + $0x20] sm:$0xff]  ;;  %v491_v45 = vld [vmem:[%s8749_s2 + $0x28] sm:$0xff]  ;;  %vm3813_vm10 = vcmp.gt.s32.totalorder %v6769_v32, %v3812_v1  ;;  %vm3814_vm11 = vcmp.gt.s32.totalorder %v6774_v33, %v3812_v1  ;;  %vm4971_vm12 = vcmp.gt.s32.totalorder %v6769_v32, %v4970_v11  ;;  %vm4972_vm13 = vcmp.gt.s32.totalorder %v6774_v33, %v4970_v11 }
  0x6f   : > { %1261 = vmatpush1.bf16.msra.mxu0 %v5412_v4  ;;  %1304 = vmatpush1.bf16.msra.mxu1 %v5414_v14  ;;  %v5381_v43 = vcombine.high %v486_v36, %v490_v37  ;;  %v606_v47 = vld [vmem:[%s8749_s2 + $0x3c0] sm:$0xff]  ;;  %v5380_v52 = vcombine.low %v486_v36, %v490_v37  ;;  %v5383_v53 = vcombine.high %v487_v44, %v491_v45  ;;  %v607_v55 = vld [vmem:[%s8749_s2 + $0x3c8] sm:$0xff]  ;;  %v4974_v26 = vsel %vm4972_vm13, 1, %v6557_v0 }
  0x70   : > { %1262 = vmatprep.subr.bf16.mxu0 %v5405_v8  ;;  %1305 = vmatprep.subr.bf16.mxu1 %v5407_v16  ;;  %v610_v48 = vld [vmem:[%s8749_s2 + $0x3e0] sm:$0xff]  ;;  %v611_v56 = vld [vmem:[%s8749_s2 + $0x3e8] sm:$0xff]  ;;  %v5382_v60 = vcombine.low %v487_v44, %v491_v45  ;;  %vm5073_vm14 = vcmp.gt.s32.totalorder %v6769_v32, %v5072_v22  ;;  %vm5074_vm15 = vcmp.gt.s32.totalorder %v6774_v33, %v5072_v22 }
  0x71   : > { %1286 = vmatprep.mubr.bf16.mxu0 %v6888_v29  ;;  %1329 = vmatprep.mubr.bf16.mxu1 %v6888_v29  ;;  %v5501_v54 = vcombine.high %v606_v47, %v610_v48  ;;  %v598_v57 = vld [vmem:[%s8749_s2 + $0x380] sm:$0xff]  ;;  %v5500_v62 = vcombine.low %v606_v47, %v610_v48  ;;  %v5503_v63 = vcombine.high %v607_v55, %v611_v56  ;;  %v599_v3 = vld [vmem:[%s8749_s2 + $0x388] sm:$0xff]  ;;  %v5075_v40 = vsel %vm5073_vm14, 1, %v6557_v0 }
  0x72   : > { %v602_v58 = vld [vmem:[%s8749_s2 + $0x3a0] sm:$0xff]  ;;  %2663 = vperm.xlu1 %6165, %v2658_v51   ;;  %v603_v4 = vld [vmem:[%s8749_s2 + $0x3a8] sm:$0xff]  ;;  %2660 = vperm.xlu0 %6164, %v2657_v59   ;;  %v5502_v8 = vcombine.low %v607_v55, %v611_v56 }
  0x73   : > { %1263 = vmatpush1.bf16.msra.mxu0 %v5404_v15  ;;  %1306 = vmatpush1.bf16.msra.mxu1 %v5406_v23  ;;  %v5493_v2 = vcombine.high %v598_v57, %v602_v58  ;;  %v590_v5 = vld [vmem:[%s8749_s2 + $0x340] sm:$0xff]  ;;  %v5492_v9 = vcombine.low %v598_v57, %v602_v58  ;;  %v5495_v10 = vcombine.high %v599_v3, %v603_v4  ;;  %v591_v13 = vld [vmem:[%s8749_s2 + $0x348] sm:$0xff]  ;;  %v3816_v15 = vsel %vm3814_vm11, 1, %v6557_v0 }
  0x74   : > { %1264 = vmatprep.subr.bf16.mxu0 %v5397_v18  ;;  %1307 = vmatprep.subr.bf16.mxu1 %v5399_v28  ;;  %v594_v6 = vld [vmem:[%s8749_s2 + $0x360] sm:$0xff]  ;;  %v595_v14 = vld [vmem:[%s8749_s2 + $0x368] sm:$0xff]  ;;  %v3815_v18 = vsel %vm3813_vm10, 1, %v6557_v0  ;;  %v5494_v19 = vcombine.low %v599_v3, %v603_v4  ;;  %v7043_v3 = vld [vmem:[#allocation2 + $0x10] sm:$0xff] }
  0x75   : > { %v5485_v12 = vcombine.high %v590_v5, %v594_v6  ;;  %v582_v16 = vld [vmem:[%s8749_s2 + $0x300] sm:$0xff]  ;;  %v5484_v20 = vcombine.low %v590_v5, %v594_v6  ;;  %v5487_v21 = vcombine.high %v591_v13, %v595_v14  ;;  %v583_v24 = vld [vmem:[%s8749_s2 + $0x308] sm:$0xff]  ;;  %v5486_v31 = vcombine.low %v591_v13, %v595_v14  ;;  %v7045_v4 = vld [vmem:[#allocation2 + $0x18] sm:$0xff] }
  0x76   : > { %3925 = vperm.xlu1 %6165, %v3920_v61   ;;  %3922 = vperm.xlu0 %6164, %v3919_v7   ;;  %v586_v17 = vld [vmem:[%s8749_s2 + $0x320] sm:$0xff]  ;;  %v587_v25 = vld [vmem:[%s8749_s2 + $0x328] sm:$0xff]  ;;  %v545_v7 = vld [vmem:[%s8749_s2 + $0x1d8] sm:$0xff]  ;;  %v7061_v11 = vpack.c.bf16 %v7045_v4, %v7043_v3 }
  0x77   : > { %1265 = vmatpush1.bf16.msra.mxu0 %v5396_v27  ;;  %1308 = vmatpush1.bf16.msra.mxu1 %v5398_v39  ;;  %v5477_v23 = vcombine.high %v582_v16, %v586_v17  ;;  %v574_v27 = vld [vmem:[%s8749_s2 + $0x2c0] sm:$0xff]  ;;  %v5476_v34 = vcombine.low %v582_v16, %v586_v17  ;;  %v5479_v35 = vcombine.high %v583_v24, %v587_v25  ;;  %v575_v37 = vld [vmem:[%s8749_s2 + $0x2c8] sm:$0xff]  ;;  %v5076_v39 = vsel %vm5074_vm15, 1, %v6557_v0  ;;  %v537_v16 = vld [vmem:[%s8749_s2 + $0x198] sm:$0xff] }
  0x78   : > { %1266 = vmatprep.subr.bf16.mxu0 %v5389_v30  ;;  %1309 = vmatprep.subr.bf16.mxu1 %v5391_v42  ;;  %v578_v28 = vld [vmem:[%s8749_s2 + $0x2e0] sm:$0xff]  ;;  %v4973_v30 = vsel %vm4971_vm12, 1, %v6557_v0  ;;  %v579_v38 = vld [vmem:[%s8749_s2 + $0x2e8] sm:$0xff]  ;;  %v541_v17 = vld [vmem:[%s8749_s2 + $0x1b8] sm:$0xff] }
  0x79   : > { %v5469_v36 = vcombine.high %v574_v27, %v578_v28  ;;  %v566_v32 = vld [vmem:[%s8749_s2 + $0x280] sm:$0xff]  ;;  %v5468_v42 = vcombine.low %v574_v27, %v578_v28  ;;  %v567_v45 = vld [vmem:[%s8749_s2 + $0x288] sm:$0xff]  ;;  %v5470_v48 = vcombine.low %v575_v37, %v579_v38  ;;  %v5435_v22 = vcombine.high %v537_v16, %v541_v17  ;;  %v524_v27 = vld [vmem:[%s8749_s2 + $0x130] sm:$0xff] }
  0x7a   : > { %3821 = vperm.xlu1 %6165, %v3816_v15   ;;  %3818 = vperm.xlu0 %6164, %v3815_v18   ;;  %v570_v33 = vld [vmem:[%s8749_s2 + $0x2a0] sm:$0xff]  ;;  %v571_v46 = vld [vmem:[%s8749_s2 + $0x2a8] sm:$0xff]  ;;  %v528_v18 = vld [vmem:[%s8749_s2 + $0x150] sm:$0xff]  ;;  %v5434_v28 = vcombine.low %v537_v16, %v541_v17 }
  0x7b   : > { %1267 = vmatpush1.bf16.msra.mxu0 %v5388_v41  ;;  %1310 = vmatpush1.bf16.msra.mxu1 %v5390_v50  ;;  %v5478_v41 = vcombine.low %v583_v24, %v587_v25  ;;  %v5461_v44 = vcombine.high %v566_v32, %v570_v33  ;;  %v558_v0 = vld [vmem:[%s8749_s2 + $0x240] sm:$0xff]  ;;  %v5460_v49 = vcombine.low %v566_v32, %v570_v33  ;;  %v555_v61 = vld [vmem:[%s8749_s2 + $0x228] sm:$0xff]  ;;  %v529_v24 = vld [vmem:[%s8749_s2 + $0x158] sm:$0xff] }
  0x7c   : > { %1268 = vmatprep.subr.bf16.mxu0 %v5381_v43  ;;  %1311 = vmatprep.subr.bf16.mxu1 %v5383_v53  ;;  %v5471_v43 = vcombine.high %v575_v37, %v579_v38  ;;  %v562_v47 = vld [vmem:[%s8749_s2 + $0x260] sm:$0xff]  ;;  %v5463_v50 = vcombine.high %v567_v45, %v571_v46  ;;  %v563_v53 = vld [vmem:[%s8749_s2 + $0x268] sm:$0xff]  ;;  %v5462_v56 = vcombine.low %v567_v45, %v571_v46  ;;  %v533_v25 = vld [vmem:[%s8749_s2 + $0x178] sm:$0xff] }
  0x7d   : > { %v5453_v51 = vcombine.high %v558_v0, %v562_v47  ;;  %v554_v55 = vld [vmem:[%s8749_s2 + $0x220] sm:$0xff]  ;;  %v5452_v57 = vcombine.low %v558_v0, %v562_v47  ;;  %v512_v37 = vld [vmem:[%s8749_s2 + $0xd0] sm:$0xff]  ;;  %v5426_v38 = vcombine.low %v529_v24, %v533_v25  ;;  %v505_v47 = vld [vmem:[%s8749_s2 + $0x98] sm:$0xff] }
  0x7e   : > { %4979 = vperm.xlu1 %6165, %v4974_v26   ;;  %4976 = vperm.xlu0 %6164, %v4973_v30   ;;  %v520_v26 = vld [vmem:[%s8749_s2 + $0x110] sm:$0xff] }
  0x7f   : > { %1269 = vmatpush1.bf16.msra.mxu0 %v5380_v52  ;;  %1312 = vmatpush1.bf16.msra.mxu1 %v5382_v60  ;;  %v559_v52 = vld [vmem:[%s8749_s2 + $0x248] sm:$0xff] }
  0x80   : > { %1270 = vmatprep.subr.bf16.mxu0 %v5501_v54  ;;  %1313 = vmatprep.subr.bf16.mxu1 %v5503_v63  ;;  %v550_v54 = vld [vmem:[%s8749_s2 + $0x200] sm:$0xff]  ;;  %v5455_v58 = vcombine.high %v559_v52, %v563_v53  ;;  %v551_v60 = vld [vmem:[%s8749_s2 + $0x208] sm:$0xff]  ;;  %v548_v63 = vld [vmem:[%s8749_s2 + $0x1f0] sm:$0xff]  ;;  %v5454_v1 = vcombine.low %v559_v52, %v563_v53 }
  0x81   : > { %v5445_v59 = vcombine.high %v550_v54, %v554_v55  ;;  %v5447_v5 = vcombine.high %v551_v60, %v555_v61 }
  0x82   : > { %5081 = vperm.xlu1 %6165, %v5076_v39   ;;  %5078 = vperm.xlu0 %6164, %v5075_v40   ;;  %v5416_v39 = vcombine.low %v520_v26, %v524_v27  ;;  %v513_v40 = vld [vmem:[%s8749_s2 + $0xd8] sm:$0xff] }
  0x83   : > { %1271 = vmatpush2.bf16.msra.mxu0 %v5500_v62  ;;  %1314 = vmatpush2.bf16.msra.mxu1 %v5502_v8  ;;  %v544_v62 = vld [vmem:[%s8749_s2 + $0x1d0] sm:$0xff]  ;;  %v549_v8 = vld [vmem:[%s8749_s2 + $0x1f8] sm:$0xff] }
  0x84   : > { %1272 = vmatprep.subr.bf16.mxu0 %v5493_v2  ;;  %1315 = vmatprep.subr.bf16.mxu1 %v5495_v10  ;;  %v5444_v2 = vcombine.low %v550_v54, %v554_v55  ;;  %v5441_v6 = vcombine.high %v544_v62, %v548_v63  ;;  %v540_v10 = vld [vmem:[%s8749_s2 + $0x1b0] sm:$0xff]  ;;  %v5440_v13 = vcombine.low %v544_v62, %v548_v63  ;;  %v497_v55 = vld [vmem:[%s8749_s2 + $0x58] sm:$0xff] }
  0x85   : > { %v5443_v14 = vcombine.high %v545_v7, %v549_v8  ;;  %v489_v63 = vld [vmem:[%s8749_s2 + $0x18] sm:$0xff] }
  0x87   : > { %1273 = vmatpush2.bf16.msra.mxu0 %v5492_v9  ;;  %1316 = vmatpush2.bf16.msra.mxu1 %v5494_v19  ;;  %v536_v9 = vld [vmem:[%s8749_s2 + $0x190] sm:$0xff] }
  0x88   : > { %1274 = vmatprep.subr.bf16.mxu0 %v5485_v12  ;;  %1317 = vmatprep.subr.bf16.mxu1 %v5487_v21  ;;  %v5446_v12 = vcombine.low %v551_v60, %v555_v61  ;;  %v5433_v15 = vcombine.high %v536_v9, %v540_v10  ;;  %v532_v19 = vld [vmem:[%s8749_s2 + $0x170] sm:$0xff]  ;;  %v5432_v21 = vcombine.low %v536_v9, %v540_v10  ;;  %v609_v10 = vld [vmem:[%s8749_s2 + $0x3d8] sm:$0xff] }
  0x89   : > { %v5424_v30 = vcombine.low %v528_v18, %v532_v19 }
  0x8b   : > { %1275 = vmatpush2.bf16.msra.mxu0 %v5484_v20  ;;  %1318 = vmatpush2.bf16.msra.mxu1 %v5486_v31  ;;  %v5442_v20 = vcombine.low %v545_v7, %v549_v8  ;;  %v5427_v31 = vcombine.high %v529_v24, %v533_v25 }
  0x8c   : > { %1276 = vmatprep.subr.bf16.mxu0 %v5477_v23  ;;  %1319 = vmatprep.subr.bf16.mxu1 %v5479_v35  ;;  %v5425_v23 = vcombine.high %v528_v18, %v532_v19  ;;  %v521_v35 = vld [vmem:[%s8749_s2 + $0x118] sm:$0xff] }
  0x8d   : > { %v601_v19 = vld [vmem:[%s8749_s2 + $0x398] sm:$0xff] }
  0x8f   : > { %1277 = vmatpush2.bf16.msra.mxu0 %v5476_v34  ;;  %1320 = vmatpush2.bf16.msra.mxu1 %v5478_v41  ;;  %v5417_v34 = vcombine.high %v520_v26, %v524_v27  ;;  %v517_v41 = vld [vmem:[%s8749_s2 + $0xf8] sm:$0xff] }
  0x90   : > { %1278 = vmatprep.subr.bf16.mxu0 %v5469_v36  ;;  %1321 = vmatprep.subr.bf16.mxu1 %v5471_v43  ;;  %v525_v36 = vld [vmem:[%s8749_s2 + $0x138] sm:$0xff]  ;;  %v508_v43 = vld [vmem:[%s8749_s2 + $0xb0] sm:$0xff]  ;;  %v5411_v46 = vcombine.high %v513_v40, %v517_v41 }
  0x91   : > { %v5419_v32 = vcombine.high %v521_v35, %v525_v36  ;;  %v593_v27 = vld [vmem:[%s8749_s2 + $0x358] sm:$0xff] }
  0x93   : > { %1279 = vmatpush2.bf16.msra.mxu0 %v5468_v42  ;;  %1322 = vmatpush2.bf16.msra.mxu1 %v5470_v48  ;;  %v504_v42 = vld [vmem:[%s8749_s2 + $0x90] sm:$0xff]  ;;  %v509_v48 = vld [vmem:[%s8749_s2 + $0xb8] sm:$0xff] }
  0x94   : > { %1280 = vmatprep.subr.bf16.mxu0 %v5461_v44  ;;  %1323 = vmatprep.subr.bf16.mxu1 %v5463_v50  ;;  %v5418_v44 = vcombine.low %v521_v35, %v525_v36  ;;  %v5401_v0 = vcombine.high %v504_v42, %v508_v43  ;;  %v500_v50 = vld [vmem:[%s8749_s2 + $0x70] sm:$0xff]  ;;  %v5400_v52 = vcombine.low %v504_v42, %v508_v43  ;;  %v577_v43 = vld [vmem:[%s8749_s2 + $0x2d8] sm:$0xff] }
  0x95   : > { %v5403_v53 = vcombine.high %v505_v47, %v509_v48 }
  0x97   : > { %1281 = vmatpush2.bf16.msra.mxu0 %v5460_v49  ;;  %1324 = vmatpush2.bf16.msra.mxu1 %v5462_v56  ;;  %v496_v49 = vld [vmem:[%s8749_s2 + $0x50] sm:$0xff]  ;;  %v501_v56 = vld [vmem:[%s8749_s2 + $0x78] sm:$0xff] }
  0x98   : > { %1282 = vmatprep.subr.bf16.mxu0 %v5453_v51  ;;  %1325 = vmatprep.subr.bf16.mxu1 %v5455_v58  ;;  %v5410_v51 = vcombine.low %v513_v40, %v517_v41  ;;  %v5393_v54 = vcombine.high %v496_v49, %v500_v50  ;;  %v492_v58 = vld [vmem:[%s8749_s2 + $0x30] sm:$0xff]  ;;  %v5392_v60 = vcombine.low %v496_v49, %v500_v50  ;;  %v569_v50 = vld [vmem:[%s8749_s2 + $0x298] sm:$0xff] }
  0x99   : > { %v5395_v61 = vcombine.high %v497_v55, %v501_v56 }
  0x9b   : > { %1283 = vmatpush2.bf16.msra.mxu0 %v5452_v57  ;;  %1326 = vmatpush2.bf16.msra.mxu1 %v5454_v1  ;;  %v488_v57 = vld [vmem:[%s8749_s2 + $0x10] sm:$0xff]  ;;  %v493_v1 = vld [vmem:[%s8749_s2 + $0x38] sm:$0xff] }
  0x9c   : > { %1284 = vmatprep.subr.bf16.mxu0 %v5445_v59  ;;  %1327 = vmatprep.subr.bf16.mxu1 %v5447_v5  ;;  %v5402_v59 = vcombine.low %v505_v47, %v509_v48  ;;  %v5385_v62 = vcombine.high %v488_v57, %v492_v58  ;;  %v612_v5 = vld [vmem:[%s8749_s2 + $0x3f0] sm:$0xff]  ;;  %v5384_v7 = vcombine.low %v488_v57, %v492_v58  ;;  %v561_v58 = vld [vmem:[%s8749_s2 + $0x258] sm:$0xff] }
  0x9d   : > { %v5387_v8 = vcombine.high %v489_v63, %v493_v1 }
  0x9f   : > { %1285 = vmatpush2.bf16.msra.mxu0 %v5444_v2  ;;  %1328 = vmatpush2.bf16.msra.mxu1 %v5446_v12  ;;  %v608_v2 = vld [vmem:[%s8749_s2 + $0x3d0] sm:$0xff]  ;;  %v613_v12 = vld [vmem:[%s8749_s2 + $0x3f8] sm:$0xff] }
  0xa0   : > { %1340 = vmatprep.subr.bf16.mxu0 %v5441_v6  ;;  %1383 = vmatprep.subr.bf16.mxu1 %v5443_v14  ;;  %v5394_v6 = vcombine.low %v497_v55, %v501_v56  ;;  %v5505_v9 = vcombine.high %v608_v2, %v612_v5  ;;  %v604_v14 = vld [vmem:[%s8749_s2 + $0x3b0] sm:$0xff]  ;;  %v5504_v16 = vcombine.low %v608_v2, %v612_v5  ;;  %v553_v5 = vld [vmem:[%s8749_s2 + $0x218] sm:$0xff] }
  0xa1   : > { %v5507_v17 = vcombine.high %v609_v10, %v613_v12 }
  0xa2   : > { %1287 = vmatmul.mubr.bf16.vlgmr.msra.gmra.mxu0 %v7061_v11  ;;  %1330 = vmatmul.mubr.bf16.vlgmr.msra.gmra.mxu1 %v7061_v11 }
  0xa3   : > { %1341 = vmatpush1.bf16.msra.mxu0 %v5440_v13  ;;  %1372 = vmatprep.mubr.bf16.mxu0 %v6888_v29  ;;  %v600_v13 = vld [vmem:[%s8749_s2 + $0x390] sm:$0xff] }
  0xa4   : > { %1342 = vmatprep.subr.bf16.mxu0 %v5433_v15  ;;  %1384 = vmatpush1.bf16.msra.mxu1 %v5442_v20  ;;  %v5386_v15 = vcombine.low %v489_v63, %v493_v1  ;;  %v5497_v18 = vcombine.high %v600_v13, %v604_v14  ;;  %v605_v20 = vld [vmem:[%s8749_s2 + $0x3b8] sm:$0xff]  ;;  %v5496_v24 = vcombine.low %v600_v13, %v604_v14  ;;  %v1704_v13 = vld [vmem:[%s8749_s2 + $0x1e0] sm:$0xff]  ;;  %v1701_v14 = vld [vmem:[%s8749_s2 + $0x1c8] sm:$0xff] }
  0xa5   : > { %1415 = vmatprep.mubr.bf16.mxu1 %v6888_v29  ;;  %1385 = vmatprep.subr.bf16.mxu1 %v5435_v22  ;;  %v516_v29 = vld [vmem:[%s8749_s2 + $0xf0] sm:$0xff]  ;;  %v5499_v25 = vcombine.high %v601_v19, %v605_v20 }
  0xa6   : > { %v5409_v33 = vcombine.high %v512_v37, %v516_v29  ;;  %v5408_v45 = vcombine.low %v512_v37, %v516_v29  ;;  %v596_v22 = vld [vmem:[%s8749_s2 + $0x370] sm:$0xff]  ;;  %v585_v29 = vld [vmem:[%s8749_s2 + $0x318] sm:$0xff] }
  0xa7   : > { %1343 = vmatpush1.bf16.msra.mxu0 %v5432_v21  ;;  %v592_v21 = vld [vmem:[%s8749_s2 + $0x350] sm:$0xff] }
  0xa8   : > { %1344 = vmatprep.subr.bf16.mxu0 %v5425_v23  ;;  %1386 = vmatpush1.bf16.msra.mxu1 %v5434_v28  ;;  %v5506_v23 = vcombine.low %v609_v10, %v613_v12  ;;  %v5489_v26 = vcombine.high %v592_v21, %v596_v22  ;;  %v597_v28 = vld [vmem:[%s8749_s2 + $0x378] sm:$0xff]  ;;  %v5488_v35 = vcombine.low %v592_v21, %v596_v22  ;;  %v1700_v12 = vld [vmem:[%s8749_s2 + $0x1c0] sm:$0xff]  ;;  %v1693_v21 = vld [vmem:[%s8749_s2 + $0x188] sm:$0xff] }
  0xa9   : > { %1387 = vmatprep.subr.bf16.mxu1 %v5427_v31  ;;  %v588_v31 = vld [vmem:[%s8749_s2 + $0x330] sm:$0xff]  ;;  %v5491_v36 = vcombine.high %v593_v27, %v597_v28 }
  0xab   : > { %1345 = vmatpush1.bf16.msra.mxu0 %v5424_v30  ;;  %v584_v30 = vld [vmem:[%s8749_s2 + $0x310] sm:$0xff] }
  0xac   : > { %1346 = vmatprep.subr.bf16.mxu0 %v5417_v34  ;;  %1388 = vmatpush1.bf16.msra.mxu1 %v5426_v38  ;;  %v5498_v34 = vcombine.low %v601_v19, %v605_v20  ;;  %v5481_v37 = vcombine.high %v584_v30, %v588_v31  ;;  %v589_v38 = vld [vmem:[%s8749_s2 + $0x338] sm:$0xff]  ;;  %v5480_v40 = vcombine.low %v584_v30, %v588_v31  ;;  %v1692_v19 = vld [vmem:[%s8749_s2 + $0x180] sm:$0xff]  ;;  %v1685_v30 = vld [vmem:[%s8749_s2 + $0x148] sm:$0xff] }
  0xad   : > { %1389 = vmatprep.subr.bf16.mxu1 %v5419_v32  ;;  %v580_v32 = vld [vmem:[%s8749_s2 + $0x2f0] sm:$0xff]  ;;  %v5483_v41 = vcombine.high %v585_v29, %v589_v38  ;;  %v1696_v20 = vld [vmem:[%s8749_s2 + $0x1a0] sm:$0xff] }
  0xae   : > { %v5581_v22 = vcombine.high %v1692_v19, %v1696_v20 }
  0xaf   : > { %1347 = vmatpush1.bf16.msra.mxu0 %v5416_v39  ;;  %v576_v39 = vld [vmem:[%s8749_s2 + $0x2d0] sm:$0xff] }
  0xb0   : > { %1348 = vmatprep.subr.bf16.mxu0 %v5409_v33  ;;  %1390 = vmatpush1.bf16.msra.mxu1 %v5418_v44  ;;  %v5490_v33 = vcombine.low %v593_v27, %v597_v28  ;;  %v5473_v42 = vcombine.high %v576_v39, %v580_v32  ;;  %v581_v44 = vld [vmem:[%s8749_s2 + $0x2f8] sm:$0xff]  ;;  %v5472_v47 = vcombine.low %v576_v39, %v580_v32  ;;  %v1684_v27 = vld [vmem:[%s8749_s2 + $0x140] sm:$0xff]  ;;  %v1677_v39 = vld [vmem:[%s8749_s2 + $0x108] sm:$0xff] }
  0xb1   : > { %1391 = vmatprep.subr.bf16.mxu1 %v5411_v46  ;;  %v572_v46 = vld [vmem:[%s8749_s2 + $0x2b0] sm:$0xff]  ;;  %v5475_v48 = vcombine.high %v577_v43, %v581_v44  ;;  %v1688_v28 = vld [vmem:[%s8749_s2 + $0x160] sm:$0xff] }
  0xb2   : > { %v5573_v31 = vcombine.high %v1684_v27, %v1688_v28 }
  0xb3   : > { %1349 = vmatpush1.bf16.msra.mxu0 %v5408_v45  ;;  %v568_v45 = vld [vmem:[%s8749_s2 + $0x290] sm:$0xff] }
  0xb4   : > { %1350 = vmatprep.subr.bf16.mxu0 %v5401_v0  ;;  %1392 = vmatpush1.bf16.msra.mxu1 %v5410_v51  ;;  %v5482_v0 = vcombine.low %v585_v29, %v589_v38  ;;  %v5465_v49 = vcombine.high %v568_v45, %v572_v46  ;;  %v573_v51 = vld [vmem:[%s8749_s2 + $0x2b8] sm:$0xff]  ;;  %v5464_v55 = vcombine.low %v568_v45, %v572_v46  ;;  %v1676_v29 = vld [vmem:[%s8749_s2 + $0x100] sm:$0xff]  ;;  %v1669_v45 = vld [vmem:[%s8749_s2 + $0xc8] sm:$0xff] }
  0xb5   : > { %1393 = vmatprep.subr.bf16.mxu1 %v5403_v53  ;;  %v564_v53 = vld [vmem:[%s8749_s2 + $0x270] sm:$0xff]  ;;  %v5467_v56 = vcombine.high %v569_v50, %v573_v51  ;;  %v1680_v38 = vld [vmem:[%s8749_s2 + $0x120] sm:$0xff] }
  0xb6   : > { %v5565_v32 = vcombine.high %v1676_v29, %v1680_v38 }
  0xb7   : > { %1351 = vmatpush1.bf16.msra.mxu0 %v5400_v52  ;;  %v560_v52 = vld [vmem:[%s8749_s2 + $0x250] sm:$0xff] }
  0xb8   : > { %1352 = vmatprep.subr.bf16.mxu0 %v5393_v54  ;;  %1394 = vmatpush1.bf16.msra.mxu1 %v5402_v59  ;;  %v5474_v54 = vcombine.low %v577_v43, %v581_v44  ;;  %v5457_v57 = vcombine.high %v560_v52, %v564_v53  ;;  %v565_v59 = vld [vmem:[%s8749_s2 + $0x278] sm:$0xff]  ;;  %v5456_v63 = vcombine.low %v560_v52, %v564_v53  ;;  %v1668_v43 = vld [vmem:[%s8749_s2 + $0xc0] sm:$0xff]  ;;  %v1661_v52 = vld [vmem:[%s8749_s2 + $0x88] sm:$0xff] }
  0xb9   : > { %1395 = vmatprep.subr.bf16.mxu1 %v5395_v61  ;;  %v556_v61 = vld [vmem:[%s8749_s2 + $0x230] sm:$0xff]  ;;  %v5459_v1 = vcombine.high %v561_v58, %v565_v59  ;;  %v1672_v44 = vld [vmem:[%s8749_s2 + $0xe0] sm:$0xff] }
  0xba   : > { %v5557_v46 = vcombine.high %v1668_v43, %v1672_v44 }
  0xbb   : > { %1353 = vmatpush1.bf16.msra.mxu0 %v5392_v60  ;;  %v552_v60 = vld [vmem:[%s8749_s2 + $0x210] sm:$0xff] }
  0xbc   : > { %1354 = vmatprep.subr.bf16.mxu0 %v5385_v62  ;;  %1396 = vmatpush1.bf16.msra.mxu1 %v5394_v6  ;;  %v5466_v62 = vcombine.low %v569_v50, %v573_v51  ;;  %v5449_v2 = vcombine.high %v552_v60, %v556_v61  ;;  %v557_v6 = vld [vmem:[%s8749_s2 + $0x238] sm:$0xff]  ;;  %v1660_v50 = vld [vmem:[%s8749_s2 + $0x80] sm:$0xff] }
  0xbd   : > { %1397 = vmatprep.subr.bf16.mxu1 %v5387_v8  ;;  %v5448_v8 = vcombine.low %v552_v60, %v556_v61  ;;  %v5450_v10 = vcombine.low %v553_v5, %v557_v6  ;;  %v1664_v51 = vld [vmem:[%s8749_s2 + $0xa0] sm:$0xff]  ;;  %v1653_v60 = vld [vmem:[%s8749_s2 + $0x48] sm:$0xff] }
  0xbe   : > { %v5549_v53 = vcombine.high %v1660_v50, %v1664_v51 }
  0xbf   : > { %1355 = vmatpush1.bf16.msra.mxu0 %v5384_v7  ;;  %v5458_v7 = vcombine.low %v561_v58, %v565_v59  ;;  %v1652_v58 = vld [vmem:[%s8749_s2 + $0x40] sm:$0xff] }
  0xc0   : > { %1356 = vmatprep.subr.bf16.mxu0 %v5505_v9  ;;  %1398 = vmatpush1.bf16.msra.mxu1 %v5386_v15  ;;  %v5451_v9 = vcombine.high %v553_v5, %v557_v6  ;;  %v5589_v15 = vcombine.high %v1700_v12, %v1704_v13  ;;  %v1656_v59 = vld [vmem:[%s8749_s2 + $0x60] sm:$0xff] }
  0xc1   : > { %1399 = vmatprep.subr.bf16.mxu1 %v5507_v17  ;;  %v5588_v17 = vcombine.low %v1700_v12, %v1704_v13  ;;  %v5541_v61 = vcombine.high %v1652_v58, %v1656_v59  ;;  %v1644_v5 = vld [vmem:[%s8749_s2] sm:$0xff] }
  0xc2   : > { %v1648_v6 = vld [vmem:[%s8749_s2 + $0x20] sm:$0xff] }
  0xc3   : > { %1357 = vmatpush2.bf16.msra.mxu0 %v5504_v16  ;;  %v1705_v16 = vld [vmem:[%s8749_s2 + $0x1e8] sm:$0xff] }
  0xc4   : > { %1358 = vmatprep.subr.bf16.mxu0 %v5497_v18  ;;  %1400 = vmatpush2.bf16.msra.mxu1 %v5506_v23  ;;  %v5590_v18 = vcombine.low %v1701_v14, %v1705_v16  ;;  %v1697_v23 = vld [vmem:[%s8749_s2 + $0x1a8] sm:$0xff] }
  0xc5   : > { %1401 = vmatprep.subr.bf16.mxu1 %v5499_v25  ;;  %v5582_v25 = vcombine.low %v1693_v21, %v1697_v23 }
  0xc7   : > { %1359 = vmatpush2.bf16.msra.mxu0 %v5496_v24  ;;  %v5580_v24 = vcombine.low %v1692_v19, %v1696_v20 }
  0xc8   : > { %1360 = vmatprep.subr.bf16.mxu0 %v5489_v26  ;;  %1402 = vmatpush2.bf16.msra.mxu1 %v5498_v34  ;;  %v5583_v26 = vcombine.high %v1693_v21, %v1697_v23  ;;  %v1689_v34 = vld [vmem:[%s8749_s2 + $0x168] sm:$0xff]  ;;  %v1756_v21 = vld [vmem:[%s8749_s2 + $0x380] sm:$0xff] }
  0xc9   : > { %1403 = vmatprep.subr.bf16.mxu1 %v5491_v36  ;;  %v5574_v36 = vcombine.low %v1685_v30, %v1689_v34  ;;  %v1757_v23 = vld [vmem:[%s8749_s2 + $0x388] sm:$0xff] }
  0xcb   : > { %1361 = vmatpush2.bf16.msra.mxu0 %v5488_v35  ;;  %v5572_v35 = vcombine.low %v1684_v27, %v1688_v28 }
  0xcc   : > { %1362 = vmatprep.subr.bf16.mxu0 %v5481_v37  ;;  %1404 = vmatpush2.bf16.msra.mxu1 %v5490_v33  ;;  %v5575_v37 = vcombine.high %v1685_v30, %v1689_v34  ;;  %v1681_v33 = vld [vmem:[%s8749_s2 + $0x128] sm:$0xff]  ;;  %v1748_v30 = vld [vmem:[%s8749_s2 + $0x340] sm:$0xff] }
  0xcd   : > { %1405 = vmatprep.subr.bf16.mxu1 %v5483_v41  ;;  %v5566_v41 = vcombine.low %v1677_v39, %v1681_v33  ;;  %v1749_v34 = vld [vmem:[%s8749_s2 + $0x348] sm:$0xff] }
  0xcf   : > { %1363 = vmatpush2.bf16.msra.mxu0 %v5480_v40  ;;  %v5564_v40 = vcombine.low %v1676_v29, %v1680_v38 }
  0xd0   : > { %1364 = vmatprep.subr.bf16.mxu0 %v5473_v42  ;;  %1406 = vmatpush2.bf16.msra.mxu1 %v5482_v0  ;;  %v5567_v42 = vcombine.high %v1677_v39, %v1681_v33  ;;  %v1673_v0 = vld [vmem:[%s8749_s2 + $0xe8] sm:$0xff]  ;;  %v1740_v39 = vld [vmem:[%s8749_s2 + $0x300] sm:$0xff] }
  0xd1   : > { %1407 = vmatprep.subr.bf16.mxu1 %v5475_v48  ;;  %v5558_v48 = vcombine.low %v1669_v45, %v1673_v0  ;;  %v1741_v33 = vld [vmem:[%s8749_s2 + $0x308] sm:$0xff] }
  0xd3   : > { %1365 = vmatpush2.bf16.msra.mxu0 %v5472_v47  ;;  %v5556_v47 = vcombine.low %v1668_v43, %v1672_v44 }
  0xd4   : > { %1366 = vmatprep.subr.bf16.mxu0 %v5465_v49  ;;  %1408 = vmatpush2.bf16.msra.mxu1 %v5474_v54  ;;  %v5559_v49 = vcombine.high %v1669_v45, %v1673_v0  ;;  %v1665_v54 = vld [vmem:[%s8749_s2 + $0xa8] sm:$0xff]  ;;  %v1732_v45 = vld [vmem:[%s8749_s2 + $0x2c0] sm:$0xff] }
  0xd5   : > { %1409 = vmatprep.subr.bf16.mxu1 %v5467_v56  ;;  %v5550_v56 = vcombine.low %v1661_v52, %v1665_v54  ;;  %v1733_v0 = vld [vmem:[%s8749_s2 + $0x2c8] sm:$0xff] }
  0xd7   : > { %1367 = vmatpush2.bf16.msra.mxu0 %v5464_v55  ;;  %v5548_v55 = vcombine.low %v1660_v50, %v1664_v51 }
  0xd8   : > { %1368 = vmatprep.subr.bf16.mxu0 %v5457_v57  ;;  %1410 = vmatpush2.bf16.msra.mxu1 %v5466_v62  ;;  %v5551_v57 = vcombine.high %v1661_v52, %v1665_v54  ;;  %v1657_v62 = vld [vmem:[%s8749_s2 + $0x68] sm:$0xff]  ;;  %v1724_v52 = vld [vmem:[%s8749_s2 + $0x280] sm:$0xff] }
  0xd9   : > { %1411 = vmatprep.subr.bf16.mxu1 %v5459_v1  ;;  %v5542_v1 = vcombine.low %v1653_v60, %v1657_v62  ;;  %v1725_v54 = vld [vmem:[%s8749_s2 + $0x288] sm:$0xff] }
  0xdb   : > { %1369 = vmatpush2.bf16.msra.mxu0 %v5456_v63  ;;  %v5540_v63 = vcombine.low %v1652_v58, %v1656_v59 }
  0xdc   : > { %1370 = vmatprep.subr.bf16.mxu0 %v5449_v2  ;;  %1412 = vmatpush2.bf16.msra.mxu1 %v5458_v7  ;;  %v5543_v2 = vcombine.high %v1653_v60, %v1657_v62  ;;  %v1645_v7 = vld [vmem:[%s8749_s2 + $0x8] sm:$0xff]  ;;  %v1716_v60 = vld [vmem:[%s8749_s2 + $0x240] sm:$0xff] }
  0xdd   : > { %1413 = vmatprep.subr.bf16.mxu1 %v5451_v9  ;;  %v1649_v9 = vld [vmem:[%s8749_s2 + $0x28] sm:$0xff] }
  0xde   : > { %v5534_v12 = vcombine.low %v1645_v7, %v1649_v9  ;;  %v5535_v13 = vcombine.high %v1645_v7, %v1649_v9  ;;  %v1717_v62 = vld [vmem:[%s8749_s2 + $0x248] sm:$0xff]  ;;  %v1708_v7 = vld [vmem:[%s8749_s2 + $0x200] sm:$0xff] }
  0xdf   : > { %1371 = vmatpush2.bf16.msra.mxu0 %v5448_v8  ;;  %v5533_v8 = vcombine.high %v1644_v5, %v1648_v6  ;;  %v1426_v9 = vld [vmem:[%s6780_s1] sm:$0xff] }
  0xe0   : > { %1414 = vmatpush2.bf16.msra.mxu1 %v5450_v10  ;;  %2412 = vmatprep.subr.bf16.mxu0 %v5589_v15  ;;  %v5532_v10 = vcombine.low %v1644_v5, %v1648_v6  ;;  %v1768_v15 = vld [vmem:[%s8749_s2 + $0x3e0] sm:$0xff] }
  0xe2   : > { %1373 = vmatmul.mubr.bf16.vlgmr.msra.gmra.mxu0 %v7061_v11 }
  0xe3   : > { %1416 = vmatmul.mubr.bf16.vlgmr.msra.gmra.mxu1 %v7061_v11  ;;  %v5591_v11 = vcombine.high %v1701_v14, %v1705_v16  ;;  %2413 = vmatpush1.bf16.msra.mxu0 %v5588_v17  ;;  %v1764_v14 = vld [vmem:[%s8749_s2 + $0x3c0] sm:$0xff]  ;;  %v1765_v16 = vld [vmem:[%s8749_s2 + $0x3c8] sm:$0xff] }
  0xe4   : > { %2414 = vmatprep.subr.bf16.mxu0 %v5581_v22  ;;  %v5653_v17 = vcombine.high %v1764_v14, %v1768_v15  ;;  %v1760_v22 = vld [vmem:[%s8749_s2 + $0x3a0] sm:$0xff] }
  0xe5   : > { %2455 = vmatprep.subr.bf16.mxu1 %v5591_v11  ;;  %v5652_v11 = vcombine.low %v1764_v14, %v1768_v15 }
  0xe6   : > { %2456 = vmatpush1.bf16.msra.mxu1 %v5590_v18  ;;  %v1769_v18 = vld [vmem:[%s8749_s2 + $0x3e8] sm:$0xff] }
  0xe7   : > { %2457 = vmatprep.subr.bf16.mxu1 %v5583_v26  ;;  %2415 = vmatpush1.bf16.msra.mxu0 %v5580_v24  ;;  %v5654_v19 = vcombine.low %v1765_v16, %v1769_v18  ;;  %v5655_v20 = vcombine.high %v1765_v16, %v1769_v18  ;;  %v5645_v24 = vcombine.high %v1756_v21, %v1760_v22  ;;  %v7439_v18 = vld [vmem:[%s8749_s2 + $0x1d0] sm:$0xff] }
  0xe8   : > { %2416 = vmatprep.subr.bf16.mxu0 %v5573_v31  ;;  %v5644_v26 = vcombine.low %v1756_v21, %v1760_v22  ;;  %v1752_v31 = vld [vmem:[%s8749_s2 + $0x360] sm:$0xff]  ;;  %v7457_v22 = vld [vmem:[%s8749_s2 + $0x1f8] sm:$0xff] }
  0xea   : > { %2458 = vmatpush1.bf16.msra.mxu1 %v5582_v25  ;;  %v1761_v25 = vld [vmem:[%s8749_s2 + $0x3a8] sm:$0xff] }
  0xeb   : > { %2459 = vmatprep.subr.bf16.mxu1 %v5575_v37  ;;  %2417 = vmatpush1.bf16.msra.mxu0 %v5572_v35  ;;  %v5646_v27 = vcombine.low %v1757_v23, %v1761_v25  ;;  %v5647_v28 = vcombine.high %v1757_v23, %v1761_v25  ;;  %v5637_v35 = vcombine.high %v1748_v30, %v1752_v31  ;;  %v1431_v23 = vunpack.c.h.bf16 %v1426_v9 }
  0xec   : > { %2418 = vmatprep.subr.bf16.mxu0 %v5565_v32  ;;  %v5636_v37 = vcombine.low %v1748_v30, %v1752_v31  ;;  %v1744_v32 = vld [vmem:[%s8749_s2 + $0x320] sm:$0xff] }
  0xee   : > { %2460 = vmatpush1.bf16.msra.mxu1 %v5574_v36  ;;  %v1753_v36 = vld [vmem:[%s8749_s2 + $0x368] sm:$0xff] }
  0xef   : > { %2461 = vmatprep.subr.bf16.mxu1 %v5567_v42  ;;  %2419 = vmatpush1.bf16.msra.mxu0 %v5564_v40  ;;  %v5638_v29 = vcombine.low %v1749_v34, %v1753_v36  ;;  %v5639_v38 = vcombine.high %v1749_v34, %v1753_v36  ;;  %v5629_v40 = vcombine.high %v1740_v39, %v1744_v32 }
  0xf0   : > { %2420 = vmatprep.subr.bf16.mxu0 %v5557_v46  ;;  %v5628_v42 = vcombine.low %v1740_v39, %v1744_v32  ;;  %v1736_v46 = vld [vmem:[%s8749_s2 + $0x2e0] sm:$0xff] }
  0xf2   : > { %2462 = vmatpush1.bf16.msra.mxu1 %v5566_v41  ;;  %v1745_v41 = vld [vmem:[%s8749_s2 + $0x328] sm:$0xff] }
  0xf3   : > { %2463 = vmatprep.subr.bf16.mxu1 %v5559_v49  ;;  %2421 = vmatpush1.bf16.msra.mxu0 %v5556_v47  ;;  %v5630_v43 = vcombine.low %v1741_v33, %v1745_v41  ;;  %v5631_v44 = vcombine.high %v1741_v33, %v1745_v41  ;;  %v5621_v47 = vcombine.high %v1732_v45, %v1736_v46 }
  0xf4   : > { %2422 = vmatprep.subr.bf16.mxu0 %v5549_v53  ;;  %v5620_v49 = vcombine.low %v1732_v45, %v1736_v46  ;;  %v1728_v53 = vld [vmem:[%s8749_s2 + $0x2a0] sm:$0xff]  ;;  %v1429_v46 = vld [vmem:[%s6780_s1 + $0x18] sm:$0xff] }
  0xf6   : > { %2464 = vmatpush1.bf16.msra.mxu1 %v5558_v48  ;;  %v1737_v48 = vld [vmem:[%s8749_s2 + $0x2e8] sm:$0xff] }
  0xf7   : > { %2465 = vmatprep.subr.bf16.mxu1 %v5551_v57  ;;  %2423 = vmatpush1.bf16.msra.mxu0 %v5548_v55  ;;  %v5622_v50 = vcombine.low %v1733_v0, %v1737_v48  ;;  %v5623_v51 = vcombine.high %v1733_v0, %v1737_v48  ;;  %v5613_v55 = vcombine.high %v1724_v52, %v1728_v53  ;;  %v1437_v48 = vunpack.c.h.bf16 %v1429_v46 }
  0xf8   : > { %2424 = vmatprep.subr.bf16.mxu0 %v5541_v61  ;;  %v5612_v57 = vcombine.low %v1724_v52, %v1728_v53  ;;  %v1720_v61 = vld [vmem:[%s8749_s2 + $0x260] sm:$0xff] }
  0xfa   : > { %2466 = vmatpush1.bf16.msra.mxu1 %v5550_v56  ;;  %v1729_v56 = vld [vmem:[%s8749_s2 + $0x2a8] sm:$0xff] }
  0xfb   : > { %2467 = vmatprep.subr.bf16.mxu1 %v5543_v2  ;;  %2425 = vmatpush1.bf16.msra.mxu0 %v5540_v63  ;;  %v5614_v58 = vcombine.low %v1725_v54, %v1729_v56  ;;  %v5615_v59 = vcombine.high %v1725_v54, %v1729_v56  ;;  %v5605_v63 = vcombine.high %v1716_v60, %v1720_v61  ;;  %v1436_v54 = vunpack.c.l.bf16 %v1429_v46 }
  0xfc   : > { %2426 = vmatprep.subr.bf16.mxu0 %v5533_v8  ;;  %v5604_v2 = vcombine.low %v1716_v60, %v1720_v61  ;;  %v1712_v8 = vld [vmem:[%s8749_s2 + $0x220] sm:$0xff] }
  0xfd   : > { %v5597_v14 = vcombine.high %v1708_v7, %v1712_v8 }
  0xfe   : > { %2468 = vmatpush1.bf16.msra.mxu1 %v5542_v1  ;;  %v1721_v1 = vld [vmem:[%s8749_s2 + $0x268] sm:$0xff] }
  0xff   : > { %2469 = vmatprep.subr.bf16.mxu1 %v5535_v13  ;;  %2427 = vmatpush1.bf16.msra.mxu0 %v5532_v10  ;;  %v5606_v5 = vcombine.low %v1717_v62, %v1721_v1  ;;  %v5607_v6 = vcombine.high %v1717_v62, %v1721_v1  ;;  %v1709_v10 = vld [vmem:[%s8749_s2 + $0x208] sm:$0xff]  ;;  %v5596_v13 = vcombine.low %v1708_v7, %v1712_v8  ;;  %v480_v7 = vld [vmem:[#allocation3] sm:$0xff] }
 0x100   : > { %2428 = vmatprep.subr.bf16.mxu0 %v5653_v17  ;;  %v1430_v17 = vunpack.c.l.bf16 %v1426_v9 }
 0x102   : > { %2470 = vmatpush1.bf16.msra.mxu1 %v5534_v12  ;;  %v1713_v12 = vld [vmem:[%s8749_s2 + $0x228] sm:$0xff] }
 0x103   : > { %2471 = vmatprep.subr.bf16.mxu1 %v5655_v20  ;;  %2429 = vmatpush2.bf16.msra.mxu0 %v5652_v11  ;;  %v5598_v15 = vcombine.low %v1709_v10, %v1713_v12  ;;  %v5599_v16 = vcombine.high %v1709_v10, %v1713_v12  ;;  %v7444_v11 = vld [vmem:[%s8749_s2 + $0x1f0] sm:$0xff] }
 0x104   : > { %2430 = vmatprep.subr.bf16.mxu0 %v5645_v24  ;;  %v1428_v20 = vld [vmem:[%s6780_s1 + $0x10] sm:$0xff]  ;;  %v5593_v21 = vcombine.high %v7439_v18, %v7444_v11  ;;  %v5592_v24 = vcombine.low %v7439_v18, %v7444_v11  ;;  %v1679_v11 = vld [vmem:[%s8749_s2 + $0x118] sm:$0xff] }
 0x105   : > { %v1434_v30 = vunpack.c.l.bf16 %v1428_v20  ;;  %v1435_v36 = vunpack.c.h.bf16 %v1428_v20  ;;  %v1682_v18 = vld [vmem:[%s8749_s2 + $0x130] sm:$0xff] }
 0x106   : > { %2472 = vmatpush2.bf16.msra.mxu1 %v5654_v19  ;;  %v7449_v19 = vld [vmem:[%s8749_s2 + $0x1d8] sm:$0xff] }
 0x107   : > { %2473 = vmatprep.subr.bf16.mxu1 %v5647_v28  ;;  %2431 = vmatpush2.bf16.msra.mxu0 %v5644_v26  ;;  %v5594_v25 = vcombine.low %v7449_v19, %v7457_v22  ;;  %v5595_v26 = vcombine.high %v7449_v19, %v7457_v22  ;;  %v1683_v19 = vld [vmem:[%s8749_s2 + $0x138] sm:$0xff] }
 0x108   : > { %2432 = vmatprep.subr.bf16.mxu0 %v5637_v35 }
 0x10a   : > { %2474 = vmatpush2.bf16.msra.mxu1 %v5646_v27 }
 0x10b   : > { %2475 = vmatprep.subr.bf16.mxu1 %v5639_v38  ;;  %2433 = vmatpush2.bf16.msra.mxu0 %v5636_v37  ;;  %v1427_v38 = vld [vmem:[%s6780_s1 + $0x8] sm:$0xff] }
 0x10c   : > { %2434 = vmatprep.subr.bf16.mxu0 %v5629_v40  ;;  %v1432_v0 = vunpack.c.l.bf16 %v1427_v38 }
 0x10e   : > { %2476 = vmatpush2.bf16.msra.mxu1 %v5638_v29 }
 0x10f   : > { %2477 = vmatprep.subr.bf16.mxu1 %v5631_v44  ;;  %2435 = vmatpush2.bf16.msra.mxu0 %v5628_v42 }
 0x110   : > { %2436 = vmatprep.subr.bf16.mxu0 %v5621_v47 }
 0x112   : > { %2478 = vmatpush2.bf16.msra.mxu1 %v5630_v43  ;;  %v1433_v43 = vunpack.c.h.bf16 %v1427_v38 }
 0x113   : > { %2479 = vmatprep.subr.bf16.mxu1 %v5623_v51  ;;  %2437 = vmatpush2.bf16.msra.mxu0 %v5620_v49 }
 0x114   : > { %2438 = vmatprep.subr.bf16.mxu0 %v5613_v55 }
 0x116   : > { %2480 = vmatpush2.bf16.msra.mxu1 %v5622_v50 }
 0x117   : > { %2481 = vmatprep.subr.bf16.mxu1 %v5615_v59  ;;  %2439 = vmatpush2.bf16.msra.mxu0 %v5612_v57 }
 0x118   : > { %2440 = vmatprep.subr.bf16.mxu0 %v5605_v63 }
 0x11a   : > { %2482 = vmatpush2.bf16.msra.mxu1 %v5614_v58 }
 0x11b   : > { %2483 = vmatprep.subr.bf16.mxu1 %v5607_v6  ;;  %2441 = vmatpush2.bf16.msra.mxu0 %v5604_v2 }
 0x11c   : > { %2442 = vmatprep.subr.bf16.mxu0 %v5597_v14 }
 0x11e   : > { %2484 = vmatpush2.bf16.msra.mxu1 %v5606_v5  ;;  %v1502_v5 = vpop.permute.xlu1 %1501 }
 0x11f   : > { %2485 = vmatprep.subr.bf16.mxu1 %v5599_v16  ;;  %2443 = vmatpush2.bf16.msra.mxu0 %v5596_v13  ;;  %vm1506_vm0 = vcmp.eq.s32.totalorder %v1502_v5, 1 }
 0x120   : > { %2498 = vmatprep.subr.bf16.mxu0 %v5593_v21 }
 0x122   : > { %2486 = vmatpush2.bf16.msra.mxu1 %v5598_v15  ;;  %v482_v15 = vld [vmem:[#allocation3 + $0x8] sm:$0xff]  ;;  %v1505_v20 = vpop.permute.xlu1 %1504 }
 0x123   : > { %2541 = vmatprep.subr.bf16.mxu1 %v5595_v26  ;;  %vm1507_vm1 = vcmp.eq.s32.totalorder %v1505_v20, 1 }
 0x162   : > { %v1288_v27 = vpop.f32.mrf.mxu0  ;;  %v1331_v37 = vpop.f32.mrf.mxu1 }
 0x163   : > { %v1438_v28 = vadd.f32 %v1430_v17, %v1288_v27  ;;  %v1440_v50 = vadd.f32 %v1432_v0, %v1331_v37 }
 0x164   : > { %v1290_v31 = vpop.f32.mrf.mxu0  ;;  %v1333_v33 = vpop.f32.mrf.mxu1 }
 0x165   : > { %v5508_v34 = vmul.f32 -1.442695, %v1438_v28  ;;  %v1439_v35 = vadd.f32 %v1431_v23, %v1290_v31  ;;  %v1441_v47 = vadd.f32 %v1433_v43, %v1333_v33 }
 0x166   : > { %v1292_v29 = vpop.f32.mrf.mxu0  ;;  %v1335_v45 = vpop.f32.mrf.mxu1 }
 0x167   : > { %6166 = vpow2.f32 %v5508_v34  ;;  %v5510_v39 = vmul.f32 -1.442695, %v1439_v35  ;;  %v1442_v32 = vadd.f32 %v1434_v30, %v1292_v29  ;;  %v5512_v51 = vmul.f32 -1.442695, %v1441_v47 }
 0x168   : > { %v1294_v40 = vpop.f32.mrf.mxu0  ;;  %v1337_v49 = vpop.f32.mrf.mxu1  ;;  %v1444_v60 = vadd.f32 %v1436_v54, %v1335_v45 }
 0x169   : > { %6168 = vpow2.f32 %v5510_v39  ;;  %v5509_v41 = vmul.f32 -1.442695, %v1442_v32  ;;  %v1443_v42 = vadd.f32 %v1435_v36, %v1294_v40  ;;  %v1445_v52 = vadd.f32 %v1437_v48, %v1337_v49  ;;  %v5517_v39 = vld [vmem:[%s6782_s28 + $0x60] sm:$0xff] }
 0x16a   : > { %v1534_v45 = vunpack.c.h.bf16 %v5517_v39 }
 0x16b   : > { %6170 = vpow2.f32 %v5509_v41  ;;  %v5511_v44 = vmul.f32 -1.442695, %v1443_v42  ;;  %v5513_v57 = vmul.f32 -1.442695, %v1445_v52  ;;  %v1533_v42 = vunpack.c.l.bf16 %v5517_v39  ;;  %v483_v39 = vld [vmem:[#allocation3 + $0x10] sm:$0xff] }
 0x16d   : > { %6172 = vpow2.f32 %v5511_v44  ;;  %v5519_v44 = vld [vmem:[%s6782_s28 + $0x70] sm:$0xff] }
 0x16e   : > { %6174 = vtanh.f32 %v1440_v50  ;;  %v1538_v50 = vunpack.c.h.bf16 %v5519_v44 }
 0x16f   : > { %6176 = vpow2.f32 %v5512_v51 }
 0x174   : > { %v6167_v53 = vpop.eup %6166 }
 0x175   : > { %v1452_v55 = vadd.f32 1.0, %v6167_v53 }
 0x176   : > { %v6169_v56 = vpop.eup %6168 }
 0x177   : > { %6178 = vrcp.f32 %v1452_v55  ;;  %v1464_v58 = vadd.f32 1.0, %v6169_v56 }
 0x178   : > { %v6171_v59 = vpop.eup %6170 }
 0x179   : > { %6180 = vrcp.f32 %v1464_v58  ;;  %v1453_v61 = vadd.f32 1.0, %v6171_v59  ;;  %v5518_v58 = vld [vmem:[%s6782_s28 + $0x68] sm:$0xff] }
 0x17a   : > { %v6173_v62 = vpop.eup %6172  ;;  %6182 = vpow2.f32 %v5513_v57 }
 0x17b   : > { %6184 = vrcp.f32 %v1453_v61  ;;  %v1465_v63 = vadd.f32 1.0, %v6173_v62  ;;  %v6175_v1 = vpop.eup %6174  ;;  %v5520_v61 = vld [vmem:[%s6782_s28 + $0x78] sm:$0xff]  ;;  %v1536_v62 = vunpack.c.h.bf16 %v5518_v58 }
 0x17c   : > { %6186 = vtanh.f32 %v1444_v60  ;;  %v6177_v2 = vpop.eup %6176 }
 0x17d   : > { %6188 = vrcp.f32 %v1465_v63  ;;  %v1478_v8 = vadd.f32 1.0, %v6177_v2  ;;  %v1535_v63 = vunpack.c.l.bf16 %v5518_v58 }
 0x17f   : > { %6190 = vrcp.f32 %v1478_v8 }
 0x184   : > { %v6179_v6 = vpop.eup %6178 }
 0x185   : > { %v1486_v9 = vmul.f32 %v6179_v6, %v6175_v1  ;;  %v1540_v1 = vunpack.c.h.bf16 %v5520_v61 }
 0x186   : > { %v6181_v10 = vpop.eup %6180 }
 0x187   : > { %v6183_v12 = vpop.eup %6182  ;;  %v1484_v13 = vmul.f32 %v6181_v10, %v480_v7  ;;  %v1539_v10 = vunpack.c.l.bf16 %v5520_v61  ;;  %v1695_v61 = vld [vmem:[%s8749_s2 + $0x198] sm:$0xff] }
 0x188   : > { %v6185_v14 = vpop.eup %6184  ;;  %v1479_v23 = vadd.f32 1.0, %v6183_v12 }
 0x189   : > { %v6187_v16 = vpop.eup %6186  ;;  %v1488_v17 = vadd.f32 %v1486_v9, %v1484_v13 }
 0x18a   : > { %v6189_v21 = vpop.eup %6188  ;;  %v1487_v28 = vmul.f32 %v6187_v16, %v6185_v14 }
 0x18b   : > { %6192 = vtanh.f32 %v1488_v17  ;;  %v1512_v26 = vsel %vm1506_vm0, %v1488_v17, %v480_v7  ;;  %v1485_v27 = vmul.f32 %v6189_v21, %v482_v15 }
 0x18c   : > { %1514 = vst [vmem:[#allocation3] sm:$0xff] %v1512_v26  ;;  %6194 = vrcp.f32 %v1479_v23  ;;  %v6191_v34 = vpop.eup %6190 }
 0x18d   : > { %v1489_v30 = vadd.f32 %v1487_v28, %v1485_v27  ;;  %v481_v28 = vld [vmem:[#allocation3 + $0x18] sm:$0xff] }
 0x18f   : > { %6196 = vtanh.f32 %v1489_v30  ;;  %v1513_v31 = vsel %vm1507_vm1, %v1489_v30, %v482_v15 }
 0x190   : > { %1515 = vst [vmem:[#allocation3 + $0x8] sm:$0xff] %v1513_v31  ;;  %v1607_v31 = vpop.permute.xlu0 %1606 }
 0x191   : > { %vm1611_vm2 = vcmp.eq.s32.totalorder %v1607_v31, 1 }
 0x198   : > { %v6193_v35 = vpop.eup %6192 }
 0x199   : > { %v1492_v36 = vmul.f32 %v6193_v35, %v6191_v34  ;;  %v6195_v37 = vpop.eup %6194 }
 0x19b   : > { %v7471_v29 = vsel %vm1506_vm0, %v1492_v36, %v7043_v3  ;;  %v1516_v33 = vsel %vm1506_vm0, %v1492_v36, 0.0  ;;  %v1537_v3 = vunpack.c.l.bf16 %v5519_v44 }
 0x19c   : > { %v6197_v38 = vpop.eup %6196 }
 0x19d   : > { %v1493_v32 = vmul.f32 %v6197_v38, %v6195_v37 }
 0x19f   : > { %v7477_v40 = vsel %vm1507_vm1, %v1493_v32, %v7045_v4  ;;  %v1517_v41 = vsel %vm1507_vm1, %v1493_v32, 0.0 }
 0x1a0   : > { %v6033_v43 = vpack.c.bf16 %v1517_v41, %v1516_v33 }
 0x1a2   : > { %6034 = vst [vmem:[%s6784_s16] sm:$0xff] %v6033_v43   ;;  %v1374_v46 = vpop.f32.mrf.mxu0 }
 0x1a3   : > { %v1541_v0 = vadd.f32 %v1533_v42, %v1374_v46  ;;  %v1417_v51 = vpop.f32.mrf.mxu1 }
 0x1a4   : > { %v1376_v47 = vpop.f32.mrf.mxu0  ;;  %v1543_v6 = vadd.f32 %v1535_v63, %v1417_v51 }
 0x1a5   : > { %v5521_v48 = vmul.f32 -1.442695, %v1541_v0  ;;  %v1542_v49 = vadd.f32 %v1534_v45, %v1376_v47  ;;  %v1419_v54 = vpop.f32.mrf.mxu1  ;;  %v1610_v45 = vpop.permute.xlu0 %1609 }
 0x1a6   : > { %v1378_v52 = vpop.f32.mrf.mxu0  ;;  %v1544_v5 = vadd.f32 %v1536_v62, %v1419_v54  ;;  %vm1612_vm3 = vcmp.eq.s32.totalorder %v1610_v45, 1  ;;  %v6422_v54 = vld [vmem:[#allocation2] sm:$0xff]  ;;  %v1699_v62 = vld [vmem:[%s8749_s2 + $0x1b8] sm:$0xff] }
 0x1a7   : > { %6198 = vpow2.f32 %v5521_v48  ;;  %v5523_v4 = vmul.f32 -1.442695, %v1542_v49  ;;  %v1545_v53 = vadd.f32 %v1537_v3, %v1378_v52  ;;  %v1421_v60 = vpop.f32.mrf.mxu1  ;;  %v1659_v45 = vld [vmem:[%s8749_s2 + $0x78] sm:$0xff] }
 0x1a8   : > { %v1380_v55 = vpop.f32.mrf.mxu0  ;;  %v5525_v9 = vmul.f32 -1.442695, %v1544_v5  ;;  %v1547_v17 = vadd.f32 %v1539_v10, %v1421_v60  ;;  %v1698_v60 = vld [vmem:[%s8749_s2 + $0x1b0] sm:$0xff]  ;;  %v1691_v10 = vld [vmem:[%s8749_s2 + $0x178] sm:$0xff] }
 0x1a9   : > { %6200 = vpow2.f32 %v5523_v4  ;;  %v5522_v56 = vmul.f32 -1.442695, %v1545_v53  ;;  %v1546_v57 = vadd.f32 %v1538_v50, %v1380_v55  ;;  %v1423_v2 = vpop.f32.mrf.mxu1  ;;  %v1694_v53 = vld [vmem:[%s8749_s2 + $0x190] sm:$0xff] }
 0x1aa   : > { %v1548_v7 = vadd.f32 %v1540_v1, %v1423_v2  ;;  %v7514_v2 = vpack.c.bf16 %v7477_v40, %v7471_v29  ;;  %v1686_v5 = vld [vmem:[%s8749_s2 + $0x150] sm:$0xff] }
 0x1ab   : > { %6202 = vpow2.f32 %v5522_v56  ;;  %v5524_v59 = vmul.f32 -1.442695, %v1546_v57  ;;  %v6423_v57 = vld [vmem:[#allocation2 + $0x8] sm:$0xff] }
 0x1ac   : > { %v5526_v14 = vmul.f32 -1.442695, %v1548_v7  ;;  %v5587_v7 = vcombine.high %v1695_v61, %v1699_v62 }
 0x1ad   : > { %6204 = vpow2.f32 %v5524_v59 }
 0x1ae   : > { %6206 = vtanh.f32 %v1543_v6  ;;  %v5585_v6 = vcombine.high %v1694_v53, %v1698_v60 }
 0x1b4   : > { %v6199_v8 = vpop.eup %6198 }
 0x1b5   : > { %v1555_v12 = vadd.f32 1.0, %v6199_v8  ;;  %v1690_v8 = vld [vmem:[%s8749_s2 + $0x170] sm:$0xff] }
 0x1b6   : > { %v6201_v13 = vpop.eup %6200  ;;  %v5576_v22 = vcombine.low %v1686_v5, %v1690_v8 }
 0x1b7   : > { %6208 = vrcp.f32 %v1555_v12  ;;  %v1567_v15 = vadd.f32 1.0, %v6201_v13  ;;  %v5584_v12 = vcombine.low %v1694_v53, %v1698_v60  ;;  %v5586_v13 = vcombine.low %v1695_v61, %v1699_v62  ;;  %v1767_v60 = vld [vmem:[%s8749_s2 + $0x3d8] sm:$0xff] }
 0x1b8   : > { %v6203_v16 = vpop.eup %6202  ;;  %6210 = vpow2.f32 %v5525_v9  ;;  %v1687_v9 = vld [vmem:[%s8749_s2 + $0x158] sm:$0xff] }
 0x1b9   : > { %6212 = vrcp.f32 %v1567_v15  ;;  %v1556_v20 = vadd.f32 1.0, %v6203_v16  ;;  %v5579_v15 = vcombine.high %v1687_v9, %v1691_v10  ;;  %v1678_v16 = vld [vmem:[%s8749_s2 + $0x110] sm:$0xff]  ;;  %v1771_v61 = vld [vmem:[%s8749_s2 + $0x3f8] sm:$0xff] }
 0x1ba   : > { %v6205_v21 = vpop.eup %6204  ;;  %6214 = vpow2.f32 %v5526_v14  ;;  %v5577_v14 = vcombine.high %v1686_v5, %v1690_v8  ;;  %v5659_v5 = vcombine.high %v1767_v60, %v1771_v61  ;;  %v1759_v8 = vld [vmem:[%s8749_s2 + $0x398] sm:$0xff] }
 0x1bb   : > { %6216 = vrcp.f32 %v1556_v20  ;;  %v1568_v23 = vadd.f32 1.0, %v6205_v21  ;;  %v6207_v26 = vpop.eup %6206  ;;  %v1670_v20 = vld [vmem:[%s8749_s2 + $0xd0] sm:$0xff] }
 0x1bc   : > { %6218 = vtanh.f32 %v1547_v17  ;;  %v5571_v17 = vcombine.high %v1679_v11, %v1683_v19  ;;  %v1674_v21 = vld [vmem:[%s8749_s2 + $0xf0] sm:$0xff] }
 0x1bd   : > { %6220 = vrcp.f32 %v1568_v23  ;;  %v1671_v23 = vld [vmem:[%s8749_s2 + $0xd8] sm:$0xff] }
 0x1c4   : > { %v6209_v27 = vpop.eup %6208 }
 0x1c5   : > { %v6211_v30 = vpop.eup %6210  ;;  %v1589_v37 = vmul.f32 %v6209_v27, %v6207_v26  ;;  %v1675_v26 = vld [vmem:[%s8749_s2 + $0xf8] sm:$0xff]  ;;  %v5568_v27 = vcombine.low %v1678_v16, %v1682_v18 }
 0x1c6   : > { %v6213_v34 = vpop.eup %6212  ;;  %v1581_v33 = vadd.f32 1.0, %v6211_v30  ;;  %v5561_v30 = vcombine.high %v1670_v20, %v1674_v21  ;;  %v5563_v31 = vcombine.high %v1671_v23, %v1675_v26 }
 0x1c7   : > { %v6215_v35 = vpop.eup %6214  ;;  %v1587_v36 = vmul.f32 %v6213_v34, %v481_v28  ;;  %v1662_v34 = vld [vmem:[%s8749_s2 + $0x90] sm:$0xff] }
 0x1c8   : > { %v6217_v38 = vpop.eup %6216  ;;  %v1582_v43 = vadd.f32 1.0, %v6215_v35  ;;  %v1666_v35 = vld [vmem:[%s8749_s2 + $0xb0] sm:$0xff] }
 0x1c9   : > { %v6219_v32 = vpop.eup %6218  ;;  %v1591_v41 = vadd.f32 %v1589_v37, %v1587_v36  ;;  %v1663_v36 = vld [vmem:[%s8749_s2 + $0x98] sm:$0xff] }
 0x1ca   : > { %v6221_v42 = vpop.eup %6220  ;;  %v1590_v0 = vmul.f32 %v6219_v32, %v6217_v38  ;;  %v1667_v37 = vld [vmem:[%s8749_s2 + $0xb8] sm:$0xff]  ;;  %v5560_v38 = vcombine.low %v1670_v20, %v1674_v21  ;;  %v5553_v32 = vcombine.high %v1662_v34, %v1666_v35  ;;  %v1746_v20 = vld [vmem:[%s8749_s2 + $0x330] sm:$0xff] }
 0x1cb   : > { %6222 = vtanh.f32 %v1591_v41  ;;  %v7485_v44 = vsel %vm1611_vm2, %v1591_v41, %v481_v28  ;;  %v1588_v46 = vmul.f32 %v6221_v42, %v483_v39  ;;  %v5570_v28 = vcombine.low %v1679_v11, %v1683_v19  ;;  %v1654_v41 = vld [vmem:[%s8749_s2 + $0x50] sm:$0xff]  ;;  %v1755_v11 = vld [vmem:[%s8749_s2 + $0x378] sm:$0xff] }
 0x1cc   : > { %6224 = vrcp.f32 %v1581_v33  ;;  %v5555_v33 = vcombine.high %v1663_v36, %v1667_v37  ;;  %v1658_v42 = vld [vmem:[%s8749_s2 + $0x70] sm:$0xff]  ;;  %v1743_v21 = vld [vmem:[%s8749_s2 + $0x318] sm:$0xff] }
 0x1cd   : > { %v1592_v3 = vadd.f32 %v1590_v0, %v1588_v46  ;;  %6226 = vrcp.f32 %v1582_v43  ;;  %v1655_v43 = vld [vmem:[%s8749_s2 + $0x58] sm:$0xff]  ;;  %v5552_v46 = vcombine.low %v1662_v34, %v1666_v35  ;;  %v5554_v0 = vcombine.low %v1663_v36, %v1667_v37  ;;  %v1738_v34 = vld [vmem:[%s8749_s2 + $0x2f0] sm:$0xff] }
 0x1ce   : > { %v5546_v53 = vcombine.low %v1655_v43, %v1659_v45  ;;  %v1735_v35 = vld [vmem:[%s8749_s2 + $0x2d8] sm:$0xff] }
 0x1cf   : > { %6228 = vtanh.f32 %v1592_v3  ;;  %v7488_v47 = vsel %vm1612_vm3, %v1592_v3, %v483_v39  ;;  %v5562_v39 = vcombine.low %v1671_v23, %v1675_v26  ;;  %v5545_v3 = vcombine.high %v1654_v41, %v1658_v42  ;;  %v1747_v23 = vld [vmem:[%s8749_s2 + $0x338] sm:$0xff] }
 0x1d0   : > { %v1739_v36 = vld [vmem:[%s8749_s2 + $0x2f8] sm:$0xff] }
 0x1d8   : > { %v6223_v48 = vpop.eup %6222 }
 0x1d9   : > { %v6225_v49 = vpop.eup %6224 }
 0x1da   : > { %v6227_v50 = vpop.eup %6226  ;;  %v1595_v51 = vmul.f32 %v6225_v49, %v6223_v48  ;;  %v5547_v48 = vcombine.high %v1655_v43, %v1659_v45  ;;  %v1646_v49 = vld [vmem:[%s8749_s2 + $0x10] sm:$0xff]  ;;  %v1731_v43 = vld [vmem:[%s8749_s2 + $0x2b8] sm:$0xff] }
 0x1dc   : > { %v6229_v52 = vpop.eup %6228  ;;  %v7494_v55 = vsel %vm1611_vm2, %v1595_v51, %v6422_v54  ;;  %v1621_v56 = vsel %vm1611_vm2, %v1595_v51, 0.0  ;;  %v1647_v51 = vld [vmem:[%s8749_s2 + $0x18] sm:$0xff] }
 0x1dd   : > { %v1596_v4 = vmul.f32 %v6229_v52, %v6227_v50  ;;  %v1650_v50 = vld [vmem:[%s8749_s2 + $0x30] sm:$0xff]  ;;  %v1651_v52 = vld [vmem:[%s8749_s2 + $0x38] sm:$0xff] }
 0x1de   : > { %v5537_v54 = vcombine.high %v1646_v49, %v1650_v50  ;;  %v5536_v62 = vcombine.low %v1646_v49, %v1650_v50  ;;  %v1722_v49 = vld [vmem:[%s8749_s2 + $0x270] sm:$0xff]  ;;  %v1719_v50 = vld [vmem:[%s8749_s2 + $0x258] sm:$0xff] }
 0x1df   : > { %v7498_v58 = vsel %vm1612_vm3, %v1596_v4, %v6423_v57  ;;  %v1622_v59 = vsel %vm1612_vm3, %v1596_v4, 0.0  ;;  %v5544_v4 = vcombine.low %v1654_v41, %v1658_v42  ;;  %v1766_v57 = vld [vmem:[%s8749_s2 + $0x3d0] sm:$0xff]  ;;  %v1727_v42 = vld [vmem:[%s8749_s2 + $0x298] sm:$0xff] }
 0x1e0   : > { %v6038_v63 = vpack.c.bf16 %v1622_v59, %v1621_v56  ;;  %v1643_v1 = vpack.c.bf16 %v7498_v58, %v7494_v55  ;;  %v5539_v56 = vcombine.high %v1647_v51, %v1651_v52  ;;  %v1770_v59 = vld [vmem:[%s8749_s2 + $0x3f0] sm:$0xff] }
 0x1e1   : > { %v1730_v41 = vld [vmem:[%s8749_s2 + $0x2b0] sm:$0xff] }
 0x1e2   : > { %6070 = vst [vmem:[%s6786_s11 + $0x18] sm:$0xff] %v6038_v63   ;;  %2444 = vmatprep.mubr.bf16.mxu0 %v1643_v1  ;;  %2487 = vmatprep.mubr.bf16.mxu1 %v1643_v1  ;;  %v5538_v63 = vcombine.low %v1647_v51, %v1651_v52  ;;  %v1723_v51 = vld [vmem:[%s8749_s2 + $0x278] sm:$0xff] }
 0x1e3   : > { %2445 = vmatmul.mubr.bf16.vlgmr.msra.gmra.mxu0 %v7514_v2  ;;  %2488 = vmatmul.mubr.bf16.vlgmr.msra.gmra.mxu1 %v7514_v2 }
 0x1e4   : > { %2499 = vmatpush1.bf16.msra.mxu0 %v5592_v24  ;;  %2542 = vmatpush1.bf16.msra.mxu1 %v5594_v25  ;;  %v5578_v24 = vcombine.low %v1687_v9, %v1691_v10  ;;  %v5569_v25 = vcombine.high %v1678_v16, %v1682_v18  ;;  %v1763_v9 = vld [vmem:[%s8749_s2 + $0x3b8] sm:$0xff]  ;;  %v5656_v10 = vcombine.low %v1766_v57, %v1770_v59  ;;  %v1754_v16 = vld [vmem:[%s8749_s2 + $0x370] sm:$0xff] }
 0x1e5   : > { %2530 = vmatprep.mubr.bf16.mxu0 %v1643_v1  ;;  %2573 = vmatprep.mubr.bf16.mxu1 %v1643_v1  ;;  %v5657_v1 = vcombine.high %v1766_v57, %v1770_v59  ;;  %v1751_v18 = vld [vmem:[%s8749_s2 + $0x358] sm:$0xff]  ;;  %v1714_v57 = vld [vmem:[%s8749_s2 + $0x230] sm:$0xff] }
 0x1e6   : > { %2500 = vmatprep.subr.bf16.mxu0 %v5585_v6  ;;  %2543 = vmatprep.subr.bf16.mxu1 %v5587_v7  ;;  %v1758_v6 = vld [vmem:[%s8749_s2 + $0x390] sm:$0xff]  ;;  %v1711_v59 = vld [vmem:[%s8749_s2 + $0x218] sm:$0xff] }
 0x1e7   : > { %v1762_v7 = vld [vmem:[%s8749_s2 + $0x3b0] sm:$0xff] }
 0x1e8   : > { %2501 = vmatpush1.bf16.msra.mxu0 %v5584_v12  ;;  %2544 = vmatpush1.bf16.msra.mxu1 %v5586_v13  ;;  %v5658_v12 = vcombine.low %v1767_v60, %v1771_v61  ;;  %v5649_v13 = vcombine.high %v1758_v6, %v1762_v7  ;;  %v5648_v19 = vcombine.low %v1758_v6, %v1762_v7  ;;  %v1715_v60 = vld [vmem:[%s8749_s2 + $0x238] sm:$0xff]  ;;  %v2858_v7 = vld [vmem:[%s8749_s2 + $0x1c0] sm:$0xff] }
 0x1e9   : > { %2502 = vmatprep.subr.bf16.mxu0 %v5577_v14  ;;  %2545 = vmatprep.subr.bf16.mxu1 %v5579_v15  ;;  %v5651_v14 = vcombine.high %v1759_v8, %v1763_v9  ;;  %v1750_v15 = vld [vmem:[%s8749_s2 + $0x350] sm:$0xff]  ;;  %v5602_v6 = vcombine.low %v1711_v59, %v1715_v60 }
 0x1ea   : > { %v5640_v26 = vcombine.low %v1750_v15, %v1754_v16 }
 0x1ec   : > { %2503 = vmatpush1.bf16.msra.mxu0 %v5576_v22  ;;  %2546 = vmatpush1.bf16.msra.mxu1 %v5578_v24  ;;  %v5650_v22 = vcombine.low %v1759_v8, %v1763_v9  ;;  %v5641_v24 = vcombine.high %v1750_v15, %v1754_v16  ;;  %v2862_v8 = vld [vmem:[%s8749_s2 + $0x1e0] sm:$0xff]  ;;  %v2859_v9 = vld [vmem:[%s8749_s2 + $0x1c8] sm:$0xff] }
 0x1ed   : > { %2504 = vmatprep.subr.bf16.mxu0 %v5569_v25  ;;  %2547 = vmatprep.subr.bf16.mxu1 %v5571_v17  ;;  %v5643_v25 = vcombine.high %v1751_v18, %v1755_v11  ;;  %v1742_v17 = vld [vmem:[%s8749_s2 + $0x310] sm:$0xff]  ;;  %v2850_v15 = vld [vmem:[%s8749_s2 + $0x180] sm:$0xff] }
 0x1ee   : > { %v5632_v37 = vcombine.low %v1742_v17, %v1746_v20  ;;  %v2854_v16 = vld [vmem:[%s8749_s2 + $0x1a0] sm:$0xff] }
 0x1f0   : > { %2505 = vmatpush1.bf16.msra.mxu0 %v5568_v27  ;;  %2548 = vmatpush1.bf16.msra.mxu1 %v5570_v28  ;;  %v5642_v27 = vcombine.low %v1751_v18, %v1755_v11  ;;  %v5633_v28 = vcombine.high %v1742_v17, %v1746_v20  ;;  %v2851_v18 = vld [vmem:[%s8749_s2 + $0x188] sm:$0xff]  ;;  %v2842_v17 = vld [vmem:[%s8749_s2 + $0x140] sm:$0xff] }
 0x1f1   : > { %2506 = vmatprep.subr.bf16.mxu0 %v5561_v30  ;;  %2549 = vmatprep.subr.bf16.mxu1 %v5563_v31  ;;  %v5635_v30 = vcombine.high %v1743_v21, %v1747_v23  ;;  %v1734_v31 = vld [vmem:[%s8749_s2 + $0x2d0] sm:$0xff]  ;;  %v2855_v11 = vld [vmem:[%s8749_s2 + $0x1a8] sm:$0xff]  ;;  %v2846_v20 = vld [vmem:[%s8749_s2 + $0x160] sm:$0xff] }
 0x1f2   : > { %v5624_v45 = vcombine.low %v1734_v31, %v1738_v34 }
 0x1f4   : > { %2507 = vmatpush1.bf16.msra.mxu0 %v5560_v38  ;;  %2550 = vmatpush1.bf16.msra.mxu1 %v5562_v39  ;;  %v5634_v38 = vcombine.low %v1743_v21, %v1747_v23  ;;  %v5625_v39 = vcombine.high %v1734_v31, %v1738_v34  ;;  %v2843_v21 = vld [vmem:[%s8749_s2 + $0x148] sm:$0xff]  ;;  %v5729_v23 = vcombine.high %v2842_v17, %v2846_v20  ;;  %v2834_v31 = vld [vmem:[%s8749_s2 + $0x100] sm:$0xff] }
 0x1f5   : > { %2508 = vmatprep.subr.bf16.mxu0 %v5553_v32  ;;  %2551 = vmatprep.subr.bf16.mxu1 %v5555_v33  ;;  %v5627_v32 = vcombine.high %v1735_v35, %v1739_v36  ;;  %v1726_v33 = vld [vmem:[%s8749_s2 + $0x290] sm:$0xff]  ;;  %v2838_v34 = vld [vmem:[%s8749_s2 + $0x120] sm:$0xff] }
 0x1f6   : > { %v5616_v52 = vcombine.low %v1726_v33, %v1730_v41 }
 0x1f8   : > { %2509 = vmatpush1.bf16.msra.mxu0 %v5552_v46  ;;  %2552 = vmatpush1.bf16.msra.mxu1 %v5554_v0  ;;  %v5626_v46 = vcombine.low %v1735_v35, %v1739_v36  ;;  %v5617_v0 = vcombine.high %v1726_v33, %v1730_v41  ;;  %v2835_v35 = vld [vmem:[%s8749_s2 + $0x108] sm:$0xff]  ;;  %v5721_v36 = vcombine.high %v2834_v31, %v2838_v34  ;;  %v2826_v33 = vld [vmem:[%s8749_s2 + $0xc0] sm:$0xff] }
 0x1f9   : > { %2510 = vmatprep.subr.bf16.mxu0 %v5545_v3  ;;  %2553 = vmatprep.subr.bf16.mxu1 %v5547_v48  ;;  %v5619_v3 = vcombine.high %v1727_v42, %v1731_v43  ;;  %v1718_v48 = vld [vmem:[%s8749_s2 + $0x250] sm:$0xff]  ;;  %v2830_v41 = vld [vmem:[%s8749_s2 + $0xe0] sm:$0xff] }
 0x1fa   : > { %v5608_v61 = vcombine.low %v1718_v48, %v1722_v49 }
 0x1fc   : > { %2511 = vmatpush1.bf16.msra.mxu0 %v5544_v4  ;;  %2554 = vmatpush1.bf16.msra.mxu1 %v5546_v53  ;;  %v5618_v4 = vcombine.low %v1727_v42, %v1731_v43  ;;  %v5609_v53 = vcombine.high %v1718_v48, %v1722_v49  ;;  %v2827_v42 = vld [vmem:[%s8749_s2 + $0xc8] sm:$0xff]  ;;  %v5713_v43 = vcombine.high %v2826_v33, %v2830_v41  ;;  %v2818_v48 = vld [vmem:[%s8749_s2 + $0x80] sm:$0xff] }
 0x1fd   : > { %2512 = vmatprep.subr.bf16.mxu0 %v5537_v54  ;;  %2555 = vmatprep.subr.bf16.mxu1 %v5539_v56  ;;  %v5611_v54 = vcombine.high %v1719_v50, %v1723_v51  ;;  %v1710_v56 = vld [vmem:[%s8749_s2 + $0x210] sm:$0xff]  ;;  %v2822_v49 = vld [vmem:[%s8749_s2 + $0xa0] sm:$0xff] }
 0x200   : > { %2513 = vmatpush1.bf16.msra.mxu0 %v5536_v62  ;;  %2556 = vmatpush1.bf16.msra.mxu1 %v5538_v63  ;;  %v5610_v62 = vcombine.low %v1719_v50, %v1723_v51  ;;  %v5601_v63 = vcombine.high %v1710_v56, %v1714_v57  ;;  %v2819_v50 = vld [vmem:[%s8749_s2 + $0x88] sm:$0xff]  ;;  %v5705_v51 = vcombine.high %v2818_v48, %v2822_v49 }
 0x201   : > { %2514 = vmatprep.subr.bf16.mxu0 %v5657_v1  ;;  %2557 = vmatprep.subr.bf16.mxu1 %v5659_v5  ;;  %v5603_v1 = vcombine.high %v1711_v59, %v1715_v60  ;;  %v5600_v5 = vcombine.low %v1710_v56, %v1714_v57  ;;  %v2810_v56 = vld [vmem:[%s8749_s2 + $0x40] sm:$0xff]  ;;  %v2811_v59 = vld [vmem:[%s8749_s2 + $0x48] sm:$0xff] }
 0x202   : > { %v2814_v57 = vld [vmem:[%s8749_s2 + $0x60] sm:$0xff] }
 0x203   : > { %v5697_v60 = vcombine.high %v2810_v56, %v2814_v57 }
 0x204   : > { %2515 = vmatpush2.bf16.msra.mxu0 %v5656_v10  ;;  %2558 = vmatpush2.bf16.msra.mxu1 %v5658_v12  ;;  %v2863_v10 = vld [vmem:[%s8749_s2 + $0x1e8] sm:$0xff]  ;;  %v5744_v12 = vcombine.low %v2858_v7, %v2862_v8 }
 0x205   : > { %2516 = vmatprep.subr.bf16.mxu0 %v5649_v13  ;;  %2559 = vmatprep.subr.bf16.mxu1 %v5651_v14  ;;  %v5745_v13 = vcombine.high %v2858_v7, %v2862_v8  ;;  %v5746_v14 = vcombine.low %v2859_v9, %v2863_v10  ;;  %v2803_v7 = vld [vmem:[%s8749_s2 + $0x8] sm:$0xff] }
 0x208   : > { %2517 = vmatpush2.bf16.msra.mxu0 %v5648_v19  ;;  %2560 = vmatpush2.bf16.msra.mxu1 %v5650_v22  ;;  %v5736_v19 = vcombine.low %v2850_v15, %v2854_v16  ;;  %v5737_v22 = vcombine.high %v2850_v15, %v2854_v16  ;;  %v2923_v15 = vld [vmem:[%s8749_s2 + $0x3c8] sm:$0xff] }
 0x209   : > { %2518 = vmatprep.subr.bf16.mxu0 %v5641_v24  ;;  %2561 = vmatprep.subr.bf16.mxu1 %v5643_v25  ;;  %v5738_v24 = vcombine.low %v2851_v18, %v2855_v11  ;;  %v5739_v25 = vcombine.high %v2851_v18, %v2855_v11  ;;  %v2927_v18 = vld [vmem:[%s8749_s2 + $0x3e8] sm:$0xff] }
 0x20c   : > { %2519 = vmatpush2.bf16.msra.mxu0 %v5640_v26  ;;  %2562 = vmatpush2.bf16.msra.mxu1 %v5642_v27  ;;  %v2847_v26 = vld [vmem:[%s8749_s2 + $0x168] sm:$0xff]  ;;  %v5728_v27 = vcombine.low %v2842_v17, %v2846_v20 }
 0x20d   : > { %2520 = vmatprep.subr.bf16.mxu0 %v5633_v28  ;;  %2563 = vmatprep.subr.bf16.mxu1 %v5635_v30  ;;  %v5730_v28 = vcombine.low %v2843_v21, %v2847_v26  ;;  %v5731_v30 = vcombine.high %v2843_v21, %v2847_v26  ;;  %v2915_v17 = vld [vmem:[%s8749_s2 + $0x388] sm:$0xff] }
 0x20e   : > { %v2919_v21 = vld [vmem:[%s8749_s2 + $0x3a8] sm:$0xff] }
 0x20f   : > { %v5802_v26 = vcombine.low %v2915_v17, %v2919_v21 }
 0x210   : > { %2521 = vmatpush2.bf16.msra.mxu0 %v5632_v37  ;;  %2564 = vmatpush2.bf16.msra.mxu1 %v5634_v38  ;;  %v2839_v37 = vld [vmem:[%s8749_s2 + $0x128] sm:$0xff]  ;;  %v5720_v38 = vcombine.low %v2834_v31, %v2838_v34 }
 0x211   : > { %2522 = vmatprep.subr.bf16.mxu0 %v5625_v39  ;;  %2565 = vmatprep.subr.bf16.mxu1 %v5627_v32  ;;  %v5722_v39 = vcombine.low %v2835_v35, %v2839_v37  ;;  %v5723_v32 = vcombine.high %v2835_v35, %v2839_v37  ;;  %v2907_v31 = vld [vmem:[%s8749_s2 + $0x348] sm:$0xff] }
 0x212   : > { %v2911_v35 = vld [vmem:[%s8749_s2 + $0x368] sm:$0xff] }
 0x213   : > { %v5794_v37 = vcombine.low %v2907_v31, %v2911_v35 }
 0x214   : > { %2523 = vmatpush2.bf16.msra.mxu0 %v5624_v45  ;;  %2566 = vmatpush2.bf16.msra.mxu1 %v5626_v46  ;;  %v2831_v45 = vld [vmem:[%s8749_s2 + $0xe8] sm:$0xff]  ;;  %v5712_v46 = vcombine.low %v2826_v33, %v2830_v41 }
 0x215   : > { %2524 = vmatprep.subr.bf16.mxu0 %v5617_v0  ;;  %2567 = vmatprep.subr.bf16.mxu1 %v5619_v3  ;;  %v5714_v0 = vcombine.low %v2827_v42, %v2831_v45  ;;  %v5715_v3 = vcombine.high %v2827_v42, %v2831_v45  ;;  %v2899_v33 = vld [vmem:[%s8749_s2 + $0x308] sm:$0xff] }
 0x216   : > { %v2903_v42 = vld [vmem:[%s8749_s2 + $0x328] sm:$0xff] }
 0x217   : > { %v5786_v45 = vcombine.low %v2899_v33, %v2903_v42 }
 0x218   : > { %2525 = vmatpush2.bf16.msra.mxu0 %v5616_v52  ;;  %2568 = vmatpush2.bf16.msra.mxu1 %v5618_v4  ;;  %v2823_v52 = vld [vmem:[%s8749_s2 + $0xa8] sm:$0xff]  ;;  %v5704_v4 = vcombine.low %v2818_v48, %v2822_v49 }
 0x219   : > { %2526 = vmatprep.subr.bf16.mxu0 %v5609_v53  ;;  %2569 = vmatprep.subr.bf16.mxu1 %v5611_v54  ;;  %v5706_v53 = vcombine.low %v2819_v50, %v2823_v52  ;;  %v5707_v54 = vcombine.high %v2819_v50, %v2823_v52  ;;  %v2891_v48 = vld [vmem:[%s8749_s2 + $0x2c8] sm:$0xff] }
 0x21a   : > { %v2895_v50 = vld [vmem:[%s8749_s2 + $0x2e8] sm:$0xff] }
 0x21b   : > { %v5778_v52 = vcombine.low %v2891_v48, %v2895_v50 }
 0x21c   : > { %2527 = vmatpush2.bf16.msra.mxu0 %v5608_v61  ;;  %2570 = vmatpush2.bf16.msra.mxu1 %v5610_v62  ;;  %v2815_v61 = vld [vmem:[%s8749_s2 + $0x68] sm:$0xff]  ;;  %v5696_v62 = vcombine.low %v2810_v56, %v2814_v57 }
 0x21d   : > { %2528 = vmatprep.subr.bf16.mxu0 %v5601_v63  ;;  %2571 = vmatprep.subr.bf16.mxu1 %v5603_v1  ;;  %v5698_v63 = vcombine.low %v2811_v59, %v2815_v61  ;;  %v5699_v1 = vcombine.high %v2811_v59, %v2815_v61  ;;  %v2883_v56 = vld [vmem:[%s8749_s2 + $0x288] sm:$0xff] }
 0x21e   : > { %v2887_v59 = vld [vmem:[%s8749_s2 + $0x2a8] sm:$0xff] }
 0x21f   : > { %v5770_v61 = vcombine.low %v2883_v56, %v2887_v59 }
 0x220   : > { %2529 = vmatpush2.bf16.msra.mxu0 %v5600_v5  ;;  %2572 = vmatpush2.bf16.msra.mxu1 %v5602_v6  ;;  %v2802_v5 = vld [vmem:[%s8749_s2] sm:$0xff] }
 0x221   : > { %3570 = vmatprep.subr.bf16.mxu0 %v5745_v13  ;;  %v2806_v6 = vld [vmem:[%s8749_s2 + $0x20] sm:$0xff] }
 0x222   : > { %v5689_v8 = vcombine.high %v2802_v5, %v2806_v6 }
 0x223   : > { %2531 = vmatmul.mubr.bf16.vlgmr.msra.gmra.mxu0 %v7514_v2  ;;  %2574 = vmatmul.mubr.bf16.vlgmr.msra.gmra.mxu1 %v7514_v2  ;;  %v5747_v2 = vcombine.high %v2859_v9, %v2863_v10  ;;  %v2807_v9 = vld [vmem:[%s8749_s2 + $0x28] sm:$0xff]  ;;  %v5688_v10 = vcombine.low %v2802_v5, %v2806_v6 }
 0x224   : > { %3571 = vmatpush1.bf16.msra.mxu0 %v5744_v12  ;;  %v5690_v12 = vcombine.low %v2803_v7, %v2807_v9  ;;  %v5691_v13 = vcombine.high %v2803_v7, %v2807_v9  ;;  %v2875_v5 = vld [vmem:[%s8749_s2 + $0x248] sm:$0xff] }
 0x225   : > { %3613 = vmatprep.subr.bf16.mxu1 %v5747_v2  ;;  %3572 = vmatprep.subr.bf16.mxu0 %v5737_v22  ;;  %v2926_v2 = vld [vmem:[%s8749_s2 + $0x3e0] sm:$0xff]  ;;  %v5811_v22 = vcombine.high %v2923_v15, %v2927_v18  ;;  %v2879_v7 = vld [vmem:[%s8749_s2 + $0x268] sm:$0xff] }
 0x226   : > { %3614 = vmatpush1.bf16.msra.mxu1 %v5746_v14  ;;  %v2922_v14 = vld [vmem:[%s8749_s2 + $0x3c0] sm:$0xff] }
 0x227   : > { %3615 = vmatprep.subr.bf16.mxu1 %v5739_v25  ;;  %v5809_v16 = vcombine.high %v2922_v14, %v2926_v2  ;;  %v5808_v11 = vcombine.low %v2922_v14, %v2926_v2  ;;  %v2918_v25 = vld [vmem:[%s8749_s2 + $0x3a0] sm:$0xff]  ;;  %v2867_v2 = vld [vmem:[%s8749_s2 + $0x208] sm:$0xff] }
 0x228   : > { %3573 = vmatpush1.bf16.msra.mxu0 %v5736_v19  ;;  %v5810_v19 = vcombine.low %v2923_v15, %v2927_v18  ;;  %v2870_v14 = vld [vmem:[%s8749_s2 + $0x220] sm:$0xff]  ;;  %v2871_v18 = vld [vmem:[%s8749_s2 + $0x228] sm:$0xff] }
 0x229   : > { %3574 = vmatprep.subr.bf16.mxu0 %v5729_v23 }
 0x22a   : > { %3616 = vmatpush1.bf16.msra.mxu1 %v5738_v24  ;;  %v2914_v24 = vld [vmem:[%s8749_s2 + $0x380] sm:$0xff] }
 0x22b   : > { %3617 = vmatprep.subr.bf16.mxu1 %v5731_v30  ;;  %v5801_v20 = vcombine.high %v2914_v24, %v2918_v25  ;;  %v5800_v23 = vcombine.low %v2914_v24, %v2918_v25  ;;  %v2910_v30 = vld [vmem:[%s8749_s2 + $0x360] sm:$0xff]  ;;  %v5755_v24 = vcombine.high %v2867_v2, %v2871_v18 }
 0x22c   : > { %3575 = vmatpush1.bf16.msra.mxu0 %v5728_v27  ;;  %v5803_v27 = vcombine.high %v2915_v17, %v2919_v21  ;;  %v7897_v21 = vld [vmem:[%s8749_s2 + $0x1f0] sm:$0xff] }
 0x22d   : > { %3576 = vmatprep.subr.bf16.mxu0 %v5721_v36 }
 0x22e   : > { %3618 = vmatpush1.bf16.msra.mxu1 %v5730_v28  ;;  %v2906_v28 = vld [vmem:[%s8749_s2 + $0x340] sm:$0xff] }
 0x22f   : > { %3619 = vmatprep.subr.bf16.mxu1 %v5723_v32  ;;  %v5793_v34 = vcombine.high %v2906_v28, %v2910_v30  ;;  %v5792_v36 = vcombine.low %v2906_v28, %v2910_v30  ;;  %v2902_v32 = vld [vmem:[%s8749_s2 + $0x320] sm:$0xff] }
 0x230   : > { %3577 = vmatpush1.bf16.msra.mxu0 %v5720_v38  ;;  %v5795_v38 = vcombine.high %v2907_v31, %v2911_v35  ;;  %v7909_v31 = vld [vmem:[%s8749_s2 + $0x1f8] sm:$0xff] }
 0x231   : > { %3578 = vmatprep.subr.bf16.mxu0 %v5713_v43 }
 0x232   : > { %3620 = vmatpush1.bf16.msra.mxu1 %v5722_v39  ;;  %v2898_v39 = vld [vmem:[%s8749_s2 + $0x300] sm:$0xff] }
 0x233   : > { %3621 = vmatprep.subr.bf16.mxu1 %v5715_v3  ;;  %v5785_v41 = vcombine.high %v2898_v39, %v2902_v32  ;;  %v5784_v43 = vcombine.low %v2898_v39, %v2902_v32  ;;  %v2894_v3 = vld [vmem:[%s8749_s2 + $0x2e0] sm:$0xff] }
 0x234   : > { %3579 = vmatpush1.bf16.msra.mxu0 %v5712_v46  ;;  %v5787_v46 = vcombine.high %v2899_v33, %v2903_v42 }
 0x235   : > { %3580 = vmatprep.subr.bf16.mxu0 %v5705_v51 }
 0x236   : > { %3622 = vmatpush1.bf16.msra.mxu1 %v5714_v0  ;;  %v2890_v0 = vld [vmem:[%s8749_s2 + $0x2c0] sm:$0xff] }
 0x237   : > { %3623 = vmatprep.subr.bf16.mxu1 %v5707_v54  ;;  %v5777_v49 = vcombine.high %v2890_v0, %v2894_v3  ;;  %v5776_v51 = vcombine.low %v2890_v0, %v2894_v3  ;;  %v2886_v54 = vld [vmem:[%s8749_s2 + $0x2a0] sm:$0xff] }
 0x238   : > { %3581 = vmatpush1.bf16.msra.mxu0 %v5704_v4  ;;  %v5779_v4 = vcombine.high %v2891_v48, %v2895_v50 }
 0x239   : > { %3582 = vmatprep.subr.bf16.mxu0 %v5697_v60 }
 0x23a   : > { %3624 = vmatpush1.bf16.msra.mxu1 %v5706_v53  ;;  %v2882_v53 = vld [vmem:[%s8749_s2 + $0x280] sm:$0xff] }
 0x23b   : > { %3625 = vmatprep.subr.bf16.mxu1 %v5699_v1  ;;  %v5769_v57 = vcombine.high %v2882_v53, %v2886_v54  ;;  %v5768_v60 = vcombine.low %v2882_v53, %v2886_v54  ;;  %v2878_v1 = vld [vmem:[%s8749_s2 + $0x260] sm:$0xff] }
 0x23c   : > { %3583 = vmatpush1.bf16.msra.mxu0 %v5696_v62  ;;  %v5771_v62 = vcombine.high %v2883_v56, %v2887_v59 }
 0x23d   : > { %3584 = vmatprep.subr.bf16.mxu0 %v5689_v8  ;;  %v5660_v8 = vld [vmem:[%s6780_s1 + $0x20] sm:$0xff] }
 0x23e   : > { %3626 = vmatpush1.bf16.msra.mxu1 %v5698_v63  ;;  %v2874_v63 = vld [vmem:[%s8749_s2 + $0x240] sm:$0xff]  ;;  %v2589_v15 = vunpack.c.l.bf16 %v5660_v8  ;;  %v2590_v25 = vunpack.c.h.bf16 %v5660_v8 }
 0x23f   : > { %3627 = vmatprep.subr.bf16.mxu1 %v5691_v13  ;;  %v5761_v6 = vcombine.high %v2874_v63, %v2878_v1  ;;  %v5760_v9 = vcombine.low %v2874_v63, %v2878_v1  ;;  %v2866_v13 = vld [vmem:[%s8749_s2 + $0x200] sm:$0xff] }
 0x240   : > { %3585 = vmatpush1.bf16.msra.mxu0 %v5688_v10  ;;  %v5762_v10 = vcombine.low %v2875_v5, %v2879_v7 }
 0x241   : > { %3586 = vmatprep.subr.bf16.mxu0 %v5809_v16  ;;  %v5753_v16 = vcombine.high %v2866_v13, %v2870_v14 }
 0x242   : > { %3628 = vmatpush1.bf16.msra.mxu1 %v5690_v12  ;;  %v5763_v12 = vcombine.high %v2875_v5, %v2879_v7 }
 0x243   : > { %3629 = vmatprep.subr.bf16.mxu1 %v5811_v22  ;;  %v5754_v22 = vcombine.low %v2867_v2, %v2871_v18 }
 0x244   : > { %3587 = vmatpush2.bf16.msra.mxu0 %v5808_v11  ;;  %v5662_v11 = vld [vmem:[%s6780_s1 + $0x30] sm:$0xff] }
 0x245   : > { %3588 = vmatprep.subr.bf16.mxu0 %v5801_v20  ;;  %v7892_v20 = vld [vmem:[%s8749_s2 + $0x1d0] sm:$0xff]  ;;  %v2593_v28 = vunpack.c.l.bf16 %v5662_v11  ;;  %v2594_v32 = vunpack.c.h.bf16 %v5662_v11 }
 0x246   : > { %3630 = vmatpush2.bf16.msra.mxu1 %v5810_v19  ;;  %v5752_v19 = vcombine.low %v2866_v13, %v2870_v14  ;;  %v5748_v30 = vcombine.low %v7892_v20, %v7897_v21  ;;  %v5749_v35 = vcombine.high %v7892_v20, %v7897_v21  ;;  %v7919_v13 = vpop.permute.xlu0 %2764  ;;  %v2840_v20 = vld [vmem:[%s8749_s2 + $0x130] sm:$0xff]  ;;  %v2837_v21 = vld [vmem:[%s8749_s2 + $0x118] sm:$0xff] }
 0x247   : > { %3631 = vmatprep.subr.bf16.mxu1 %v5803_v27  ;;  %vm2769_vm6 = vcmp.eq.s32.totalorder %v7919_v13, 1  ;;  %v2857_v13 = vld [vmem:[%s8749_s2 + $0x1b8] sm:$0xff] }
 0x248   : > { %3589 = vmatpush2.bf16.msra.mxu0 %v5800_v23  ;;  %v7902_v23 = vld [vmem:[%s8749_s2 + $0x1d8] sm:$0xff] }
 0x249   : > { %3590 = vmatprep.subr.bf16.mxu0 %v5793_v34 }
 0x24a   : > { %3632 = vmatpush2.bf16.msra.mxu1 %v5802_v26 }
 0x24b   : > { %3633 = vmatprep.subr.bf16.mxu1 %v5795_v38 }
 0x24c   : > { %3591 = vmatpush2.bf16.msra.mxu0 %v5792_v36  ;;  %v5750_v36 = vcombine.low %v7902_v23, %v7909_v31 }
 0x24d   : > { %3592 = vmatprep.subr.bf16.mxu0 %v5785_v41 }
 0x24e   : > { %3634 = vmatpush2.bf16.msra.mxu1 %v5794_v37  ;;  %v5751_v37 = vcombine.high %v7902_v23, %v7909_v31  ;;  %v2841_v23 = vld [vmem:[%s8749_s2 + $0x138] sm:$0xff] }
 0x24f   : > { %3635 = vmatprep.subr.bf16.mxu1 %v5787_v46  ;;  %v5661_v46 = vld [vmem:[%s6780_s1 + $0x28] sm:$0xff] }
 0x250   : > { %3593 = vmatpush2.bf16.msra.mxu0 %v5784_v43  ;;  %v2592_v48 = vunpack.c.h.bf16 %v5661_v46  ;;  %v2591_v54 = vunpack.c.l.bf16 %v5661_v46 }
 0x251   : > { %3594 = vmatprep.subr.bf16.mxu0 %v5777_v49 }
 0x252   : > { %3636 = vmatpush2.bf16.msra.mxu1 %v5786_v45 }
 0x253   : > { %3637 = vmatprep.subr.bf16.mxu1 %v5779_v4 }
 0x254   : > { %3595 = vmatpush2.bf16.msra.mxu0 %v5776_v51  ;;  %v5663_v51 = vld [vmem:[%s6780_s1 + $0x38] sm:$0xff] }
 0x255   : > { %3596 = vmatprep.subr.bf16.mxu0 %v5769_v57  ;;  %v2596_v4 = vunpack.c.h.bf16 %v5663_v51 }
 0x256   : > { %3638 = vmatpush2.bf16.msra.mxu1 %v5778_v52 }
 0x257   : > { %3639 = vmatprep.subr.bf16.mxu1 %v5771_v62 }
 0x258   : > { %3597 = vmatpush2.bf16.msra.mxu0 %v5768_v60 }
 0x259   : > { %3598 = vmatprep.subr.bf16.mxu0 %v5761_v6 }
 0x25a   : > { %3640 = vmatpush2.bf16.msra.mxu1 %v5770_v61  ;;  %v2595_v61 = vunpack.c.l.bf16 %v5663_v51 }
 0x25b   : > { %3641 = vmatprep.subr.bf16.mxu1 %v5763_v12 }
 0x25c   : > { %3599 = vmatpush2.bf16.msra.mxu0 %v5760_v9 }
 0x25d   : > { %3600 = vmatprep.subr.bf16.mxu0 %v5753_v16  ;;  %v1638_v16 = vld [vmem:[#allocation3] sm:$0xff] }
 0x25e   : > { %3642 = vmatpush2.bf16.msra.mxu1 %v5762_v10 }
 0x25f   : > { %3643 = vmatprep.subr.bf16.mxu1 %v5755_v24 }
 0x260   : > { %3601 = vmatpush2.bf16.msra.mxu0 %v5752_v19  ;;  %v7921_v19 = vpop.permute.xlu1 %2767 }
 0x261   : > { %3656 = vmatprep.subr.bf16.mxu0 %v5749_v35  ;;  %vm2770_vm7 = vcmp.eq.s32.totalorder %v7921_v19, 1 }
 0x262   : > { %3644 = vmatpush2.bf16.msra.mxu1 %v5754_v22 }
 0x263   : > { %3699 = vmatprep.subr.bf16.mxu1 %v5751_v37 }
 0x2a3   : > { %v2446_v17 = vpop.f32.mrf.mxu0  ;;  %v2489_v27 = vpop.f32.mrf.mxu1 }
 0x2a4   : > { %v2597_v26 = vadd.f32 %v2589_v15, %v2446_v17  ;;  %v2599_v60 = vadd.f32 %v2591_v54, %v2489_v27  ;;  %v5676_v54 = vld [vmem:[%s6782_s28 + $0x50] sm:$0xff] }
 0x2a5   : > { %v2448_v34 = vpop.f32.mrf.mxu0  ;;  %v2491_v42 = vpop.f32.mrf.mxu1 }
 0x2a6   : > { %v5664_v38 = vmul.f32 -1.442695, %v2597_v26  ;;  %v2598_v39 = vadd.f32 %v2590_v25, %v2448_v34  ;;  %v2600_v52 = vadd.f32 %v2592_v48, %v2491_v42  ;;  %v2661_v26 = vpop.permute.xlu0 %2660  ;;  %v1640_v34 = vld [vmem:[#allocation3 + $0x8] sm:$0xff]  ;;  %v5674_v48 = vld [vmem:[%s6782_s28 + $0x40] sm:$0xff] }
 0x2a7   : > { %v2450_v33 = vpop.f32.mrf.mxu0  ;;  %v2493_v49 = vpop.f32.mrf.mxu1  ;;  %vm2665_vm4 = vcmp.eq.s32.totalorder %v2661_v26, 1 }
 0x2a8   : > { %6230 = vpow2.f32 %v5664_v38  ;;  %v5666_v41 = vmul.f32 -1.442695, %v2598_v39  ;;  %v2601_v43 = vadd.f32 %v2593_v28, %v2450_v33  ;;  %v5668_v56 = vmul.f32 -1.442695, %v2600_v52 }
 0x2a9   : > { %v2452_v45 = vpop.f32.mrf.mxu0  ;;  %v2495_v53 = vpop.f32.mrf.mxu1  ;;  %v2603_v7 = vadd.f32 %v2595_v61, %v2493_v49 }
 0x2aa   : > { %6232 = vpow2.f32 %v5666_v41  ;;  %v5665_v0 = vmul.f32 -1.442695, %v2601_v43  ;;  %v2602_v3 = vadd.f32 %v2594_v32, %v2452_v45  ;;  %v2604_v57 = vadd.f32 %v2596_v4, %v2495_v53  ;;  %v2664_v32 = vpop.permute.xlu1 %2663 }
 0x2ab   : > { %vm2666_vm5 = vcmp.eq.s32.totalorder %v2664_v32, 1  ;;  %v2693_v4 = vunpack.c.l.bf16 %v5674_v48 }
 0x2ac   : > { %6234 = vpow2.f32 %v5665_v0  ;;  %v5667_v50 = vmul.f32 -1.442695, %v2602_v3  ;;  %v5669_v1 = vmul.f32 -1.442695, %v2604_v57 }
 0x2ae   : > { %6236 = vpow2.f32 %v5667_v50 }
 0x2af   : > { %6238 = vpow2.f32 %v5668_v56  ;;  %v2694_v56 = vunpack.c.h.bf16 %v5674_v48 }
 0x2b5   : > { %v6231_v59 = vpop.eup %6230 }
 0x2b6   : > { %v2611_v62 = vadd.f32 1.0, %v6231_v59 }
 0x2b7   : > { %v6233_v63 = vpop.eup %6232 }
 0x2b8   : > { %6240 = vrcp.f32 %v2611_v62  ;;  %v2623_v5 = vadd.f32 1.0, %v6233_v63 }
 0x2b9   : > { %v6235_v6 = vpop.eup %6234  ;;  %6242 = vtanh.f32 %v2599_v60 }
 0x2ba   : > { %6244 = vrcp.f32 %v2623_v5  ;;  %v2612_v8 = vadd.f32 1.0, %v6235_v6 }
 0x2bb   : > { %v6237_v9 = vpop.eup %6236  ;;  %6246 = vpow2.f32 %v5669_v1  ;;  %v2698_v1 = vunpack.c.h.bf16 %v5676_v54 }
 0x2bc   : > { %6248 = vrcp.f32 %v2612_v8  ;;  %v2624_v10 = vadd.f32 1.0, %v6237_v9  ;;  %v6239_v12 = vpop.eup %6238  ;;  %v5675_v9 = vld [vmem:[%s6782_s28 + $0x48] sm:$0xff] }
 0x2bd   : > { %6250 = vtanh.f32 %v2603_v7  ;;  %v2637_v18 = vadd.f32 1.0, %v6239_v12 }
 0x2be   : > { %6252 = vrcp.f32 %v2624_v10 }
 0x2bf   : > { %6254 = vrcp.f32 %v2637_v18 }
 0x2c5   : > { %v6241_v14 = vpop.eup %6240 }
 0x2c6   : > { %v6243_v2 = vpop.eup %6242 }
 0x2c7   : > { %v6245_v15 = vpop.eup %6244  ;;  %v2645_v22 = vmul.f32 %v6243_v2, %v6241_v14  ;;  %v2696_v14 = vunpack.c.h.bf16 %v5675_v9 }
 0x2c8   : > { %v6247_v11 = vpop.eup %6246  ;;  %v2643_v24 = vmul.f32 %v6245_v15, %v1638_v16 }
 0x2c9   : > { %v6249_v25 = vpop.eup %6248  ;;  %v2638_v35 = vadd.f32 1.0, %v6247_v11 }
 0x2ca   : > { %v6251_v17 = vpop.eup %6250  ;;  %v2647_v27 = vadd.f32 %v2645_v22, %v2643_v24  ;;  %v2695_v24 = vunpack.c.l.bf16 %v5675_v9 }
 0x2cb   : > { %v6253_v28 = vpop.eup %6252  ;;  %v2646_v38 = vmul.f32 %v6251_v17, %v6249_v25 }
 0x2cc   : > { %6256 = vtanh.f32 %v2647_v27  ;;  %v2671_v37 = vsel %vm2665_vm4, %v2647_v27, %v1638_v16  ;;  %v2644_v39 = vmul.f32 %v6253_v28, %v1640_v34  ;;  %v6255_v42 = vpop.eup %6254  ;;  %v5677_v16 = vld [vmem:[%s6782_s28 + $0x58] sm:$0xff] }
 0x2cd   : > { %2673 = vst [vmem:[#allocation3] sm:$0xff] %v2671_v37  ;;  %6258 = vrcp.f32 %v2638_v35  ;;  %v2700_v11 = vunpack.c.h.bf16 %v5677_v16  ;;  %v2699_v28 = vunpack.c.l.bf16 %v5677_v16 }
 0x2ce   : > { %v2648_v33 = vadd.f32 %v2646_v38, %v2644_v39 }
 0x2d0   : > { %6260 = vtanh.f32 %v2648_v33  ;;  %v2672_v41 = vsel %vm2666_vm5, %v2648_v33, %v1640_v34 }
 0x2d1   : > { %2674 = vst [vmem:[#allocation3 + $0x8] sm:$0xff] %v2672_v41 }
 0x2d9   : > { %v6257_v43 = vpop.eup %6256 }
 0x2da   : > { %v2651_v45 = vmul.f32 %v6257_v43, %v6255_v42  ;;  %v6259_v46 = vpop.eup %6258 }
 0x2dc   : > { %v7926_v0 = vsel %vm2665_vm4, %v2651_v45, %v7471_v29  ;;  %v2675_v50 = vsel %vm2665_vm4, %v2651_v45, 0.0  ;;  %v2697_v29 = vunpack.c.l.bf16 %v5676_v54 }
 0x2dd   : > { %v6261_v3 = vpop.eup %6260 }
 0x2de   : > { %v2652_v49 = vmul.f32 %v6261_v3, %v6259_v46 }
 0x2e0   : > { %v7931_v51 = vsel %vm2666_vm5, %v2652_v49, %v7477_v40  ;;  %v2676_v52 = vsel %vm2666_vm5, %v2652_v49, 0.0 }
 0x2e1   : > { %v6043_v53 = vpack.c.bf16 %v2676_v52, %v2675_v50 }
 0x2e3   : > { %6071 = vst [vmem:[%s6784_s16 + $0x8] sm:$0xff] %v6043_v53   ;;  %v2532_v57 = vpop.f32.mrf.mxu0  ;;  %v2575_v60 = vpop.f32.mrf.mxu1 }
 0x2e4   : > { %v2701_v59 = vadd.f32 %v2693_v4, %v2532_v57  ;;  %v2703_v27 = vadd.f32 %v2695_v24, %v2575_v60 }
 0x2e5   : > { %v2534_v61 = vpop.f32.mrf.mxu0  ;;  %v2577_v6 = vpop.f32.mrf.mxu1 }
 0x2e6   : > { %v5678_v62 = vmul.f32 -1.442695, %v2701_v59  ;;  %v2702_v63 = vadd.f32 %v2694_v56, %v2534_v61  ;;  %v2704_v18 = vadd.f32 %v2696_v14, %v2577_v6 }
 0x2e7   : > { %v2536_v5 = vpop.f32.mrf.mxu0  ;;  %v2579_v2 = vpop.f32.mrf.mxu1 }
 0x2e8   : > { %6262 = vpow2.f32 %v5678_v62  ;;  %v5680_v40 = vmul.f32 -1.442695, %v2702_v63  ;;  %v2705_v7 = vadd.f32 %v2697_v29, %v2536_v5  ;;  %v5682_v25 = vmul.f32 -1.442695, %v2704_v18  ;;  %v2848_v18 = vld [vmem:[%s8749_s2 + $0x170] sm:$0xff] }
 0x2e9   : > { %v2538_v8 = vpop.f32.mrf.mxu0  ;;  %v2581_v22 = vpop.f32.mrf.mxu1  ;;  %v2707_v32 = vadd.f32 %v2699_v28, %v2579_v2  ;;  %v2844_v2 = vld [vmem:[%s8749_s2 + $0x150] sm:$0xff]  ;;  %v5727_v28 = vcombine.high %v2837_v21, %v2841_v23 }
 0x2ea   : > { %6264 = vpow2.f32 %v5680_v40  ;;  %v5679_v10 = vmul.f32 -1.442695, %v2705_v7  ;;  %v2706_v12 = vadd.f32 %v2698_v1, %v2538_v8  ;;  %v2708_v17 = vadd.f32 %v2700_v11, %v2581_v22  ;;  %v2845_v11 = vld [vmem:[%s8749_s2 + $0x158] sm:$0xff] }
 0x2eb   : > { %v2849_v22 = vld [vmem:[%s8749_s2 + $0x178] sm:$0xff] }
 0x2ec   : > { %6266 = vpow2.f32 %v5679_v10  ;;  %v5681_v15 = vmul.f32 -1.442695, %v2706_v12  ;;  %v5683_v37 = vmul.f32 -1.442695, %v2708_v17  ;;  %v2856_v10 = vld [vmem:[%s8749_s2 + $0x1b0] sm:$0xff]  ;;  %v5733_v17 = vcombine.high %v2844_v2, %v2848_v18 }
 0x2ed   : > { %v5734_v31 = vcombine.low %v2845_v11, %v2849_v22 }
 0x2ee   : > { %6268 = vpow2.f32 %v5681_v15 }
 0x2ef   : > { %6270 = vpow2.f32 %v5682_v25 }
 0x2f5   : > { %v6263_v26 = vpop.eup %6262 }
 0x2f6   : > { %v2715_v34 = vadd.f32 1.0, %v6263_v26  ;;  %v5735_v26 = vcombine.high %v2845_v11, %v2849_v22 }
 0x2f7   : > { %v6265_v35 = vpop.eup %6264 }
 0x2f8   : > { %6272 = vrcp.f32 %v2715_v34  ;;  %v2727_v38 = vadd.f32 1.0, %v6265_v35  ;;  %v2828_v34 = vld [vmem:[%s8749_s2 + $0xd0] sm:$0xff] }
 0x2f9   : > { %v6267_v39 = vpop.eup %6266  ;;  %6274 = vtanh.f32 %v2703_v27  ;;  %v2836_v27 = vld [vmem:[%s8749_s2 + $0x110] sm:$0xff] }
 0x2fa   : > { %6276 = vrcp.f32 %v2727_v38  ;;  %v2716_v33 = vadd.f32 1.0, %v6267_v39  ;;  %v2832_v35 = vld [vmem:[%s8749_s2 + $0xf0] sm:$0xff]  ;;  %v2833_v38 = vld [vmem:[%s8749_s2 + $0xf8] sm:$0xff]  ;;  %v5724_v39 = vcombine.low %v2836_v27, %v2840_v20 }
 0x2fb   : > { %v6269_v41 = vpop.eup %6268  ;;  %6278 = vpow2.f32 %v5683_v37  ;;  %v2829_v37 = vld [vmem:[%s8749_s2 + $0xd8] sm:$0xff] }
 0x2fc   : > { %6280 = vrcp.f32 %v2716_v33  ;;  %v2728_v42 = vadd.f32 1.0, %v6269_v41  ;;  %v6271_v43 = vpop.eup %6270  ;;  %v5717_v33 = vcombine.high %v2828_v34, %v2832_v35  ;;  %v5719_v41 = vcombine.high %v2829_v37, %v2833_v38 }
 0x2fd   : > { %6282 = vtanh.f32 %v2707_v32  ;;  %v2741_v48 = vadd.f32 1.0, %v6271_v43  ;;  %v5726_v32 = vcombine.low %v2837_v21, %v2841_v23  ;;  %v2824_v43 = vld [vmem:[%s8749_s2 + $0xb0] sm:$0xff] }
 0x2fe   : > { %6284 = vrcp.f32 %v2728_v42  ;;  %v2820_v42 = vld [vmem:[%s8749_s2 + $0x90] sm:$0xff] }
 0x2ff   : > { %6286 = vrcp.f32 %v2741_v48  ;;  %v5718_v48 = vcombine.low %v2829_v37, %v2833_v38 }
 0x305   : > { %v6273_v45 = vpop.eup %6272 }
 0x306   : > { %v6275_v46 = vpop.eup %6274 }
 0x307   : > { %v6277_v3 = vpop.eup %6276  ;;  %v2749_v50 = vmul.f32 %v6275_v46, %v6273_v45  ;;  %v2821_v45 = vld [vmem:[%s8749_s2 + $0x98] sm:$0xff] }
 0x308   : > { %v6279_v49 = vpop.eup %6278  ;;  %v2747_v52 = vmul.f32 %v6277_v3, %v7485_v44  ;;  %v2825_v46 = vld [vmem:[%s8749_s2 + $0xb8] sm:$0xff]  ;;  %v5716_v3 = vcombine.low %v2828_v34, %v2832_v35 }
 0x309   : > { %v6281_v4 = vpop.eup %6280  ;;  %v2742_v57 = vadd.f32 1.0, %v6279_v49  ;;  %v5709_v49 = vcombine.high %v2820_v42, %v2824_v43  ;;  %v2905_v34 = vld [vmem:[%s8749_s2 + $0x338] sm:$0xff] }
 0x30a   : > { %v6283_v53 = vpop.eup %6282  ;;  %v2751_v54 = vadd.f32 %v2749_v50, %v2747_v52  ;;  %v5711_v50 = vcombine.high %v2821_v45, %v2825_v46  ;;  %v2812_v52 = vld [vmem:[%s8749_s2 + $0x50] sm:$0xff] }
 0x30b   : > { %v6285_v56 = vpop.eup %6284  ;;  %v2750_v60 = vmul.f32 %v6283_v53, %v6281_v4  ;;  %v2816_v4 = vld [vmem:[%s8749_s2 + $0x70] sm:$0xff]  ;;  %v2813_v53 = vld [vmem:[%s8749_s2 + $0x58] sm:$0xff] }
 0x30c   : > { %6288 = vtanh.f32 %v2751_v54  ;;  %v2775_v59 = vsel %vm2769_vm6, %v2751_v54, %v7485_v44  ;;  %v2748_v29 = vmul.f32 %v6285_v56, %v7488_v47  ;;  %v6287_v63 = vpop.eup %6286  ;;  %v2817_v54 = vld [vmem:[%s8749_s2 + $0x78] sm:$0xff]  ;;  %v5708_v56 = vcombine.low %v2820_v42, %v2824_v43 }
 0x30d   : > { %2777 = vst [vmem:[#allocation3 + $0x18] sm:$0xff] %v2775_v59  ;;  %6290 = vrcp.f32 %v2742_v57  ;;  %v5710_v57 = vcombine.low %v2821_v45, %v2825_v46  ;;  %v5701_v59 = vcombine.high %v2812_v52, %v2816_v4  ;;  %v2897_v42 = vld [vmem:[%s8749_s2 + $0x2f8] sm:$0xff] }
 0x30e   : > { %v2752_v61 = vadd.f32 %v2750_v60, %v2748_v29  ;;  %v5703_v60 = vcombine.high %v2813_v53, %v2817_v54  ;;  %v2804_v29 = vld [vmem:[%s8749_s2 + $0x10] sm:$0xff] }
 0x310   : > { %6292 = vtanh.f32 %v2752_v61  ;;  %v2776_v62 = vsel %vm2770_vm7, %v2752_v61, %v7488_v47  ;;  %v2852_v47 = vld [vmem:[%s8749_s2 + $0x190] sm:$0xff] }
 0x311   : > { %2778 = vst [vmem:[#allocation3 + $0x10] sm:$0xff] %v2776_v62  ;;  %v5741_v15 = vcombine.high %v2852_v47, %v2856_v10  ;;  %v5740_v24 = vcombine.low %v2852_v47, %v2856_v10  ;;  %v2808_v61 = vld [vmem:[%s8749_s2 + $0x30] sm:$0xff]  ;;  %v2805_v62 = vld [vmem:[%s8749_s2 + $0x18] sm:$0xff] }
 0x312   : > { %v2925_v47 = vld [vmem:[%s8749_s2 + $0x3d8] sm:$0xff]  ;;  %v5692_v10 = vcombine.low %v2804_v29, %v2808_v61 }
 0x319   : > { %v6289_v1 = vpop.eup %6288 }
 0x31a   : > { %v2755_v5 = vmul.f32 %v6289_v1, %v6287_v63  ;;  %v6291_v40 = vpop.eup %6290  ;;  %v2809_v63 = vld [vmem:[%s8749_s2 + $0x38] sm:$0xff]  ;;  %v5700_v1 = vcombine.low %v2812_v52, %v2816_v4 }
 0x31b   : > { %v2889_v52 = vld [vmem:[%s8749_s2 + $0x2b8] sm:$0xff] }
 0x31c   : > { %v7948_v44 = vsel %vm2769_vm6, %v2755_v5, %v7494_v55  ;;  %v2779_v6 = vsel %vm2769_vm6, %v2755_v5, 0.0  ;;  %v2853_v55 = vld [vmem:[%s8749_s2 + $0x198] sm:$0xff]  ;;  %v5702_v5 = vcombine.low %v2813_v53, %v2817_v54 }
 0x31d   : > { %v6293_v7 = vpop.eup %6292  ;;  %v5743_v16 = vcombine.high %v2853_v55, %v2857_v13  ;;  %v5742_v25 = vcombine.low %v2853_v55, %v2857_v13  ;;  %v5694_v55 = vcombine.low %v2805_v62, %v2809_v63 }
 0x31e   : > { %v2756_v19 = vmul.f32 %v6293_v7, %v6291_v40  ;;  %v5693_v40 = vcombine.high %v2804_v29, %v2808_v61  ;;  %v2924_v7 = vld [vmem:[%s8749_s2 + $0x3d0] sm:$0xff]  ;;  %v2881_v29 = vld [vmem:[%s8749_s2 + $0x278] sm:$0xff] }
 0x320   : > { %v7956_v8 = vsel %vm2770_vm7, %v2756_v19, %v7498_v58  ;;  %v2780_v9 = vsel %vm2770_vm7, %v2756_v19, 0.0  ;;  %v7971_v58 = vpack.c.bf16 %v7931_v51, %v7926_v0  ;;  %v2928_v19 = vld [vmem:[%s8749_s2 + $0x3f0] sm:$0xff] }
 0x321   : > { %v6048_v12 = vpack.c.bf16 %v2780_v9, %v2779_v6  ;;  %v2801_v14 = vpack.c.bf16 %v7956_v8, %v7948_v44  ;;  %v5695_v6 = vcombine.high %v2805_v62, %v2809_v63  ;;  %v2929_v9 = vld [vmem:[%s8749_s2 + $0x3f8] sm:$0xff]  ;;  %v5813_v13 = vcombine.high %v2924_v7, %v2928_v19 }
 0x322   : > { %v5814_v11 = vcombine.low %v2925_v47, %v2929_v9 }
 0x323   : > { %6072 = vst [vmem:[%s6786_s11 + $0x10] sm:$0xff] %v6048_v12   ;;  %3602 = vmatprep.mubr.bf16.mxu0 %v2801_v14  ;;  %3645 = vmatprep.mubr.bf16.mxu1 %v2801_v14  ;;  %v5815_v12 = vcombine.high %v2925_v47, %v2929_v9 }
 0x324   : > { %3603 = vmatmul.mubr.bf16.vlgmr.msra.gmra.mxu0 %v7971_v58  ;;  %3646 = vmatmul.mubr.bf16.vlgmr.msra.gmra.mxu1 %v7971_v58 }
 0x325   : > { %3657 = vmatpush1.bf16.msra.mxu0 %v5748_v30  ;;  %3700 = vmatpush1.bf16.msra.mxu1 %v5750_v36  ;;  %v5732_v30 = vcombine.low %v2844_v2, %v2848_v18  ;;  %v5725_v36 = vcombine.high %v2836_v27, %v2840_v20  ;;  %v2920_v2 = vld [vmem:[%s8749_s2 + $0x3b0] sm:$0xff]  ;;  %v5812_v18 = vcombine.low %v2924_v7, %v2928_v19  ;;  %v2913_v27 = vld [vmem:[%s8749_s2 + $0x378] sm:$0xff] }
 0x326   : > { %3688 = vmatprep.mubr.bf16.mxu0 %v2801_v14  ;;  %3731 = vmatprep.mubr.bf16.mxu1 %v2801_v14  ;;  %v2916_v14 = vld [vmem:[%s8749_s2 + $0x390] sm:$0xff]  ;;  %v2873_v7 = vld [vmem:[%s8749_s2 + $0x238] sm:$0xff] }
 0x327   : > { %3658 = vmatprep.subr.bf16.mxu0 %v5741_v15  ;;  %3701 = vmatprep.subr.bf16.mxu1 %v5743_v16  ;;  %v2917_v15 = vld [vmem:[%s8749_s2 + $0x398] sm:$0xff]  ;;  %v5805_v22 = vcombine.high %v2916_v14, %v2920_v2  ;;  %v5804_v20 = vcombine.low %v2916_v14, %v2920_v2  ;;  %v4020_v14 = vld [vmem:[%s8749_s2 + $0x1e0] sm:$0xff]  ;;  %v4017_v2 = vld [vmem:[%s8749_s2 + $0x1c8] sm:$0xff] }
 0x328   : > { %v2921_v16 = vld [vmem:[%s8749_s2 + $0x3b8] sm:$0xff] }
 0x329   : > { %3659 = vmatpush1.bf16.msra.mxu0 %v5740_v24  ;;  %3702 = vmatpush1.bf16.msra.mxu1 %v5742_v25  ;;  %v5807_v24 = vcombine.high %v2917_v15, %v2921_v16  ;;  %v2908_v25 = vld [vmem:[%s8749_s2 + $0x350] sm:$0xff]  ;;  %v5806_v21 = vcombine.low %v2917_v15, %v2921_v16  ;;  %v4021_v15 = vld [vmem:[%s8749_s2 + $0x1e8] sm:$0xff] }
 0x32a   : > { %3660 = vmatprep.subr.bf16.mxu0 %v5733_v17  ;;  %3703 = vmatprep.subr.bf16.mxu1 %v5735_v26  ;;  %v2912_v17 = vld [vmem:[%s8749_s2 + $0x370] sm:$0xff]  ;;  %v2909_v26 = vld [vmem:[%s8749_s2 + $0x358] sm:$0xff] }
 0x32b   : > { %v5797_v23 = vcombine.high %v2908_v25, %v2912_v17  ;;  %v5796_v35 = vcombine.low %v2908_v25, %v2912_v17  ;;  %v5798_v37 = vcombine.low %v2909_v26, %v2913_v27  ;;  %v4009_v25 = vld [vmem:[%s8749_s2 + $0x188] sm:$0xff] }
 0x32c   : > { %v4013_v17 = vld [vmem:[%s8749_s2 + $0x1a8] sm:$0xff] }
 0x32d   : > { %3661 = vmatpush1.bf16.msra.mxu0 %v5732_v30  ;;  %3704 = vmatpush1.bf16.msra.mxu1 %v5734_v31  ;;  %v5799_v30 = vcombine.high %v2909_v26, %v2913_v27  ;;  %v2900_v31 = vld [vmem:[%s8749_s2 + $0x310] sm:$0xff] }
 0x32e   : > { %3662 = vmatprep.subr.bf16.mxu0 %v5725_v36  ;;  %3705 = vmatprep.subr.bf16.mxu1 %v5727_v28  ;;  %v2904_v36 = vld [vmem:[%s8749_s2 + $0x330] sm:$0xff]  ;;  %v2901_v28 = vld [vmem:[%s8749_s2 + $0x318] sm:$0xff] }
 0x32f   : > { %v5789_v38 = vcombine.high %v2900_v31, %v2904_v36  ;;  %v5788_v43 = vcombine.low %v2900_v31, %v2904_v36  ;;  %v5790_v45 = vcombine.low %v2901_v28, %v2905_v34  ;;  %v4001_v31 = vld [vmem:[%s8749_s2 + $0x148] sm:$0xff] }
 0x331   : > { %3663 = vmatpush1.bf16.msra.mxu0 %v5724_v39  ;;  %3706 = vmatpush1.bf16.msra.mxu1 %v5726_v32  ;;  %v5791_v39 = vcombine.high %v2901_v28, %v2905_v34  ;;  %v2892_v32 = vld [vmem:[%s8749_s2 + $0x2d0] sm:$0xff]  ;;  %v4005_v28 = vld [vmem:[%s8749_s2 + $0x168] sm:$0xff] }
 0x332   : > { %3664 = vmatprep.subr.bf16.mxu0 %v5717_v33  ;;  %3707 = vmatprep.subr.bf16.mxu1 %v5719_v41  ;;  %v2896_v33 = vld [vmem:[%s8749_s2 + $0x2f0] sm:$0xff]  ;;  %v2893_v41 = vld [vmem:[%s8749_s2 + $0x2d8] sm:$0xff] }
 0x333   : > { %v5781_v46 = vcombine.high %v2892_v32, %v2896_v33  ;;  %v5780_v4 = vcombine.low %v2892_v32, %v2896_v33  ;;  %v5782_v53 = vcombine.low %v2893_v41, %v2897_v42  ;;  %v3993_v32 = vld [vmem:[%s8749_s2 + $0x108] sm:$0xff] }
 0x335   : > { %3665 = vmatpush1.bf16.msra.mxu0 %v5716_v3  ;;  %3708 = vmatpush1.bf16.msra.mxu1 %v5718_v48  ;;  %v5783_v3 = vcombine.high %v2893_v41, %v2897_v42  ;;  %v2884_v48 = vld [vmem:[%s8749_s2 + $0x290] sm:$0xff]  ;;  %v3997_v41 = vld [vmem:[%s8749_s2 + $0x128] sm:$0xff] }
 0x336   : > { %3666 = vmatprep.subr.bf16.mxu0 %v5709_v49  ;;  %3709 = vmatprep.subr.bf16.mxu1 %v5711_v50  ;;  %v2888_v49 = vld [vmem:[%s8749_s2 + $0x2b0] sm:$0xff]  ;;  %v2885_v50 = vld [vmem:[%s8749_s2 + $0x298] sm:$0xff] }
 0x337   : > { %v5773_v54 = vcombine.high %v2884_v48, %v2888_v49  ;;  %v5772_v61 = vcombine.low %v2884_v48, %v2888_v49  ;;  %v5774_v62 = vcombine.low %v2885_v50, %v2889_v52  ;;  %v3985_v48 = vld [vmem:[%s8749_s2 + $0xc8] sm:$0xff] }
 0x339   : > { %3667 = vmatpush1.bf16.msra.mxu0 %v5708_v56  ;;  %3710 = vmatpush1.bf16.msra.mxu1 %v5710_v57  ;;  %v5775_v56 = vcombine.high %v2885_v50, %v2889_v52  ;;  %v2876_v57 = vld [vmem:[%s8749_s2 + $0x250] sm:$0xff]  ;;  %v3989_v50 = vld [vmem:[%s8749_s2 + $0xe8] sm:$0xff] }
 0x33a   : > { %3668 = vmatprep.subr.bf16.mxu0 %v5701_v59  ;;  %3711 = vmatprep.subr.bf16.mxu1 %v5703_v60  ;;  %v2880_v59 = vld [vmem:[%s8749_s2 + $0x270] sm:$0xff]  ;;  %v2877_v60 = vld [vmem:[%s8749_s2 + $0x258] sm:$0xff] }
 0x33b   : > { %v5765_v63 = vcombine.high %v2876_v57, %v2880_v59  ;;  %v5764_v19 = vcombine.low %v2876_v57, %v2880_v59  ;;  %v5766_v47 = vcombine.low %v2877_v60, %v2881_v29  ;;  %v3977_v57 = vld [vmem:[%s8749_s2 + $0x88] sm:$0xff] }
 0x33d   : > { %3669 = vmatpush1.bf16.msra.mxu0 %v5700_v1  ;;  %3712 = vmatpush1.bf16.msra.mxu1 %v5702_v5  ;;  %v5767_v1 = vcombine.high %v2877_v60, %v2881_v29  ;;  %v2868_v5 = vld [vmem:[%s8749_s2 + $0x210] sm:$0xff]  ;;  %v3981_v60 = vld [vmem:[%s8749_s2 + $0xa8] sm:$0xff] }
 0x33e   : > { %3670 = vmatprep.subr.bf16.mxu0 %v5693_v40  ;;  %3713 = vmatprep.subr.bf16.mxu1 %v5695_v6  ;;  %v2872_v40 = vld [vmem:[%s8749_s2 + $0x230] sm:$0xff]  ;;  %v2869_v6 = vld [vmem:[%s8749_s2 + $0x218] sm:$0xff] }
 0x33f   : > { %v5757_v9 = vcombine.high %v2868_v5, %v2872_v40 }
 0x341   : > { %3671 = vmatpush1.bf16.msra.mxu0 %v5692_v10  ;;  %3714 = vmatpush1.bf16.msra.mxu1 %v5694_v55  ;;  %v5759_v10 = vcombine.high %v2869_v6, %v2873_v7  ;;  %v5756_v55 = vcombine.low %v2868_v5, %v2872_v40  ;;  %v3969_v5 = vld [vmem:[%s8749_s2 + $0x48] sm:$0xff] }
 0x342   : > { %3672 = vmatprep.subr.bf16.mxu0 %v5813_v13  ;;  %3715 = vmatprep.subr.bf16.mxu1 %v5815_v12  ;;  %v5758_v13 = vcombine.low %v2869_v6, %v2873_v7  ;;  %v4016_v12 = vld [vmem:[%s8749_s2 + $0x1c0] sm:$0xff]  ;;  %v3973_v6 = vld [vmem:[%s8749_s2 + $0x68] sm:$0xff] }
 0x343   : > { %v5900_v16 = vcombine.low %v4016_v12, %v4020_v14 }
 0x345   : > { %3673 = vmatpush2.bf16.msra.mxu0 %v5812_v18  ;;  %3716 = vmatpush2.bf16.msra.mxu1 %v5814_v11  ;;  %v5901_v18 = vcombine.high %v4016_v12, %v4020_v14  ;;  %v5902_v11 = vcombine.low %v4017_v2, %v4021_v15  ;;  %v3965_v12 = vld [vmem:[%s8749_s2 + $0x28] sm:$0xff] }
 0x346   : > { %3674 = vmatprep.subr.bf16.mxu0 %v5805_v22  ;;  %3717 = vmatprep.subr.bf16.mxu1 %v5807_v24  ;;  %v4008_v22 = vld [vmem:[%s8749_s2 + $0x180] sm:$0xff] }
 0x347   : > { %v4012_v24 = vld [vmem:[%s8749_s2 + $0x1a0] sm:$0xff] }
 0x348   : > { %v5892_v26 = vcombine.low %v4008_v22, %v4012_v24  ;;  %v5893_v27 = vcombine.high %v4008_v22, %v4012_v24  ;;  %v4085_v22 = vld [vmem:[%s8749_s2 + $0x3e8] sm:$0xff] }
 0x349   : > { %3675 = vmatpush2.bf16.msra.mxu0 %v5804_v20  ;;  %3718 = vmatpush2.bf16.msra.mxu1 %v5806_v21  ;;  %v5894_v20 = vcombine.low %v4009_v25, %v4013_v17  ;;  %v5895_v21 = vcombine.high %v4009_v25, %v4013_v17 }
 0x34a   : > { %3676 = vmatprep.subr.bf16.mxu0 %v5797_v23  ;;  %3719 = vmatprep.subr.bf16.mxu1 %v5799_v30  ;;  %v4000_v23 = vld [vmem:[%s8749_s2 + $0x140] sm:$0xff] }
 0x34b   : > { %v4004_v30 = vld [vmem:[%s8749_s2 + $0x160] sm:$0xff] }
 0x34c   : > { %v5885_v36 = vcombine.high %v4000_v23, %v4004_v30  ;;  %v5884_v34 = vcombine.low %v4000_v23, %v4004_v30  ;;  %v4077_v23 = vld [vmem:[%s8749_s2 + $0x3a8] sm:$0xff] }
 0x34d   : > { %3677 = vmatpush2.bf16.msra.mxu0 %v5796_v35  ;;  %3720 = vmatpush2.bf16.msra.mxu1 %v5798_v37  ;;  %v5886_v35 = vcombine.low %v4001_v31, %v4005_v28  ;;  %v5887_v37 = vcombine.high %v4001_v31, %v4005_v28  ;;  %v4064_v28 = vld [vmem:[%s8749_s2 + $0x340] sm:$0xff] }
 0x34e   : > { %3678 = vmatprep.subr.bf16.mxu0 %v5789_v38  ;;  %3721 = vmatprep.subr.bf16.mxu1 %v5791_v39  ;;  %v3992_v38 = vld [vmem:[%s8749_s2 + $0x100] sm:$0xff] }
 0x34f   : > { %v3996_v39 = vld [vmem:[%s8749_s2 + $0x120] sm:$0xff] }
 0x350   : > { %v5877_v33 = vcombine.high %v3992_v38, %v3996_v39  ;;  %v5876_v42 = vcombine.low %v3992_v38, %v3996_v39  ;;  %v4069_v38 = vld [vmem:[%s8749_s2 + $0x368] sm:$0xff] }
 0x351   : > { %3679 = vmatpush2.bf16.msra.mxu0 %v5788_v43  ;;  %3722 = vmatpush2.bf16.msra.mxu1 %v5790_v45  ;;  %v5878_v43 = vcombine.low %v3993_v32, %v3997_v41  ;;  %v5879_v45 = vcombine.high %v3993_v32, %v3997_v41  ;;  %v4056_v41 = vld [vmem:[%s8749_s2 + $0x300] sm:$0xff] }
 0x352   : > { %3680 = vmatprep.subr.bf16.mxu0 %v5781_v46  ;;  %3723 = vmatprep.subr.bf16.mxu1 %v5783_v3  ;;  %v3984_v46 = vld [vmem:[%s8749_s2 + $0xc0] sm:$0xff] }
 0x353   : > { %v3988_v3 = vld [vmem:[%s8749_s2 + $0xe0] sm:$0xff] }
 0x354   : > { %v5869_v49 = vcombine.high %v3984_v46, %v3988_v3  ;;  %v5868_v52 = vcombine.low %v3984_v46, %v3988_v3  ;;  %v4061_v46 = vld [vmem:[%s8749_s2 + $0x328] sm:$0xff] }
 0x355   : > { %3681 = vmatpush2.bf16.msra.mxu0 %v5780_v4  ;;  %3724 = vmatpush2.bf16.msra.mxu1 %v5782_v53  ;;  %v5870_v4 = vcombine.low %v3985_v48, %v3989_v50  ;;  %v5871_v53 = vcombine.high %v3985_v48, %v3989_v50  ;;  %v4048_v50 = vld [vmem:[%s8749_s2 + $0x2c0] sm:$0xff] }
 0x356   : > { %3682 = vmatprep.subr.bf16.mxu0 %v5773_v54  ;;  %3725 = vmatprep.subr.bf16.mxu1 %v5775_v56  ;;  %v3976_v54 = vld [vmem:[%s8749_s2 + $0x80] sm:$0xff] }
 0x357   : > { %v3980_v56 = vld [vmem:[%s8749_s2 + $0xa0] sm:$0xff] }
 0x358   : > { %v5861_v59 = vcombine.high %v3976_v54, %v3980_v56  ;;  %v5860_v29 = vcombine.low %v3976_v54, %v3980_v56  ;;  %v4053_v54 = vld [vmem:[%s8749_s2 + $0x2e8] sm:$0xff] }
 0x359   : > { %3683 = vmatpush2.bf16.msra.mxu0 %v5772_v61  ;;  %3726 = vmatpush2.bf16.msra.mxu1 %v5774_v62  ;;  %v5862_v61 = vcombine.low %v3977_v57, %v3981_v60  ;;  %v5863_v62 = vcombine.high %v3977_v57, %v3981_v60  ;;  %v4040_v60 = vld [vmem:[%s8749_s2 + $0x280] sm:$0xff] }
 0x35a   : > { %3684 = vmatprep.subr.bf16.mxu0 %v5765_v63  ;;  %3727 = vmatprep.subr.bf16.mxu1 %v5767_v1  ;;  %v3968_v63 = vld [vmem:[%s8749_s2 + $0x40] sm:$0xff] }
 0x35b   : > { %v3972_v1 = vld [vmem:[%s8749_s2 + $0x60] sm:$0xff] }
 0x35c   : > { %v5853_v40 = vcombine.high %v3968_v63, %v3972_v1  ;;  %v5852_v7 = vcombine.low %v3968_v63, %v3972_v1  ;;  %v4045_v63 = vld [vmem:[%s8749_s2 + $0x2a8] sm:$0xff] }
 0x35d   : > { %3685 = vmatpush2.bf16.msra.mxu0 %v5764_v19  ;;  %3728 = vmatpush2.bf16.msra.mxu1 %v5766_v47  ;;  %v5854_v19 = vcombine.low %v3969_v5, %v3973_v6  ;;  %v5855_v47 = vcombine.high %v3969_v5, %v3973_v6  ;;  %v4032_v6 = vld [vmem:[%s8749_s2 + $0x240] sm:$0xff] }
 0x35e   : > { %3686 = vmatprep.subr.bf16.mxu0 %v5757_v9  ;;  %3729 = vmatprep.subr.bf16.mxu1 %v5759_v10  ;;  %v3960_v9 = vld [vmem:[%s8749_s2] sm:$0xff] }
 0x35f   : > { %v3964_v10 = vld [vmem:[%s8749_s2 + $0x20] sm:$0xff] }
 0x360   : > { %v5844_v14 = vcombine.low %v3960_v9, %v3964_v10 }
 0x361   : > { %3687 = vmatpush2.bf16.msra.mxu0 %v5756_v55  ;;  %3730 = vmatpush2.bf16.msra.mxu1 %v5758_v13  ;;  %v3961_v55 = vld [vmem:[%s8749_s2 + $0x8] sm:$0xff]  ;;  %v5845_v13 = vcombine.high %v3960_v9, %v3964_v10  ;;  %v5816_v10 = vld [vmem:[%s6780_s1 + $0x40] sm:$0xff] }
 0x362   : > { %4728 = vmatprep.subr.bf16.mxu0 %v5901_v18  ;;  %v4084_v18 = vld [vmem:[%s8749_s2 + $0x3e0] sm:$0xff]  ;;  %v4037_v9 = vld [vmem:[%s8749_s2 + $0x268] sm:$0xff] }
 0x364   : > { %3689 = vmatmul.mubr.bf16.vlgmr.msra.gmra.mxu0 %v7971_v58  ;;  %3732 = vmatmul.mubr.bf16.vlgmr.msra.gmra.mxu1 %v7971_v58  ;;  %v5903_v58 = vcombine.high %v4017_v2, %v4021_v15  ;;  %v5846_v2 = vcombine.low %v3961_v55, %v3965_v12  ;;  %v5847_v15 = vcombine.high %v3961_v55, %v3965_v12 }
 0x365   : > { %4729 = vmatpush1.bf16.msra.mxu0 %v5900_v16  ;;  %v4080_v16 = vld [vmem:[%s8749_s2 + $0x3c0] sm:$0xff] }
 0x366   : > { %4771 = vmatprep.subr.bf16.mxu1 %v5903_v58  ;;  %4730 = vmatprep.subr.bf16.mxu0 %v5893_v27  ;;  %v5965_v58 = vcombine.high %v4080_v16, %v4084_v18  ;;  %v5964_v24 = vcombine.low %v4080_v16, %v4084_v18  ;;  %v4076_v27 = vld [vmem:[%s8749_s2 + $0x3a0] sm:$0xff]  ;;  %v3747_v16 = vunpack.c.l.bf16 %v5816_v10 }
 0x367   : > { %4772 = vmatpush1.bf16.msra.mxu1 %v5902_v11  ;;  %v4081_v11 = vld [vmem:[%s8749_s2 + $0x3c8] sm:$0xff] }
 0x368   : > { %4773 = vmatprep.subr.bf16.mxu1 %v5895_v21  ;;  %v5966_v25 = vcombine.low %v4081_v11, %v4085_v22  ;;  %v5967_v17 = vcombine.high %v4081_v11, %v4085_v22  ;;  %v4029_v11 = vld [vmem:[%s8749_s2 + $0x228] sm:$0xff] }
 0x369   : > { %4731 = vmatpush1.bf16.msra.mxu0 %v5892_v26  ;;  %v4072_v26 = vld [vmem:[%s8749_s2 + $0x380] sm:$0xff] }
 0x36a   : > { %4732 = vmatprep.subr.bf16.mxu0 %v5885_v36  ;;  %v5957_v21 = vcombine.high %v4072_v26, %v4076_v27  ;;  %v5956_v30 = vcombine.low %v4072_v26, %v4076_v27  ;;  %v8349_v27 = vld [vmem:[%s8749_s2 + $0x1d0] sm:$0xff] }
 0x36b   : > { %4774 = vmatpush1.bf16.msra.mxu1 %v5894_v20  ;;  %v4073_v20 = vld [vmem:[%s8749_s2 + $0x388] sm:$0xff] }
 0x36c   : > { %4775 = vmatprep.subr.bf16.mxu1 %v5887_v37  ;;  %v5958_v31 = vcombine.low %v4073_v20, %v4077_v23  ;;  %v5959_v36 = vcombine.high %v4073_v20, %v4077_v23  ;;  %v8354_v20 = vld [vmem:[%s8749_s2 + $0x1f0] sm:$0xff] }
 0x36d   : > { %4733 = vmatpush1.bf16.msra.mxu0 %v5884_v34  ;;  %v4068_v34 = vld [vmem:[%s8749_s2 + $0x360] sm:$0xff] }
 0x36e   : > { %4734 = vmatprep.subr.bf16.mxu0 %v5877_v33  ;;  %v5949_v37 = vcombine.high %v4064_v28, %v4068_v34  ;;  %v5948_v39 = vcombine.low %v4064_v28, %v4068_v34  ;;  %v8366_v28 = vld [vmem:[%s8749_s2 + $0x1f8] sm:$0xff] }
 0x36f   : > { %4776 = vmatpush1.bf16.msra.mxu1 %v5886_v35  ;;  %v4065_v35 = vld [vmem:[%s8749_s2 + $0x348] sm:$0xff] }
 0x370   : > { %4777 = vmatprep.subr.bf16.mxu1 %v5879_v45  ;;  %v5950_v32 = vcombine.low %v4065_v35, %v4069_v38  ;;  %v5951_v33 = vcombine.high %v4065_v35, %v4069_v38  ;;  %v5905_v35 = vcombine.high %v8349_v27, %v8354_v20 }
 0x371   : > { %4735 = vmatpush1.bf16.msra.mxu0 %v5876_v42  ;;  %v4060_v42 = vld [vmem:[%s8749_s2 + $0x320] sm:$0xff] }
 0x372   : > { %4736 = vmatprep.subr.bf16.mxu0 %v5869_v49  ;;  %v5941_v45 = vcombine.high %v4056_v41, %v4060_v42  ;;  %v5940_v3 = vcombine.low %v4056_v41, %v4060_v42 }
 0x373   : > { %4778 = vmatpush1.bf16.msra.mxu1 %v5878_v43  ;;  %v4057_v43 = vld [vmem:[%s8749_s2 + $0x308] sm:$0xff] }
 0x374   : > { %4779 = vmatprep.subr.bf16.mxu1 %v5871_v53  ;;  %v5942_v48 = vcombine.low %v4057_v43, %v4061_v46  ;;  %v5943_v49 = vcombine.high %v4057_v43, %v4061_v46 }
 0x375   : > { %4737 = vmatpush1.bf16.msra.mxu0 %v5868_v52  ;;  %v4052_v52 = vld [vmem:[%s8749_s2 + $0x2e0] sm:$0xff] }
 0x376   : > { %4738 = vmatprep.subr.bf16.mxu0 %v5861_v59  ;;  %v5933_v53 = vcombine.high %v4048_v50, %v4052_v52  ;;  %v5932_v56 = vcombine.low %v4048_v50, %v4052_v52 }
 0x377   : > { %4780 = vmatpush1.bf16.msra.mxu1 %v5870_v4  ;;  %v4049_v4 = vld [vmem:[%s8749_s2 + $0x2c8] sm:$0xff] }
 0x378   : > { %4781 = vmatprep.subr.bf16.mxu1 %v5863_v62  ;;  %v5934_v57 = vcombine.low %v4049_v4, %v4053_v54  ;;  %v5935_v59 = vcombine.high %v4049_v4, %v4053_v54 }
 0x379   : > { %4739 = vmatpush1.bf16.msra.mxu0 %v5860_v29  ;;  %v4044_v29 = vld [vmem:[%s8749_s2 + $0x2a0] sm:$0xff] }
 0x37a   : > { %4740 = vmatprep.subr.bf16.mxu0 %v5853_v40  ;;  %v5925_v62 = vcombine.high %v4040_v60, %v4044_v29  ;;  %v5924_v1 = vcombine.low %v4040_v60, %v4044_v29 }
 0x37b   : > { %4782 = vmatpush1.bf16.msra.mxu1 %v5862_v61  ;;  %v4041_v61 = vld [vmem:[%s8749_s2 + $0x288] sm:$0xff] }
 0x37c   : > { %4783 = vmatprep.subr.bf16.mxu1 %v5855_v47  ;;  %v5926_v5 = vcombine.low %v4041_v61, %v4045_v63  ;;  %v5927_v40 = vcombine.high %v4041_v61, %v4045_v63 }
 0x37d   : > { %4741 = vmatpush1.bf16.msra.mxu0 %v5852_v7  ;;  %v4036_v7 = vld [vmem:[%s8749_s2 + $0x260] sm:$0xff] }
 0x37e   : > { %4742 = vmatprep.subr.bf16.mxu0 %v5845_v13  ;;  %v5917_v47 = vcombine.high %v4032_v6, %v4036_v7  ;;  %v5916_v55 = vcombine.low %v4032_v6, %v4036_v7 }
 0x37f   : > { %4784 = vmatpush1.bf16.msra.mxu1 %v5854_v19  ;;  %v4033_v19 = vld [vmem:[%s8749_s2 + $0x248] sm:$0xff] }
 0x380   : > { %4785 = vmatprep.subr.bf16.mxu1 %v5847_v15  ;;  %v5918_v13 = vcombine.low %v4033_v19, %v4037_v9  ;;  %v5919_v12 = vcombine.high %v4033_v19, %v4037_v9  ;;  %v4025_v15 = vld [vmem:[%s8749_s2 + $0x208] sm:$0xff] }
 0x381   : > { %4743 = vmatpush1.bf16.msra.mxu0 %v5844_v14  ;;  %v4024_v14 = vld [vmem:[%s8749_s2 + $0x200] sm:$0xff] }
 0x382   : > { %4744 = vmatprep.subr.bf16.mxu0 %v5965_v58  ;;  %v5818_v58 = vld [vmem:[%s6780_s1 + $0x50] sm:$0xff] }
 0x383   : > { %4786 = vmatpush1.bf16.msra.mxu1 %v5846_v2  ;;  %v4028_v2 = vld [vmem:[%s8749_s2 + $0x220] sm:$0xff] }
 0x384   : > { %4787 = vmatprep.subr.bf16.mxu1 %v5967_v17  ;;  %v5909_v18 = vcombine.high %v4024_v14, %v4028_v2  ;;  %v5908_v22 = vcombine.low %v4024_v14, %v4028_v2  ;;  %v3748_v17 = vunpack.c.h.bf16 %v5816_v10 }
 0x385   : > { %4745 = vmatpush2.bf16.msra.mxu0 %v5964_v24  ;;  %v5910_v24 = vcombine.low %v4025_v15, %v4029_v11 }
 0x386   : > { %4746 = vmatprep.subr.bf16.mxu0 %v5957_v21  ;;  %v8359_v21 = vld [vmem:[%s8749_s2 + $0x1d8] sm:$0xff] }
 0x387   : > { %4788 = vmatpush2.bf16.msra.mxu1 %v5966_v25  ;;  %v5911_v25 = vcombine.high %v4025_v15, %v4029_v11  ;;  %v5907_v38 = vcombine.high %v8359_v21, %v8366_v28  ;;  %v2796_v15 = vld [vmem:[#allocation3] sm:$0xff]  ;;  %v8378_v11 = vpop.permute.xlu1 %3925 }
 0x388   : > { %4789 = vmatprep.subr.bf16.mxu1 %v5959_v36  ;;  %v5904_v36 = vcombine.low %v8349_v27, %v8354_v20  ;;  %vm3928_vm11 = vcmp.eq.s32.totalorder %v8378_v11, 1  ;;  %v3998_v27 = vld [vmem:[%s8749_s2 + $0x130] sm:$0xff]  ;;  %v3995_v20 = vld [vmem:[%s8749_s2 + $0x118] sm:$0xff] }
 0x389   : > { %4747 = vmatpush2.bf16.msra.mxu0 %v5956_v30 }
 0x38a   : > { %4748 = vmatprep.subr.bf16.mxu0 %v5949_v37  ;;  %v5906_v37 = vcombine.low %v8359_v21, %v8366_v28  ;;  %v3999_v21 = vld [vmem:[%s8749_s2 + $0x138] sm:$0xff] }
 0x38b   : > { %4790 = vmatpush2.bf16.msra.mxu1 %v5958_v31  ;;  %v3751_v31 = vunpack.c.l.bf16 %v5818_v58 }
 0x38c   : > { %4791 = vmatprep.subr.bf16.mxu1 %v5951_v33  ;;  %v3752_v33 = vunpack.c.h.bf16 %v5818_v58 }
 0x38d   : > { %4749 = vmatpush2.bf16.msra.mxu0 %v5948_v39 }
 0x38e   : > { %4750 = vmatprep.subr.bf16.mxu0 %v5941_v45 }
 0x38f   : > { %4792 = vmatpush2.bf16.msra.mxu1 %v5950_v32 }
 0x390   : > { %4793 = vmatprep.subr.bf16.mxu1 %v5943_v49 }
 0x391   : > { %4751 = vmatpush2.bf16.msra.mxu0 %v5940_v3  ;;  %v5817_v3 = vld [vmem:[%s6780_s1 + $0x48] sm:$0xff] }
 0x392   : > { %4752 = vmatprep.subr.bf16.mxu0 %v5933_v53  ;;  %v3750_v50 = vunpack.c.h.bf16 %v5817_v3  ;;  %v5819_v53 = vld [vmem:[%s6780_s1 + $0x58] sm:$0xff] }
 0x393   : > { %4794 = vmatpush2.bf16.msra.mxu1 %v5942_v48  ;;  %v3753_v63 = vunpack.c.l.bf16 %v5819_v53 }
 0x394   : > { %4795 = vmatprep.subr.bf16.mxu1 %v5935_v59  ;;  %v3749_v59 = vunpack.c.l.bf16 %v5817_v3 }
 0x395   : > { %4753 = vmatpush2.bf16.msra.mxu0 %v5932_v56  ;;  %v3754_v56 = vunpack.c.h.bf16 %v5819_v53 }
 0x396   : > { %4754 = vmatprep.subr.bf16.mxu0 %v5925_v62 }
 0x397   : > { %4796 = vmatpush2.bf16.msra.mxu1 %v5934_v57 }
 0x398   : > { %4797 = vmatprep.subr.bf16.mxu1 %v5927_v40 }
 0x399   : > { %4755 = vmatpush2.bf16.msra.mxu0 %v5924_v1 }
 0x39a   : > { %4756 = vmatprep.subr.bf16.mxu0 %v5917_v47 }
 0x39b   : > { %4798 = vmatpush2.bf16.msra.mxu1 %v5926_v5 }
 0x39c   : > { %4799 = vmatprep.subr.bf16.mxu1 %v5919_v12 }
 0x39d   : > { %4757 = vmatpush2.bf16.msra.mxu0 %v5916_v55 }
 0x39e   : > { %4758 = vmatprep.subr.bf16.mxu0 %v5909_v18 }
 0x39f   : > { %4800 = vmatpush2.bf16.msra.mxu1 %v5918_v13  ;;  %v8376_v13 = vpop.permute.xlu0 %3922 }
 0x3a0   : > { %4801 = vmatprep.subr.bf16.mxu1 %v5911_v25  ;;  %vm3927_vm10 = vcmp.eq.s32.totalorder %v8376_v13, 1 }
 0x3a1   : > { %4759 = vmatpush2.bf16.msra.mxu0 %v5908_v22 }
 0x3a2   : > { %4814 = vmatprep.subr.bf16.mxu0 %v5905_v35 }
 0x3a3   : > { %4802 = vmatpush2.bf16.msra.mxu1 %v5910_v24 }
 0x3a4   : > { %4857 = vmatprep.subr.bf16.mxu1 %v5907_v38 }
 0x3e4   : > { %v3604_v26 = vpop.f32.mrf.mxu0  ;;  %v3647_v30 = vpop.f32.mrf.mxu1 }
 0x3e5   : > { %v3755_v23 = vadd.f32 %v3747_v16, %v3604_v26  ;;  %v3757_v62 = vadd.f32 %v3749_v59, %v3647_v30  ;;  %v2798_v30 = vld [vmem:[#allocation3 + $0x8] sm:$0xff] }
 0x3e6   : > { %v3606_v34 = vpop.f32.mrf.mxu0  ;;  %v3649_v43 = vpop.f32.mrf.mxu1 }
 0x3e7   : > { %v5820_v39 = vmul.f32 -1.442695, %v3755_v23  ;;  %v3756_v32 = vadd.f32 %v3748_v17, %v3606_v34  ;;  %v3758_v54 = vadd.f32 %v3750_v50, %v3649_v43  ;;  %v3819_v17 = vpop.permute.xlu0 %3818 }
 0x3e8   : > { %v3608_v41 = vpop.f32.mrf.mxu0  ;;  %v3651_v52 = vpop.f32.mrf.mxu1  ;;  %vm3823_vm8 = vcmp.eq.s32.totalorder %v3819_v17, 1 }
 0x3e9   : > { %6294 = vpow2.f32 %v5820_v39  ;;  %v5822_v42 = vmul.f32 -1.442695, %v3756_v32  ;;  %v3759_v45 = vadd.f32 %v3751_v31, %v3608_v41  ;;  %v5824_v60 = vmul.f32 -1.442695, %v3758_v54  ;;  %v3822_v39 = vpop.permute.xlu1 %3821 }
 0x3ea   : > { %v3610_v46 = vpop.f32.mrf.mxu0  ;;  %v3653_v57 = vpop.f32.mrf.mxu1  ;;  %v3761_v19 = vadd.f32 %v3753_v63, %v3651_v52  ;;  %vm3824_vm9 = vcmp.eq.s32.totalorder %v3822_v39, 1 }
 0x3eb   : > { %6296 = vpow2.f32 %v5822_v42  ;;  %v5821_v48 = vmul.f32 -1.442695, %v3759_v45  ;;  %v3760_v49 = vadd.f32 %v3752_v33, %v3610_v46  ;;  %v3762_v29 = vadd.f32 %v3754_v56, %v3653_v57  ;;  %v5832_v56 = vld [vmem:[%s6782_s28 + $0x30] sm:$0xff] }
 0x3ed   : > { %6298 = vpow2.f32 %v5821_v48  ;;  %v5823_v4 = vmul.f32 -1.442695, %v3760_v49  ;;  %v5825_v40 = vmul.f32 -1.442695, %v3762_v29  ;;  %v5830_v48 = vld [vmem:[%s6782_s28 + $0x20] sm:$0xff] }
 0x3ee   : > { %v3851_v53 = vunpack.c.l.bf16 %v5830_v48  ;;  %v3852_v57 = vunpack.c.h.bf16 %v5830_v48 }
 0x3ef   : > { %6300 = vpow2.f32 %v5823_v4 }
 0x3f0   : > { %6302 = vpow2.f32 %v5824_v60 }
 0x3f6   : > { %v6295_v61 = vpop.eup %6294 }
 0x3f7   : > { %v3769_v1 = vadd.f32 1.0, %v6295_v61 }
 0x3f8   : > { %v6297_v5 = vpop.eup %6296 }
 0x3f9   : > { %6304 = vrcp.f32 %v3769_v1  ;;  %v3781_v6 = vadd.f32 1.0, %v6297_v5  ;;  %v3856_v1 = vunpack.c.h.bf16 %v5832_v56 }
 0x3fa   : > { %v6299_v7 = vpop.eup %6298  ;;  %6306 = vtanh.f32 %v3757_v62 }
 0x3fb   : > { %6308 = vrcp.f32 %v3781_v6  ;;  %v3770_v47 = vadd.f32 1.0, %v6299_v7 }
 0x3fc   : > { %v6301_v9 = vpop.eup %6300  ;;  %6310 = vpow2.f32 %v5825_v40 }
 0x3fd   : > { %6312 = vrcp.f32 %v3770_v47  ;;  %v3782_v10 = vadd.f32 1.0, %v6301_v9  ;;  %v6303_v55 = vpop.eup %6302  ;;  %v5831_v9 = vld [vmem:[%s6782_s28 + $0x28] sm:$0xff] }
 0x3fe   : > { %6314 = vtanh.f32 %v3761_v19  ;;  %v3795_v16 = vadd.f32 1.0, %v6303_v55 }
 0x3ff   : > { %6316 = vrcp.f32 %v3782_v10 }
 0x400   : > { %6318 = vrcp.f32 %v3795_v16 }
 0x406   : > { %v6305_v12 = vpop.eup %6304 }
 0x407   : > { %v6307_v14 = vpop.eup %6306 }
 0x408   : > { %v6309_v2 = vpop.eup %6308  ;;  %v3803_v58 = vmul.f32 %v6307_v14, %v6305_v12  ;;  %v3854_v12 = vunpack.c.h.bf16 %v5831_v9  ;;  %v5833_v14 = vld [vmem:[%s6782_s28 + $0x38] sm:$0xff] }
 0x409   : > { %v6311_v18 = vpop.eup %6310  ;;  %v3801_v22 = vmul.f32 %v6309_v2, %v2796_v15  ;;  %v3853_v2 = vunpack.c.l.bf16 %v5831_v9  ;;  %v3857_v17 = vunpack.c.l.bf16 %v5833_v14 }
 0x40a   : > { %v6313_v24 = vpop.eup %6312  ;;  %v3796_v31 = vadd.f32 1.0, %v6311_v18 }
 0x40b   : > { %v6315_v25 = vpop.eup %6314  ;;  %v3805_v26 = vadd.f32 %v3803_v58, %v3801_v22 }
 0x40c   : > { %v6317_v23 = vpop.eup %6316  ;;  %v3804_v35 = vmul.f32 %v6315_v25, %v6313_v24 }
 0x40d   : > { %6320 = vtanh.f32 %v3805_v26  ;;  %v3829_v34 = vsel %vm3823_vm8, %v3805_v26, %v2796_v15  ;;  %v3802_v38 = vmul.f32 %v6317_v23, %v2798_v30  ;;  %v6319_v41 = vpop.eup %6318  ;;  %v3858_v15 = vunpack.c.h.bf16 %v5833_v14  ;;  %v4002_v14 = vld [vmem:[%s8749_s2 + $0x150] sm:$0xff] }
 0x40e   : > { %3831 = vst [vmem:[#allocation3] sm:$0xff] %v3829_v34  ;;  %6322 = vrcp.f32 %v3796_v31 }
 0x40f   : > { %v3806_v32 = vadd.f32 %v3804_v35, %v3802_v38 }
 0x411   : > { %6324 = vtanh.f32 %v3806_v32  ;;  %v3830_v33 = vsel %vm3824_vm9, %v3806_v32, %v2798_v30 }
 0x412   : > { %3832 = vst [vmem:[#allocation3 + $0x8] sm:$0xff] %v3830_v33 }
 0x41a   : > { %v6321_v42 = vpop.eup %6320 }
 0x41b   : > { %v3809_v43 = vmul.f32 %v6321_v42, %v6319_v41  ;;  %v6323_v45 = vpop.eup %6322 }
 0x41d   : > { %v8383_v46 = vsel %vm3823_vm8, %v3809_v43, %v7926_v0  ;;  %v3833_v50 = vsel %vm3823_vm8, %v3809_v43, 0.0  ;;  %v3855_v0 = vunpack.c.l.bf16 %v5832_v56 }
 0x41e   : > { %v6325_v3 = vpop.eup %6324 }
 0x41f   : > { %v3810_v49 = vmul.f32 %v6325_v3, %v6323_v45  ;;  %v2797_v45 = vld [vmem:[#allocation3 + $0x18] sm:$0xff] }
 0x421   : > { %v8388_v52 = vsel %vm3824_vm9, %v3810_v49, %v7931_v51  ;;  %v3834_v4 = vsel %vm3824_vm9, %v3810_v49, 0.0 }
 0x422   : > { %v6053_v54 = vpack.c.bf16 %v3834_v4, %v3833_v50 }
 0x424   : > { %6073 = vst [vmem:[%s6784_s16 + $0x10] sm:$0xff] %v6053_v54   ;;  %v3690_v59 = vpop.f32.mrf.mxu0  ;;  %v3733_v29 = vpop.f32.mrf.mxu1 }
 0x425   : > { %v3859_v60 = vadd.f32 %v3851_v53, %v3690_v59  ;;  %v3861_v58 = vadd.f32 %v3853_v2, %v3733_v29 }
 0x426   : > { %v3692_v61 = vpop.f32.mrf.mxu0  ;;  %v3735_v40 = vpop.f32.mrf.mxu1 }
 0x427   : > { %v5834_v62 = vmul.f32 -1.442695, %v3859_v60  ;;  %v3860_v63 = vadd.f32 %v3852_v57, %v3692_v61  ;;  %v3862_v18 = vadd.f32 %v3854_v12, %v3735_v40  ;;  %v2799_v57 = vld [vmem:[#allocation3 + $0x10] sm:$0xff] }
 0x428   : > { %v3694_v5 = vpop.f32.mrf.mxu0  ;;  %v3737_v10 = vpop.f32.mrf.mxu1 }
 0x429   : > { %6326 = vpow2.f32 %v5834_v62  ;;  %v5836_v51 = vmul.f32 -1.442695, %v3860_v63  ;;  %v3863_v6 = vadd.f32 %v3855_v0, %v3694_v5  ;;  %v5838_v25 = vmul.f32 -1.442695, %v3862_v18  ;;  %v4003_v18 = vld [vmem:[%s8749_s2 + $0x158] sm:$0xff] }
 0x42a   : > { %v3696_v7 = vpop.f32.mrf.mxu0  ;;  %v3739_v16 = vpop.f32.mrf.mxu1  ;;  %v3865_v35 = vadd.f32 %v3857_v17, %v3737_v10  ;;  %v4014_v10 = vld [vmem:[%s8749_s2 + $0x1b0] sm:$0xff] }
 0x42b   : > { %6328 = vpow2.f32 %v5836_v51  ;;  %v5835_v19 = vmul.f32 -1.442695, %v3863_v6  ;;  %v3864_v47 = vadd.f32 %v3856_v1, %v3696_v7  ;;  %v3866_v22 = vadd.f32 %v3858_v15, %v3739_v16  ;;  %v4010_v7 = vld [vmem:[%s8749_s2 + $0x190] sm:$0xff] }
 0x42c   : > { %v5897_v2 = vcombine.high %v4010_v7, %v4014_v10  ;;  %v4006_v16 = vld [vmem:[%s8749_s2 + $0x170] sm:$0xff] }
 0x42d   : > { %6330 = vpow2.f32 %v5835_v19  ;;  %v5837_v55 = vmul.f32 -1.442695, %v3864_v47  ;;  %v5839_v30 = vmul.f32 -1.442695, %v3866_v22  ;;  %v5896_v22 = vcombine.low %v4010_v7, %v4014_v10  ;;  %v4086_v7 = vld [vmem:[%s8749_s2 + $0x3f0] sm:$0xff] }
 0x42f   : > { %6332 = vpow2.f32 %v5837_v55  ;;  %v4011_v55 = vld [vmem:[%s8749_s2 + $0x198] sm:$0xff] }
 0x430   : > { %6334 = vtanh.f32 %v3861_v58  ;;  %v4007_v58 = vld [vmem:[%s8749_s2 + $0x178] sm:$0xff] }
 0x431   : > { %v5891_v17 = vcombine.high %v4003_v18, %v4007_v58  ;;  %v5890_v28 = vcombine.low %v4003_v18, %v4007_v58 }
 0x436   : > { %v6327_v24 = vpop.eup %6326 }
 0x437   : > { %v3873_v26 = vadd.f32 1.0, %v6327_v24 }
 0x438   : > { %v6329_v23 = vpop.eup %6328 }
 0x439   : > { %6336 = vrcp.f32 %v3873_v26  ;;  %v3885_v31 = vadd.f32 1.0, %v6329_v23  ;;  %v3994_v26 = vld [vmem:[%s8749_s2 + $0x110] sm:$0xff]  ;;  %v5883_v23 = vcombine.high %v3995_v20, %v3999_v21 }
 0x43a   : > { %v6331_v34 = vpop.eup %6330  ;;  %6338 = vpow2.f32 %v5838_v25  ;;  %v5889_v25 = vcombine.high %v4002_v14, %v4006_v16 }
 0x43b   : > { %6340 = vrcp.f32 %v3885_v31  ;;  %v3874_v38 = vadd.f32 1.0, %v6331_v34  ;;  %v3990_v31 = vld [vmem:[%s8749_s2 + $0xf0] sm:$0xff]  ;;  %v3987_v34 = vld [vmem:[%s8749_s2 + $0xd8] sm:$0xff] }
 0x43c   : > { %v6333_v39 = vpop.eup %6332  ;;  %6342 = vpow2.f32 %v5839_v30  ;;  %v3986_v30 = vld [vmem:[%s8749_s2 + $0xd0] sm:$0xff] }
 0x43d   : > { %6344 = vrcp.f32 %v3874_v38  ;;  %v3886_v32 = vadd.f32 1.0, %v6333_v39  ;;  %v6335_v33 = vpop.eup %6334  ;;  %v5880_v38 = vcombine.low %v3994_v26, %v3998_v27  ;;  %v5882_v39 = vcombine.low %v3995_v20, %v3999_v21 }
 0x43e   : > { %6346 = vtanh.f32 %v3865_v35  ;;  %v3991_v35 = vld [vmem:[%s8749_s2 + $0xf8] sm:$0xff] }
 0x43f   : > { %6348 = vrcp.f32 %v3886_v32  ;;  %v5873_v32 = vcombine.high %v3986_v30, %v3990_v31 }
 0x446   : > { %v6337_v41 = vpop.eup %6336 }
 0x447   : > { %v6339_v42 = vpop.eup %6338  ;;  %v3907_v48 = vmul.f32 %v6337_v41, %v6335_v33  ;;  %v5875_v33 = vcombine.high %v3987_v34, %v3991_v35  ;;  %v3978_v41 = vld [vmem:[%s8749_s2 + $0x90] sm:$0xff] }
 0x448   : > { %v6341_v43 = vpop.eup %6340  ;;  %v3899_v54 = vadd.f32 1.0, %v6339_v42  ;;  %v3982_v42 = vld [vmem:[%s8749_s2 + $0xb0] sm:$0xff] }
 0x449   : > { %v6343_v3 = vpop.eup %6342  ;;  %v3905_v49 = vmul.f32 %v6341_v43, %v2797_v45  ;;  %v3979_v43 = vld [vmem:[%s8749_s2 + $0x98] sm:$0xff] }
 0x44a   : > { %v6345_v50 = vpop.eup %6344  ;;  %v3900_v59 = vadd.f32 1.0, %v6343_v3  ;;  %v5872_v3 = vcombine.low %v3986_v30, %v3990_v31  ;;  %v4063_v30 = vld [vmem:[%s8749_s2 + $0x338] sm:$0xff] }
 0x44b   : > { %v6347_v4 = vpop.eup %6346  ;;  %v3909_v53 = vadd.f32 %v3907_v48, %v3905_v49  ;;  %v5874_v48 = vcombine.low %v3987_v34, %v3991_v35  ;;  %v5865_v49 = vcombine.high %v3978_v41, %v3982_v42 }
 0x44c   : > { %v6349_v56 = vpop.eup %6348  ;;  %v3908_v29 = vmul.f32 %v6347_v4, %v6345_v50  ;;  %v3970_v4 = vld [vmem:[%s8749_s2 + $0x50] sm:$0xff] }
 0x44d   : > { %6350 = vtanh.f32 %v3909_v53  ;;  %v3933_v60 = vsel %vm3927_vm10, %v3909_v53, %v2797_v45  ;;  %v3906_v0 = vmul.f32 %v6349_v56, %v2799_v57  ;;  %v3983_v45 = vld [vmem:[%s8749_s2 + $0xb8] sm:$0xff]  ;;  %v3974_v53 = vld [vmem:[%s8749_s2 + $0x70] sm:$0xff] }
 0x44e   : > { %3935 = vst [vmem:[#allocation3 + $0x18] sm:$0xff] %v3933_v60  ;;  %6352 = vrcp.f32 %v3899_v54  ;;  %v5867_v50 = vcombine.high %v3979_v43, %v3983_v45  ;;  %v3971_v54 = vld [vmem:[%s8749_s2 + $0x58] sm:$0xff]  ;;  %v5857_v60 = vcombine.high %v3970_v4, %v3974_v53 }
 0x44f   : > { %v3910_v61 = vadd.f32 %v3908_v29, %v3906_v0  ;;  %6354 = vrcp.f32 %v3900_v59  ;;  %v3975_v56 = vld [vmem:[%s8749_s2 + $0x78] sm:$0xff]  ;;  %v5866_v59 = vcombine.low %v3979_v43, %v3983_v45  ;;  %v3962_v0 = vld [vmem:[%s8749_s2 + $0x10] sm:$0xff] }
 0x450   : > { %v5859_v29 = vcombine.high %v3971_v54, %v3975_v56 }
 0x451   : > { %6356 = vtanh.f32 %v3910_v61  ;;  %v3934_v62 = vsel %vm3928_vm11, %v3910_v61, %v2799_v57  ;;  %v5864_v57 = vcombine.low %v3978_v41, %v3982_v42  ;;  %v3966_v61 = vld [vmem:[%s8749_s2 + $0x30] sm:$0xff]  ;;  %v4055_v41 = vld [vmem:[%s8749_s2 + $0x2f8] sm:$0xff] }
 0x452   : > { %3936 = vst [vmem:[#allocation3 + $0x10] sm:$0xff] %v3934_v62  ;;  %v3963_v62 = vld [vmem:[%s8749_s2 + $0x18] sm:$0xff]  ;;  %v5848_v10 = vcombine.low %v3962_v0, %v3966_v61 }
 0x45a   : > { %v6351_v63 = vpop.eup %6350 }
 0x45b   : > { %v6353_v1 = vpop.eup %6352 }
 0x45c   : > { %v6355_v5 = vpop.eup %6354  ;;  %v3913_v51 = vmul.f32 %v6353_v1, %v6351_v63  ;;  %v3967_v63 = vld [vmem:[%s8749_s2 + $0x38] sm:$0xff]  ;;  %v5856_v1 = vcombine.low %v3970_v4, %v3974_v53 }
 0x45d   : > { %v4047_v4 = vld [vmem:[%s8749_s2 + $0x2b8] sm:$0xff] }
 0x45e   : > { %v6357_v40 = vpop.eup %6356  ;;  %v8404_v19 = vsel %vm3927_vm10, %v3913_v51, %v7948_v44  ;;  %v3937_v11 = vsel %vm3927_vm10, %v3913_v51, 0.0  ;;  %v4015_v44 = vld [vmem:[%s8749_s2 + $0x1b8] sm:$0xff]  ;;  %v5849_v51 = vcombine.high %v3962_v0, %v3966_v61 }
 0x45f   : > { %v3914_v6 = vmul.f32 %v6357_v40, %v6355_v5  ;;  %v5899_v15 = vcombine.high %v4011_v55, %v4015_v44  ;;  %v5898_v24 = vcombine.low %v4011_v55, %v4015_v44  ;;  %v5858_v5 = vcombine.low %v3971_v54, %v3975_v56  ;;  %v4039_v0 = vld [vmem:[%s8749_s2 + $0x278] sm:$0xff] }
 0x460   : > { %v5851_v40 = vcombine.high %v3963_v62, %v3967_v63  ;;  %v5850_v55 = vcombine.low %v3963_v62, %v3967_v63 }
 0x461   : > { %v8409_v47 = vsel %vm3928_vm11, %v3914_v6, %v7956_v8  ;;  %v3938_v9 = vsel %vm3928_vm11, %v3914_v6, 0.0  ;;  %v8424_v8 = vpack.c.bf16 %v8388_v52, %v8383_v46  ;;  %v4082_v6 = vld [vmem:[%s8749_s2 + $0x3d0] sm:$0xff] }
 0x462   : > { %v6058_v12 = vpack.c.bf16 %v3938_v9, %v3937_v11  ;;  %v3959_v13 = vpack.c.bf16 %v8409_v47, %v8404_v19  ;;  %v4083_v11 = vld [vmem:[%s8749_s2 + $0x3d8] sm:$0xff]  ;;  %v5969_v44 = vcombine.high %v4082_v6, %v4086_v7 }
 0x463   : > { %v4087_v9 = vld [vmem:[%s8749_s2 + $0x3f8] sm:$0xff] }
 0x464   : > { %6074 = vst [vmem:[%s6786_s11 + $0x8] sm:$0xff] %v6058_v12   ;;  %4760 = vmatprep.mubr.bf16.mxu0 %v3959_v13  ;;  %4803 = vmatprep.mubr.bf16.mxu1 %v3959_v13  ;;  %v5971_v12 = vcombine.high %v4083_v11, %v4087_v9  ;;  %v5970_v18 = vcombine.low %v4083_v11, %v4087_v9 }
 0x465   : > { %4761 = vmatmul.mubr.bf16.vlgmr.msra.gmra.mxu0 %v8424_v8  ;;  %4804 = vmatmul.mubr.bf16.vlgmr.msra.gmra.mxu1 %v8424_v8 }
 0x466   : > { %4815 = vmatpush1.bf16.msra.mxu0 %v5904_v36  ;;  %4858 = vmatpush1.bf16.msra.mxu1 %v5906_v37  ;;  %v5888_v36 = vcombine.low %v4002_v14, %v4006_v16  ;;  %v5881_v37 = vcombine.high %v3994_v26, %v3998_v27  ;;  %v4078_v14 = vld [vmem:[%s8749_s2 + $0x3b0] sm:$0xff]  ;;  %v5968_v16 = vcombine.low %v4082_v6, %v4086_v7  ;;  %v4071_v26 = vld [vmem:[%s8749_s2 + $0x378] sm:$0xff] }
 0x467   : > { %4846 = vmatprep.mubr.bf16.mxu0 %v3959_v13  ;;  %4889 = vmatprep.mubr.bf16.mxu1 %v3959_v13  ;;  %v4074_v13 = vld [vmem:[%s8749_s2 + $0x390] sm:$0xff]  ;;  %v4031_v6 = vld [vmem:[%s8749_s2 + $0x238] sm:$0xff] }
 0x468   : > { %4816 = vmatprep.subr.bf16.mxu0 %v5897_v2  ;;  %4859 = vmatprep.subr.bf16.mxu1 %v5899_v15  ;;  %v4075_v2 = vld [vmem:[%s8749_s2 + $0x398] sm:$0xff]  ;;  %v5961_v58 = vcombine.high %v4074_v13, %v4078_v14  ;;  %v5960_v27 = vcombine.low %v4074_v13, %v4078_v14  ;;  %v5974_v14 = vld [vmem:[%s6780_s1 + $0x70] sm:$0xff] }
 0x469   : > { %v4079_v15 = vld [vmem:[%s8749_s2 + $0x3b8] sm:$0xff] }
 0x46a   : > { %4817 = vmatpush1.bf16.msra.mxu0 %v5896_v22  ;;  %4860 = vmatpush1.bf16.msra.mxu1 %v5898_v24  ;;  %v5963_v22 = vcombine.high %v4075_v2, %v4079_v15  ;;  %v4066_v24 = vld [vmem:[%s8749_s2 + $0x350] sm:$0xff]  ;;  %v5962_v20 = vcombine.low %v4075_v2, %v4079_v15 }
 0x46b   : > { %4818 = vmatprep.subr.bf16.mxu0 %v5889_v25  ;;  %4861 = vmatprep.subr.bf16.mxu1 %v5891_v17  ;;  %v4070_v25 = vld [vmem:[%s8749_s2 + $0x370] sm:$0xff]  ;;  %v4067_v17 = vld [vmem:[%s8749_s2 + $0x358] sm:$0xff] }
 0x46c   : > { %v5953_v21 = vcombine.high %v4066_v24, %v4070_v25  ;;  %v5952_v31 = vcombine.low %v4066_v24, %v4070_v25  ;;  %v5954_v34 = vcombine.low %v4067_v17, %v4071_v26 }
 0x46e   : > { %4819 = vmatpush1.bf16.msra.mxu0 %v5888_v36  ;;  %4862 = vmatpush1.bf16.msra.mxu1 %v5890_v28  ;;  %v5955_v36 = vcombine.high %v4067_v17, %v4071_v26  ;;  %v4058_v28 = vld [vmem:[%s8749_s2 + $0x310] sm:$0xff]  ;;  %v4910_v17 = vunpack.c.h.bf16 %v5974_v14 }
 0x46f   : > { %4820 = vmatprep.subr.bf16.mxu0 %v5881_v37  ;;  %4863 = vmatprep.subr.bf16.mxu1 %v5883_v23  ;;  %v4062_v37 = vld [vmem:[%s8749_s2 + $0x330] sm:$0xff]  ;;  %v4059_v23 = vld [vmem:[%s8749_s2 + $0x318] sm:$0xff] }
 0x470   : > { %v5945_v35 = vcombine.high %v4058_v28, %v4062_v37  ;;  %v5944_v42 = vcombine.low %v4058_v28, %v4062_v37  ;;  %v5946_v43 = vcombine.low %v4059_v23, %v4063_v30 }
 0x472   : > { %4821 = vmatpush1.bf16.msra.mxu0 %v5880_v38  ;;  %4864 = vmatpush1.bf16.msra.mxu1 %v5882_v39  ;;  %v5947_v38 = vcombine.high %v4059_v23, %v4063_v30  ;;  %v4050_v39 = vld [vmem:[%s8749_s2 + $0x2d0] sm:$0xff] }
 0x473   : > { %4822 = vmatprep.subr.bf16.mxu0 %v5873_v32  ;;  %4865 = vmatprep.subr.bf16.mxu1 %v5875_v33  ;;  %v4054_v32 = vld [vmem:[%s8749_s2 + $0x2f0] sm:$0xff]  ;;  %v4051_v33 = vld [vmem:[%s8749_s2 + $0x2d8] sm:$0xff] }
 0x474   : > { %v5937_v45 = vcombine.high %v4050_v39, %v4054_v32  ;;  %v5936_v53 = vcombine.low %v4050_v39, %v4054_v32  ;;  %v5938_v54 = vcombine.low %v4051_v33, %v4055_v41 }
 0x476   : > { %4823 = vmatpush1.bf16.msra.mxu0 %v5872_v3  ;;  %4866 = vmatpush1.bf16.msra.mxu1 %v5874_v48  ;;  %v5939_v3 = vcombine.high %v4051_v33, %v4055_v41  ;;  %v4042_v48 = vld [vmem:[%s8749_s2 + $0x290] sm:$0xff] }
 0x477   : > { %4824 = vmatprep.subr.bf16.mxu0 %v5865_v49  ;;  %4867 = vmatprep.subr.bf16.mxu1 %v5867_v50  ;;  %v4046_v49 = vld [vmem:[%s8749_s2 + $0x2b0] sm:$0xff]  ;;  %v4043_v50 = vld [vmem:[%s8749_s2 + $0x298] sm:$0xff] }
 0x478   : > { %v5929_v56 = vcombine.high %v4042_v48, %v4046_v49  ;;  %v5928_v61 = vcombine.low %v4042_v48, %v4046_v49  ;;  %v5930_v62 = vcombine.low %v4043_v50, %v4047_v4 }
 0x47a   : > { %4825 = vmatpush1.bf16.msra.mxu0 %v5864_v57  ;;  %4868 = vmatpush1.bf16.msra.mxu1 %v5866_v59  ;;  %v5931_v57 = vcombine.high %v4043_v50, %v4047_v4  ;;  %v4034_v59 = vld [vmem:[%s8749_s2 + $0x250] sm:$0xff] }
 0x47b   : > { %4826 = vmatprep.subr.bf16.mxu0 %v5857_v60  ;;  %4869 = vmatprep.subr.bf16.mxu1 %v5859_v29  ;;  %v4038_v60 = vld [vmem:[%s8749_s2 + $0x270] sm:$0xff]  ;;  %v4035_v29 = vld [vmem:[%s8749_s2 + $0x258] sm:$0xff] }
 0x47c   : > { %v5921_v63 = vcombine.high %v4034_v59, %v4038_v60  ;;  %v5920_v7 = vcombine.low %v4034_v59, %v4038_v60  ;;  %v5922_v11 = vcombine.low %v4035_v29, %v4039_v0 }
 0x47e   : > { %4827 = vmatpush1.bf16.msra.mxu0 %v5856_v1  ;;  %4870 = vmatpush1.bf16.msra.mxu1 %v5858_v5  ;;  %v5923_v1 = vcombine.high %v4035_v29, %v4039_v0  ;;  %v4026_v5 = vld [vmem:[%s8749_s2 + $0x210] sm:$0xff] }
 0x47f   : > { %4828 = vmatprep.subr.bf16.mxu0 %v5849_v51  ;;  %4871 = vmatprep.subr.bf16.mxu1 %v5851_v40  ;;  %v4030_v51 = vld [vmem:[%s8749_s2 + $0x230] sm:$0xff]  ;;  %v4027_v40 = vld [vmem:[%s8749_s2 + $0x218] sm:$0xff] }
 0x480   : > { %v5913_v9 = vcombine.high %v4026_v5, %v4030_v51 }
 0x482   : > { %4829 = vmatpush1.bf16.msra.mxu0 %v5848_v10  ;;  %4872 = vmatpush1.bf16.msra.mxu1 %v5850_v55  ;;  %v5915_v10 = vcombine.high %v4027_v40, %v4031_v6  ;;  %v5912_v55 = vcombine.low %v4026_v5, %v4030_v51 }
 0x483   : > { %4830 = vmatprep.subr.bf16.mxu0 %v5969_v44  ;;  %4873 = vmatprep.subr.bf16.mxu1 %v5971_v12  ;;  %v5914_v44 = vcombine.low %v4027_v40, %v4031_v6  ;;  %v5972_v12 = vld [vmem:[%s6780_s1 + $0x60] sm:$0xff]  ;;  %v4977_v6 = vpop.permute.xlu0 %4976 }
 0x484   : > { %v4905_v13 = vunpack.c.l.bf16 %v5972_v12  ;;  %v4906_v2 = vunpack.c.h.bf16 %v5972_v12  ;;  %vm4981_vm12 = vcmp.eq.s32.totalorder %v4977_v6, 1 }
 0x486   : > { %4831 = vmatpush2.bf16.msra.mxu0 %v5968_v16  ;;  %4874 = vmatpush2.bf16.msra.mxu1 %v5970_v18 }
 0x487   : > { %4832 = vmatprep.subr.bf16.mxu0 %v5961_v58  ;;  %4875 = vmatprep.subr.bf16.mxu1 %v5963_v22  ;;  %v4909_v58 = vunpack.c.l.bf16 %v5974_v14 }
 0x48a   : > { %4833 = vmatpush2.bf16.msra.mxu0 %v5960_v27  ;;  %4876 = vmatpush2.bf16.msra.mxu1 %v5962_v20 }
 0x48b   : > { %4834 = vmatprep.subr.bf16.mxu0 %v5953_v21  ;;  %4877 = vmatprep.subr.bf16.mxu1 %v5955_v36  ;;  %v5973_v36 = vld [vmem:[%s6780_s1 + $0x68] sm:$0xff] }
 0x48c   : > { %v4908_v23 = vunpack.c.h.bf16 %v5973_v36  ;;  %v4907_v32 = vunpack.c.l.bf16 %v5973_v36  ;;  %v5006_v36 = vld [vmem:[%s6782_s28 + $0x10] sm:$0xff] }
 0x48e   : > { %4835 = vmatpush2.bf16.msra.mxu0 %v5952_v31  ;;  %4878 = vmatpush2.bf16.msra.mxu1 %v5954_v34  ;;  %v5975_v34 = vld [vmem:[%s6780_s1 + $0x78] sm:$0xff] }
 0x48f   : > { %4836 = vmatprep.subr.bf16.mxu0 %v5945_v35  ;;  %4879 = vmatprep.subr.bf16.mxu1 %v5947_v38  ;;  %v4912_v38 = vunpack.c.h.bf16 %v5975_v34 }
 0x492   : > { %4837 = vmatpush2.bf16.msra.mxu0 %v5944_v42  ;;  %4880 = vmatpush2.bf16.msra.mxu1 %v5946_v43 }
 0x493   : > { %4838 = vmatprep.subr.bf16.mxu0 %v5937_v45  ;;  %4881 = vmatprep.subr.bf16.mxu1 %v5939_v3  ;;  %v4911_v45 = vunpack.c.l.bf16 %v5975_v34 }
 0x496   : > { %4839 = vmatpush2.bf16.msra.mxu0 %v5936_v53  ;;  %4882 = vmatpush2.bf16.msra.mxu1 %v5938_v54 }
 0x497   : > { %4840 = vmatprep.subr.bf16.mxu0 %v5929_v56  ;;  %4883 = vmatprep.subr.bf16.mxu1 %v5931_v57 }
 0x49a   : > { %4841 = vmatpush2.bf16.msra.mxu0 %v5928_v61  ;;  %4884 = vmatpush2.bf16.msra.mxu1 %v5930_v62  ;;  %v3954_v61 = vld [vmem:[#allocation3] sm:$0xff] }
 0x49b   : > { %4842 = vmatprep.subr.bf16.mxu0 %v5921_v63  ;;  %4885 = vmatprep.subr.bf16.mxu1 %v5923_v1 }
 0x49e   : > { %4843 = vmatpush2.bf16.msra.mxu0 %v5920_v7  ;;  %4886 = vmatpush2.bf16.msra.mxu1 %v5922_v11 }
 0x49f   : > { %4844 = vmatprep.subr.bf16.mxu0 %v5913_v9  ;;  %4887 = vmatprep.subr.bf16.mxu1 %v5915_v10  ;;  %v3956_v9 = vld [vmem:[#allocation3 + $0x8] sm:$0xff] }
 0x4a2   : > { %4845 = vmatpush2.bf16.msra.mxu0 %v5912_v55  ;;  %4888 = vmatpush2.bf16.msra.mxu1 %v5914_v44 }
 0x4a5   : > { %4847 = vmatmul.mubr.bf16.vlgmr.msra.gmra.mxu0 %v8424_v8  ;;  %4890 = vmatmul.mubr.bf16.vlgmr.msra.gmra.mxu1 %v8424_v8 }
 0x525   : > { %v4762_v15 = vpop.f32.mrf.mxu0  ;;  %v4805_v18 = vpop.f32.mrf.mxu1 }
 0x526   : > { %v4913_v16 = vadd.f32 %v4905_v13, %v4762_v15  ;;  %v4915_v43 = vadd.f32 %v4907_v32, %v4805_v18  ;;  %v4980_v13 = vpop.permute.xlu1 %4979 }
 0x527   : > { %v4764_v22 = vpop.f32.mrf.mxu0  ;;  %v4807_v20 = vpop.f32.mrf.mxu1  ;;  %vm4982_vm13 = vcmp.eq.s32.totalorder %v4980_v13, 1 }
 0x528   : > { %v5976_v24 = vmul.f32 -1.442695, %v4913_v16  ;;  %v4914_v25 = vadd.f32 %v4906_v2, %v4764_v22  ;;  %v4916_v35 = vadd.f32 %v4908_v23, %v4807_v20 }
 0x529   : > { %v4766_v26 = vpop.f32.mrf.mxu0  ;;  %v4809_v30 = vpop.f32.mrf.mxu1 }
 0x52a   : > { %6358 = vpow2.f32 %v5976_v24  ;;  %v5978_v27 = vmul.f32 -1.442695, %v4914_v25  ;;  %v4917_v21 = vadd.f32 %v4909_v58, %v4766_v26  ;;  %v5980_v33 = vmul.f32 -1.442695, %v4916_v35  ;;  %v5004_v25 = vld [vmem:[%s6782_s28] sm:$0xff] }
 0x52b   : > { %v4768_v8 = vpop.f32.mrf.mxu0  ;;  %v4811_v39 = vpop.f32.mrf.mxu1  ;;  %v4919_v53 = vadd.f32 %v4911_v45, %v4809_v30  ;;  %v5012_v30 = vunpack.c.l.bf16 %v5006_v36 }
 0x52c   : > { %6360 = vpow2.f32 %v5978_v27  ;;  %v5977_v28 = vmul.f32 -1.442695, %v4917_v21  ;;  %v4918_v37 = vadd.f32 %v4910_v17, %v4768_v8  ;;  %v4920_v41 = vadd.f32 %v4912_v38, %v4811_v39 }
 0x52d   : > { %v5008_v21 = vunpack.c.l.bf16 %v5004_v25  ;;  %v5013_v38 = vunpack.c.h.bf16 %v5006_v36 }
 0x52e   : > { %6362 = vpow2.f32 %v5977_v28  ;;  %v5979_v31 = vmul.f32 -1.442695, %v4918_v37  ;;  %v5981_v49 = vmul.f32 -1.442695, %v4920_v41  ;;  %v5009_v28 = vunpack.c.h.bf16 %v5004_v25 }
 0x530   : > { %6364 = vpow2.f32 %v5979_v31 }
 0x531   : > { %6366 = vpow2.f32 %v5980_v33 }
 0x537   : > { %v6359_v42 = vpop.eup %6358 }
 0x538   : > { %v4927_v3 = vadd.f32 1.0, %v6359_v42  ;;  %v5005_v42 = vld [vmem:[%s6782_s28 + $0x8] sm:$0xff] }
 0x539   : > { %v6361_v48 = vpop.eup %6360 }
 0x53a   : > { %6368 = vrcp.f32 %v4927_v3  ;;  %v4939_v50 = vadd.f32 1.0, %v6361_v48  ;;  %v5011_v3 = vunpack.c.h.bf16 %v5005_v42 }
 0x53b   : > { %v6363_v4 = vpop.eup %6362  ;;  %6370 = vtanh.f32 %v4915_v43 }
 0x53c   : > { %6372 = vrcp.f32 %v4939_v50  ;;  %v4928_v54 = vadd.f32 1.0, %v6363_v4  ;;  %v5007_v50 = vld [vmem:[%s6782_s28 + $0x18] sm:$0xff] }
 0x53d   : > { %v6365_v56 = vpop.eup %6364  ;;  %6374 = vpow2.f32 %v5981_v49 }
 0x53e   : > { %6376 = vrcp.f32 %v4928_v54  ;;  %v4940_v57 = vadd.f32 1.0, %v6365_v56  ;;  %v6367_v59 = vpop.eup %6366  ;;  %v5010_v56 = vunpack.c.l.bf16 %v5005_v42 }
 0x53f   : > { %6378 = vtanh.f32 %v4919_v53  ;;  %v4953_v62 = vadd.f32 1.0, %v6367_v59  ;;  %v5015_v53 = vunpack.c.h.bf16 %v5007_v50 }
 0x540   : > { %6380 = vrcp.f32 %v4940_v57 }
 0x541   : > { %6382 = vrcp.f32 %v4953_v62 }
 0x547   : > { %v6369_v60 = vpop.eup %6368 }
 0x548   : > { %v6371_v29 = vpop.eup %6370 }
 0x549   : > { %v6373_v0 = vpop.eup %6372  ;;  %v4961_v1 = vmul.f32 %v6371_v29, %v6369_v60 }
 0x54a   : > { %v6375_v63 = vpop.eup %6374  ;;  %v4959_v5 = vmul.f32 %v6373_v0, %v3954_v61  ;;  %v5014_v0 = vunpack.c.l.bf16 %v5007_v50 }
 0x54b   : > { %v6377_v51 = vpop.eup %6376  ;;  %v4954_v10 = vadd.f32 1.0, %v6375_v63 }
 0x54c   : > { %v6379_v40 = vpop.eup %6378  ;;  %v4963_v7 = vadd.f32 %v4961_v1, %v4959_v5 }
 0x54d   : > { %v6381_v11 = vpop.eup %6380  ;;  %v4962_v44 = vmul.f32 %v6379_v40, %v6377_v51 }
 0x54e   : > { %6384 = vtanh.f32 %v4963_v7  ;;  %v4987_v55 = vsel %vm4981_vm12, %v4963_v7, %v3954_v61  ;;  %v4960_v12 = vmul.f32 %v6381_v11, %v3956_v9  ;;  %v6383_v15 = vpop.eup %6382 }
 0x54f   : > { %4989 = vst [vmem:[#allocation3] sm:$0xff] %v4987_v55  ;;  %6386 = vrcp.f32 %v4954_v10 }
 0x550   : > { %v4964_v14 = vadd.f32 %v4962_v44, %v4960_v12  ;;  %v3955_v44 = vld [vmem:[#allocation3 + $0x18] sm:$0xff] }
 0x552   : > { %6388 = vtanh.f32 %v4964_v14  ;;  %v4988_v2 = vsel %vm4982_vm13, %v4964_v14, %v3956_v9  ;;  %v5079_v14 = vpop.permute.xlu0 %5078 }
 0x553   : > { %4990 = vst [vmem:[#allocation3 + $0x8] sm:$0xff] %v4988_v2  ;;  %vm5083_vm14 = vcmp.eq.s32.totalorder %v5079_v14, 1 }
 0x55b   : > { %v6385_v16 = vpop.eup %6384 }
 0x55c   : > { %v4967_v18 = vmul.f32 %v6385_v16, %v6383_v15  ;;  %v6387_v58 = vpop.eup %6386 }
 0x55e   : > { %v4983_v22 = vsel %vm4981_vm12, %v4967_v18, %v8383_v46  ;;  %v4991_v26 = vsel %vm4981_vm12, %v4967_v18, 0.0 }
 0x55f   : > { %v6389_v24 = vpop.eup %6388  ;;  %4985 = vst [vmem:[#allocation2 + $0x10] sm:$0xff] %v4983_v22 }
 0x560   : > { %v4968_v17 = vmul.f32 %v6389_v24, %v6387_v58  ;;  %v3957_v24 = vld [vmem:[#allocation3 + $0x10] sm:$0xff] }
 0x562   : > { %v4984_v27 = vsel %vm4982_vm13, %v4968_v17, %v8388_v52  ;;  %v4992_v20 = vsel %vm4982_vm13, %v4968_v17, 0.0  ;;  %v5082_v17 = vpop.permute.xlu1 %5081 }
 0x563   : > { %4986 = vst [vmem:[#allocation2 + $0x18] sm:$0xff] %v4984_v27  ;;  %v6063_v8 = vpack.c.bf16 %v4992_v20, %v4991_v26  ;;  %vm5084_vm15 = vcmp.eq.s32.totalorder %v5082_v17, 1 }
 0x565   : > { %6075 = vst [vmem:[%s6784_s16 + $0x18] sm:$0xff] %v6063_v8   ;;  %v4848_v37 = vpop.f32.mrf.mxu0  ;;  %v4891_v23 = vpop.f32.mrf.mxu1 }
 0x566   : > { %v5016_v46 = vadd.f32 %v5008_v21, %v4848_v37  ;;  %v5018_v29 = vadd.f32 %v5010_v56, %v4891_v23 }
 0x567   : > { %v4850_v31 = vpop.f32.mrf.mxu0  ;;  %v4893_v32 = vpop.f32.mrf.mxu1 }
 0x568   : > { %v5986_v34 = vmul.f32 -1.442695, %v5016_v46  ;;  %v5017_v35 = vadd.f32 %v5009_v28, %v4850_v31  ;;  %v5019_v4 = vadd.f32 %v5011_v3, %v4893_v32 }
 0x569   : > { %v4852_v39 = vpop.f32.mrf.mxu0  ;;  %v4895_v48 = vpop.f32.mrf.mxu1 }
 0x56a   : > { %6390 = vpow2.f32 %v5986_v34  ;;  %v5988_v52 = vmul.f32 -1.442695, %v5017_v35  ;;  %v5020_v33 = vadd.f32 %v5012_v30, %v4852_v39  ;;  %v5990_v57 = vmul.f32 -1.442695, %v5019_v4 }
 0x56b   : > { %v4854_v41 = vpop.f32.mrf.mxu0  ;;  %v4897_v54 = vpop.f32.mrf.mxu1  ;;  %v5022_v51 = vadd.f32 %v5014_v0, %v4895_v48 }
 0x56c   : > { %6392 = vpow2.f32 %v5988_v52  ;;  %v5987_v43 = vmul.f32 -1.442695, %v5020_v33  ;;  %v5021_v45 = vadd.f32 %v5013_v38, %v4854_v41  ;;  %v5023_v59 = vadd.f32 %v5015_v53, %v4897_v54 }
 0x56e   : > { %6394 = vpow2.f32 %v5987_v43  ;;  %v5989_v49 = vmul.f32 -1.442695, %v5021_v45  ;;  %v5991_v63 = vmul.f32 -1.442695, %v5023_v59 }
 0x570   : > { %6396 = vpow2.f32 %v5989_v49 }
 0x571   : > { %6398 = vpow2.f32 %v5990_v57 }
 0x577   : > { %v6391_v60 = vpop.eup %6390 }
 0x578   : > { %v5030_v61 = vadd.f32 1.0, %v6391_v60 }
 0x579   : > { %v6393_v62 = vpop.eup %6392 }
 0x57a   : > { %6400 = vrcp.f32 %v5030_v61  ;;  %v5042_v1 = vadd.f32 1.0, %v6393_v62 }
 0x57b   : > { %v6395_v5 = vpop.eup %6394  ;;  %6402 = vtanh.f32 %v5018_v29 }
 0x57c   : > { %6404 = vrcp.f32 %v5042_v1  ;;  %v5031_v40 = vadd.f32 1.0, %v6395_v5 }
 0x57d   : > { %v6397_v6 = vpop.eup %6396  ;;  %6406 = vpow2.f32 %v5991_v63 }
 0x57e   : > { %6408 = vrcp.f32 %v5031_v40  ;;  %v5043_v7 = vadd.f32 1.0, %v6397_v6  ;;  %v6399_v11 = vpop.eup %6398 }
 0x57f   : > { %6410 = vtanh.f32 %v5022_v51  ;;  %v5056_v12 = vadd.f32 1.0, %v6399_v11 }
 0x580   : > { %6412 = vrcp.f32 %v5043_v7 }
 0x581   : > { %6414 = vrcp.f32 %v5056_v12 }
 0x587   : > { %v6401_v9 = vpop.eup %6400 }
 0x588   : > { %v6403_v10 = vpop.eup %6402 }
 0x589   : > { %v6405_v55 = vpop.eup %6404  ;;  %v5064_v2 = vmul.f32 %v6403_v10, %v6401_v9 }
 0x58a   : > { %v6407_v13 = vpop.eup %6406  ;;  %v5062_v15 = vmul.f32 %v6405_v55, %v3955_v44 }
 0x58b   : > { %v6409_v16 = vpop.eup %6408  ;;  %v5057_v25 = vadd.f32 1.0, %v6407_v13 }
 0x58c   : > { %v6411_v18 = vpop.eup %6410  ;;  %v5066_v58 = vadd.f32 %v5064_v2, %v5062_v15 }
 0x58d   : > { %v6413_v22 = vpop.eup %6412  ;;  %v5065_v27 = vmul.f32 %v6411_v18, %v6409_v16 }
 0x58e   : > { %6416 = vtanh.f32 %v5066_v58  ;;  %v5089_v26 = vsel %vm5083_vm14, %v5066_v58, %v3955_v44  ;;  %v5063_v20 = vmul.f32 %v6413_v22, %v3957_v24  ;;  %v6415_v36 = vpop.eup %6414 }
 0x58f   : > { %5091 = vst [vmem:[#allocation3 + $0x18] sm:$0xff] %v5089_v26  ;;  %6418 = vrcp.f32 %v5057_v25 }
 0x590   : > { %v5067_v21 = vadd.f32 %v5065_v27, %v5063_v20 }
 0x592   : > { %6420 = vtanh.f32 %v5067_v21  ;;  %v5090_v8 = vsel %vm5084_vm15, %v5067_v21, %v3957_v24 }
 0x593   : > { %5092 = vst [vmem:[#allocation3 + $0x10] sm:$0xff] %v5090_v8 }
 0x59b   : > { %v6417_v28 = vpop.eup %6416 }
 0x59c   : > { %v5070_v37 = vmul.f32 %v6417_v28, %v6415_v36  ;;  %v6419_v46 = vpop.eup %6418 }
 0x59e   : > { %v5085_v23 = vsel %vm5083_vm14, %v5070_v37, %v8404_v19  ;;  %v5093_v34 = vsel %vm5083_vm14, %v5070_v37, 0.0 }
 0x59f   : > { %v6421_v30 = vpop.eup %6420  ;;  %5087 = vst [vmem:[#allocation2] sm:$0xff] %v5085_v23 }
 0x5a0   : > { %v5071_v31 = vmul.f32 %v6421_v30, %v6419_v46 }
 0x5a1   : > { %5108 = sbr.rel (%p5994_p7) target bundleno = 1452 (0x5ac), region = 90 }
 0x5a2   : > { %v5086_v35 = vsel %vm5084_vm15, %v5071_v31, %v8409_v47  ;;  %v5094_v38 = vsel %vm5084_vm15, %v5071_v31, 0.0 }
 0x5a3   : > { %5088 = vst [vmem:[#allocation2 + $0x8] sm:$0xff] %v5086_v35  ;;  %v6068_v39 = vpack.c.bf16 %v5094_v38, %v5093_v34 }
 0x5a5   : > { %6069 = vst [vmem:[%s6786_s11] sm:$0xff] %v6068_v39  }
 0x5a6   : > { %v5109_v52 = vld [vmem:[#allocation2 + $0x10] sm:$0xff]  ;;  %v5110_v32 = vld [vmem:[#allocation2] sm:$0xff]  ;;  %v5111_v33 = vld [vmem:[#allocation2 + $0x18] sm:$0xff] }
 0x5a7   : > { %5113 = vst [vmem:[%s8753_s6] sm:$0xff] %v5109_v52  ;;  %5114 = vst [vmem:[%s8753_s6 + $0x8] sm:$0xff] %v5110_v32 }
 0x5a8   : > { %5115 = vst [vmem:[%s8753_s6 + $0x10] sm:$0xff] %v5111_v33 }
 0x5aa   : > { %v5112_v19 = vld [vmem:[#allocation2 + $0x8] sm:$0xff] }
 0x5ab   : > { %5116 = vst [vmem:[%s8753_s6 + $0x18] sm:$0xff] %v5112_v19 }
 0x5ac PF: > { %s6027_s13 = sshll.u32 %s6546_s27, 9  ;;  %s5145_s3 = sshll.u32 %s6784_s16, 4  ;;  %s8648_s3 = int_to_ptr.vmem [resolvable:$true] %s5145_s3 }
 0x5ad   : > { %s8645_s14 = scalar_lea.hbm %s8751_s4, %s6027_s13  ;;  %s5118_s26 = scalar_lea.sflag [#allocation7], %s6761_s0 }
 0x5ae   : > { %s6424_s1 = scalar_lea.vmem %s8648_s3, 512  ;;  %s6558_s28 = smov [#allocation6]  }
 0x5af   : > { %p6425_p8 = scmp.ne.s32.totalorder %s8648_s3, %s6424_s1  ;;  %s6428_s30 = sshll.u32 %s6558_s28, 4  ;;  %s6429_s30 = int_to_ptr.vmem [resolvable:$false] %s6428_s30 }
 0x5b0   : > { %s6430_s25 = scalar_lea.vmem %s6429_s30, 1024  ;;  %p6431_p0 = scmp.lt.s32.totalorder %s8648_s3, %s6429_s30 }
 0x5b1   : > { %p6426_p9 = pnand %p6425_p8, %p6686_p11  ;;  %p6432_p1 = scmp.lt.s32.totalorder %s6430_s25, %s6424_s1 }
 0x5b3   : > { %p6427_p10 = pneg %p6426_p9  ;;  %p6433_p3 = por %p6432_p1, %p6431_p0 }
 0x5b5   : > { %p6434_p5 = pnand %p6433_p3, %p6427_p10 }
 0x5b7   : > { %6437 = shalt.err (!%p6434_p5)
}
 0x5b8   : > { %s6438_s16 = scalar_lea.hbm %s8645_s14, 512  ;;  %s6442_s7 = scalar_lea.hbm %s8751_s4, 1024 }
 0x5b9   : > { %p6439_p6 = scmp.ne.s32.totalorder %s8645_s14, %s6438_s16  ;;  %p6443_p8 = scmp.lt.s32.totalorder %s8645_s14, %s8751_s4 }
 0x5ba   : > { %p6444_p9 = scmp.lt.s32.totalorder %s6442_s7, %s6438_s16 }
 0x5bb   : > { %p6440_p7 = pnand %p6439_p6, %p6686_p11 }
 0x5bc   : > { %p6445_p10 = por %p6444_p9, %p6443_p8 }
 0x5bd   : > { %p6441_p4 = pneg %p6440_p7 }
 0x5bf   : > { %p6446_p0 = pnand %p6445_p10, %p6441_p4 }
 0x5c1   : > { %6449 = shalt.err (!%p6446_p0)
}
 0x5c2   : > { %s6559_s17 = smov 64   ;;  %s6560_s10 = smov 4  }
 0x5c3   : > { %6076 = dma.vmem_to_hbm [thread:$0]  (%p6686_p11), %s8648_s3, 512, %s8645_s14, %s5118_s26, %s6559_s17, %s6559_s17, %s6560_s10  }
 0x5c4   : > { %s8782_s1 = ssub.s32 1, %s6546_s27  ;;  %s5165_s30 = sshll.u32 %s6786_s11, 4  ;;  %s8684_s30 = int_to_ptr.vmem [resolvable:$true] %s5165_s30 }
 0x5c5   : > { %s6029_s28 = sshll.u32 %s8782_s1, 9  ;;  %s5123_s24 = scalar_lea.sflag [#allocation9], %s6764_s18 }
 0x5c6   : > { %s8682_s8 = scalar_lea.hbm %s8752_s5, %s6029_s28  ;;  %s6450_s19 = scalar_lea.vmem %s8684_s30, 512 }
 0x5c7   : > { %p6451_p4 = scmp.ne.s32.totalorder %s8684_s30, %s6450_s19  ;;  %s6561_s0 = smov [#allocation8]  }
 0x5c8   : > { %s6454_s27 = sshll.u32 %s6561_s0, 4  ;;  %s6455_s27 = int_to_ptr.vmem [resolvable:$false] %s6454_s27 }
 0x5c9   : > { %p6452_p1 = pnand %p6451_p4, %p6690_p12  ;;  %s6456_s11 = scalar_lea.vmem %s6455_s27, 1024 }
 0x5ca   : > { %p6457_p11 = scmp.lt.s32.totalorder %s8684_s30, %s6455_s27  ;;  %p6458_p5 = scmp.lt.s32.totalorder %s6456_s11, %s6450_s19 }
 0x5cb   : > { %p6453_p3 = pneg %p6452_p1 }
 0x5cc   : > { %p6459_p6 = por %p6458_p5, %p6457_p11 }
 0x5ce   : > { %p6460_p7 = pnand %p6459_p6, %p6453_p3 }
 0x5d0   : > { %6463 = shalt.err (!%p6460_p7)
}
 0x5d1   : > { %s6464_s14 = scalar_lea.hbm %s8682_s8, 512  ;;  %s6468_s26 = scalar_lea.hbm %s8752_s5, 1024 }
 0x5d2   : > { %p6465_p8 = scmp.ne.s32.totalorder %s8682_s8, %s6464_s14  ;;  %p6469_p0 = scmp.lt.s32.totalorder %s8682_s8, %s8752_s5 }
 0x5d3   : > { %p6470_p4 = scmp.lt.s32.totalorder %s6468_s26, %s6464_s14 }
 0x5d4   : > { %p6466_p9 = pnand %p6465_p8, %p6690_p12 }
 0x5d5   : > { %p6471_p1 = por %p6470_p4, %p6469_p0 }
 0x5d6   : > { %p6467_p10 = pneg %p6466_p9 }
 0x5d8   : > { %p6472_p3 = pnand %p6471_p1, %p6467_p10 }
 0x5da   : > { %6475 = shalt.err (!%p6472_p3)
}
 0x5db   : > { %6077 = dma.vmem_to_hbm [thread:$0]  (%p6690_p12), %s8684_s30, 512, %s8682_s8, %s5123_s24, %s6559_s17, %s6559_s17, %s6560_s10  }
 0x5dc PF: > { %s5193_s13 = sand.u32 1, %s6526_s22   ;;  %p8783_p11 = scmp.ge.s32.totalorder %s6554_s29, 2 }
 0x5dd   : > { %s5194_s1 = scalar_lea.sflag [#allocation7], %s5193_s13 }
 0x5de   : > { %p6081_p5 = pnand %p8783_p11, %p6694_p13 }
 0x5e0   : > { %p6082_p6 = pneg %p6081_p5 }
 0x5e2   : > { %6513 = dma.done.wait (%p6082_p6), %s5194_s1, 512  }
 0x5e3   : > { %6515 = vsyncadd (%p6082_p6), %s5194_s1, 4294966784  ;;  %s5202_s20 = sand.u32 1, %s6522_s21   ;;  %p8784_p7 = pmov %p8783_p11 }
 0x5e4   : > { %s5203_s17 = scalar_lea.sflag [#allocation9], %s5202_s20 }
 0x5e5   : > { %p6084_p8 = pnand %p8784_p7, %p6700_p2 }
 0x5e7   : > { %p6085_p12 = pneg %p6084_p8 }
 0x5e9   : > { %6517 = dma.done.wait (%p6085_p12), %s5203_s17, 512  }
 0x5ea   : > { %6519 = vsyncadd (%p6085_p12), %s5203_s17, 4294966784  ;;  %s23_s29 = sadd.s32 1, %s6554_s29   ;;  %s8785_s22 = sld [smem:[#allocation13_spill]] }
 0x5eb   : > { %p20_p9 = scmp.ge.s32.totalorder %s23_s29, 4   ;;  %s8786_s9 = sld [smem:[#allocation12_spill]] }
 0x5ec   : > { %s8787_s24 = sld [smem:[#allocation18_spill]]  ;;  %s8792_s21 = smov %s6530_s23 }
 0x5ed   : > { %s8788_s25 = sld [smem:[#allocation14_spill]]  ;;  %22 = sbr.rel (!%p20_p9) target bundleno = 12 (0xc), region = 182 }
 0x5ee   : > { %s8789_s26 = sld [smem:[#allocation17_spill]] }
 0x5ef   : > { %s8790_s27 = sld [smem:[#allocation15_spill]] }
 0x5f0   : > { %s8791_s28 = sld [smem:[#allocation16_spill]] }
 0x5f1   : > { %s8793_s23 = smov %s8786_s9 }
 0x5f2   :  { %5208 = vsyncpa [#allocation7], 1 }
 0x5f3   :  { %5210 = vsyncpa [#allocation7 + $0x1], 1 }
 0x5f4   :  { %5211 = vsyncpa [#allocation9], 1 }
 0x5f5   :  { %5213 = vsyncpa [#allocation9 + $0x1], 1 }

// kernel: lstm_classifier_forward.2
= control target key start
LH: loop header
LB: loop body
LE: loop exit
PB: predicated region body
PF: predicated region fallthrough
CT: control target
= control target key end

     0   :  { %12 = vsyncpa [#allocation7], 0  ;;  %s7120_s0 = inlined_call_operand.vmem [shape: bf16[8,16,1024], index: 0, kind: input, shape index: {}, may-alias: {0,1}]   ;;  %s7121_s1 = inlined_call_operand.vmem [shape: bf16[8,16,1024], index: 1, kind: input, shape index: {}, may-alias: {0,1}]   ;;  %s7122_s2 = inlined_call_operand.hbm [shape: bf16[256,1024], index: 2, kind: input, shape index: {}]   ;;  %s7123_s3 = inlined_call_operand.vmem [shape: s32[16,1], index: 3, kind: input, shape index: {}]   ;;  %s7124_s4 = inlined_call_operand.vmem [shape: bf16[8,16,128], index: 4, kind: output, shape index: {0}]   ;;  %s7125_s5 = inlined_call_operand.vmem [shape: bf16[8,16,128], index: 5, kind: output, shape index: {1}]   ;;  %s7126_s6 = inlined_call_operand.hbm [shape: f32[16,256], index: 6, kind: output, shape index: {2}]  }
   0x1   :  { %13 = vsyncpa [#allocation8], 0  ;;  %s6600_s21 = smov 0   ;;  %s6602_s22 = smov 0  }
   0x2   :  { %s6604_s23 = smov 0   ;;  %s6606_s24 = smov 0  }
   0x3   :  { %s6608_s25 = smov 0   ;;  %s6610_s26 = smov 0  }
   0x4   :  { %s6612_s27 = smov 0  }
   0x5 LB: > { %s7127_s28 = sadd.s32 4294967295, %s6555_s27   ;;  %s28_s29 = sadd.s32 1, %s6551_s26  ;;  %s6555_s27 = sphi %s6612_s27, %s19_s27   ;;  %s6551_s26 = sphi %s6610_s26, %s7145_s26   ;;  %s6547_s25 = sphi %s6608_s25, %s7144_s25   ;;  %s6543_s24 = sphi %s6606_s24, %s7143_s24   ;;  %s6539_s23 = sphi %s6604_s23, %s7142_s23   ;;  %s6535_s22 = sphi %s6602_s22, %s7141_s22   ;;  %s6531_s21 = sphi %s6600_s21, %s7140_s21  }
   0x6   : > { %p29_p0 = scmp.ge.s32.totalorder %s28_s29, 2  ;;  %s40_s30 = sadd.s32 1, %s6543_s24 }
   0x7   : > { %p47_p1 = scmp.ne.s32.totalorder %s6543_s24, %s6539_s23  ;;  %p48_p2 = scmp.eq.s32.totalorder %s6555_s27, 0 }
   0x8   : > { %s7147_s29 = smov (%p29_p0, %s28_s29), 0  ;;  %s7128_s8 = ssub.s32 1, %s6551_s26 }
   0x9   : > { %7130 = sst [smem:[#allocation12_spill]] %s7147_s29  ;;  %p6645_p3 = por %p48_p2, %p47_p1 }
   0xa   : > { %s35_s9 = ssub.s32 %s6551_s26, %s7147_s29  ;;  %s64_s10 = ssub.s32 1, %s7147_s29 }
   0xb   : > { %p38_p4 = scmp.eq.s32.totalorder %s35_s9, 0  ;;  %s65_s11 = ssub.s32 %s7128_s8, %s64_s10 }
   0xc   : > { %p68_p5 = scmp.eq.s32.totalorder %s65_s11, 0  ;;  %s70_s12 = sadd.s32 1, %s6535_s22 }
   0xd   : > { %s6657_s13 = scalar_select %p38_p4, %s6543_s24, %s40_s30  }
   0xe   : > { %s6660_s14 = scalar_select %p68_p5, %s6535_s22, %s70_s12  }
   0xf   : > { %p77_p6 = scmp.ne.s32.totalorder %s6535_s22, %s6531_s21  ;;  %p5379_p7 = scmp.ge.s32.totalorder %s6555_s27, 1 }
  0x10   : > { %p225_p8 = scmp.lt.s32.totalorder %s6555_s27, 3  ;;  %p6674_p10 = scmp.eq.s32.totalorder %s7127_s28, 0 }
  0x11   : > { %p6668_p9 = por %p77_p6, %p48_p2  ;;  %s6557_s18 = smov [#allocation6]  }
  0x12   : > { %p6678_p11 = pnand %p5379_p7, %p225_p8  ;;  %s237_s19 = sshll.u32 %s6557_s18, 4  ;;  %s238_s19 = int_to_ptr.vmem [resolvable:$true] %s237_s19 }
  0x13   : > { %s7132_s15 = scalar_select %p6668_p9, 1, 0 }
  0x14   : > { %p6111_p12 = pneg %p6678_p11  ;;  %s6454_s20 = scalar_lea.vmem %s238_s19, 16384 }
  0x15   : > { %p6455_p1 = scmp.ne.s32.totalorder %s238_s19, %s6454_s20  ;;  %p6462_p5 = scmp.lt.s32.totalorder %s238_s19, %s238_s19 }
  0x16   : > { %p6112_p13 = pnand %p6674_p10, %p6111_p12  ;;  %p6463_p6 = scmp.lt.s32.totalorder %s6454_s20, %s6454_s20 }
  0x18   : > { %p6445_p0 = pneg %p6112_p13  ;;  %p6464_p9 = por %p6463_p6, %p6462_p5 }
  0x1a   : > { %p6457_p2 = pnand %p6455_p1, %p6445_p0 }
  0x1c   : > { %p6458_p4 = pneg %p6457_p2 }
  0x1e   : > { %p6465_p7 = pnand %p6464_p9, %p6458_p4 }
  0x20   : > { %6468 = shalt.err (!%p6465_p7)
}
  0x21   : > { %s6558_s30 = smov 512   ;;  %s6559_s9 = smov 32  }
  0x22   : > { %6114 = dma.hbm_to_vmem [thread:$0]  (!%p6112_p13), %s7122_s2, 16384, %s238_s19, [#allocation7], %s6558_s30, %s6558_s30, %s6559_s9  }
  0x23   : > { %p5382_p8 = scmp.ge.s32.totalorder %s6555_s27, 2 }
  0x25   : > { %256 = sbr.rel (%p5382_p8) target bundleno = 67 (0x43), region = 24 }
  0x2a   : > { %259 = sbr.rel (!%p6645_p3) target bundleno = 54 (0x36), region = 28  ;;  %s261_s12 = sand.u32 (%p6645_p3), 1, %s6543_s24  }
  0x2b   : > { %s6037_s18 = sshll.u32 (%p6645_p3), %s6551_s26, 8  ;;  %s5383_s20 = sshll.u32 (%p6645_p3), %s261_s12, 7 }
  0x2c   : > { %s6697_s29 = scalar_lea.vmem (%p6645_p3), %s7120_s0, %s6037_s18  ;;  %s263_s7 = scalar_lea.vmem (%p6645_p3), [#allocation4], %s5383_s20 }
  0x2d   : > { %v283_v0 = vld [vmem:[%s6697_s29] sm:$0xff] (%p6645_p3)  ;;  %v285_v1 = vld [vmem:[%s6697_s29 + $0x8] sm:$0xff] (%p6645_p3) }
  0x2e   : > { %v287_v2 = vld [vmem:[%s6697_s29 + $0x20] sm:$0xff] (%p6645_p3)  ;;  %284 = vst [vmem:[%s263_s7] sm:$0xff] (%p6645_p3), %v283_v0  ;;  %286 = vst [vmem:[%s263_s7 + $0x8] sm:$0xff] (%p6645_p3), %v285_v1  ;;  %v289_v3 = vld [vmem:[%s6697_s29 + $0x28] sm:$0xff] (%p6645_p3) }
  0x2f   : > { %288 = vst [vmem:[%s263_s7 + $0x10] sm:$0xff] %v287_v2  ;;  %v291_v4 = vld [vmem:[%s6697_s29 + $0x40] sm:$0xff]  ;;  %v293_v5 = vld [vmem:[%s6697_s29 + $0x48] sm:$0xff]  ;;  %290 = vst [vmem:[%s263_s7 + $0x18] sm:$0xff] %v289_v3 }
  0x30   : > { %292 = vst [vmem:[%s263_s7 + $0x20] sm:$0xff] %v291_v4  ;;  %294 = vst [vmem:[%s263_s7 + $0x28] sm:$0xff] %v293_v5  ;;  %v295_v6 = vld [vmem:[%s6697_s29 + $0x60] sm:$0xff]  ;;  %v297_v7 = vld [vmem:[%s6697_s29 + $0x68] sm:$0xff] }
  0x31   : > { %v299_v8 = vld [vmem:[%s6697_s29 + $0x80] sm:$0xff]  ;;  %296 = vst [vmem:[%s263_s7 + $0x30] sm:$0xff] %v295_v6  ;;  %298 = vst [vmem:[%s263_s7 + $0x38] sm:$0xff] %v297_v7  ;;  %v301_v9 = vld [vmem:[%s6697_s29 + $0x88] sm:$0xff] }
  0x32   : > { %300 = vst [vmem:[%s263_s7 + $0x40] sm:$0xff] %v299_v8  ;;  %v303_v10 = vld [vmem:[%s6697_s29 + $0xa0] sm:$0xff]  ;;  %v305_v11 = vld [vmem:[%s6697_s29 + $0xa8] sm:$0xff]  ;;  %302 = vst [vmem:[%s263_s7 + $0x48] sm:$0xff] %v301_v9 }
  0x33   : > { %304 = vst [vmem:[%s263_s7 + $0x50] sm:$0xff] %v303_v10  ;;  %306 = vst [vmem:[%s263_s7 + $0x58] sm:$0xff] %v305_v11  ;;  %v307_v12 = vld [vmem:[%s6697_s29 + $0xc0] sm:$0xff]  ;;  %v309_v13 = vld [vmem:[%s6697_s29 + $0xc8] sm:$0xff] }
  0x34   : > { %v311_v14 = vld [vmem:[%s6697_s29 + $0xe0] sm:$0xff]  ;;  %308 = vst [vmem:[%s263_s7 + $0x60] sm:$0xff] %v307_v12  ;;  %310 = vst [vmem:[%s263_s7 + $0x68] sm:$0xff] %v309_v13  ;;  %v313_v15 = vld [vmem:[%s6697_s29 + $0xe8] sm:$0xff] }
  0x35   : > { %312 = vst [vmem:[%s263_s7 + $0x70] sm:$0xff] %v311_v14  ;;  %314 = vst [vmem:[%s263_s7 + $0x78] sm:$0xff] %v313_v15 }
  0x36 PF: > { %p7135_p3 = scmp.ne.s32.totalorder %s7132_s15, 0 }
  0x37   : > { %s322_s28 = sand.u32 (%p7135_p3), 1, %s6535_s22   ;;  %s7136_s8 = ssub.s32 (%p7135_p3), 1, %s6551_s26 }
  0x38   : > { %320 = sbr.rel (!%p7135_p3) target bundleno = 67 (0x43), region = 51  ;;  %s6038_s19 = sshll.u32 (%p7135_p3), %s7136_s8, 8 }
  0x39   : > { %s5387_s30 = sshll.u32 (%p7135_p3), %s322_s28, 7  ;;  %s6723_s11 = scalar_lea.vmem (%p7135_p3), %s7121_s1, %s6038_s19 }
  0x3a   : > { %v5390_v16 = vld [vmem:[%s6723_s11 + $0x10] sm:$0xff] (%p7135_p3)  ;;  %v5391_v17 = vld [vmem:[%s6723_s11 + $0x18] sm:$0xff] (%p7135_p3)  ;;  %s324_s29 = scalar_lea.vmem (%p7135_p3), [#allocation5], %s5387_s30 }
  0x3b   : > { %v5392_v18 = vld [vmem:[%s6723_s11 + $0x30] sm:$0xff] (%p7135_p3)  ;;  %347 = vst [vmem:[%s324_s29] sm:$0xff] (%p7135_p3), %v5390_v16  ;;  %349 = vst [vmem:[%s324_s29 + $0x8] sm:$0xff] (%p7135_p3), %v5391_v17  ;;  %v5393_v19 = vld [vmem:[%s6723_s11 + $0x38] sm:$0xff] (%p7135_p3) }
  0x3c   : > { %351 = vst [vmem:[%s324_s29 + $0x10] sm:$0xff] (%p7135_p3), %v5392_v18  ;;  %v5394_v20 = vld [vmem:[%s6723_s11 + $0x50] sm:$0xff] (%p7135_p3)  ;;  %v5395_v21 = vld [vmem:[%s6723_s11 + $0x58] sm:$0xff] (%p7135_p3)  ;;  %353 = vst [vmem:[%s324_s29 + $0x18] sm:$0xff] (%p7135_p3), %v5393_v19 }
  0x3d   : > { %355 = vst [vmem:[%s324_s29 + $0x20] sm:$0xff] %v5394_v20  ;;  %357 = vst [vmem:[%s324_s29 + $0x28] sm:$0xff] %v5395_v21  ;;  %v5396_v22 = vld [vmem:[%s6723_s11 + $0x70] sm:$0xff]  ;;  %v5397_v23 = vld [vmem:[%s6723_s11 + $0x78] sm:$0xff] }
  0x3e   : > { %v5398_v24 = vld [vmem:[%s6723_s11 + $0x90] sm:$0xff]  ;;  %359 = vst [vmem:[%s324_s29 + $0x30] sm:$0xff] %v5396_v22  ;;  %361 = vst [vmem:[%s324_s29 + $0x38] sm:$0xff] %v5397_v23  ;;  %v5399_v25 = vld [vmem:[%s6723_s11 + $0x98] sm:$0xff] }
  0x3f   : > { %363 = vst [vmem:[%s324_s29 + $0x40] sm:$0xff] %v5398_v24  ;;  %v5400_v26 = vld [vmem:[%s6723_s11 + $0xb0] sm:$0xff]  ;;  %v5401_v27 = vld [vmem:[%s6723_s11 + $0xb8] sm:$0xff]  ;;  %365 = vst [vmem:[%s324_s29 + $0x48] sm:$0xff] %v5399_v25 }
  0x40   : > { %367 = vst [vmem:[%s324_s29 + $0x50] sm:$0xff] %v5400_v26  ;;  %369 = vst [vmem:[%s324_s29 + $0x58] sm:$0xff] %v5401_v27  ;;  %v5402_v28 = vld [vmem:[%s6723_s11 + $0xd0] sm:$0xff]  ;;  %v5403_v29 = vld [vmem:[%s6723_s11 + $0xd8] sm:$0xff] }
  0x41   : > { %v5404_v30 = vld [vmem:[%s6723_s11 + $0xf0] sm:$0xff]  ;;  %371 = vst [vmem:[%s324_s29 + $0x60] sm:$0xff] %v5402_v28  ;;  %373 = vst [vmem:[%s324_s29 + $0x68] sm:$0xff] %v5403_v29  ;;  %v5405_v31 = vld [vmem:[%s6723_s11 + $0xf8] sm:$0xff] }
  0x42   : > { %375 = vst [vmem:[%s324_s29 + $0x70] sm:$0xff] %v5404_v30  ;;  %377 = vst [vmem:[%s324_s29 + $0x78] sm:$0xff] %v5405_v31 }
  0x43 PF: > { %386 = sbr.rel (%p6678_p11) target bundleno = 1462 (0x5b6), region = 74  ;;  %s389_s15 = sand.u32 (!%p6678_p11), 1, %s6539_s23  }
  0x44   : > { %s396_s12 = sand.u32 (!%p6678_p11), 1, %s6531_s21   ;;  %s5407_s18 = sshll.u32 (!%p6678_p11), %s389_s15, 7 }
  0x45   : > { %s5408_s20 = sshll.u32 (!%p6678_p11), %s396_s12, 7  ;;  %s6745_s7 = scalar_lea.vmem (!%p6678_p11), [#allocation4], %s5407_s18 }
  0x46   : > { %s6747_s28 = scalar_lea.vmem (!%p6678_p11), [#allocation5], %s5408_s20 }
  0x48   : > { %6522 = dma.done.wait (%p6674_p10), [#allocation7], 16384  }
  0x49   : > { %6524 = vsyncadd (%p6674_p10), [#allocation7], 4294950912  ;;  %s6754_s17 = sshll.u32 %s6547_s25, 2  ;;  %s477_s8 = ssub.s32 1, %s6547_s25  ;;  %v6771_v32 = vld [vmem:[%s7123_s3] sm:$0xff]  ;;  %v6776_v33 = vld [vmem:[%s7123_s3 + $0x8] sm:$0xff] }
  0x4a   : > { %p467_p9 = scmp.lt.s32.totalorder %s6754_s17, 7  ;;  %s6758_s21 = sshll.u32 %s477_s8, 2 }
  0x4b   : > { %p480_p11 = scmp.lt.s32.totalorder %s6758_s21, 7  ;;  %p5416_p10 = scmp.ne.s32.totalorder %s6547_s25, 0 }
  0x4c   : > { %s468_s23 = scalar_select %p467_p9, %s6754_s17, 7 }
  0x4d   : > { %s481_s19 = scalar_select %p480_p11, %s6758_s21, 7 }
  0x4e   : > { %s6039_s30 = sshll.u32 %s468_s23, 3  ;;  %497 = sbr.rel (%p5416_p10) target bundleno = 88 (0x58), region = 90 }
  0x4f   : > { %s6766_s16 = scalar_lea.vmem %s7124_s4, %s6039_s30  ;;  %s6040_s11 = sshll.u32 %s481_s19, 3 }
  0x50   : > { %s6781_s23 = scalar_lea.vmem %s7125_s5, %s6040_s11 }
  0x53   : > { %v6560_v34 = vmov 0.0  }
  0x54   : > { %498 = vst [vmem:[#allocation2 + $0x10] sm:$0xff] %v6560_v34  ;;  %499 = vst [vmem:[#allocation2] sm:$0xff] %v6560_v34 }
  0x55   : > { %500 = vst [vmem:[#allocation2 + $0x18] sm:$0xff] %v6560_v34  ;;  %501 = vst [vmem:[#allocation2 + $0x8] sm:$0xff] %v6560_v34 }
  0x56   : > { %502 = vst [vmem:[#allocation3] sm:$0xff] %v6560_v34  ;;  %503 = vst [vmem:[#allocation3 + $0x18] sm:$0xff] %v6560_v34 }
  0x57   : > { %504 = vst [vmem:[#allocation3 + $0x8] sm:$0xff] %v6560_v34  ;;  %505 = vst [vmem:[#allocation3 + $0x10] sm:$0xff] %v6560_v34 }
  0x58 PF: > { %v572_v35 = vld [vmem:[#allocation6 + $0x1c0] sm:$0xff]  ;;  %v573_v44 = vld [vmem:[#allocation6 + $0x1c8] sm:$0xff]  ;;  %v1525_v60 = vstv %s6754_s17  ;;  %v6561_v0 = vmov 0   ;;  %s1629_s19 = sadd.s32 3, %s6758_s21  ;;  %s2787_s30 = sadd.s32 2, %s6758_s21 }
  0x59   : > { %v576_v36 = vld [vmem:[#allocation6 + $0x1e0] sm:$0xff]  ;;  %v577_v45 = vld [vmem:[#allocation6 + $0x1e8] sm:$0xff]  ;;  %6184 = vset.pattern.permute.xlu1 %v6561_v0  ;;  %6183 = vset.pattern.permute.xlu0 %v6561_v0  ;;  %vm1526_vm0 = vcmp.gt.s32.totalorder %v6771_v32, %v1525_v60  ;;  %vm1527_vm1 = vcmp.gt.s32.totalorder %v6776_v33, %v1525_v60  ;;  %v1630_v7 = vstv %s1629_s19  ;;  %v2788_v21 = vstv %s2787_s30  ;;  %s2683_s9 = sadd.s32 1, %s6754_s17  ;;  %s3945_s10 = sadd.s32 1, %s6758_s21 }
  0x5a   : > { %v564_v37 = vld [vmem:[#allocation6 + $0x180] sm:$0xff]  ;;  %v5474_v38 = vcombine.high %v572_v35, %v576_v36  ;;  %v5473_v39 = vcombine.low %v572_v35, %v576_v36  ;;  %v5476_v47 = vcombine.high %v573_v44, %v577_v45  ;;  %v5475_v48 = vcombine.low %v573_v44, %v577_v45  ;;  %v565_v49 = vld [vmem:[#allocation6 + $0x188] sm:$0xff]  ;;  %s3841_s11 = sadd.s32 2, %s6754_s17  ;;  %s4999_s29 = sadd.s32 3, %s6754_s17 }
  0x5b   : > { %v568_v40 = vld [vmem:[#allocation6 + $0x1a0] sm:$0xff]  ;;  %v569_v50 = vld [vmem:[#allocation6 + $0x1a8] sm:$0xff]  ;;  %v1528_v6 = vsel %vm1526_vm0, 1, %v6561_v0  ;;  %v1529_v13 = vsel %vm1527_vm1, 1, %v6561_v0  ;;  %vm1631_vm2 = vcmp.gt.s32.totalorder %v6771_v32, %v1630_v7  ;;  %vm1632_vm3 = vcmp.gt.s32.totalorder %v6776_v33, %v1630_v7  ;;  %p6031_p12 = scmp.ne.s32.totalorder %s6547_s25, 1 }
  0x5c   : > { %v5466_v41 = vcombine.high %v564_v37, %v568_v40  ;;  %v556_v42 = vld [vmem:[#allocation6 + $0x140] sm:$0xff]  ;;  %1284 = vmatprep.subr.bf16.mxu0 %v5474_v38  ;;  %v5465_v46 = vcombine.low %v564_v37, %v568_v40  ;;  %v5468_v52 = vcombine.high %v565_v49, %v569_v50  ;;  %v557_v53 = vld [vmem:[#allocation6 + $0x148] sm:$0xff]  ;;  %1327 = vmatprep.subr.bf16.mxu1 %v5476_v47  ;;  %v1633_v17 = vsel %vm1631_vm2, 1, %v6561_v0 }
  0x5d   : > { %v560_v43 = vld [vmem:[#allocation6 + $0x160] sm:$0xff]  ;;  %1285 = vmatpush1.bf16.msra.mxu0 %v5473_v39  ;;  %v561_v54 = vld [vmem:[#allocation6 + $0x168] sm:$0xff]  ;;  %1328 = vmatpush1.bf16.msra.mxu1 %v5475_v48  ;;  %v5467_v57 = vcombine.low %v565_v49, %v569_v50  ;;  %vm2790_vm4 = vcmp.gt.s32.totalorder %v6776_v33, %v2788_v21  ;;  %v1634_v37 = vsel %vm1632_vm3, 1, %v6561_v0  ;;  %vm2789_vm5 = vcmp.gt.s32.totalorder %v6771_v32, %v2788_v21 }
  0x5e   : > { %1286 = vmatprep.subr.bf16.mxu0 %v5466_v41  ;;  %v5458_v51 = vcombine.high %v556_v42, %v560_v43  ;;  %v548_v55 = vld [vmem:[#allocation6 + $0x100] sm:$0xff]  ;;  %v5457_v58 = vcombine.low %v556_v42, %v560_v43  ;;  %1329 = vmatprep.subr.bf16.mxu1 %v5468_v52  ;;  %v5460_v59 = vcombine.high %v557_v53, %v561_v54  ;;  %v549_v62 = vld [vmem:[#allocation6 + $0x108] sm:$0xff]  ;;  %v2792_v39 = vsel %vm2790_vm4, 1, %v6561_v0 }
  0x5f   : > { %v552_v56 = vld [vmem:[#allocation6 + $0x120] sm:$0xff]  ;;  %v553_v63 = vld [vmem:[#allocation6 + $0x128] sm:$0xff]  ;;  %v5459_v3 = vcombine.low %v557_v53, %v561_v54  ;;  %1531 = vperm.xlu1 %6184, %v1528_v6   ;;  %1636 = vperm.xlu0 %6183, %v1633_v17   ;;  %v2684_v42 = vstv %s2683_s9  ;;  %v2791_v48 = vsel %vm2789_vm5, 1, %v6561_v0  ;;  %v3946_v53 = vstv %s3945_s10 }
  0x60   : > { %v5450_v61 = vcombine.high %v548_v55, %v552_v56  ;;  %v540_v1 = vld [vmem:[#allocation6 + $0xc0] sm:$0xff]  ;;  %v5449_v4 = vcombine.low %v548_v55, %v552_v56  ;;  %v5452_v5 = vcombine.high %v549_v62, %v553_v63  ;;  %v541_v9 = vld [vmem:[#allocation6 + $0xc8] sm:$0xff]  ;;  %v5451_v14 = vcombine.low %v549_v62, %v553_v63 }
  0x61   : > { %1287 = vmatpush1.bf16.msra.mxu0 %v5465_v46  ;;  %v544_v2 = vld [vmem:[#allocation6 + $0xe0] sm:$0xff]  ;;  %1330 = vmatpush1.bf16.msra.mxu1 %v5467_v57  ;;  %v545_v10 = vld [vmem:[#allocation6 + $0xe8] sm:$0xff]  ;;  %vm2685_vm6 = vcmp.gt.s32.totalorder %v6771_v32, %v2684_v42  ;;  %vm2686_vm7 = vcmp.gt.s32.totalorder %v6776_v33, %v2684_v42  ;;  %vm3947_vm8 = vcmp.gt.s32.totalorder %v6771_v32, %v3946_v53 }
  0x62   : > { %1288 = vmatprep.subr.bf16.mxu0 %v5458_v51  ;;  %1331 = vmatprep.subr.bf16.mxu1 %v5460_v59  ;;  %v5442_v8 = vcombine.high %v540_v1, %v544_v2  ;;  %v532_v11 = vld [vmem:[#allocation6 + $0x80] sm:$0xff]  ;;  %v5441_v15 = vcombine.low %v540_v1, %v544_v2  ;;  %v5444_v16 = vcombine.high %v541_v9, %v545_v10  ;;  %v533_v19 = vld [vmem:[#allocation6 + $0x88] sm:$0xff]  ;;  %v2688_v52 = vsel %vm2686_vm7, 1, %v6561_v0 }
  0x63   : > { %v536_v12 = vld [vmem:[#allocation6 + $0xa0] sm:$0xff]  ;;  %v537_v20 = vld [vmem:[#allocation6 + $0xa8] sm:$0xff]  ;;  %1534 = vperm.xlu1 %6184, %v1529_v13   ;;  %v5443_v25 = vcombine.low %v541_v9, %v545_v10  ;;  %1639 = vperm.xlu0 %6183, %v1634_v37   ;;  %v2687_v59 = vsel %vm2685_vm6, 1, %v6561_v0  ;;  %vm3948_vm9 = vcmp.gt.s32.totalorder %v6776_v33, %v3946_v53  ;;  %v3842_v1 = vstv %s3841_s11 }
  0x64   : > { %v5434_v18 = vcombine.high %v532_v11, %v536_v12  ;;  %v524_v22 = vld [vmem:[#allocation6 + $0x40] sm:$0xff]  ;;  %v5433_v24 = vcombine.low %v532_v11, %v536_v12  ;;  %v509_v27 = vld [vmem:[#allocation2 + $0x8] sm:$0xff]  ;;  %v5436_v28 = vcombine.high %v533_v19, %v537_v20  ;;  %v5435_v38 = vcombine.low %v533_v19, %v537_v20 }
  0x65   : > { %1289 = vmatpush1.bf16.msra.mxu0 %v5457_v58  ;;  %1332 = vmatpush1.bf16.msra.mxu1 %v5459_v3  ;;  %v528_v23 = vld [vmem:[#allocation6 + $0x60] sm:$0xff]  ;;  %v525_v31 = vld [vmem:[#allocation6 + $0x48] sm:$0xff]  ;;  %v3950_v63 = vsel %vm3948_vm9, 1, %v6561_v0  ;;  %v3949_v7 = vsel %vm3947_vm8, 1, %v6561_v0  ;;  %vm3843_vm10 = vcmp.gt.s32.totalorder %v6771_v32, %v3842_v1  ;;  %vm3844_vm11 = vcmp.gt.s32.totalorder %v6776_v33, %v3842_v1 }
  0x66   : > { %1290 = vmatprep.subr.bf16.mxu0 %v5450_v61  ;;  %1333 = vmatprep.subr.bf16.mxu1 %v5452_v5  ;;  %v507_v26 = vld [vmem:[#allocation2] sm:$0xff]  ;;  %v5426_v30 = vcombine.high %v524_v22, %v528_v23  ;;  %v529_v34 = vld [vmem:[#allocation6 + $0x68] sm:$0xff]  ;;  %v5425_v40 = vcombine.low %v524_v22, %v528_v23  ;;  %v3846_v11 = vsel %vm3844_vm11, 1, %v6561_v0  ;;  %v5000_v12 = vstv %s4999_s29 }
  0x67   : > { %v6796_v29 = vpack.c.bf16 %v509_v27, %v507_v26  ;;  %v516_v35 = vld [vmem:[#allocation6] sm:$0xff]  ;;  %v5428_v41 = vcombine.high %v525_v31, %v529_v34  ;;  %v517_v44 = vld [vmem:[#allocation6 + $0x8] sm:$0xff]  ;;  %2797 = vperm.xlu1 %6184, %v2792_v39   ;;  %v5427_v49 = vcombine.low %v525_v31, %v529_v34  ;;  %2794 = vperm.xlu0 %6183, %v2791_v48   ;;  %v5102_v23 = vstv %s6758_s21 }
  0x68   : > { %v520_v36 = vld [vmem:[#allocation6 + $0x20] sm:$0xff]  ;;  %v521_v45 = vld [vmem:[#allocation6 + $0x28] sm:$0xff]  ;;  %vm5001_vm12 = vcmp.gt.s32.totalorder %v6771_v32, %v5000_v12  ;;  %vm5002_vm13 = vcmp.gt.s32.totalorder %v6776_v33, %v5000_v12  ;;  %vm5103_vm14 = vcmp.gt.s32.totalorder %v6771_v32, %v5102_v23  ;;  %vm5104_vm15 = vcmp.gt.s32.totalorder %v6776_v33, %v5102_v23 }
  0x69   : > { %1291 = vmatpush1.bf16.msra.mxu0 %v5449_v4  ;;  %1334 = vmatpush1.bf16.msra.mxu1 %v5451_v14  ;;  %v5418_v43 = vcombine.high %v516_v35, %v520_v36  ;;  %v636_v46 = vld [vmem:[#allocation6 + $0x3c0] sm:$0xff]  ;;  %v5417_v50 = vcombine.low %v516_v35, %v520_v36  ;;  %v5420_v51 = vcombine.high %v517_v44, %v521_v45  ;;  %v637_v55 = vld [vmem:[#allocation6 + $0x3c8] sm:$0xff]  ;;  %v5004_v22 = vsel %vm5002_vm13, 1, %v6561_v0 }
  0x6a   : > { %1292 = vmatprep.subr.bf16.mxu0 %v5442_v8  ;;  %1335 = vmatprep.subr.bf16.mxu1 %v5444_v16  ;;  %v640_v47 = vld [vmem:[#allocation6 + $0x3e0] sm:$0xff]  ;;  %v641_v56 = vld [vmem:[#allocation6 + $0x3e8] sm:$0xff]  ;;  %v5419_v60 = vcombine.low %v517_v44, %v521_v45  ;;  %v5106_v39 = vsel %vm5104_vm15, 1, %v6561_v0  ;;  %v5105_v42 = vsel %vm5103_vm14, 1, %v6561_v0 }
  0x6b   : > { %1316 = vmatprep.mubr.bf16.mxu0 %v6796_v29  ;;  %1359 = vmatprep.mubr.bf16.mxu1 %v6796_v29  ;;  %v5538_v54 = vcombine.high %v636_v46, %v640_v47  ;;  %v628_v57 = vld [vmem:[#allocation6 + $0x380] sm:$0xff]  ;;  %v5537_v61 = vcombine.low %v636_v46, %v640_v47  ;;  %v5540_v62 = vcombine.high %v637_v55, %v641_v56  ;;  %v629_v3 = vld [vmem:[#allocation6 + $0x388] sm:$0xff] }
  0x6c   : > { %v632_v58 = vld [vmem:[#allocation6 + $0x3a0] sm:$0xff]  ;;  %2693 = vperm.xlu1 %6184, %v2688_v52   ;;  %v633_v4 = vld [vmem:[#allocation6 + $0x3a8] sm:$0xff]  ;;  %2690 = vperm.xlu0 %6183, %v2687_v59   ;;  %v5539_v8 = vcombine.low %v637_v55, %v641_v56 }
  0x6d   : > { %1293 = vmatpush1.bf16.msra.mxu0 %v5441_v15  ;;  %1336 = vmatpush1.bf16.msra.mxu1 %v5443_v25  ;;  %v5530_v2 = vcombine.high %v628_v57, %v632_v58  ;;  %v620_v5 = vld [vmem:[#allocation6 + $0x340] sm:$0xff]  ;;  %v5529_v9 = vcombine.low %v628_v57, %v632_v58  ;;  %v5532_v10 = vcombine.high %v629_v3, %v633_v4  ;;  %v621_v14 = vld [vmem:[#allocation6 + $0x348] sm:$0xff] }
  0x6e   : > { %1294 = vmatprep.subr.bf16.mxu0 %v5434_v18  ;;  %1337 = vmatprep.subr.bf16.mxu1 %v5436_v28  ;;  %v624_v6 = vld [vmem:[#allocation6 + $0x360] sm:$0xff]  ;;  %v625_v15 = vld [vmem:[#allocation6 + $0x368] sm:$0xff]  ;;  %v3845_v18 = vsel %vm3843_vm10, 1, %v6561_v0  ;;  %v5531_v19 = vcombine.low %v629_v3, %v633_v4  ;;  %v6834_v3 = vld [vmem:[#allocation2 + $0x10] sm:$0xff] }
  0x6f   : > { %v5522_v13 = vcombine.high %v620_v5, %v624_v6  ;;  %v612_v16 = vld [vmem:[#allocation6 + $0x300] sm:$0xff]  ;;  %v5521_v20 = vcombine.low %v620_v5, %v624_v6  ;;  %v5524_v21 = vcombine.high %v621_v14, %v625_v15  ;;  %v613_v25 = vld [vmem:[#allocation6 + $0x308] sm:$0xff]  ;;  %v5523_v31 = vcombine.low %v621_v14, %v625_v15  ;;  %v6836_v4 = vld [vmem:[#allocation2 + $0x18] sm:$0xff] }
  0x70   : > { %3955 = vperm.xlu1 %6184, %v3950_v63   ;;  %3952 = vperm.xlu0 %6183, %v3949_v7   ;;  %v616_v17 = vld [vmem:[#allocation6 + $0x320] sm:$0xff]  ;;  %v617_v26 = vld [vmem:[#allocation6 + $0x328] sm:$0xff]  ;;  %v578_v63 = vld [vmem:[#allocation6 + $0x1f0] sm:$0xff] }
  0x71   : > { %1295 = vmatpush1.bf16.msra.mxu0 %v5433_v24  ;;  %1338 = vmatpush1.bf16.msra.mxu1 %v5435_v38  ;;  %v5514_v24 = vcombine.high %v612_v16, %v616_v17  ;;  %v604_v27 = vld [vmem:[#allocation6 + $0x2c0] sm:$0xff]  ;;  %v5513_v34 = vcombine.low %v612_v16, %v616_v17  ;;  %v5516_v35 = vcombine.high %v613_v25, %v617_v26  ;;  %v605_v37 = vld [vmem:[#allocation6 + $0x2c8] sm:$0xff]  ;;  %v575_v7 = vld [vmem:[#allocation6 + $0x1d8] sm:$0xff] }
  0x72   : > { %1296 = vmatprep.subr.bf16.mxu0 %v5426_v30  ;;  %1339 = vmatprep.subr.bf16.mxu1 %v5428_v41  ;;  %v608_v28 = vld [vmem:[#allocation6 + $0x2e0] sm:$0xff]  ;;  %v5003_v30 = vsel %vm5001_vm12, 1, %v6561_v0  ;;  %v609_v38 = vld [vmem:[#allocation6 + $0x2e8] sm:$0xff]  ;;  %v5515_v32 = vcombine.low %v613_v25, %v617_v26  ;;  %v567_v16 = vld [vmem:[#allocation6 + $0x198] sm:$0xff] }
  0x73   : > { %v5506_v36 = vcombine.high %v604_v27, %v608_v28  ;;  %v600_v41 = vld [vmem:[#allocation6 + $0x2a0] sm:$0xff]  ;;  %v5505_v33 = vcombine.low %v604_v27, %v608_v28  ;;  %v597_v45 = vld [vmem:[#allocation6 + $0x288] sm:$0xff]  ;;  %v571_v17 = vld [vmem:[#allocation6 + $0x1b8] sm:$0xff] }
  0x74   : > { %3851 = vperm.xlu1 %6184, %v3846_v11   ;;  %3848 = vperm.xlu0 %6183, %v3845_v18   ;;  %v601_v46 = vld [vmem:[#allocation6 + $0x2a8] sm:$0xff]  ;;  %v588_v47 = vld [vmem:[#allocation6 + $0x240] sm:$0xff]  ;;  %v6840_v11 = vpack.c.bf16 %v6836_v4, %v6834_v3  ;;  %v558_v18 = vld [vmem:[#allocation6 + $0x150] sm:$0xff]  ;;  %v5471_v28 = vcombine.low %v567_v16, %v571_v17 }
  0x75   : > { %1297 = vmatpush1.bf16.msra.mxu0 %v5425_v40  ;;  %1340 = vmatpush1.bf16.msra.mxu1 %v5427_v49  ;;  %v596_v40 = vld [vmem:[#allocation6 + $0x280] sm:$0xff]  ;;  %v5507_v49 = vcombine.low %v605_v37, %v609_v38  ;;  %v5500_v0 = vcombine.high %v597_v45, %v601_v46  ;;  %v589_v52 = vld [vmem:[#allocation6 + $0x248] sm:$0xff]  ;;  %v5499_v56 = vcombine.low %v597_v45, %v601_v46  ;;  %v563_v25 = vld [vmem:[#allocation6 + $0x178] sm:$0xff] }
  0x76   : > { %1298 = vmatprep.subr.bf16.mxu0 %v5418_v43  ;;  %1341 = vmatprep.subr.bf16.mxu1 %v5420_v51  ;;  %v5508_v43 = vcombine.high %v605_v37, %v609_v38  ;;  %v5498_v44 = vcombine.high %v596_v40, %v600_v41  ;;  %v592_v48 = vld [vmem:[#allocation6 + $0x260] sm:$0xff]  ;;  %v593_v53 = vld [vmem:[#allocation6 + $0x268] sm:$0xff]  ;;  %v550_v26 = vld [vmem:[#allocation6 + $0x110] sm:$0xff] }
  0x77   : > { %v5490_v51 = vcombine.high %v588_v47, %v592_v48  ;;  %v584_v55 = vld [vmem:[#allocation6 + $0x220] sm:$0xff]  ;;  %v5489_v57 = vcombine.low %v588_v47, %v592_v48  ;;  %v5492_v58 = vcombine.high %v589_v52, %v593_v53  ;;  %v5491_v1 = vcombine.low %v589_v52, %v593_v53  ;;  %v554_v27 = vld [vmem:[#allocation6 + $0x130] sm:$0xff]  ;;  %v535_v48 = vld [vmem:[#allocation6 + $0x98] sm:$0xff] }
  0x78   : > { %5009 = vperm.xlu1 %6184, %v5004_v22   ;;  %5006 = vperm.xlu0 %6183, %v5003_v30   ;;  %v5472_v22 = vcombine.high %v567_v16, %v571_v17  ;;  %v542_v37 = vld [vmem:[#allocation6 + $0xd0] sm:$0xff] }
  0x79   : > { %1299 = vmatpush1.bf16.msra.mxu0 %v5417_v50  ;;  %1342 = vmatpush1.bf16.msra.mxu1 %v5419_v60  ;;  %v5497_v50 = vcombine.low %v596_v40, %v600_v41  ;;  %v581_v60 = vld [vmem:[#allocation6 + $0x208] sm:$0xff]  ;;  %v546_v38 = vld [vmem:[#allocation6 + $0xf0] sm:$0xff]  ;;  %v5453_v40 = vcombine.low %v550_v26, %v554_v27 }
  0x7a   : > { %1300 = vmatprep.subr.bf16.mxu0 %v5538_v54  ;;  %1343 = vmatprep.subr.bf16.mxu1 %v5540_v62  ;;  %v580_v54 = vld [vmem:[#allocation6 + $0x200] sm:$0xff]  ;;  %v574_v62 = vld [vmem:[#allocation6 + $0x1d0] sm:$0xff]  ;;  %v5445_v45 = vcombine.low %v542_v37, %v546_v38 }
  0x7b   : > { %v5482_v59 = vcombine.high %v580_v54, %v584_v55  ;;  %v5478_v6 = vcombine.high %v574_v62, %v578_v63 }
  0x7c   : > { %5111 = vperm.xlu1 %6184, %v5106_v39   ;;  %5108 = vperm.xlu0 %6183, %v5105_v42   ;;  %v5446_v42 = vcombine.high %v542_v37, %v546_v38  ;;  %v615_v38 = vld [vmem:[#allocation6 + $0x318] sm:$0xff] }
  0x7d   : > { %1301 = vmatpush2.bf16.msra.mxu0 %v5537_v61  ;;  %1344 = vmatpush2.bf16.msra.mxu1 %v5539_v8  ;;  %v585_v61 = vld [vmem:[#allocation6 + $0x228] sm:$0xff]  ;;  %v579_v8 = vld [vmem:[#allocation6 + $0x1f8] sm:$0xff] }
  0x7e   : > { %1302 = vmatprep.subr.bf16.mxu0 %v5530_v2  ;;  %1345 = vmatprep.subr.bf16.mxu1 %v5532_v10  ;;  %v5481_v2 = vcombine.low %v580_v54, %v584_v55  ;;  %v5484_v5 = vcombine.high %v581_v60, %v585_v61  ;;  %v570_v10 = vld [vmem:[#allocation6 + $0x1b0] sm:$0xff]  ;;  %v5483_v12 = vcombine.low %v581_v60, %v585_v61  ;;  %v527_v55 = vld [vmem:[#allocation6 + $0x58] sm:$0xff] }
  0x7f   : > { %v5480_v14 = vcombine.high %v575_v7, %v579_v8 }
  0x81   : > { %1303 = vmatpush2.bf16.msra.mxu0 %v5529_v9  ;;  %1346 = vmatpush2.bf16.msra.mxu1 %v5531_v19  ;;  %v566_v9 = vld [vmem:[#allocation6 + $0x190] sm:$0xff] }
  0x82   : > { %1304 = vmatprep.subr.bf16.mxu0 %v5522_v13  ;;  %1347 = vmatprep.subr.bf16.mxu1 %v5524_v21  ;;  %v5477_v13 = vcombine.low %v574_v62, %v578_v63  ;;  %v5470_v15 = vcombine.high %v566_v9, %v570_v10  ;;  %v562_v19 = vld [vmem:[#allocation6 + $0x170] sm:$0xff]  ;;  %v5469_v21 = vcombine.low %v566_v9, %v570_v10  ;;  %v519_v63 = vld [vmem:[#allocation6 + $0x18] sm:$0xff] }
  0x83   : > { %v5462_v23 = vcombine.high %v558_v18, %v562_v19  ;;  %v5461_v30 = vcombine.low %v558_v18, %v562_v19  ;;  %v639_v10 = vld [vmem:[#allocation6 + $0x3d8] sm:$0xff] }
  0x84   : > { %v631_v19 = vld [vmem:[#allocation6 + $0x398] sm:$0xff] }
  0x85   : > { %1305 = vmatpush2.bf16.msra.mxu0 %v5521_v20  ;;  %1348 = vmatpush2.bf16.msra.mxu1 %v5523_v31  ;;  %v5479_v20 = vcombine.low %v575_v7, %v579_v8 }
  0x86   : > { %1306 = vmatprep.subr.bf16.mxu0 %v5514_v24  ;;  %1349 = vmatprep.subr.bf16.mxu1 %v5516_v35  ;;  %v559_v24 = vld [vmem:[#allocation6 + $0x158] sm:$0xff] }
  0x87   : > { %v5464_v31 = vcombine.high %v559_v24, %v563_v25  ;;  %v551_v35 = vld [vmem:[#allocation6 + $0x118] sm:$0xff]  ;;  %v5463_v39 = vcombine.low %v559_v24, %v563_v25 }
  0x89   : > { %1307 = vmatpush2.bf16.msra.mxu0 %v5513_v34  ;;  %1350 = vmatpush2.bf16.msra.mxu1 %v5515_v32  ;;  %v5454_v34 = vcombine.high %v550_v26, %v554_v27  ;;  %v543_v32 = vld [vmem:[#allocation6 + $0xd8] sm:$0xff] }
  0x8a   : > { %1308 = vmatprep.subr.bf16.mxu0 %v5506_v36  ;;  %1351 = vmatprep.subr.bf16.mxu1 %v5508_v43  ;;  %v555_v36 = vld [vmem:[#allocation6 + $0x138] sm:$0xff]  ;;  %v538_v43 = vld [vmem:[#allocation6 + $0xb0] sm:$0xff] }
  0x8b   : > { %v5456_v41 = vcombine.high %v551_v35, %v555_v36  ;;  %v623_v27 = vld [vmem:[#allocation6 + $0x358] sm:$0xff] }
  0x8d   : > { %1309 = vmatpush2.bf16.msra.mxu0 %v5505_v33  ;;  %1352 = vmatpush2.bf16.msra.mxu1 %v5507_v49  ;;  %v534_v33 = vld [vmem:[#allocation6 + $0x90] sm:$0xff]  ;;  %v539_v49 = vld [vmem:[#allocation6 + $0xb8] sm:$0xff] }
  0x8e   : > { %1310 = vmatprep.subr.bf16.mxu0 %v5498_v44  ;;  %1353 = vmatprep.subr.bf16.mxu1 %v5500_v0  ;;  %v5455_v44 = vcombine.low %v551_v35, %v555_v36  ;;  %v5438_v47 = vcombine.high %v534_v33, %v538_v43  ;;  %v530_v0 = vld [vmem:[#allocation6 + $0x70] sm:$0xff]  ;;  %v5437_v52 = vcombine.low %v534_v33, %v538_v43  ;;  %v607_v43 = vld [vmem:[#allocation6 + $0x2d8] sm:$0xff] }
  0x8f   : > { %v5440_v53 = vcombine.high %v535_v48, %v539_v49 }
  0x91   : > { %1311 = vmatpush2.bf16.msra.mxu0 %v5497_v50  ;;  %1354 = vmatpush2.bf16.msra.mxu1 %v5499_v56  ;;  %v526_v50 = vld [vmem:[#allocation6 + $0x50] sm:$0xff]  ;;  %v531_v56 = vld [vmem:[#allocation6 + $0x78] sm:$0xff] }
  0x92   : > { %1312 = vmatprep.subr.bf16.mxu0 %v5490_v51  ;;  %1355 = vmatprep.subr.bf16.mxu1 %v5492_v58  ;;  %v5430_v54 = vcombine.high %v526_v50, %v530_v0  ;;  %v522_v58 = vld [vmem:[#allocation6 + $0x30] sm:$0xff]  ;;  %v5429_v60 = vcombine.low %v526_v50, %v530_v0  ;;  %v5432_v61 = vcombine.high %v527_v55, %v531_v56  ;;  %v599_v0 = vld [vmem:[#allocation6 + $0x298] sm:$0xff] }
  0x95   : > { %1313 = vmatpush2.bf16.msra.mxu0 %v5489_v57  ;;  %1356 = vmatpush2.bf16.msra.mxu1 %v5491_v1  ;;  %v518_v57 = vld [vmem:[#allocation6 + $0x10] sm:$0xff]  ;;  %v523_v1 = vld [vmem:[#allocation6 + $0x38] sm:$0xff] }
  0x96   : > { %1314 = vmatprep.subr.bf16.mxu0 %v5482_v59  ;;  %1357 = vmatprep.subr.bf16.mxu1 %v5484_v5  ;;  %v5439_v59 = vcombine.low %v535_v48, %v539_v49  ;;  %v5422_v62 = vcombine.high %v518_v57, %v522_v58  ;;  %v642_v5 = vld [vmem:[#allocation6 + $0x3f0] sm:$0xff]  ;;  %v5421_v7 = vcombine.low %v518_v57, %v522_v58  ;;  %v591_v58 = vld [vmem:[#allocation6 + $0x258] sm:$0xff] }
  0x97   : > { %v5424_v8 = vcombine.high %v519_v63, %v523_v1 }
  0x99   : > { %1315 = vmatpush2.bf16.msra.mxu0 %v5481_v2  ;;  %1358 = vmatpush2.bf16.msra.mxu1 %v5483_v12  ;;  %v638_v2 = vld [vmem:[#allocation6 + $0x3d0] sm:$0xff]  ;;  %v643_v12 = vld [vmem:[#allocation6 + $0x3f8] sm:$0xff] }
  0x9a   : > { %1370 = vmatprep.subr.bf16.mxu0 %v5478_v6  ;;  %1413 = vmatprep.subr.bf16.mxu1 %v5480_v14  ;;  %v5431_v6 = vcombine.low %v527_v55, %v531_v56  ;;  %v5542_v9 = vcombine.high %v638_v2, %v642_v5  ;;  %v634_v14 = vld [vmem:[#allocation6 + $0x3b0] sm:$0xff]  ;;  %v5541_v16 = vcombine.low %v638_v2, %v642_v5  ;;  %v583_v5 = vld [vmem:[#allocation6 + $0x218] sm:$0xff] }
  0x9b   : > { %v5544_v17 = vcombine.high %v639_v10, %v643_v12 }
  0x9c   : > { %1317 = vmatmul.mubr.bf16.vlgmr.msra.gmra.mxu0 %v6840_v11  ;;  %1360 = vmatmul.mubr.bf16.vlgmr.msra.gmra.mxu1 %v6840_v11 }
  0x9d   : > { %1371 = vmatpush1.bf16.msra.mxu0 %v5477_v13  ;;  %1402 = vmatprep.mubr.bf16.mxu0 %v6796_v29  ;;  %v630_v13 = vld [vmem:[#allocation6 + $0x390] sm:$0xff] }
  0x9e   : > { %1372 = vmatprep.subr.bf16.mxu0 %v5470_v15  ;;  %1414 = vmatpush1.bf16.msra.mxu1 %v5479_v20  ;;  %v5423_v15 = vcombine.low %v519_v63, %v523_v1  ;;  %v5534_v18 = vcombine.high %v630_v13, %v634_v14  ;;  %v635_v20 = vld [vmem:[#allocation6 + $0x3b8] sm:$0xff]  ;;  %v5533_v24 = vcombine.low %v630_v13, %v634_v14  ;;  %v1734_v13 = vld [vmem:[#allocation6 + $0x1e0] sm:$0xff]  ;;  %v1731_v14 = vld [vmem:[#allocation6 + $0x1c8] sm:$0xff] }
  0x9f   : > { %1445 = vmatprep.mubr.bf16.mxu1 %v6796_v29  ;;  %1415 = vmatprep.subr.bf16.mxu1 %v5472_v22  ;;  %v547_v29 = vld [vmem:[#allocation6 + $0xf8] sm:$0xff]  ;;  %v626_v22 = vld [vmem:[#allocation6 + $0x370] sm:$0xff]  ;;  %v5536_v25 = vcombine.high %v631_v19, %v635_v20 }
  0xa0   : > { %v5448_v46 = vcombine.high %v543_v32, %v547_v29  ;;  %v5447_v51 = vcombine.low %v543_v32, %v547_v29 }
  0xa1   : > { %1373 = vmatpush1.bf16.msra.mxu0 %v5469_v21  ;;  %v622_v21 = vld [vmem:[#allocation6 + $0x350] sm:$0xff] }
  0xa2   : > { %1374 = vmatprep.subr.bf16.mxu0 %v5462_v23  ;;  %1416 = vmatpush1.bf16.msra.mxu1 %v5471_v28  ;;  %v5543_v23 = vcombine.low %v639_v10, %v643_v12  ;;  %v5526_v26 = vcombine.high %v622_v21, %v626_v22  ;;  %v627_v28 = vld [vmem:[#allocation6 + $0x378] sm:$0xff]  ;;  %v5525_v35 = vcombine.low %v622_v21, %v626_v22  ;;  %v1730_v12 = vld [vmem:[#allocation6 + $0x1c0] sm:$0xff]  ;;  %v1723_v22 = vld [vmem:[#allocation6 + $0x188] sm:$0xff] }
  0xa3   : > { %1417 = vmatprep.subr.bf16.mxu1 %v5464_v31  ;;  %v618_v31 = vld [vmem:[#allocation6 + $0x330] sm:$0xff]  ;;  %v5528_v36 = vcombine.high %v623_v27, %v627_v28  ;;  %v1726_v21 = vld [vmem:[#allocation6 + $0x1a0] sm:$0xff] }
  0xa5   : > { %1375 = vmatpush1.bf16.msra.mxu0 %v5461_v30  ;;  %v614_v30 = vld [vmem:[#allocation6 + $0x310] sm:$0xff] }
  0xa6   : > { %1376 = vmatprep.subr.bf16.mxu0 %v5454_v34  ;;  %1418 = vmatpush1.bf16.msra.mxu1 %v5463_v39  ;;  %v5535_v34 = vcombine.low %v631_v19, %v635_v20  ;;  %v5518_v37 = vcombine.high %v614_v30, %v618_v31  ;;  %v619_v39 = vld [vmem:[#allocation6 + $0x338] sm:$0xff]  ;;  %v5517_v32 = vcombine.low %v614_v30, %v618_v31  ;;  %v1722_v20 = vld [vmem:[#allocation6 + $0x180] sm:$0xff]  ;;  %v1715_v30 = vld [vmem:[#allocation6 + $0x148] sm:$0xff] }
  0xa7   : > { %1419 = vmatprep.subr.bf16.mxu1 %v5456_v41  ;;  %v610_v41 = vld [vmem:[#allocation6 + $0x2f0] sm:$0xff]  ;;  %v5520_v29 = vcombine.high %v615_v38, %v619_v39 }
  0xa9   : > { %1377 = vmatpush1.bf16.msra.mxu0 %v5453_v40  ;;  %v606_v40 = vld [vmem:[#allocation6 + $0x2d0] sm:$0xff] }
  0xaa   : > { %1378 = vmatprep.subr.bf16.mxu0 %v5446_v42  ;;  %1420 = vmatpush1.bf16.msra.mxu1 %v5455_v44  ;;  %v5527_v42 = vcombine.low %v623_v27, %v627_v28  ;;  %v5510_v33 = vcombine.high %v606_v40, %v610_v41  ;;  %v611_v44 = vld [vmem:[#allocation6 + $0x2f8] sm:$0xff]  ;;  %v5509_v48 = vcombine.low %v606_v40, %v610_v41  ;;  %v1714_v27 = vld [vmem:[#allocation6 + $0x140] sm:$0xff]  ;;  %v1707_v40 = vld [vmem:[#allocation6 + $0x108] sm:$0xff] }
  0xab   : > { %1421 = vmatprep.subr.bf16.mxu1 %v5448_v46  ;;  %v602_v46 = vld [vmem:[#allocation6 + $0x2b0] sm:$0xff]  ;;  %v5512_v49 = vcombine.high %v607_v43, %v611_v44  ;;  %v1718_v28 = vld [vmem:[#allocation6 + $0x160] sm:$0xff] }
  0xac   : > { %v5610_v31 = vcombine.high %v1714_v27, %v1718_v28 }
  0xad   : > { %1379 = vmatpush1.bf16.msra.mxu0 %v5445_v45  ;;  %v598_v45 = vld [vmem:[#allocation6 + $0x290] sm:$0xff] }
  0xae   : > { %1380 = vmatprep.subr.bf16.mxu0 %v5438_v47  ;;  %1422 = vmatpush1.bf16.msra.mxu1 %v5447_v51  ;;  %v5519_v47 = vcombine.low %v615_v38, %v619_v39  ;;  %v5502_v50 = vcombine.high %v598_v45, %v602_v46  ;;  %v603_v51 = vld [vmem:[#allocation6 + $0x2b8] sm:$0xff]  ;;  %v5501_v55 = vcombine.low %v598_v45, %v602_v46  ;;  %v1706_v38 = vld [vmem:[#allocation6 + $0x100] sm:$0xff]  ;;  %v1699_v45 = vld [vmem:[#allocation6 + $0xc8] sm:$0xff] }
  0xaf   : > { %1423 = vmatprep.subr.bf16.mxu1 %v5440_v53  ;;  %v594_v53 = vld [vmem:[#allocation6 + $0x270] sm:$0xff]  ;;  %v5504_v56 = vcombine.high %v599_v0, %v603_v51  ;;  %v1710_v39 = vld [vmem:[#allocation6 + $0x120] sm:$0xff] }
  0xb0   : > { %v5602_v41 = vcombine.high %v1706_v38, %v1710_v39 }
  0xb1   : > { %1381 = vmatpush1.bf16.msra.mxu0 %v5437_v52  ;;  %v590_v52 = vld [vmem:[#allocation6 + $0x250] sm:$0xff] }
  0xb2   : > { %1382 = vmatprep.subr.bf16.mxu0 %v5430_v54  ;;  %1424 = vmatpush1.bf16.msra.mxu1 %v5439_v59  ;;  %v5511_v54 = vcombine.low %v607_v43, %v611_v44  ;;  %v5494_v57 = vcombine.high %v590_v52, %v594_v53  ;;  %v595_v59 = vld [vmem:[#allocation6 + $0x278] sm:$0xff]  ;;  %v5493_v63 = vcombine.low %v590_v52, %v594_v53  ;;  %v1698_v43 = vld [vmem:[#allocation6 + $0xc0] sm:$0xff]  ;;  %v1691_v52 = vld [vmem:[#allocation6 + $0x88] sm:$0xff] }
  0xb3   : > { %1425 = vmatprep.subr.bf16.mxu1 %v5432_v61  ;;  %v586_v61 = vld [vmem:[#allocation6 + $0x230] sm:$0xff]  ;;  %v5496_v1 = vcombine.high %v591_v58, %v595_v59  ;;  %v1702_v44 = vld [vmem:[#allocation6 + $0xe0] sm:$0xff] }
  0xb4   : > { %v5594_v46 = vcombine.high %v1698_v43, %v1702_v44 }
  0xb5   : > { %1383 = vmatpush1.bf16.msra.mxu0 %v5429_v60  ;;  %v582_v60 = vld [vmem:[#allocation6 + $0x210] sm:$0xff] }
  0xb6   : > { %1384 = vmatprep.subr.bf16.mxu0 %v5422_v62  ;;  %1426 = vmatpush1.bf16.msra.mxu1 %v5431_v6  ;;  %v5503_v62 = vcombine.low %v599_v0, %v603_v51  ;;  %v5486_v2 = vcombine.high %v582_v60, %v586_v61  ;;  %v587_v6 = vld [vmem:[#allocation6 + $0x238] sm:$0xff]  ;;  %v1690_v0 = vld [vmem:[#allocation6 + $0x80] sm:$0xff] }
  0xb7   : > { %1427 = vmatprep.subr.bf16.mxu1 %v5424_v8  ;;  %v5485_v8 = vcombine.low %v582_v60, %v586_v61  ;;  %v5487_v10 = vcombine.low %v583_v5, %v587_v6  ;;  %v1694_v51 = vld [vmem:[#allocation6 + $0xa0] sm:$0xff]  ;;  %v1683_v60 = vld [vmem:[#allocation6 + $0x48] sm:$0xff] }
  0xb8   : > { %v5586_v53 = vcombine.high %v1690_v0, %v1694_v51 }
  0xb9   : > { %1385 = vmatpush1.bf16.msra.mxu0 %v5421_v7  ;;  %v5495_v7 = vcombine.low %v591_v58, %v595_v59  ;;  %v1682_v58 = vld [vmem:[#allocation6 + $0x40] sm:$0xff] }
  0xba   : > { %1386 = vmatprep.subr.bf16.mxu0 %v5542_v9  ;;  %1428 = vmatpush1.bf16.msra.mxu1 %v5423_v15  ;;  %v5488_v9 = vcombine.high %v583_v5, %v587_v6  ;;  %v5626_v15 = vcombine.high %v1730_v12, %v1734_v13  ;;  %v1686_v59 = vld [vmem:[#allocation6 + $0x60] sm:$0xff] }
  0xbb   : > { %1429 = vmatprep.subr.bf16.mxu1 %v5544_v17  ;;  %v5625_v17 = vcombine.low %v1730_v12, %v1734_v13  ;;  %v5578_v61 = vcombine.high %v1682_v58, %v1686_v59  ;;  %v1674_v5 = vld [vmem:[#allocation6] sm:$0xff] }
  0xbc   : > { %v1678_v6 = vld [vmem:[#allocation6 + $0x20] sm:$0xff] }
  0xbd   : > { %1387 = vmatpush2.bf16.msra.mxu0 %v5541_v16  ;;  %v1735_v16 = vld [vmem:[#allocation6 + $0x1e8] sm:$0xff] }
  0xbe   : > { %1388 = vmatprep.subr.bf16.mxu0 %v5534_v18  ;;  %1430 = vmatpush2.bf16.msra.mxu1 %v5543_v23  ;;  %v5627_v18 = vcombine.low %v1731_v14, %v1735_v16  ;;  %v5628_v19 = vcombine.high %v1731_v14, %v1735_v16  ;;  %v5618_v23 = vcombine.high %v1722_v20, %v1726_v21  ;;  %v1794_v14 = vld [vmem:[#allocation6 + $0x3c0] sm:$0xff]  ;;  %v1795_v16 = vld [vmem:[#allocation6 + $0x3c8] sm:$0xff] }
  0xbf   : > { %1431 = vmatprep.subr.bf16.mxu1 %v5536_v25  ;;  %v5617_v25 = vcombine.low %v1722_v20, %v1726_v21 }
  0xc1   : > { %1389 = vmatpush2.bf16.msra.mxu0 %v5533_v24  ;;  %v1727_v24 = vld [vmem:[#allocation6 + $0x1a8] sm:$0xff] }
  0xc2   : > { %1390 = vmatprep.subr.bf16.mxu0 %v5526_v26  ;;  %1432 = vmatpush2.bf16.msra.mxu1 %v5535_v34  ;;  %v5619_v26 = vcombine.low %v1723_v22, %v1727_v24  ;;  %v1719_v34 = vld [vmem:[#allocation6 + $0x168] sm:$0xff] }
  0xc3   : > { %1433 = vmatprep.subr.bf16.mxu1 %v5528_v36  ;;  %v5611_v36 = vcombine.low %v1715_v30, %v1719_v34 }
  0xc5   : > { %1391 = vmatpush2.bf16.msra.mxu0 %v5525_v35  ;;  %v5609_v35 = vcombine.low %v1714_v27, %v1718_v28 }
  0xc6   : > { %1392 = vmatprep.subr.bf16.mxu0 %v5518_v37  ;;  %1434 = vmatpush2.bf16.msra.mxu1 %v5527_v42  ;;  %v5612_v37 = vcombine.high %v1715_v30, %v1719_v34  ;;  %v1711_v42 = vld [vmem:[#allocation6 + $0x128] sm:$0xff]  ;;  %v1778_v30 = vld [vmem:[#allocation6 + $0x340] sm:$0xff] }
  0xc7   : > { %1435 = vmatprep.subr.bf16.mxu1 %v5520_v29  ;;  %v5603_v29 = vcombine.low %v1707_v40, %v1711_v42  ;;  %v1779_v34 = vld [vmem:[#allocation6 + $0x348] sm:$0xff] }
  0xc9   : > { %1393 = vmatpush2.bf16.msra.mxu0 %v5517_v32  ;;  %v5601_v32 = vcombine.low %v1706_v38, %v1710_v39 }
  0xca   : > { %1394 = vmatprep.subr.bf16.mxu0 %v5510_v33  ;;  %1436 = vmatpush2.bf16.msra.mxu1 %v5519_v47  ;;  %v5604_v33 = vcombine.high %v1707_v40, %v1711_v42  ;;  %v1703_v47 = vld [vmem:[#allocation6 + $0xe8] sm:$0xff]  ;;  %v1770_v40 = vld [vmem:[#allocation6 + $0x300] sm:$0xff] }
  0xcb   : > { %1437 = vmatprep.subr.bf16.mxu1 %v5512_v49  ;;  %v5595_v49 = vcombine.low %v1699_v45, %v1703_v47  ;;  %v1771_v42 = vld [vmem:[#allocation6 + $0x308] sm:$0xff] }
  0xcd   : > { %1395 = vmatpush2.bf16.msra.mxu0 %v5509_v48  ;;  %v5593_v48 = vcombine.low %v1698_v43, %v1702_v44 }
  0xce   : > { %1396 = vmatprep.subr.bf16.mxu0 %v5502_v50  ;;  %1438 = vmatpush2.bf16.msra.mxu1 %v5511_v54  ;;  %v5596_v50 = vcombine.high %v1699_v45, %v1703_v47  ;;  %v1695_v54 = vld [vmem:[#allocation6 + $0xa8] sm:$0xff]  ;;  %v1762_v45 = vld [vmem:[#allocation6 + $0x2c0] sm:$0xff] }
  0xcf   : > { %1439 = vmatprep.subr.bf16.mxu1 %v5504_v56  ;;  %v5587_v56 = vcombine.low %v1691_v52, %v1695_v54  ;;  %v1763_v47 = vld [vmem:[#allocation6 + $0x2c8] sm:$0xff] }
  0xd1   : > { %1397 = vmatpush2.bf16.msra.mxu0 %v5501_v55  ;;  %v5585_v55 = vcombine.low %v1690_v0, %v1694_v51 }
  0xd2   : > { %1398 = vmatprep.subr.bf16.mxu0 %v5494_v57  ;;  %1440 = vmatpush2.bf16.msra.mxu1 %v5503_v62  ;;  %v5588_v57 = vcombine.high %v1691_v52, %v1695_v54  ;;  %v1687_v62 = vld [vmem:[#allocation6 + $0x68] sm:$0xff]  ;;  %v1754_v52 = vld [vmem:[#allocation6 + $0x280] sm:$0xff] }
  0xd3   : > { %1441 = vmatprep.subr.bf16.mxu1 %v5496_v1  ;;  %v5579_v1 = vcombine.low %v1683_v60, %v1687_v62  ;;  %v1755_v54 = vld [vmem:[#allocation6 + $0x288] sm:$0xff] }
  0xd5   : > { %1399 = vmatpush2.bf16.msra.mxu0 %v5493_v63  ;;  %v5577_v63 = vcombine.low %v1682_v58, %v1686_v59 }
  0xd6   : > { %1400 = vmatprep.subr.bf16.mxu0 %v5486_v2  ;;  %1442 = vmatpush2.bf16.msra.mxu1 %v5495_v7  ;;  %v5580_v2 = vcombine.high %v1683_v60, %v1687_v62  ;;  %v1675_v7 = vld [vmem:[#allocation6 + $0x8] sm:$0xff]  ;;  %v1746_v60 = vld [vmem:[#allocation6 + $0x240] sm:$0xff] }
  0xd7   : > { %1443 = vmatprep.subr.bf16.mxu1 %v5488_v9  ;;  %v1679_v9 = vld [vmem:[#allocation6 + $0x28] sm:$0xff] }
  0xd8   : > { %v5571_v12 = vcombine.low %v1675_v7, %v1679_v9  ;;  %v5572_v13 = vcombine.high %v1675_v7, %v1679_v9  ;;  %v1747_v62 = vld [vmem:[#allocation6 + $0x248] sm:$0xff]  ;;  %v1738_v7 = vld [vmem:[#allocation6 + $0x200] sm:$0xff] }
  0xd9   : > { %1401 = vmatpush2.bf16.msra.mxu0 %v5485_v8  ;;  %v5570_v8 = vcombine.high %v1674_v5, %v1678_v6  ;;  %v1456_v9 = vld [vmem:[%s6745_s7] sm:$0xff] }
  0xda   : > { %1444 = vmatpush2.bf16.msra.mxu1 %v5487_v10  ;;  %2442 = vmatprep.subr.bf16.mxu0 %v5626_v15  ;;  %v5569_v10 = vcombine.low %v1674_v5, %v1678_v6  ;;  %v1798_v15 = vld [vmem:[#allocation6 + $0x3e0] sm:$0xff] }
  0xdb   : > { %2485 = vmatprep.subr.bf16.mxu1 %v5628_v19  ;;  %v5689_v19 = vcombine.low %v1794_v14, %v1798_v15 }
  0xdc   : > { %1403 = vmatmul.mubr.bf16.vlgmr.msra.gmra.mxu0 %v6840_v11 }
  0xdd   : > { %1446 = vmatmul.mubr.bf16.vlgmr.msra.gmra.mxu1 %v6840_v11  ;;  %2443 = vmatpush1.bf16.msra.mxu0 %v5625_v17  ;;  %v5620_v11 = vcombine.high %v1723_v22, %v1727_v24  ;;  %v5690_v17 = vcombine.high %v1794_v14, %v1798_v15  ;;  %v1786_v22 = vld [vmem:[#allocation6 + $0x380] sm:$0xff]  ;;  %v1787_v24 = vld [vmem:[#allocation6 + $0x388] sm:$0xff] }
  0xde   : > { %2486 = vmatpush1.bf16.msra.mxu1 %v5627_v18  ;;  %2444 = vmatprep.subr.bf16.mxu0 %v5618_v23  ;;  %v1799_v18 = vld [vmem:[#allocation6 + $0x3e8] sm:$0xff]  ;;  %v1790_v23 = vld [vmem:[#allocation6 + $0x3a0] sm:$0xff] }
  0xdf   : > { %2487 = vmatprep.subr.bf16.mxu1 %v5620_v11  ;;  %v5691_v20 = vcombine.low %v1795_v16, %v1799_v18  ;;  %v5692_v21 = vcombine.high %v1795_v16, %v1799_v18  ;;  %v5681_v11 = vcombine.low %v1786_v22, %v1790_v23  ;;  %v6849_v18 = vld [vmem:[#allocation6 + $0x1d0] sm:$0xff] }
  0xe1   : > { %2445 = vmatpush1.bf16.msra.mxu0 %v5617_v25  ;;  %v5682_v25 = vcombine.high %v1786_v22, %v1790_v23  ;;  %v6858_v23 = vld [vmem:[#allocation6 + $0x1f8] sm:$0xff] }
  0xe2   : > { %2488 = vmatpush1.bf16.msra.mxu1 %v5619_v26  ;;  %2446 = vmatprep.subr.bf16.mxu0 %v5610_v31  ;;  %v1791_v26 = vld [vmem:[#allocation6 + $0x3a8] sm:$0xff]  ;;  %v1782_v31 = vld [vmem:[#allocation6 + $0x360] sm:$0xff] }
  0xe3   : > { %2489 = vmatprep.subr.bf16.mxu1 %v5612_v37  ;;  %v5683_v27 = vcombine.low %v1787_v24, %v1791_v26  ;;  %v5684_v28 = vcombine.high %v1787_v24, %v1791_v26  ;;  %v5673_v37 = vcombine.low %v1778_v30, %v1782_v31  ;;  %v1461_v24 = vunpack.c.h.bf16 %v1456_v9 }
  0xe5   : > { %2447 = vmatpush1.bf16.msra.mxu0 %v5609_v35  ;;  %v5674_v35 = vcombine.high %v1778_v30, %v1782_v31 }
  0xe6   : > { %2490 = vmatpush1.bf16.msra.mxu1 %v5611_v36  ;;  %2448 = vmatprep.subr.bf16.mxu0 %v5602_v41  ;;  %v1783_v36 = vld [vmem:[#allocation6 + $0x368] sm:$0xff]  ;;  %v1774_v41 = vld [vmem:[#allocation6 + $0x320] sm:$0xff] }
  0xe7   : > { %2491 = vmatprep.subr.bf16.mxu1 %v5604_v33  ;;  %v5675_v38 = vcombine.low %v1779_v34, %v1783_v36  ;;  %v5676_v39 = vcombine.high %v1779_v34, %v1783_v36  ;;  %v5665_v33 = vcombine.low %v1770_v40, %v1774_v41 }
  0xe9   : > { %2449 = vmatpush1.bf16.msra.mxu0 %v5601_v32  ;;  %v5666_v32 = vcombine.high %v1770_v40, %v1774_v41 }
  0xea   : > { %2492 = vmatpush1.bf16.msra.mxu1 %v5603_v29  ;;  %2450 = vmatprep.subr.bf16.mxu0 %v5594_v46  ;;  %v1775_v29 = vld [vmem:[#allocation6 + $0x328] sm:$0xff]  ;;  %v1766_v46 = vld [vmem:[#allocation6 + $0x2e0] sm:$0xff] }
  0xeb   : > { %2493 = vmatprep.subr.bf16.mxu1 %v5596_v50  ;;  %v5667_v43 = vcombine.low %v1771_v42, %v1775_v29  ;;  %v5668_v44 = vcombine.high %v1771_v42, %v1775_v29  ;;  %v5657_v50 = vcombine.low %v1762_v45, %v1766_v46 }
  0xed   : > { %2451 = vmatpush1.bf16.msra.mxu0 %v5593_v48  ;;  %v5658_v48 = vcombine.high %v1762_v45, %v1766_v46  ;;  %v1459_v46 = vld [vmem:[%s6745_s7 + $0x18] sm:$0xff] }
  0xee   : > { %2494 = vmatpush1.bf16.msra.mxu1 %v5595_v49  ;;  %2452 = vmatprep.subr.bf16.mxu0 %v5586_v53  ;;  %v1767_v49 = vld [vmem:[#allocation6 + $0x2e8] sm:$0xff]  ;;  %v1758_v53 = vld [vmem:[#allocation6 + $0x2a0] sm:$0xff] }
  0xef   : > { %2495 = vmatprep.subr.bf16.mxu1 %v5588_v57  ;;  %v5659_v0 = vcombine.low %v1763_v47, %v1767_v49  ;;  %v5660_v51 = vcombine.high %v1763_v47, %v1767_v49  ;;  %v5649_v57 = vcombine.low %v1754_v52, %v1758_v53  ;;  %v1467_v49 = vunpack.c.h.bf16 %v1459_v46 }
  0xf1   : > { %2453 = vmatpush1.bf16.msra.mxu0 %v5585_v55  ;;  %v5650_v55 = vcombine.high %v1754_v52, %v1758_v53 }
  0xf2   : > { %2496 = vmatpush1.bf16.msra.mxu1 %v5587_v56  ;;  %2454 = vmatprep.subr.bf16.mxu0 %v5578_v61  ;;  %v1759_v56 = vld [vmem:[#allocation6 + $0x2a8] sm:$0xff]  ;;  %v1750_v61 = vld [vmem:[#allocation6 + $0x260] sm:$0xff] }
  0xf3   : > { %2497 = vmatprep.subr.bf16.mxu1 %v5580_v2  ;;  %v5651_v58 = vcombine.low %v1755_v54, %v1759_v56  ;;  %v5652_v59 = vcombine.high %v1755_v54, %v1759_v56  ;;  %v5641_v2 = vcombine.low %v1746_v60, %v1750_v61  ;;  %v1466_v54 = vunpack.c.l.bf16 %v1459_v46 }
  0xf5   : > { %2455 = vmatpush1.bf16.msra.mxu0 %v5577_v63  ;;  %v5642_v63 = vcombine.high %v1746_v60, %v1750_v61 }
  0xf6   : > { %2498 = vmatpush1.bf16.msra.mxu1 %v5579_v1  ;;  %2456 = vmatprep.subr.bf16.mxu0 %v5570_v8  ;;  %v1751_v1 = vld [vmem:[#allocation6 + $0x268] sm:$0xff]  ;;  %v1742_v8 = vld [vmem:[#allocation6 + $0x220] sm:$0xff] }
  0xf7   : > { %2499 = vmatprep.subr.bf16.mxu1 %v5572_v13  ;;  %v5643_v5 = vcombine.low %v1747_v62, %v1751_v1  ;;  %v5644_v6 = vcombine.high %v1747_v62, %v1751_v1  ;;  %v5633_v13 = vcombine.low %v1738_v7, %v1742_v8  ;;  %v5634_v14 = vcombine.high %v1738_v7, %v1742_v8  ;;  %v510_v7 = vld [vmem:[#allocation3] sm:$0xff] }
  0xf9   : > { %2457 = vmatpush1.bf16.msra.mxu0 %v5569_v10  ;;  %v1739_v10 = vld [vmem:[#allocation6 + $0x208] sm:$0xff] }
  0xfa   : > { %2500 = vmatpush1.bf16.msra.mxu1 %v5571_v12  ;;  %2458 = vmatprep.subr.bf16.mxu0 %v5690_v17  ;;  %v1743_v12 = vld [vmem:[#allocation6 + $0x228] sm:$0xff]  ;;  %v1460_v17 = vunpack.c.l.bf16 %v1456_v9 }
  0xfb   : > { %2501 = vmatprep.subr.bf16.mxu1 %v5692_v21  ;;  %v5635_v15 = vcombine.low %v1739_v10, %v1743_v12  ;;  %v5636_v16 = vcombine.high %v1739_v10, %v1743_v12  ;;  %v1458_v21 = vld [vmem:[%s6745_s7 + $0x10] sm:$0xff] }
  0xfc   : > { %v1464_v30 = vunpack.c.l.bf16 %v1458_v21  ;;  %v1465_v36 = vunpack.c.h.bf16 %v1458_v21 }
  0xfd   : > { %2459 = vmatpush2.bf16.msra.mxu0 %v5689_v19  ;;  %v6851_v19 = vld [vmem:[#allocation6 + $0x1f0] sm:$0xff] }
  0xfe   : > { %2502 = vmatpush2.bf16.msra.mxu1 %v5691_v20  ;;  %2460 = vmatprep.subr.bf16.mxu0 %v5682_v25  ;;  %v6853_v20 = vld [vmem:[#allocation6 + $0x1d8] sm:$0xff]  ;;  %v5630_v22 = vcombine.high %v6849_v18, %v6851_v19  ;;  %v5629_v25 = vcombine.low %v6849_v18, %v6851_v19 }
  0xff   : > { %2503 = vmatprep.subr.bf16.mxu1 %v5684_v28  ;;  %v5631_v26 = vcombine.low %v6853_v20, %v6858_v23 }
 0x101   : > { %2461 = vmatpush2.bf16.msra.mxu0 %v5681_v11  ;;  %v5632_v11 = vcombine.high %v6853_v20, %v6858_v23 }
 0x102   : > { %2504 = vmatpush2.bf16.msra.mxu1 %v5683_v27  ;;  %2462 = vmatprep.subr.bf16.mxu0 %v5674_v35 }
 0x103   : > { %2505 = vmatprep.subr.bf16.mxu1 %v5676_v39  ;;  %v1457_v39 = vld [vmem:[%s6745_s7 + $0x8] sm:$0xff] }
 0x104   : > { %v1462_v47 = vunpack.c.l.bf16 %v1457_v39 }
 0x105   : > { %2463 = vmatpush2.bf16.msra.mxu0 %v5673_v37 }
 0x106   : > { %2506 = vmatpush2.bf16.msra.mxu1 %v5675_v38  ;;  %2464 = vmatprep.subr.bf16.mxu0 %v5666_v32 }
 0x107   : > { %2507 = vmatprep.subr.bf16.mxu1 %v5668_v44 }
 0x109   : > { %2465 = vmatpush2.bf16.msra.mxu0 %v5665_v33 }
 0x10a   : > { %2508 = vmatpush2.bf16.msra.mxu1 %v5667_v43  ;;  %2466 = vmatprep.subr.bf16.mxu0 %v5658_v48  ;;  %v1463_v43 = vunpack.c.h.bf16 %v1457_v39 }
 0x10b   : > { %2509 = vmatprep.subr.bf16.mxu1 %v5660_v51 }
 0x10d   : > { %2467 = vmatpush2.bf16.msra.mxu0 %v5657_v50 }
 0x10e   : > { %2510 = vmatpush2.bf16.msra.mxu1 %v5659_v0  ;;  %2468 = vmatprep.subr.bf16.mxu0 %v5650_v55 }
 0x10f   : > { %2511 = vmatprep.subr.bf16.mxu1 %v5652_v59 }
 0x111   : > { %2469 = vmatpush2.bf16.msra.mxu0 %v5649_v57 }
 0x112   : > { %2512 = vmatpush2.bf16.msra.mxu1 %v5651_v58  ;;  %2470 = vmatprep.subr.bf16.mxu0 %v5642_v63 }
 0x113   : > { %2513 = vmatprep.subr.bf16.mxu1 %v5644_v6 }
 0x115   : > { %2471 = vmatpush2.bf16.msra.mxu0 %v5641_v2 }
 0x116   : > { %2514 = vmatpush2.bf16.msra.mxu1 %v5643_v5  ;;  %2472 = vmatprep.subr.bf16.mxu0 %v5634_v14  ;;  %v1532_v5 = vpop.permute.xlu1 %1531 }
 0x117   : > { %2515 = vmatprep.subr.bf16.mxu1 %v5636_v16  ;;  %vm1536_vm0 = vcmp.eq.s32.totalorder %v1532_v5, 1 }
 0x119   : > { %2473 = vmatpush2.bf16.msra.mxu0 %v5633_v13 }
 0x11a   : > { %2516 = vmatpush2.bf16.msra.mxu1 %v5635_v15  ;;  %2528 = vmatprep.subr.bf16.mxu0 %v5630_v22  ;;  %v512_v15 = vld [vmem:[#allocation3 + $0x8] sm:$0xff]  ;;  %v1535_v21 = vpop.permute.xlu1 %1534 }
 0x11b   : > { %2571 = vmatprep.subr.bf16.mxu1 %v5632_v11  ;;  %vm1537_vm1 = vcmp.eq.s32.totalorder %v1535_v21, 1 }
 0x15c   : > { %v1318_v27 = vpop.f32.mrf.mxu0  ;;  %v1361_v37 = vpop.f32.mrf.mxu1 }
 0x15d   : > { %v1468_v28 = vadd.f32 %v1460_v17, %v1318_v27  ;;  %v1470_v0 = vadd.f32 %v1462_v47, %v1361_v37 }
 0x15e   : > { %v1320_v31 = vpop.f32.mrf.mxu0  ;;  %v1363_v42 = vpop.f32.mrf.mxu1 }
 0x15f   : > { %v5545_v34 = vmul.f32 -1.442695, %v1468_v28  ;;  %v1469_v35 = vadd.f32 %v1461_v24, %v1320_v31  ;;  %v1471_v48 = vadd.f32 %v1463_v43, %v1363_v42 }
 0x160   : > { %v1322_v38 = vpop.f32.mrf.mxu0  ;;  %v1365_v45 = vpop.f32.mrf.mxu1 }
 0x161   : > { %6185 = vpow2.f32 %v5545_v34  ;;  %v5547_v40 = vmul.f32 -1.442695, %v1469_v35  ;;  %v1472_v41 = vadd.f32 %v1464_v30, %v1322_v38  ;;  %v5549_v51 = vmul.f32 -1.442695, %v1471_v48 }
 0x162   : > { %v1324_v32 = vpop.f32.mrf.mxu0  ;;  %v1367_v50 = vpop.f32.mrf.mxu1  ;;  %v1474_v60 = vadd.f32 %v1466_v54, %v1365_v45 }
 0x163   : > { %6187 = vpow2.f32 %v5547_v40  ;;  %v5546_v29 = vmul.f32 -1.442695, %v1472_v41  ;;  %v1473_v33 = vadd.f32 %v1465_v36, %v1324_v32  ;;  %v1475_v52 = vadd.f32 %v1467_v49, %v1367_v50  ;;  %v5554_v40 = vld [vmem:[%s6747_s28 + $0x60] sm:$0xff] }
 0x164   : > { %v1564_v45 = vunpack.c.h.bf16 %v5554_v40 }
 0x165   : > { %6189 = vpow2.f32 %v5546_v29  ;;  %v5548_v44 = vmul.f32 -1.442695, %v1473_v33  ;;  %v5550_v57 = vmul.f32 -1.442695, %v1475_v52  ;;  %v1563_v33 = vunpack.c.l.bf16 %v5554_v40  ;;  %v513_v40 = vld [vmem:[#allocation3 + $0x10] sm:$0xff] }
 0x167   : > { %6191 = vpow2.f32 %v5548_v44  ;;  %v5556_v44 = vld [vmem:[%s6747_s28 + $0x70] sm:$0xff] }
 0x168   : > { %6193 = vtanh.f32 %v1470_v0  ;;  %v1568_v0 = vunpack.c.h.bf16 %v5556_v44 }
 0x169   : > { %6195 = vpow2.f32 %v5549_v51 }
 0x16e   : > { %v6186_v53 = vpop.eup %6185 }
 0x16f   : > { %v1482_v55 = vadd.f32 1.0, %v6186_v53 }
 0x170   : > { %v6188_v56 = vpop.eup %6187 }
 0x171   : > { %6197 = vrcp.f32 %v1482_v55  ;;  %v1494_v58 = vadd.f32 1.0, %v6188_v56 }
 0x172   : > { %v6190_v59 = vpop.eup %6189 }
 0x173   : > { %6199 = vrcp.f32 %v1494_v58  ;;  %v1483_v61 = vadd.f32 1.0, %v6190_v59  ;;  %v5555_v58 = vld [vmem:[%s6747_s28 + $0x68] sm:$0xff] }
 0x174   : > { %v6192_v62 = vpop.eup %6191  ;;  %6201 = vpow2.f32 %v5550_v57 }
 0x175   : > { %6203 = vrcp.f32 %v1483_v61  ;;  %v1495_v63 = vadd.f32 1.0, %v6192_v62  ;;  %v6194_v1 = vpop.eup %6193  ;;  %v5557_v61 = vld [vmem:[%s6747_s28 + $0x78] sm:$0xff]  ;;  %v1566_v62 = vunpack.c.h.bf16 %v5555_v58 }
 0x176   : > { %6205 = vtanh.f32 %v1474_v60  ;;  %v6196_v2 = vpop.eup %6195 }
 0x177   : > { %6207 = vrcp.f32 %v1495_v63  ;;  %v1508_v8 = vadd.f32 1.0, %v6196_v2  ;;  %v1565_v63 = vunpack.c.l.bf16 %v5555_v58 }
 0x179   : > { %6209 = vrcp.f32 %v1508_v8 }
 0x17e   : > { %v6198_v6 = vpop.eup %6197 }
 0x17f   : > { %v1516_v9 = vmul.f32 %v6198_v6, %v6194_v1  ;;  %v1570_v1 = vunpack.c.h.bf16 %v5557_v61 }
 0x180   : > { %v6200_v10 = vpop.eup %6199 }
 0x181   : > { %v6202_v12 = vpop.eup %6201  ;;  %v1514_v13 = vmul.f32 %v6200_v10, %v510_v7  ;;  %v1569_v10 = vunpack.c.l.bf16 %v5557_v61  ;;  %v1725_v61 = vld [vmem:[#allocation6 + $0x198] sm:$0xff] }
 0x182   : > { %v6204_v14 = vpop.eup %6203  ;;  %v1509_v24 = vadd.f32 1.0, %v6202_v12 }
 0x183   : > { %v6206_v16 = vpop.eup %6205  ;;  %v1518_v17 = vadd.f32 %v1516_v9, %v1514_v13 }
 0x184   : > { %v6208_v22 = vpop.eup %6207  ;;  %v1517_v28 = vmul.f32 %v6206_v16, %v6204_v14 }
 0x185   : > { %6211 = vtanh.f32 %v1518_v17  ;;  %v1542_v11 = vsel %vm1536_vm0, %v1518_v17, %v510_v7  ;;  %v1515_v27 = vmul.f32 %v6208_v22, %v512_v15 }
 0x186   : > { %1544 = vst [vmem:[#allocation3] sm:$0xff] %v1542_v11  ;;  %6213 = vrcp.f32 %v1509_v24  ;;  %v6210_v34 = vpop.eup %6209 }
 0x187   : > { %v1519_v30 = vadd.f32 %v1517_v28, %v1515_v27  ;;  %v511_v28 = vld [vmem:[#allocation3 + $0x18] sm:$0xff] }
 0x189   : > { %6215 = vtanh.f32 %v1519_v30  ;;  %v1543_v31 = vsel %vm1537_vm1, %v1519_v30, %v512_v15 }
 0x18a   : > { %1545 = vst [vmem:[#allocation3 + $0x8] sm:$0xff] %v1543_v31  ;;  %v1637_v31 = vpop.permute.xlu0 %1636 }
 0x18b   : > { %vm1641_vm2 = vcmp.eq.s32.totalorder %v1637_v31, 1 }
 0x192   : > { %v6212_v35 = vpop.eup %6211 }
 0x193   : > { %v1522_v36 = vmul.f32 %v6212_v35, %v6210_v34  ;;  %v6214_v37 = vpop.eup %6213 }
 0x195   : > { %v6872_v38 = vsel %vm1536_vm0, %v1522_v36, %v6834_v3  ;;  %v1546_v42 = vsel %vm1536_vm0, %v1522_v36, 0.0  ;;  %v1567_v3 = vunpack.c.l.bf16 %v5556_v44 }
 0x196   : > { %v6216_v39 = vpop.eup %6215 }
 0x197   : > { %v1523_v41 = vmul.f32 %v6216_v39, %v6214_v37 }
 0x199   : > { %v6878_v32 = vsel %vm1537_vm1, %v1523_v41, %v6836_v4  ;;  %v1547_v29 = vsel %vm1537_vm1, %v1523_v41, 0.0 }
 0x19a   : > { %v6060_v43 = vpack.c.bf16 %v1547_v29, %v1546_v42 }
 0x19c   : > { %6061 = vst [vmem:[%s6766_s16] sm:$0xff] %v6060_v43   ;;  %v1404_v46 = vpop.f32.mrf.mxu0 }
 0x19d   : > { %v1571_v47 = vadd.f32 %v1563_v33, %v1404_v46  ;;  %v1447_v51 = vpop.f32.mrf.mxu1 }
 0x19e   : > { %v1406_v48 = vpop.f32.mrf.mxu0  ;;  %v1573_v6 = vadd.f32 %v1565_v63, %v1447_v51 }
 0x19f   : > { %v5558_v49 = vmul.f32 -1.442695, %v1571_v47  ;;  %v1572_v50 = vadd.f32 %v1564_v45, %v1406_v48  ;;  %v1449_v54 = vpop.f32.mrf.mxu1  ;;  %v1640_v45 = vpop.permute.xlu0 %1639 }
 0x1a0   : > { %v1408_v52 = vpop.f32.mrf.mxu0  ;;  %v1574_v5 = vadd.f32 %v1566_v62, %v1449_v54  ;;  %vm1642_vm3 = vcmp.eq.s32.totalorder %v1640_v45, 1  ;;  %v6441_v54 = vld [vmem:[#allocation2] sm:$0xff]  ;;  %v1729_v62 = vld [vmem:[#allocation6 + $0x1b8] sm:$0xff] }
 0x1a1   : > { %6217 = vpow2.f32 %v5558_v49  ;;  %v5560_v4 = vmul.f32 -1.442695, %v1572_v50  ;;  %v1575_v53 = vadd.f32 %v1567_v3, %v1408_v52  ;;  %v1451_v60 = vpop.f32.mrf.mxu1  ;;  %v1689_v45 = vld [vmem:[#allocation6 + $0x78] sm:$0xff] }
 0x1a2   : > { %v1410_v55 = vpop.f32.mrf.mxu0  ;;  %v5562_v9 = vmul.f32 -1.442695, %v1574_v5  ;;  %v1577_v17 = vadd.f32 %v1569_v10, %v1451_v60  ;;  %v1728_v60 = vld [vmem:[#allocation6 + $0x1b0] sm:$0xff]  ;;  %v1721_v10 = vld [vmem:[#allocation6 + $0x178] sm:$0xff] }
 0x1a3   : > { %6219 = vpow2.f32 %v5560_v4  ;;  %v5559_v56 = vmul.f32 -1.442695, %v1575_v53  ;;  %v1576_v57 = vadd.f32 %v1568_v0, %v1410_v55  ;;  %v1453_v2 = vpop.f32.mrf.mxu1  ;;  %v1724_v53 = vld [vmem:[#allocation6 + $0x190] sm:$0xff] }
 0x1a4   : > { %v1578_v7 = vadd.f32 %v1570_v1, %v1453_v2  ;;  %v6903_v2 = vpack.c.bf16 %v6878_v32, %v6872_v38  ;;  %v1716_v5 = vld [vmem:[#allocation6 + $0x150] sm:$0xff] }
 0x1a5   : > { %6221 = vpow2.f32 %v5559_v56  ;;  %v5561_v59 = vmul.f32 -1.442695, %v1576_v57  ;;  %v6442_v57 = vld [vmem:[#allocation2 + $0x8] sm:$0xff] }
 0x1a6   : > { %v5563_v14 = vmul.f32 -1.442695, %v1578_v7  ;;  %v5624_v7 = vcombine.high %v1725_v61, %v1729_v62 }
 0x1a7   : > { %6223 = vpow2.f32 %v5561_v59 }
 0x1a8   : > { %6225 = vtanh.f32 %v1573_v6  ;;  %v5622_v6 = vcombine.high %v1724_v53, %v1728_v60 }
 0x1ae   : > { %v6218_v8 = vpop.eup %6217 }
 0x1af   : > { %v1585_v12 = vadd.f32 1.0, %v6218_v8  ;;  %v1720_v8 = vld [vmem:[#allocation6 + $0x170] sm:$0xff] }
 0x1b0   : > { %v6220_v13 = vpop.eup %6219  ;;  %v5613_v18 = vcombine.low %v1716_v5, %v1720_v8 }
 0x1b1   : > { %6227 = vrcp.f32 %v1585_v12  ;;  %v1597_v15 = vadd.f32 1.0, %v6220_v13  ;;  %v5621_v12 = vcombine.low %v1724_v53, %v1728_v60  ;;  %v5623_v13 = vcombine.low %v1725_v61, %v1729_v62  ;;  %v1797_v60 = vld [vmem:[#allocation6 + $0x3d8] sm:$0xff] }
 0x1b2   : > { %v6222_v16 = vpop.eup %6221  ;;  %6229 = vpow2.f32 %v5562_v9  ;;  %v1717_v9 = vld [vmem:[#allocation6 + $0x158] sm:$0xff] }
 0x1b3   : > { %6231 = vrcp.f32 %v1597_v15  ;;  %v1586_v21 = vadd.f32 1.0, %v6222_v16  ;;  %v5616_v15 = vcombine.high %v1717_v9, %v1721_v10  ;;  %v1708_v16 = vld [vmem:[#allocation6 + $0x110] sm:$0xff]  ;;  %v5615_v19 = vcombine.low %v1717_v9, %v1721_v10  ;;  %v1801_v61 = vld [vmem:[#allocation6 + $0x3f8] sm:$0xff] }
 0x1b4   : > { %v6224_v22 = vpop.eup %6223  ;;  %6233 = vpow2.f32 %v5563_v14  ;;  %v5614_v14 = vcombine.high %v1716_v5, %v1720_v8  ;;  %v5696_v5 = vcombine.high %v1797_v60, %v1801_v61  ;;  %v1789_v8 = vld [vmem:[#allocation6 + $0x398] sm:$0xff] }
 0x1b5   : > { %6235 = vrcp.f32 %v1586_v21  ;;  %v1598_v24 = vadd.f32 1.0, %v6224_v22  ;;  %v6226_v11 = vpop.eup %6225  ;;  %v1709_v21 = vld [vmem:[#allocation6 + $0x118] sm:$0xff] }
 0x1b6   : > { %6237 = vtanh.f32 %v1577_v17  ;;  %v1712_v17 = vld [vmem:[#allocation6 + $0x130] sm:$0xff]  ;;  %v1713_v22 = vld [vmem:[#allocation6 + $0x138] sm:$0xff] }
 0x1b7   : > { %6239 = vrcp.f32 %v1598_v24  ;;  %v5606_v20 = vcombine.high %v1708_v16, %v1712_v17  ;;  %v5608_v23 = vcombine.high %v1709_v21, %v1713_v22  ;;  %v1701_v24 = vld [vmem:[#allocation6 + $0xd8] sm:$0xff] }
 0x1b8   : > { %v1793_v9 = vld [vmem:[#allocation6 + $0x3b8] sm:$0xff] }
 0x1be   : > { %v6228_v27 = vpop.eup %6227 }
 0x1bf   : > { %v6230_v30 = vpop.eup %6229  ;;  %v1619_v37 = vmul.f32 %v6228_v27, %v6226_v11  ;;  %v1705_v11 = vld [vmem:[#allocation6 + $0xf8] sm:$0xff]  ;;  %v5605_v27 = vcombine.low %v1708_v16, %v1712_v17  ;;  %v1784_v16 = vld [vmem:[#allocation6 + $0x370] sm:$0xff] }
 0x1c0   : > { %v6232_v34 = vpop.eup %6231  ;;  %v1611_v42 = vadd.f32 1.0, %v6230_v30  ;;  %v5600_v31 = vcombine.high %v1701_v24, %v1705_v11  ;;  %v1781_v17 = vld [vmem:[#allocation6 + $0x358] sm:$0xff] }
 0x1c1   : > { %v6234_v35 = vpop.eup %6233  ;;  %v1617_v36 = vmul.f32 %v6232_v34, %v511_v28  ;;  %v1692_v34 = vld [vmem:[#allocation6 + $0x90] sm:$0xff] }
 0x1c2   : > { %v6236_v39 = vpop.eup %6235  ;;  %v1612_v43 = vadd.f32 1.0, %v6234_v35  ;;  %v1696_v35 = vld [vmem:[#allocation6 + $0xb0] sm:$0xff] }
 0x1c3   : > { %v6238_v41 = vpop.eup %6237  ;;  %v1621_v29 = vadd.f32 %v1619_v37, %v1617_v36  ;;  %v1693_v36 = vld [vmem:[#allocation6 + $0x98] sm:$0xff] }
 0x1c4   : > { %v6240_v33 = vpop.eup %6239  ;;  %v1620_v47 = vmul.f32 %v6238_v41, %v6236_v39  ;;  %v1697_v37 = vld [vmem:[#allocation6 + $0xb8] sm:$0xff]  ;;  %v5590_v41 = vcombine.high %v1692_v34, %v1696_v35 }
 0x1c5   : > { %6241 = vtanh.f32 %v1621_v29  ;;  %v6886_v44 = vsel %vm1641_vm2, %v1621_v29, %v511_v28  ;;  %v1618_v46 = vmul.f32 %v6240_v33, %v513_v40  ;;  %v5607_v28 = vcombine.low %v1709_v21, %v1713_v22  ;;  %v1684_v29 = vld [vmem:[#allocation6 + $0x50] sm:$0xff]  ;;  %v1785_v21 = vld [vmem:[#allocation6 + $0x378] sm:$0xff] }
 0x1c6   : > { %6243 = vrcp.f32 %v1611_v42  ;;  %v5592_v42 = vcombine.high %v1693_v36, %v1697_v37  ;;  %v1688_v33 = vld [vmem:[#allocation6 + $0x70] sm:$0xff] }
 0x1c7   : > { %v1622_v3 = vadd.f32 %v1620_v47, %v1618_v46  ;;  %6245 = vrcp.f32 %v1612_v43  ;;  %v1685_v43 = vld [vmem:[#allocation6 + $0x58] sm:$0xff]  ;;  %v5589_v46 = vcombine.low %v1692_v34, %v1696_v35  ;;  %v5591_v47 = vcombine.low %v1693_v36, %v1697_v37  ;;  %v1768_v34 = vld [vmem:[#allocation6 + $0x2f0] sm:$0xff] }
 0x1c8   : > { %v5583_v53 = vcombine.low %v1685_v43, %v1689_v45  ;;  %v1765_v35 = vld [vmem:[#allocation6 + $0x2d8] sm:$0xff] }
 0x1c9   : > { %6247 = vtanh.f32 %v1622_v3  ;;  %v6889_v48 = vsel %vm1642_vm3, %v1622_v3, %v513_v40  ;;  %v5599_v40 = vcombine.low %v1701_v24, %v1705_v11  ;;  %v5582_v3 = vcombine.high %v1684_v29, %v1688_v33  ;;  %v1777_v24 = vld [vmem:[#allocation6 + $0x338] sm:$0xff] }
 0x1ca   : > { %v1769_v36 = vld [vmem:[#allocation6 + $0x2f8] sm:$0xff] }
 0x1d2   : > { %v6242_v49 = vpop.eup %6241 }
 0x1d3   : > { %v6244_v50 = vpop.eup %6243 }
 0x1d4   : > { %v6246_v0 = vpop.eup %6245  ;;  %v1625_v51 = vmul.f32 %v6244_v50, %v6242_v49  ;;  %v5584_v49 = vcombine.high %v1685_v43, %v1689_v45  ;;  %v1676_v50 = vld [vmem:[#allocation6 + $0x10] sm:$0xff]  ;;  %v1761_v43 = vld [vmem:[#allocation6 + $0x2b8] sm:$0xff] }
 0x1d6   : > { %v6248_v52 = vpop.eup %6247  ;;  %v6892_v55 = vsel %vm1641_vm2, %v1625_v51, %v6441_v54  ;;  %v1651_v56 = vsel %vm1641_vm2, %v1625_v51, 0.0  ;;  %v1677_v51 = vld [vmem:[#allocation6 + $0x18] sm:$0xff] }
 0x1d7   : > { %v1626_v4 = vmul.f32 %v6248_v52, %v6246_v0  ;;  %v1680_v0 = vld [vmem:[#allocation6 + $0x30] sm:$0xff]  ;;  %v1681_v52 = vld [vmem:[#allocation6 + $0x38] sm:$0xff] }
 0x1d8   : > { %v5574_v54 = vcombine.high %v1676_v50, %v1680_v0  ;;  %v5573_v62 = vcombine.low %v1676_v50, %v1680_v0  ;;  %v1752_v50 = vld [vmem:[#allocation6 + $0x270] sm:$0xff]  ;;  %v1749_v0 = vld [vmem:[#allocation6 + $0x258] sm:$0xff] }
 0x1d9   : > { %v6896_v58 = vsel %vm1642_vm3, %v1626_v4, %v6442_v57  ;;  %v1652_v59 = vsel %vm1642_vm3, %v1626_v4, 0.0  ;;  %v5581_v4 = vcombine.low %v1684_v29, %v1688_v33  ;;  %v1796_v57 = vld [vmem:[#allocation6 + $0x3d0] sm:$0xff]  ;;  %v1757_v33 = vld [vmem:[#allocation6 + $0x298] sm:$0xff] }
 0x1da   : > { %v6065_v63 = vpack.c.bf16 %v1652_v59, %v1651_v56  ;;  %v1673_v1 = vpack.c.bf16 %v6896_v58, %v6892_v55  ;;  %v5576_v56 = vcombine.high %v1677_v51, %v1681_v52  ;;  %v1800_v59 = vld [vmem:[#allocation6 + $0x3f0] sm:$0xff] }
 0x1db   : > { %v5693_v10 = vcombine.low %v1796_v57, %v1800_v59  ;;  %v1760_v29 = vld [vmem:[#allocation6 + $0x2b0] sm:$0xff] }
 0x1dc   : > { %6097 = vst [vmem:[%s6781_s23 + $0x18] sm:$0xff] %v6065_v63   ;;  %2474 = vmatprep.mubr.bf16.mxu0 %v1673_v1  ;;  %2517 = vmatprep.mubr.bf16.mxu1 %v1673_v1  ;;  %v5575_v63 = vcombine.low %v1677_v51, %v1681_v52  ;;  %v1753_v51 = vld [vmem:[#allocation6 + $0x278] sm:$0xff] }
 0x1dd   : > { %2475 = vmatmul.mubr.bf16.vlgmr.msra.gmra.mxu0 %v6903_v2  ;;  %2518 = vmatmul.mubr.bf16.vlgmr.msra.gmra.mxu1 %v6903_v2 }
 0x1de   : > { %2529 = vmatpush1.bf16.msra.mxu0 %v5629_v25  ;;  %2572 = vmatpush1.bf16.msra.mxu1 %v5631_v26  ;;  %v1700_v25 = vld [vmem:[#allocation6 + $0xd0] sm:$0xff] }
 0x1df   : > { %2560 = vmatprep.mubr.bf16.mxu0 %v1673_v1  ;;  %2603 = vmatprep.mubr.bf16.mxu1 %v1673_v1  ;;  %v1704_v26 = vld [vmem:[#allocation6 + $0xf0] sm:$0xff]  ;;  %v5694_v1 = vcombine.high %v1796_v57, %v1800_v59  ;;  %v1741_v59 = vld [vmem:[#allocation6 + $0x218] sm:$0xff] }
 0x1e0   : > { %2530 = vmatprep.subr.bf16.mxu0 %v5622_v6  ;;  %2573 = vmatprep.subr.bf16.mxu1 %v5624_v7  ;;  %v5598_v30 = vcombine.high %v1700_v25, %v1704_v26  ;;  %v5597_v39 = vcombine.low %v1700_v25, %v1704_v26  ;;  %v1788_v6 = vld [vmem:[#allocation6 + $0x390] sm:$0xff]  ;;  %v1773_v26 = vld [vmem:[#allocation6 + $0x318] sm:$0xff] }
 0x1e1   : > { %v1792_v7 = vld [vmem:[#allocation6 + $0x3b0] sm:$0xff] }
 0x1e2   : > { %2531 = vmatpush1.bf16.msra.mxu0 %v5621_v12  ;;  %2574 = vmatpush1.bf16.msra.mxu1 %v5623_v13  ;;  %v5695_v12 = vcombine.low %v1797_v60, %v1801_v61  ;;  %v5686_v13 = vcombine.high %v1788_v6, %v1792_v7  ;;  %v5685_v22 = vcombine.low %v1788_v6, %v1792_v7  ;;  %v1776_v25 = vld [vmem:[#allocation6 + $0x330] sm:$0xff]  ;;  %v1745_v60 = vld [vmem:[#allocation6 + $0x238] sm:$0xff]  ;;  %v2888_v7 = vld [vmem:[#allocation6 + $0x1c0] sm:$0xff] }
 0x1e3   : > { %2532 = vmatprep.subr.bf16.mxu0 %v5614_v14  ;;  %2575 = vmatprep.subr.bf16.mxu1 %v5616_v15  ;;  %v5688_v14 = vcombine.high %v1789_v8, %v1793_v9  ;;  %v1780_v15 = vld [vmem:[#allocation6 + $0x350] sm:$0xff]  ;;  %v5639_v6 = vcombine.low %v1741_v59, %v1745_v60 }
 0x1e4   : > { %v5677_v11 = vcombine.low %v1780_v15, %v1784_v16  ;;  %v1744_v57 = vld [vmem:[#allocation6 + $0x230] sm:$0xff] }
 0x1e6   : > { %2533 = vmatpush1.bf16.msra.mxu0 %v5613_v18  ;;  %2576 = vmatpush1.bf16.msra.mxu1 %v5615_v19  ;;  %v5687_v18 = vcombine.low %v1789_v8, %v1793_v9  ;;  %v5678_v19 = vcombine.high %v1780_v15, %v1784_v16  ;;  %v2892_v8 = vld [vmem:[#allocation6 + $0x1e0] sm:$0xff]  ;;  %v2889_v9 = vld [vmem:[#allocation6 + $0x1c8] sm:$0xff] }
 0x1e7   : > { %2534 = vmatprep.subr.bf16.mxu0 %v5606_v20  ;;  %2577 = vmatprep.subr.bf16.mxu1 %v5608_v23  ;;  %v5680_v20 = vcombine.high %v1781_v17, %v1785_v21  ;;  %v1772_v23 = vld [vmem:[#allocation6 + $0x310] sm:$0xff]  ;;  %v2880_v16 = vld [vmem:[#allocation6 + $0x180] sm:$0xff] }
 0x1e8   : > { %v5669_v37 = vcombine.low %v1772_v23, %v1776_v25 }
 0x1ea   : > { %2535 = vmatpush1.bf16.msra.mxu0 %v5605_v27  ;;  %2578 = vmatpush1.bf16.msra.mxu1 %v5607_v28  ;;  %v5679_v27 = vcombine.low %v1781_v17, %v1785_v21  ;;  %v5670_v28 = vcombine.high %v1772_v23, %v1776_v25  ;;  %v2884_v17 = vld [vmem:[#allocation6 + $0x1a0] sm:$0xff]  ;;  %v2881_v21 = vld [vmem:[#allocation6 + $0x188] sm:$0xff] }
 0x1eb   : > { %2536 = vmatprep.subr.bf16.mxu0 %v5598_v30  ;;  %2579 = vmatprep.subr.bf16.mxu1 %v5600_v31  ;;  %v5672_v30 = vcombine.high %v1773_v26, %v1777_v24  ;;  %v1764_v31 = vld [vmem:[#allocation6 + $0x2d0] sm:$0xff]  ;;  %v2872_v23 = vld [vmem:[#allocation6 + $0x140] sm:$0xff] }
 0x1ec   : > { %v5661_v45 = vcombine.low %v1764_v31, %v1768_v34  ;;  %v2876_v25 = vld [vmem:[#allocation6 + $0x160] sm:$0xff] }
 0x1ee   : > { %2537 = vmatpush1.bf16.msra.mxu0 %v5597_v39  ;;  %2580 = vmatpush1.bf16.msra.mxu1 %v5599_v40  ;;  %v5671_v39 = vcombine.low %v1773_v26, %v1777_v24  ;;  %v5662_v40 = vcombine.high %v1764_v31, %v1768_v34  ;;  %v2873_v26 = vld [vmem:[#allocation6 + $0x148] sm:$0xff]  ;;  %v5766_v24 = vcombine.high %v2872_v23, %v2876_v25  ;;  %v2864_v31 = vld [vmem:[#allocation6 + $0x100] sm:$0xff] }
 0x1ef   : > { %2538 = vmatprep.subr.bf16.mxu0 %v5590_v41  ;;  %2581 = vmatprep.subr.bf16.mxu1 %v5592_v42  ;;  %v5664_v41 = vcombine.high %v1765_v35, %v1769_v36  ;;  %v1756_v42 = vld [vmem:[#allocation6 + $0x290] sm:$0xff]  ;;  %v2868_v34 = vld [vmem:[#allocation6 + $0x120] sm:$0xff] }
 0x1f0   : > { %v5653_v52 = vcombine.low %v1756_v42, %v1760_v29 }
 0x1f2   : > { %2539 = vmatpush1.bf16.msra.mxu0 %v5589_v46  ;;  %2582 = vmatpush1.bf16.msra.mxu1 %v5591_v47  ;;  %v5663_v46 = vcombine.low %v1765_v35, %v1769_v36  ;;  %v5654_v47 = vcombine.high %v1756_v42, %v1760_v29  ;;  %v2865_v35 = vld [vmem:[#allocation6 + $0x108] sm:$0xff]  ;;  %v5758_v36 = vcombine.high %v2864_v31, %v2868_v34  ;;  %v2856_v42 = vld [vmem:[#allocation6 + $0xc0] sm:$0xff] }
 0x1f3   : > { %2540 = vmatprep.subr.bf16.mxu0 %v5582_v3  ;;  %2583 = vmatprep.subr.bf16.mxu1 %v5584_v49  ;;  %v5656_v3 = vcombine.high %v1757_v33, %v1761_v43  ;;  %v1748_v49 = vld [vmem:[#allocation6 + $0x250] sm:$0xff]  ;;  %v2860_v29 = vld [vmem:[#allocation6 + $0xe0] sm:$0xff] }
 0x1f4   : > { %v5645_v61 = vcombine.low %v1748_v49, %v1752_v50 }
 0x1f6   : > { %2541 = vmatpush1.bf16.msra.mxu0 %v5581_v4  ;;  %2584 = vmatpush1.bf16.msra.mxu1 %v5583_v53  ;;  %v5655_v4 = vcombine.low %v1757_v33, %v1761_v43  ;;  %v5646_v53 = vcombine.high %v1748_v49, %v1752_v50  ;;  %v2857_v33 = vld [vmem:[#allocation6 + $0xc8] sm:$0xff]  ;;  %v5750_v43 = vcombine.high %v2856_v42, %v2860_v29  ;;  %v2848_v49 = vld [vmem:[#allocation6 + $0x80] sm:$0xff] }
 0x1f7   : > { %2542 = vmatprep.subr.bf16.mxu0 %v5574_v54  ;;  %2585 = vmatprep.subr.bf16.mxu1 %v5576_v56  ;;  %v5648_v54 = vcombine.high %v1749_v0, %v1753_v51  ;;  %v1740_v56 = vld [vmem:[#allocation6 + $0x210] sm:$0xff]  ;;  %v2852_v50 = vld [vmem:[#allocation6 + $0xa0] sm:$0xff] }
 0x1fa   : > { %2543 = vmatpush1.bf16.msra.mxu0 %v5573_v62  ;;  %2586 = vmatpush1.bf16.msra.mxu1 %v5575_v63  ;;  %v5647_v62 = vcombine.low %v1749_v0, %v1753_v51  ;;  %v5638_v63 = vcombine.high %v1740_v56, %v1744_v57  ;;  %v2849_v0 = vld [vmem:[#allocation6 + $0x88] sm:$0xff]  ;;  %v5742_v51 = vcombine.high %v2848_v49, %v2852_v50 }
 0x1fb   : > { %2544 = vmatprep.subr.bf16.mxu0 %v5694_v1  ;;  %2587 = vmatprep.subr.bf16.mxu1 %v5696_v5  ;;  %v5640_v1 = vcombine.high %v1741_v59, %v1745_v60  ;;  %v5637_v5 = vcombine.low %v1740_v56, %v1744_v57  ;;  %v2840_v56 = vld [vmem:[#allocation6 + $0x40] sm:$0xff]  ;;  %v2841_v59 = vld [vmem:[#allocation6 + $0x48] sm:$0xff] }
 0x1fc   : > { %v2844_v57 = vld [vmem:[#allocation6 + $0x60] sm:$0xff] }
 0x1fd   : > { %v5734_v60 = vcombine.high %v2840_v56, %v2844_v57 }
 0x1fe   : > { %2545 = vmatpush2.bf16.msra.mxu0 %v5693_v10  ;;  %2588 = vmatpush2.bf16.msra.mxu1 %v5695_v12  ;;  %v2893_v10 = vld [vmem:[#allocation6 + $0x1e8] sm:$0xff]  ;;  %v5781_v12 = vcombine.low %v2888_v7, %v2892_v8 }
 0x1ff   : > { %2546 = vmatprep.subr.bf16.mxu0 %v5686_v13  ;;  %2589 = vmatprep.subr.bf16.mxu1 %v5688_v14  ;;  %v5782_v13 = vcombine.high %v2888_v7, %v2892_v8  ;;  %v5783_v14 = vcombine.low %v2889_v9, %v2893_v10  ;;  %v5784_v15 = vcombine.high %v2889_v9, %v2893_v10  ;;  %v2833_v7 = vld [vmem:[#allocation6 + $0x8] sm:$0xff] }
 0x200   : > { %v2837_v9 = vld [vmem:[#allocation6 + $0x28] sm:$0xff] }
 0x202   : > { %2547 = vmatpush2.bf16.msra.mxu0 %v5685_v22  ;;  %2590 = vmatpush2.bf16.msra.mxu1 %v5687_v18  ;;  %v2885_v22 = vld [vmem:[#allocation6 + $0x1a8] sm:$0xff]  ;;  %v5773_v18 = vcombine.low %v2880_v16, %v2884_v17 }
 0x203   : > { %2548 = vmatprep.subr.bf16.mxu0 %v5678_v19  ;;  %2591 = vmatprep.subr.bf16.mxu1 %v5680_v20  ;;  %v5774_v19 = vcombine.high %v2880_v16, %v2884_v17  ;;  %v5775_v20 = vcombine.low %v2881_v21, %v2885_v22  ;;  %v2953_v16 = vld [vmem:[#allocation6 + $0x3c8] sm:$0xff] }
 0x206   : > { %2549 = vmatpush2.bf16.msra.mxu0 %v5677_v11  ;;  %2592 = vmatpush2.bf16.msra.mxu1 %v5679_v27  ;;  %v2877_v11 = vld [vmem:[#allocation6 + $0x168] sm:$0xff]  ;;  %v5765_v27 = vcombine.low %v2872_v23, %v2876_v25 }
 0x207   : > { %2550 = vmatprep.subr.bf16.mxu0 %v5670_v28  ;;  %2593 = vmatprep.subr.bf16.mxu1 %v5672_v30  ;;  %v5767_v28 = vcombine.low %v2873_v26, %v2877_v11  ;;  %v5768_v30 = vcombine.high %v2873_v26, %v2877_v11  ;;  %v2945_v23 = vld [vmem:[#allocation6 + $0x388] sm:$0xff] }
 0x208   : > { %v2949_v26 = vld [vmem:[#allocation6 + $0x3a8] sm:$0xff] }
 0x209   : > { %v5839_v11 = vcombine.low %v2945_v23, %v2949_v26 }
 0x20a   : > { %2551 = vmatpush2.bf16.msra.mxu0 %v5669_v37  ;;  %2594 = vmatpush2.bf16.msra.mxu1 %v5671_v39  ;;  %v2869_v37 = vld [vmem:[#allocation6 + $0x128] sm:$0xff]  ;;  %v5757_v39 = vcombine.low %v2864_v31, %v2868_v34 }
 0x20b   : > { %2552 = vmatprep.subr.bf16.mxu0 %v5662_v40  ;;  %2595 = vmatprep.subr.bf16.mxu1 %v5664_v41  ;;  %v5759_v40 = vcombine.low %v2865_v35, %v2869_v37  ;;  %v5760_v41 = vcombine.high %v2865_v35, %v2869_v37  ;;  %v2937_v31 = vld [vmem:[#allocation6 + $0x348] sm:$0xff] }
 0x20c   : > { %v2941_v35 = vld [vmem:[#allocation6 + $0x368] sm:$0xff] }
 0x20d   : > { %v5831_v37 = vcombine.low %v2937_v31, %v2941_v35 }
 0x20e   : > { %2553 = vmatpush2.bf16.msra.mxu0 %v5661_v45  ;;  %2596 = vmatpush2.bf16.msra.mxu1 %v5663_v46  ;;  %v2861_v45 = vld [vmem:[#allocation6 + $0xe8] sm:$0xff]  ;;  %v5749_v46 = vcombine.low %v2856_v42, %v2860_v29 }
 0x20f   : > { %2554 = vmatprep.subr.bf16.mxu0 %v5654_v47  ;;  %2597 = vmatprep.subr.bf16.mxu1 %v5656_v3  ;;  %v5751_v47 = vcombine.low %v2857_v33, %v2861_v45  ;;  %v5752_v3 = vcombine.high %v2857_v33, %v2861_v45  ;;  %v2929_v42 = vld [vmem:[#allocation6 + $0x308] sm:$0xff] }
 0x210   : > { %v2933_v33 = vld [vmem:[#allocation6 + $0x328] sm:$0xff] }
 0x211   : > { %v5823_v45 = vcombine.low %v2929_v42, %v2933_v33 }
 0x212   : > { %2555 = vmatpush2.bf16.msra.mxu0 %v5653_v52  ;;  %2598 = vmatpush2.bf16.msra.mxu1 %v5655_v4  ;;  %v2853_v52 = vld [vmem:[#allocation6 + $0xa8] sm:$0xff]  ;;  %v5741_v4 = vcombine.low %v2848_v49, %v2852_v50 }
 0x213   : > { %2556 = vmatprep.subr.bf16.mxu0 %v5646_v53  ;;  %2599 = vmatprep.subr.bf16.mxu1 %v5648_v54  ;;  %v5743_v53 = vcombine.low %v2849_v0, %v2853_v52  ;;  %v5744_v54 = vcombine.high %v2849_v0, %v2853_v52  ;;  %v2921_v49 = vld [vmem:[#allocation6 + $0x2c8] sm:$0xff] }
 0x214   : > { %v2925_v0 = vld [vmem:[#allocation6 + $0x2e8] sm:$0xff] }
 0x215   : > { %v5815_v52 = vcombine.low %v2921_v49, %v2925_v0 }
 0x216   : > { %2557 = vmatpush2.bf16.msra.mxu0 %v5645_v61  ;;  %2600 = vmatpush2.bf16.msra.mxu1 %v5647_v62  ;;  %v2845_v61 = vld [vmem:[#allocation6 + $0x68] sm:$0xff]  ;;  %v5733_v62 = vcombine.low %v2840_v56, %v2844_v57 }
 0x217   : > { %2558 = vmatprep.subr.bf16.mxu0 %v5638_v63  ;;  %2601 = vmatprep.subr.bf16.mxu1 %v5640_v1  ;;  %v5735_v63 = vcombine.low %v2841_v59, %v2845_v61  ;;  %v5736_v1 = vcombine.high %v2841_v59, %v2845_v61  ;;  %v2913_v56 = vld [vmem:[#allocation6 + $0x288] sm:$0xff] }
 0x218   : > { %v2917_v59 = vld [vmem:[#allocation6 + $0x2a8] sm:$0xff] }
 0x219   : > { %v5807_v61 = vcombine.low %v2913_v56, %v2917_v59 }
 0x21a   : > { %2559 = vmatpush2.bf16.msra.mxu0 %v5637_v5  ;;  %2602 = vmatpush2.bf16.msra.mxu1 %v5639_v6  ;;  %v2832_v5 = vld [vmem:[#allocation6] sm:$0xff] }
 0x21b   : > { %3600 = vmatprep.subr.bf16.mxu0 %v5782_v13  ;;  %3643 = vmatprep.subr.bf16.mxu1 %v5784_v15  ;;  %v2836_v6 = vld [vmem:[#allocation6 + $0x20] sm:$0xff]  ;;  %v5728_v13 = vcombine.high %v2833_v7, %v2837_v9 }
 0x21c   : > { %v5726_v8 = vcombine.high %v2832_v5, %v2836_v6  ;;  %v5725_v10 = vcombine.low %v2832_v5, %v2836_v6  ;;  %v2956_v15 = vld [vmem:[#allocation6 + $0x3e0] sm:$0xff]  ;;  %v2905_v5 = vld [vmem:[#allocation6 + $0x248] sm:$0xff] }
 0x21d   : > { %2561 = vmatmul.mubr.bf16.vlgmr.msra.gmra.mxu0 %v6903_v2  ;;  %2604 = vmatmul.mubr.bf16.vlgmr.msra.gmra.mxu1 %v6903_v2  ;;  %v5776_v2 = vcombine.high %v2881_v21, %v2885_v22  ;;  %v2957_v21 = vld [vmem:[#allocation6 + $0x3e8] sm:$0xff] }
 0x21e   : > { %3601 = vmatpush1.bf16.msra.mxu0 %v5781_v12  ;;  %3644 = vmatpush1.bf16.msra.mxu1 %v5783_v14  ;;  %v5727_v12 = vcombine.low %v2833_v7, %v2837_v9  ;;  %v2952_v14 = vld [vmem:[#allocation6 + $0x3c0] sm:$0xff]  ;;  %v2909_v7 = vld [vmem:[#allocation6 + $0x268] sm:$0xff] }
 0x21f   : > { %3602 = vmatprep.subr.bf16.mxu0 %v5774_v19  ;;  %3645 = vmatprep.subr.bf16.mxu1 %v5776_v2  ;;  %v5846_v17 = vcombine.high %v2952_v14, %v2956_v15  ;;  %v5845_v22 = vcombine.low %v2952_v14, %v2956_v15  ;;  %v5848_v19 = vcombine.high %v2953_v16, %v2957_v21  ;;  %v2948_v2 = vld [vmem:[#allocation6 + $0x3a0] sm:$0xff]  ;;  %v2897_v15 = vld [vmem:[#allocation6 + $0x208] sm:$0xff] }
 0x220   : > { %v2900_v14 = vld [vmem:[#allocation6 + $0x220] sm:$0xff] }
 0x222   : > { %3603 = vmatpush1.bf16.msra.mxu0 %v5773_v18  ;;  %3646 = vmatpush1.bf16.msra.mxu1 %v5775_v20  ;;  %v5847_v18 = vcombine.low %v2953_v16, %v2957_v21  ;;  %v2944_v20 = vld [vmem:[#allocation6 + $0x380] sm:$0xff]  ;;  %v2901_v21 = vld [vmem:[#allocation6 + $0x228] sm:$0xff] }
 0x223   : > { %3604 = vmatprep.subr.bf16.mxu0 %v5766_v24  ;;  %3647 = vmatprep.subr.bf16.mxu1 %v5768_v30  ;;  %v5838_v25 = vcombine.high %v2944_v20, %v2948_v2  ;;  %v5837_v24 = vcombine.low %v2944_v20, %v2948_v2  ;;  %v2940_v30 = vld [vmem:[#allocation6 + $0x360] sm:$0xff]  ;;  %v5792_v20 = vcombine.high %v2897_v15, %v2901_v21 }
 0x226   : > { %3605 = vmatpush1.bf16.msra.mxu0 %v5765_v27  ;;  %3648 = vmatpush1.bf16.msra.mxu1 %v5767_v28  ;;  %v5840_v27 = vcombine.high %v2945_v23, %v2949_v26  ;;  %v2936_v28 = vld [vmem:[#allocation6 + $0x340] sm:$0xff]  ;;  %v6920_v26 = vld [vmem:[#allocation6 + $0x1f0] sm:$0xff] }
 0x227   : > { %3606 = vmatprep.subr.bf16.mxu0 %v5758_v36  ;;  %3649 = vmatprep.subr.bf16.mxu1 %v5760_v41  ;;  %v5830_v34 = vcombine.high %v2936_v28, %v2940_v30  ;;  %v5829_v36 = vcombine.low %v2936_v28, %v2940_v30  ;;  %v2932_v41 = vld [vmem:[#allocation6 + $0x320] sm:$0xff] }
 0x22a   : > { %3607 = vmatpush1.bf16.msra.mxu0 %v5757_v39  ;;  %3650 = vmatpush1.bf16.msra.mxu1 %v5759_v40  ;;  %v5832_v39 = vcombine.high %v2937_v31, %v2941_v35  ;;  %v2928_v40 = vld [vmem:[#allocation6 + $0x300] sm:$0xff]  ;;  %v6926_v31 = vld [vmem:[#allocation6 + $0x1f8] sm:$0xff] }
 0x22b   : > { %3608 = vmatprep.subr.bf16.mxu0 %v5750_v43  ;;  %3651 = vmatprep.subr.bf16.mxu1 %v5752_v3  ;;  %v5822_v29 = vcombine.high %v2928_v40, %v2932_v41  ;;  %v5821_v43 = vcombine.low %v2928_v40, %v2932_v41  ;;  %v2924_v3 = vld [vmem:[#allocation6 + $0x2e0] sm:$0xff] }
 0x22e   : > { %3609 = vmatpush1.bf16.msra.mxu0 %v5749_v46  ;;  %3652 = vmatpush1.bf16.msra.mxu1 %v5751_v47  ;;  %v5824_v46 = vcombine.high %v2929_v42, %v2933_v33  ;;  %v2920_v47 = vld [vmem:[#allocation6 + $0x2c0] sm:$0xff] }
 0x22f   : > { %3610 = vmatprep.subr.bf16.mxu0 %v5742_v51  ;;  %3653 = vmatprep.subr.bf16.mxu1 %v5744_v54  ;;  %v5814_v50 = vcombine.high %v2920_v47, %v2924_v3  ;;  %v5813_v51 = vcombine.low %v2920_v47, %v2924_v3  ;;  %v2916_v54 = vld [vmem:[#allocation6 + $0x2a0] sm:$0xff] }
 0x232   : > { %3611 = vmatpush1.bf16.msra.mxu0 %v5741_v4  ;;  %3654 = vmatpush1.bf16.msra.mxu1 %v5743_v53  ;;  %v5816_v4 = vcombine.high %v2921_v49, %v2925_v0  ;;  %v2912_v53 = vld [vmem:[#allocation6 + $0x280] sm:$0xff] }
 0x233   : > { %3612 = vmatprep.subr.bf16.mxu0 %v5734_v60  ;;  %3655 = vmatprep.subr.bf16.mxu1 %v5736_v1  ;;  %v5806_v57 = vcombine.high %v2912_v53, %v2916_v54  ;;  %v5805_v60 = vcombine.low %v2912_v53, %v2916_v54  ;;  %v2908_v1 = vld [vmem:[#allocation6 + $0x260] sm:$0xff] }
 0x236   : > { %3613 = vmatpush1.bf16.msra.mxu0 %v5733_v62  ;;  %3656 = vmatpush1.bf16.msra.mxu1 %v5735_v63  ;;  %v5808_v62 = vcombine.high %v2913_v56, %v2917_v59  ;;  %v2904_v63 = vld [vmem:[#allocation6 + $0x240] sm:$0xff] }
 0x237   : > { %3614 = vmatprep.subr.bf16.mxu0 %v5726_v8  ;;  %3657 = vmatprep.subr.bf16.mxu1 %v5728_v13  ;;  %v5798_v6 = vcombine.high %v2904_v63, %v2908_v1  ;;  %v5697_v8 = vld [vmem:[%s6745_s7 + $0x20] sm:$0xff]  ;;  %v5797_v9 = vcombine.low %v2904_v63, %v2908_v1 }
 0x238   : > { %v2896_v13 = vld [vmem:[#allocation6 + $0x200] sm:$0xff]  ;;  %v2619_v16 = vunpack.c.l.bf16 %v5697_v8  ;;  %v2620_v2 = vunpack.c.h.bf16 %v5697_v8 }
 0x23a   : > { %3615 = vmatpush1.bf16.msra.mxu0 %v5725_v10  ;;  %3658 = vmatpush1.bf16.msra.mxu1 %v5727_v12  ;;  %v5799_v10 = vcombine.low %v2905_v5, %v2909_v7  ;;  %v5800_v12 = vcombine.high %v2905_v5, %v2909_v7 }
 0x23b   : > { %3616 = vmatprep.subr.bf16.mxu0 %v5846_v17  ;;  %3659 = vmatprep.subr.bf16.mxu1 %v5848_v19  ;;  %v5790_v17 = vcombine.high %v2896_v13, %v2900_v14  ;;  %v5791_v19 = vcombine.low %v2897_v15, %v2901_v21 }
 0x23e   : > { %3617 = vmatpush2.bf16.msra.mxu0 %v5845_v22  ;;  %3660 = vmatpush2.bf16.msra.mxu1 %v5847_v18  ;;  %v5699_v22 = vld [vmem:[%s6745_s7 + $0x30] sm:$0xff]  ;;  %v5789_v18 = vcombine.low %v2896_v13, %v2900_v14  ;;  %v6936_v13 = vpop.permute.xlu0 %2794 }
 0x23f   : > { %3618 = vmatprep.subr.bf16.mxu0 %v5838_v25  ;;  %3661 = vmatprep.subr.bf16.mxu1 %v5840_v27  ;;  %v6918_v25 = vld [vmem:[#allocation6 + $0x1d0] sm:$0xff]  ;;  %v2623_v28 = vunpack.c.l.bf16 %v5699_v22  ;;  %v2624_v41 = vunpack.c.h.bf16 %v5699_v22  ;;  %vm2799_vm6 = vcmp.eq.s32.totalorder %v6936_v13, 1 }
 0x240   : > { %v5785_v30 = vcombine.low %v6918_v25, %v6920_v26  ;;  %v5786_v35 = vcombine.high %v6918_v25, %v6920_v26  ;;  %v2874_v13 = vld [vmem:[#allocation6 + $0x150] sm:$0xff] }
 0x242   : > { %3619 = vmatpush2.bf16.msra.mxu0 %v5837_v24  ;;  %3662 = vmatpush2.bf16.msra.mxu1 %v5839_v11  ;;  %v6922_v24 = vld [vmem:[#allocation6 + $0x1d8] sm:$0xff] }
 0x243   : > { %3620 = vmatprep.subr.bf16.mxu0 %v5830_v34  ;;  %3663 = vmatprep.subr.bf16.mxu1 %v5832_v39 }
 0x246   : > { %3621 = vmatpush2.bf16.msra.mxu0 %v5829_v36  ;;  %3664 = vmatpush2.bf16.msra.mxu1 %v5831_v37  ;;  %v5787_v36 = vcombine.low %v6922_v24, %v6926_v31  ;;  %v5788_v37 = vcombine.high %v6922_v24, %v6926_v31  ;;  %v2858_v31 = vld [vmem:[#allocation6 + $0xd0] sm:$0xff] }
 0x247   : > { %3622 = vmatprep.subr.bf16.mxu0 %v5822_v29  ;;  %3665 = vmatprep.subr.bf16.mxu1 %v5824_v46  ;;  %v5698_v46 = vld [vmem:[%s6745_s7 + $0x28] sm:$0xff] }
 0x248   : > { %v2622_v49 = vunpack.c.h.bf16 %v5698_v46  ;;  %v2621_v54 = vunpack.c.l.bf16 %v5698_v46 }
 0x24a   : > { %3623 = vmatpush2.bf16.msra.mxu0 %v5821_v43  ;;  %3666 = vmatpush2.bf16.msra.mxu1 %v5823_v45 }
 0x24b   : > { %3624 = vmatprep.subr.bf16.mxu0 %v5814_v50  ;;  %3667 = vmatprep.subr.bf16.mxu1 %v5816_v4 }
 0x24e   : > { %3625 = vmatpush2.bf16.msra.mxu0 %v5813_v51  ;;  %3668 = vmatpush2.bf16.msra.mxu1 %v5815_v52  ;;  %v5700_v51 = vld [vmem:[%s6745_s7 + $0x38] sm:$0xff] }
 0x24f   : > { %3626 = vmatprep.subr.bf16.mxu0 %v5806_v57  ;;  %3669 = vmatprep.subr.bf16.mxu1 %v5808_v62  ;;  %v2626_v4 = vunpack.c.h.bf16 %v5700_v51 }
 0x252   : > { %3627 = vmatpush2.bf16.msra.mxu0 %v5805_v60  ;;  %3670 = vmatpush2.bf16.msra.mxu1 %v5807_v61  ;;  %v2625_v61 = vunpack.c.l.bf16 %v5700_v51 }
 0x253   : > { %3628 = vmatprep.subr.bf16.mxu0 %v5798_v6  ;;  %3671 = vmatprep.subr.bf16.mxu1 %v5800_v12 }
 0x256   : > { %3629 = vmatpush2.bf16.msra.mxu0 %v5797_v9  ;;  %3672 = vmatpush2.bf16.msra.mxu1 %v5799_v10 }
 0x257   : > { %3630 = vmatprep.subr.bf16.mxu0 %v5790_v17  ;;  %3673 = vmatprep.subr.bf16.mxu1 %v5792_v20  ;;  %v1668_v17 = vld [vmem:[#allocation3] sm:$0xff] }
 0x25a   : > { %3631 = vmatpush2.bf16.msra.mxu0 %v5789_v18  ;;  %3674 = vmatpush2.bf16.msra.mxu1 %v5791_v19  ;;  %v6938_v18 = vpop.permute.xlu1 %2797 }
 0x25b   : > { %3686 = vmatprep.subr.bf16.mxu0 %v5786_v35  ;;  %3729 = vmatprep.subr.bf16.mxu1 %v5788_v37  ;;  %vm2800_vm7 = vcmp.eq.s32.totalorder %v6938_v18, 1 }
 0x29d   : > { %v2476_v23 = vpop.f32.mrf.mxu0  ;;  %v2519_v27 = vpop.f32.mrf.mxu1 }
 0x29e   : > { %v2627_v11 = vadd.f32 %v2619_v16, %v2476_v23  ;;  %v2629_v60 = vadd.f32 %v2621_v54, %v2519_v27  ;;  %v5713_v54 = vld [vmem:[%s6747_s28 + $0x50] sm:$0xff] }
 0x29f   : > { %v2478_v34 = vpop.f32.mrf.mxu0  ;;  %v2521_v33 = vpop.f32.mrf.mxu1 }
 0x2a0   : > { %v5701_v39 = vmul.f32 -1.442695, %v2627_v11  ;;  %v2628_v40 = vadd.f32 %v2620_v2, %v2478_v34  ;;  %v2630_v52 = vadd.f32 %v2622_v49, %v2521_v33  ;;  %v2691_v11 = vpop.permute.xlu0 %2690  ;;  %v1670_v34 = vld [vmem:[#allocation3 + $0x8] sm:$0xff]  ;;  %v5711_v49 = vld [vmem:[%s6747_s28 + $0x40] sm:$0xff] }
 0x2a1   : > { %v2480_v42 = vpop.f32.mrf.mxu0  ;;  %v2523_v50 = vpop.f32.mrf.mxu1  ;;  %vm2695_vm4 = vcmp.eq.s32.totalorder %v2691_v11, 1 }
 0x2a2   : > { %6249 = vpow2.f32 %v5701_v39  ;;  %v5703_v29 = vmul.f32 -1.442695, %v2628_v40  ;;  %v2631_v43 = vadd.f32 %v2623_v28, %v2480_v42  ;;  %v5705_v56 = vmul.f32 -1.442695, %v2630_v52 }
 0x2a3   : > { %v2482_v45 = vpop.f32.mrf.mxu0  ;;  %v2525_v53 = vpop.f32.mrf.mxu1  ;;  %v2633_v7 = vadd.f32 %v2625_v61, %v2523_v50 }
 0x2a4   : > { %6251 = vpow2.f32 %v5703_v29  ;;  %v5702_v47 = vmul.f32 -1.442695, %v2631_v43  ;;  %v2632_v3 = vadd.f32 %v2624_v41, %v2482_v45  ;;  %v2634_v57 = vadd.f32 %v2626_v4, %v2525_v53  ;;  %v2694_v41 = vpop.permute.xlu1 %2693 }
 0x2a5   : > { %vm2696_vm5 = vcmp.eq.s32.totalorder %v2694_v41, 1  ;;  %v2723_v4 = vunpack.c.l.bf16 %v5711_v49 }
 0x2a6   : > { %6253 = vpow2.f32 %v5702_v47  ;;  %v5704_v0 = vmul.f32 -1.442695, %v2632_v3  ;;  %v5706_v1 = vmul.f32 -1.442695, %v2634_v57 }
 0x2a8   : > { %6255 = vpow2.f32 %v5704_v0 }
 0x2a9   : > { %6257 = vpow2.f32 %v5705_v56  ;;  %v2724_v56 = vunpack.c.h.bf16 %v5711_v49 }
 0x2af   : > { %v6250_v59 = vpop.eup %6249 }
 0x2b0   : > { %v2641_v62 = vadd.f32 1.0, %v6250_v59 }
 0x2b1   : > { %v6252_v63 = vpop.eup %6251 }
 0x2b2   : > { %6259 = vrcp.f32 %v2641_v62  ;;  %v2653_v5 = vadd.f32 1.0, %v6252_v63 }
 0x2b3   : > { %v6254_v6 = vpop.eup %6253  ;;  %6261 = vtanh.f32 %v2629_v60 }
 0x2b4   : > { %6263 = vrcp.f32 %v2653_v5  ;;  %v2642_v8 = vadd.f32 1.0, %v6254_v6 }
 0x2b5   : > { %v6256_v9 = vpop.eup %6255  ;;  %6265 = vpow2.f32 %v5706_v1  ;;  %v2728_v1 = vunpack.c.h.bf16 %v5713_v54 }
 0x2b6   : > { %6267 = vrcp.f32 %v2642_v8  ;;  %v2654_v10 = vadd.f32 1.0, %v6256_v9  ;;  %v6258_v12 = vpop.eup %6257  ;;  %v5712_v9 = vld [vmem:[%s6747_s28 + $0x48] sm:$0xff] }
 0x2b7   : > { %6269 = vtanh.f32 %v2633_v7  ;;  %v2667_v21 = vadd.f32 1.0, %v6258_v12 }
 0x2b8   : > { %6271 = vrcp.f32 %v2654_v10 }
 0x2b9   : > { %6273 = vrcp.f32 %v2667_v21 }
 0x2bf   : > { %v6260_v14 = vpop.eup %6259 }
 0x2c0   : > { %v6262_v15 = vpop.eup %6261 }
 0x2c1   : > { %v6264_v16 = vpop.eup %6263  ;;  %v2675_v19 = vmul.f32 %v6262_v15, %v6260_v14  ;;  %v2726_v14 = vunpack.c.h.bf16 %v5712_v9 }
 0x2c2   : > { %v6266_v22 = vpop.eup %6265  ;;  %v2673_v20 = vmul.f32 %v6264_v16, %v1668_v17 }
 0x2c3   : > { %v6268_v2 = vpop.eup %6267  ;;  %v2668_v35 = vadd.f32 1.0, %v6266_v22 }
 0x2c4   : > { %v6270_v23 = vpop.eup %6269  ;;  %v2677_v27 = vadd.f32 %v2675_v19, %v2673_v20  ;;  %v2725_v20 = vunpack.c.l.bf16 %v5712_v9 }
 0x2c5   : > { %v6272_v28 = vpop.eup %6271  ;;  %v2676_v39 = vmul.f32 %v6270_v23, %v6268_v2 }
 0x2c6   : > { %6275 = vtanh.f32 %v2677_v27  ;;  %v2701_v37 = vsel %vm2695_vm4, %v2677_v27, %v1668_v17  ;;  %v2674_v40 = vmul.f32 %v6272_v28, %v1670_v34  ;;  %v6274_v33 = vpop.eup %6273  ;;  %v5714_v17 = vld [vmem:[%s6747_s28 + $0x58] sm:$0xff] }
 0x2c7   : > { %2703 = vst [vmem:[#allocation3] sm:$0xff] %v2701_v37  ;;  %6277 = vrcp.f32 %v2668_v35  ;;  %v2730_v22 = vunpack.c.h.bf16 %v5714_v17  ;;  %v2729_v28 = vunpack.c.l.bf16 %v5714_v17 }
 0x2c8   : > { %v2678_v42 = vadd.f32 %v2676_v39, %v2674_v40 }
 0x2ca   : > { %6279 = vtanh.f32 %v2678_v42  ;;  %v2702_v29 = vsel %vm2696_vm5, %v2678_v42, %v1670_v34 }
 0x2cb   : > { %2704 = vst [vmem:[#allocation3 + $0x8] sm:$0xff] %v2702_v29 }
 0x2d3   : > { %v6276_v43 = vpop.eup %6275 }
 0x2d4   : > { %v2681_v45 = vmul.f32 %v6276_v43, %v6274_v33  ;;  %v6278_v46 = vpop.eup %6277 }
 0x2d6   : > { %v6943_v47 = vsel %vm2695_vm4, %v2681_v45, %v6872_v38  ;;  %v2705_v0 = vsel %vm2695_vm4, %v2681_v45, 0.0  ;;  %v2727_v38 = vunpack.c.l.bf16 %v5713_v54 }
 0x2d7   : > { %v6280_v3 = vpop.eup %6279 }
 0x2d8   : > { %v2682_v50 = vmul.f32 %v6280_v3, %v6278_v46 }
 0x2da   : > { %v6948_v51 = vsel %vm2696_vm5, %v2682_v50, %v6878_v32  ;;  %v2706_v52 = vsel %vm2696_vm5, %v2682_v50, 0.0 }
 0x2db   : > { %v6070_v53 = vpack.c.bf16 %v2706_v52, %v2705_v0 }
 0x2dd   : > { %6098 = vst [vmem:[%s6766_s16 + $0x8] sm:$0xff] %v6070_v53   ;;  %v2562_v57 = vpop.f32.mrf.mxu0  ;;  %v2605_v60 = vpop.f32.mrf.mxu1 }
 0x2de   : > { %v2731_v59 = vadd.f32 %v2723_v4, %v2562_v57  ;;  %v2733_v27 = vadd.f32 %v2725_v20, %v2605_v60 }
 0x2df   : > { %v2564_v61 = vpop.f32.mrf.mxu0  ;;  %v2607_v6 = vpop.f32.mrf.mxu1 }
 0x2e0   : > { %v5715_v62 = vmul.f32 -1.442695, %v2731_v59  ;;  %v2732_v63 = vadd.f32 %v2724_v56, %v2564_v61  ;;  %v2734_v21 = vadd.f32 %v2726_v14, %v2607_v6  ;;  %v2887_v14 = vld [vmem:[#allocation6 + $0x1b8] sm:$0xff] }
 0x2e1   : > { %v2566_v5 = vpop.f32.mrf.mxu0  ;;  %v2609_v15 = vpop.f32.mrf.mxu1 }
 0x2e2   : > { %6281 = vpow2.f32 %v5715_v62  ;;  %v5717_v32 = vmul.f32 -1.442695, %v2732_v63  ;;  %v2735_v7 = vadd.f32 %v2727_v38, %v2566_v5  ;;  %v5719_v2 = vmul.f32 -1.442695, %v2734_v21 }
 0x2e3   : > { %v2568_v8 = vpop.f32.mrf.mxu0  ;;  %v2611_v19 = vpop.f32.mrf.mxu1  ;;  %v2737_v41 = vadd.f32 %v2729_v28, %v2609_v15  ;;  %v2870_v28 = vld [vmem:[#allocation6 + $0x130] sm:$0xff] }
 0x2e4   : > { %6283 = vpow2.f32 %v5717_v32  ;;  %v5716_v10 = vmul.f32 -1.442695, %v2735_v7  ;;  %v2736_v12 = vadd.f32 %v2728_v1, %v2568_v8  ;;  %v2738_v23 = vadd.f32 %v2730_v22, %v2611_v19  ;;  %v2882_v8 = vld [vmem:[#allocation6 + $0x190] sm:$0xff]  ;;  %v2875_v22 = vld [vmem:[#allocation6 + $0x158] sm:$0xff] }
 0x2e5   : > { %v2879_v19 = vld [vmem:[#allocation6 + $0x178] sm:$0xff] }
 0x2e6   : > { %6285 = vpow2.f32 %v5716_v10  ;;  %v5718_v16 = vmul.f32 -1.442695, %v2736_v12  ;;  %v5720_v37 = vmul.f32 -1.442695, %v2738_v23  ;;  %v2886_v10 = vld [vmem:[#allocation6 + $0x1b0] sm:$0xff]  ;;  %v2883_v12 = vld [vmem:[#allocation6 + $0x198] sm:$0xff]  ;;  %v5771_v26 = vcombine.low %v2875_v22, %v2879_v19 }
 0x2e7   : > { %v5778_v17 = vcombine.high %v2882_v8, %v2886_v10  ;;  %v5780_v21 = vcombine.high %v2883_v12, %v2887_v14  ;;  %v5777_v20 = vcombine.low %v2882_v8, %v2886_v10  ;;  %v2955_v8 = vld [vmem:[#allocation6 + $0x3d8] sm:$0xff] }
 0x2e8   : > { %6287 = vpow2.f32 %v5718_v16 }
 0x2e9   : > { %6289 = vpow2.f32 %v5719_v2  ;;  %v5779_v2 = vcombine.low %v2883_v12, %v2887_v14 }
 0x2ef   : > { %v6282_v11 = vpop.eup %6281 }
 0x2f0   : > { %v2745_v34 = vadd.f32 1.0, %v6282_v11  ;;  %v5772_v11 = vcombine.high %v2875_v22, %v2879_v19 }
 0x2f1   : > { %v6284_v35 = vpop.eup %6283 }
 0x2f2   : > { %6291 = vrcp.f32 %v2745_v34  ;;  %v2757_v39 = vadd.f32 1.0, %v6284_v35  ;;  %v2867_v34 = vld [vmem:[#allocation6 + $0x118] sm:$0xff] }
 0x2f3   : > { %v6286_v40 = vpop.eup %6285  ;;  %6293 = vtanh.f32 %v2733_v27  ;;  %v2866_v27 = vld [vmem:[#allocation6 + $0x110] sm:$0xff]  ;;  %v2871_v35 = vld [vmem:[#allocation6 + $0x138] sm:$0xff] }
 0x2f4   : > { %6295 = vrcp.f32 %v2757_v39  ;;  %v2746_v42 = vadd.f32 1.0, %v6286_v40  ;;  %v5762_v24 = vcombine.high %v2866_v27, %v2870_v28  ;;  %v2863_v39 = vld [vmem:[#allocation6 + $0xf8] sm:$0xff]  ;;  %v5761_v40 = vcombine.low %v2866_v27, %v2870_v28 }
 0x2f5   : > { %v6288_v29 = vpop.eup %6287  ;;  %6297 = vpow2.f32 %v5720_v37  ;;  %v2859_v37 = vld [vmem:[#allocation6 + $0xd8] sm:$0xff] }
 0x2f6   : > { %6299 = vrcp.f32 %v2746_v42  ;;  %v2758_v33 = vadd.f32 1.0, %v6288_v29  ;;  %v6290_v43 = vpop.eup %6289  ;;  %v5756_v29 = vcombine.high %v2859_v37, %v2863_v39  ;;  %v2943_v27 = vld [vmem:[#allocation6 + $0x378] sm:$0xff] }
 0x2f7   : > { %6301 = vtanh.f32 %v2737_v41  ;;  %v2771_v49 = vadd.f32 1.0, %v6290_v43  ;;  %v5763_v41 = vcombine.low %v2867_v34, %v2871_v35  ;;  %v2854_v43 = vld [vmem:[#allocation6 + $0xb0] sm:$0xff] }
 0x2f8   : > { %6303 = vrcp.f32 %v2758_v33  ;;  %v2850_v33 = vld [vmem:[#allocation6 + $0x90] sm:$0xff] }
 0x2f9   : > { %6305 = vrcp.f32 %v2771_v49  ;;  %v5755_v49 = vcombine.low %v2859_v37, %v2863_v39 }
 0x2ff   : > { %v6292_v45 = vpop.eup %6291 }
 0x300   : > { %v6294_v46 = vpop.eup %6293 }
 0x301   : > { %v6296_v3 = vpop.eup %6295  ;;  %v2779_v0 = vmul.f32 %v6294_v46, %v6292_v45  ;;  %v2851_v45 = vld [vmem:[#allocation6 + $0x98] sm:$0xff] }
 0x302   : > { %v6298_v50 = vpop.eup %6297  ;;  %v2777_v52 = vmul.f32 %v6296_v3, %v6886_v44  ;;  %v2855_v46 = vld [vmem:[#allocation6 + $0xb8] sm:$0xff] }
 0x303   : > { %v6300_v4 = vpop.eup %6299  ;;  %v2772_v57 = vadd.f32 1.0, %v6298_v50  ;;  %v5746_v50 = vcombine.high %v2850_v33, %v2854_v43 }
 0x304   : > { %v6302_v53 = vpop.eup %6301  ;;  %v2781_v54 = vadd.f32 %v2779_v0, %v2777_v52  ;;  %v5748_v0 = vcombine.high %v2851_v45, %v2855_v46  ;;  %v2842_v52 = vld [vmem:[#allocation6 + $0x50] sm:$0xff] }
 0x305   : > { %v6304_v56 = vpop.eup %6303  ;;  %v2780_v60 = vmul.f32 %v6302_v53, %v6300_v4  ;;  %v2846_v4 = vld [vmem:[#allocation6 + $0x70] sm:$0xff]  ;;  %v2843_v53 = vld [vmem:[#allocation6 + $0x58] sm:$0xff] }
 0x306   : > { %6307 = vtanh.f32 %v2781_v54  ;;  %v2805_v59 = vsel %vm2799_vm6, %v2781_v54, %v6886_v44  ;;  %v2778_v38 = vmul.f32 %v6304_v56, %v6889_v48  ;;  %v6306_v63 = vpop.eup %6305  ;;  %v2847_v54 = vld [vmem:[#allocation6 + $0x78] sm:$0xff]  ;;  %v5745_v56 = vcombine.low %v2850_v33, %v2854_v43 }
 0x307   : > { %2807 = vst [vmem:[#allocation3 + $0x18] sm:$0xff] %v2805_v59  ;;  %6309 = vrcp.f32 %v2772_v57  ;;  %v5747_v57 = vcombine.low %v2851_v45, %v2855_v46  ;;  %v5738_v59 = vcombine.high %v2842_v52, %v2846_v4  ;;  %v2927_v33 = vld [vmem:[#allocation6 + $0x2f8] sm:$0xff] }
 0x308   : > { %v2782_v61 = vadd.f32 %v2780_v60, %v2778_v38  ;;  %v5740_v60 = vcombine.high %v2843_v53, %v2847_v54  ;;  %v2834_v38 = vld [vmem:[#allocation6 + $0x10] sm:$0xff] }
 0x30a   : > { %6311 = vtanh.f32 %v2782_v61  ;;  %v2806_v62 = vsel %vm2800_vm7, %v2782_v61, %v6889_v48  ;;  %v2838_v61 = vld [vmem:[#allocation6 + $0x30] sm:$0xff] }
 0x30b   : > { %2808 = vst [vmem:[#allocation3 + $0x10] sm:$0xff] %v2806_v62  ;;  %v2835_v62 = vld [vmem:[#allocation6 + $0x18] sm:$0xff]  ;;  %v5729_v10 = vcombine.low %v2834_v38, %v2838_v61 }
 0x313   : > { %v6308_v1 = vpop.eup %6307 }
 0x314   : > { %v2785_v5 = vmul.f32 %v6308_v1, %v6306_v63  ;;  %v6310_v32 = vpop.eup %6309  ;;  %v2839_v63 = vld [vmem:[#allocation6 + $0x38] sm:$0xff]  ;;  %v5737_v1 = vcombine.low %v2842_v52, %v2846_v4 }
 0x315   : > { %v5731_v12 = vcombine.low %v2835_v62, %v2839_v63  ;;  %v2919_v52 = vld [vmem:[#allocation6 + $0x2b8] sm:$0xff] }
 0x316   : > { %v6965_v44 = vsel %vm2799_vm6, %v2785_v5, %v6892_v55  ;;  %v2809_v6 = vsel %vm2799_vm6, %v2785_v5, 0.0  ;;  %v6976_v55 = vpack.c.bf16 %v6948_v51, %v6943_v47  ;;  %v5739_v5 = vcombine.low %v2843_v53, %v2847_v54 }
 0x317   : > { %v6312_v7 = vpop.eup %6311 }
 0x318   : > { %v2786_v18 = vmul.f32 %v6312_v7, %v6310_v32  ;;  %v5730_v32 = vcombine.high %v2834_v38, %v2838_v61  ;;  %v2954_v7 = vld [vmem:[#allocation6 + $0x3d0] sm:$0xff]  ;;  %v2911_v38 = vld [vmem:[#allocation6 + $0x278] sm:$0xff] }
 0x31a   : > { %v6970_v9 = vsel %vm2800_vm7, %v2786_v18, %v6896_v58  ;;  %v2810_v48 = vsel %vm2800_vm7, %v2786_v18, 0.0  ;;  %v2878_v58 = vld [vmem:[#allocation6 + $0x170] sm:$0xff] }
 0x31b   : > { %v6075_v15 = vpack.c.bf16 %v2810_v48, %v2809_v6  ;;  %v2831_v16 = vpack.c.bf16 %v6970_v9, %v6965_v44  ;;  %v5770_v23 = vcombine.high %v2874_v13, %v2878_v58  ;;  %v5769_v25 = vcombine.low %v2874_v13, %v2878_v58  ;;  %v2958_v18 = vld [vmem:[#allocation6 + $0x3f0] sm:$0xff]  ;;  %v2959_v48 = vld [vmem:[#allocation6 + $0x3f8] sm:$0xff] }
 0x31c   : > { %v5732_v6 = vcombine.high %v2835_v62, %v2839_v63  ;;  %v5850_v14 = vcombine.high %v2954_v7, %v2958_v18  ;;  %v2950_v13 = vld [vmem:[#allocation6 + $0x3b0] sm:$0xff]  ;;  %v5849_v58 = vcombine.low %v2954_v7, %v2958_v18  ;;  %v5851_v22 = vcombine.low %v2955_v8, %v2959_v48  ;;  %v2903_v7 = vld [vmem:[#allocation6 + $0x238] sm:$0xff] }
 0x31d   : > { %6099 = vst [vmem:[%s6781_s23 + $0x10] sm:$0xff] %v6075_v15   ;;  %3632 = vmatprep.mubr.bf16.mxu0 %v2831_v16  ;;  %3675 = vmatprep.mubr.bf16.mxu1 %v2831_v16  ;;  %v5852_v15 = vcombine.high %v2955_v8, %v2959_v48 }
 0x31e   : > { %3633 = vmatmul.mubr.bf16.vlgmr.msra.gmra.mxu0 %v6976_v55  ;;  %3676 = vmatmul.mubr.bf16.vlgmr.msra.gmra.mxu1 %v6976_v55 }
 0x31f   : > { %3687 = vmatpush1.bf16.msra.mxu0 %v5785_v30  ;;  %3730 = vmatpush1.bf16.msra.mxu1 %v5787_v36  ;;  %v5764_v30 = vcombine.high %v2867_v34, %v2871_v35  ;;  %v2862_v36 = vld [vmem:[#allocation6 + $0xf0] sm:$0xff] }
 0x320   : > { %3718 = vmatprep.mubr.bf16.mxu0 %v2831_v16  ;;  %3761 = vmatprep.mubr.bf16.mxu1 %v2831_v16  ;;  %v5754_v42 = vcombine.high %v2858_v31, %v2862_v36  ;;  %v5753_v3 = vcombine.low %v2858_v31, %v2862_v36  ;;  %v2946_v16 = vld [vmem:[#allocation6 + $0x390] sm:$0xff]  ;;  %v2935_v31 = vld [vmem:[#allocation6 + $0x338] sm:$0xff] }
 0x321   : > { %3688 = vmatprep.subr.bf16.mxu0 %v5778_v17  ;;  %3731 = vmatprep.subr.bf16.mxu1 %v5780_v21  ;;  %v2947_v17 = vld [vmem:[#allocation6 + $0x398] sm:$0xff]  ;;  %v5842_v19 = vcombine.high %v2946_v16, %v2950_v13  ;;  %v5841_v28 = vcombine.low %v2946_v16, %v2950_v13  ;;  %v4050_v16 = vld [vmem:[#allocation6 + $0x1e0] sm:$0xff]  ;;  %v4047_v13 = vld [vmem:[#allocation6 + $0x1c8] sm:$0xff] }
 0x322   : > { %v2951_v21 = vld [vmem:[#allocation6 + $0x3b8] sm:$0xff] }
 0x323   : > { %3689 = vmatpush1.bf16.msra.mxu0 %v5777_v20  ;;  %3732 = vmatpush1.bf16.msra.mxu1 %v5779_v2  ;;  %v5844_v20 = vcombine.high %v2947_v17, %v2951_v21  ;;  %v2938_v2 = vld [vmem:[#allocation6 + $0x350] sm:$0xff]  ;;  %v5843_v34 = vcombine.low %v2947_v17, %v2951_v21  ;;  %v4051_v17 = vld [vmem:[#allocation6 + $0x1e8] sm:$0xff] }
 0x324   : > { %3690 = vmatprep.subr.bf16.mxu0 %v5770_v23  ;;  %3733 = vmatprep.subr.bf16.mxu1 %v5772_v11  ;;  %v2942_v23 = vld [vmem:[#allocation6 + $0x370] sm:$0xff]  ;;  %v2939_v11 = vld [vmem:[#allocation6 + $0x358] sm:$0xff] }
 0x325   : > { %v5834_v35 = vcombine.high %v2938_v2, %v2942_v23  ;;  %v5833_v36 = vcombine.low %v2938_v2, %v2942_v23  ;;  %v5835_v37 = vcombine.low %v2939_v11, %v2943_v27  ;;  %v4042_v2 = vld [vmem:[#allocation6 + $0x1a0] sm:$0xff]  ;;  %v4039_v23 = vld [vmem:[#allocation6 + $0x188] sm:$0xff] }
 0x327   : > { %3691 = vmatpush1.bf16.msra.mxu0 %v5769_v25  ;;  %3734 = vmatpush1.bf16.msra.mxu1 %v5771_v26  ;;  %v5836_v25 = vcombine.high %v2939_v11, %v2943_v27  ;;  %v2930_v26 = vld [vmem:[#allocation6 + $0x310] sm:$0xff]  ;;  %v4043_v11 = vld [vmem:[#allocation6 + $0x1a8] sm:$0xff] }
 0x328   : > { %3692 = vmatprep.subr.bf16.mxu0 %v5762_v24  ;;  %3735 = vmatprep.subr.bf16.mxu1 %v5764_v30  ;;  %v2934_v24 = vld [vmem:[#allocation6 + $0x330] sm:$0xff]  ;;  %v2931_v30 = vld [vmem:[#allocation6 + $0x318] sm:$0xff] }
 0x329   : > { %v5826_v39 = vcombine.high %v2930_v26, %v2934_v24  ;;  %v5825_v43 = vcombine.low %v2930_v26, %v2934_v24  ;;  %v5827_v45 = vcombine.low %v2931_v30, %v2935_v31  ;;  %v4031_v26 = vld [vmem:[#allocation6 + $0x148] sm:$0xff] }
 0x32b   : > { %3693 = vmatpush1.bf16.msra.mxu0 %v5761_v40  ;;  %3736 = vmatpush1.bf16.msra.mxu1 %v5763_v41  ;;  %v5828_v40 = vcombine.high %v2931_v30, %v2935_v31  ;;  %v2922_v41 = vld [vmem:[#allocation6 + $0x2d0] sm:$0xff]  ;;  %v4035_v30 = vld [vmem:[#allocation6 + $0x168] sm:$0xff] }
 0x32c   : > { %3694 = vmatprep.subr.bf16.mxu0 %v5754_v42  ;;  %3737 = vmatprep.subr.bf16.mxu1 %v5756_v29  ;;  %v2926_v42 = vld [vmem:[#allocation6 + $0x2f0] sm:$0xff]  ;;  %v2923_v29 = vld [vmem:[#allocation6 + $0x2d8] sm:$0xff] }
 0x32d   : > { %v5818_v46 = vcombine.high %v2922_v41, %v2926_v42  ;;  %v5817_v4 = vcombine.low %v2922_v41, %v2926_v42  ;;  %v5819_v53 = vcombine.low %v2923_v29, %v2927_v33  ;;  %v4023_v41 = vld [vmem:[#allocation6 + $0x108] sm:$0xff] }
 0x32f   : > { %3695 = vmatpush1.bf16.msra.mxu0 %v5753_v3  ;;  %3738 = vmatpush1.bf16.msra.mxu1 %v5755_v49  ;;  %v5820_v3 = vcombine.high %v2923_v29, %v2927_v33  ;;  %v2914_v49 = vld [vmem:[#allocation6 + $0x290] sm:$0xff]  ;;  %v4027_v29 = vld [vmem:[#allocation6 + $0x128] sm:$0xff] }
 0x330   : > { %3696 = vmatprep.subr.bf16.mxu0 %v5746_v50  ;;  %3739 = vmatprep.subr.bf16.mxu1 %v5748_v0  ;;  %v2918_v50 = vld [vmem:[#allocation6 + $0x2b0] sm:$0xff]  ;;  %v2915_v0 = vld [vmem:[#allocation6 + $0x298] sm:$0xff] }
 0x331   : > { %v5810_v54 = vcombine.high %v2914_v49, %v2918_v50  ;;  %v5809_v61 = vcombine.low %v2914_v49, %v2918_v50  ;;  %v5811_v62 = vcombine.low %v2915_v0, %v2919_v52  ;;  %v4015_v49 = vld [vmem:[#allocation6 + $0xc8] sm:$0xff] }
 0x333   : > { %3697 = vmatpush1.bf16.msra.mxu0 %v5745_v56  ;;  %3740 = vmatpush1.bf16.msra.mxu1 %v5747_v57  ;;  %v5812_v56 = vcombine.high %v2915_v0, %v2919_v52  ;;  %v2906_v57 = vld [vmem:[#allocation6 + $0x250] sm:$0xff]  ;;  %v4019_v0 = vld [vmem:[#allocation6 + $0xe8] sm:$0xff] }
 0x334   : > { %3698 = vmatprep.subr.bf16.mxu0 %v5738_v59  ;;  %3741 = vmatprep.subr.bf16.mxu1 %v5740_v60  ;;  %v2910_v59 = vld [vmem:[#allocation6 + $0x270] sm:$0xff]  ;;  %v2907_v60 = vld [vmem:[#allocation6 + $0x258] sm:$0xff] }
 0x335   : > { %v5802_v63 = vcombine.high %v2906_v57, %v2910_v59  ;;  %v5801_v18 = vcombine.low %v2906_v57, %v2910_v59  ;;  %v5803_v8 = vcombine.low %v2907_v60, %v2911_v38  ;;  %v4007_v57 = vld [vmem:[#allocation6 + $0x88] sm:$0xff] }
 0x337   : > { %3699 = vmatpush1.bf16.msra.mxu0 %v5737_v1  ;;  %3742 = vmatpush1.bf16.msra.mxu1 %v5739_v5  ;;  %v5804_v1 = vcombine.high %v2907_v60, %v2911_v38  ;;  %v2898_v5 = vld [vmem:[#allocation6 + $0x210] sm:$0xff]  ;;  %v4011_v60 = vld [vmem:[#allocation6 + $0xa8] sm:$0xff] }
 0x338   : > { %3700 = vmatprep.subr.bf16.mxu0 %v5730_v32  ;;  %3743 = vmatprep.subr.bf16.mxu1 %v5732_v6  ;;  %v2902_v32 = vld [vmem:[#allocation6 + $0x230] sm:$0xff]  ;;  %v2899_v6 = vld [vmem:[#allocation6 + $0x218] sm:$0xff] }
 0x339   : > { %v5794_v48 = vcombine.high %v2898_v5, %v2902_v32 }
 0x33b   : > { %3701 = vmatpush1.bf16.msra.mxu0 %v5729_v10  ;;  %3744 = vmatpush1.bf16.msra.mxu1 %v5731_v12  ;;  %v5796_v10 = vcombine.high %v2899_v6, %v2903_v7  ;;  %v5793_v12 = vcombine.low %v2898_v5, %v2902_v32  ;;  %v3999_v5 = vld [vmem:[#allocation6 + $0x48] sm:$0xff] }
 0x33c   : > { %3702 = vmatprep.subr.bf16.mxu0 %v5850_v14  ;;  %3745 = vmatprep.subr.bf16.mxu1 %v5852_v15  ;;  %v5795_v14 = vcombine.low %v2899_v6, %v2903_v7  ;;  %v4046_v15 = vld [vmem:[#allocation6 + $0x1c0] sm:$0xff]  ;;  %v4003_v6 = vld [vmem:[#allocation6 + $0x68] sm:$0xff] }
 0x33d   : > { %v5937_v21 = vcombine.low %v4046_v15, %v4050_v16 }
 0x33f   : > { %3703 = vmatpush2.bf16.msra.mxu0 %v5849_v58  ;;  %3746 = vmatpush2.bf16.msra.mxu1 %v5851_v22  ;;  %v5938_v58 = vcombine.high %v4046_v15, %v4050_v16  ;;  %v5939_v22 = vcombine.low %v4047_v13, %v4051_v17  ;;  %v3995_v15 = vld [vmem:[#allocation6 + $0x28] sm:$0xff] }
 0x340   : > { %3704 = vmatprep.subr.bf16.mxu0 %v5842_v19  ;;  %3747 = vmatprep.subr.bf16.mxu1 %v5844_v20  ;;  %v5940_v19 = vcombine.high %v4047_v13, %v4051_v17  ;;  %v4038_v20 = vld [vmem:[#allocation6 + $0x180] sm:$0xff] }
 0x341   : > { %v5929_v27 = vcombine.low %v4038_v20, %v4042_v2 }
 0x343   : > { %3705 = vmatpush2.bf16.msra.mxu0 %v5841_v28  ;;  %3748 = vmatpush2.bf16.msra.mxu1 %v5843_v34  ;;  %v5930_v28 = vcombine.high %v4038_v20, %v4042_v2  ;;  %v5931_v34 = vcombine.low %v4039_v23, %v4043_v11  ;;  %v4115_v20 = vld [vmem:[#allocation6 + $0x3e8] sm:$0xff] }
 0x344   : > { %3706 = vmatprep.subr.bf16.mxu0 %v5834_v35  ;;  %3749 = vmatprep.subr.bf16.mxu1 %v5836_v25  ;;  %v4030_v35 = vld [vmem:[#allocation6 + $0x140] sm:$0xff] }
 0x345   : > { %v4034_v25 = vld [vmem:[#allocation6 + $0x160] sm:$0xff] }
 0x346   : > { %v5922_v24 = vcombine.high %v4030_v35, %v4034_v25  ;;  %v5921_v31 = vcombine.low %v4030_v35, %v4034_v25  ;;  %v4107_v35 = vld [vmem:[#allocation6 + $0x3a8] sm:$0xff] }
 0x347   : > { %3707 = vmatpush2.bf16.msra.mxu0 %v5833_v36  ;;  %3750 = vmatpush2.bf16.msra.mxu1 %v5835_v37  ;;  %v5923_v36 = vcombine.low %v4031_v26, %v4035_v30  ;;  %v5924_v37 = vcombine.high %v4031_v26, %v4035_v30  ;;  %v4094_v30 = vld [vmem:[#allocation6 + $0x340] sm:$0xff] }
 0x348   : > { %3708 = vmatprep.subr.bf16.mxu0 %v5826_v39  ;;  %3751 = vmatprep.subr.bf16.mxu1 %v5828_v40  ;;  %v4022_v39 = vld [vmem:[#allocation6 + $0x100] sm:$0xff] }
 0x349   : > { %v4026_v40 = vld [vmem:[#allocation6 + $0x120] sm:$0xff] }
 0x34a   : > { %v5914_v42 = vcombine.high %v4022_v39, %v4026_v40  ;;  %v5913_v33 = vcombine.low %v4022_v39, %v4026_v40  ;;  %v4099_v39 = vld [vmem:[#allocation6 + $0x368] sm:$0xff] }
 0x34b   : > { %3709 = vmatpush2.bf16.msra.mxu0 %v5825_v43  ;;  %3752 = vmatpush2.bf16.msra.mxu1 %v5827_v45  ;;  %v5915_v43 = vcombine.low %v4023_v41, %v4027_v29  ;;  %v5916_v45 = vcombine.high %v4023_v41, %v4027_v29  ;;  %v4086_v29 = vld [vmem:[#allocation6 + $0x300] sm:$0xff] }
 0x34c   : > { %3710 = vmatprep.subr.bf16.mxu0 %v5818_v46  ;;  %3753 = vmatprep.subr.bf16.mxu1 %v5820_v3  ;;  %v4014_v46 = vld [vmem:[#allocation6 + $0xc0] sm:$0xff] }
 0x34d   : > { %v4018_v3 = vld [vmem:[#allocation6 + $0xe0] sm:$0xff] }
 0x34e   : > { %v5906_v50 = vcombine.high %v4014_v46, %v4018_v3  ;;  %v5905_v52 = vcombine.low %v4014_v46, %v4018_v3  ;;  %v4091_v46 = vld [vmem:[#allocation6 + $0x328] sm:$0xff] }
 0x34f   : > { %3711 = vmatpush2.bf16.msra.mxu0 %v5817_v4  ;;  %3754 = vmatpush2.bf16.msra.mxu1 %v5819_v53  ;;  %v5907_v4 = vcombine.low %v4015_v49, %v4019_v0  ;;  %v5908_v53 = vcombine.high %v4015_v49, %v4019_v0  ;;  %v4078_v0 = vld [vmem:[#allocation6 + $0x2c0] sm:$0xff] }
 0x350   : > { %3712 = vmatprep.subr.bf16.mxu0 %v5810_v54  ;;  %3755 = vmatprep.subr.bf16.mxu1 %v5812_v56  ;;  %v4006_v54 = vld [vmem:[#allocation6 + $0x80] sm:$0xff] }
 0x351   : > { %v4010_v56 = vld [vmem:[#allocation6 + $0xa0] sm:$0xff] }
 0x352   : > { %v5898_v59 = vcombine.high %v4006_v54, %v4010_v56  ;;  %v5897_v38 = vcombine.low %v4006_v54, %v4010_v56  ;;  %v4083_v54 = vld [vmem:[#allocation6 + $0x2e8] sm:$0xff] }
 0x353   : > { %3713 = vmatpush2.bf16.msra.mxu0 %v5809_v61  ;;  %3756 = vmatpush2.bf16.msra.mxu1 %v5811_v62  ;;  %v5899_v61 = vcombine.low %v4007_v57, %v4011_v60  ;;  %v5900_v62 = vcombine.high %v4007_v57, %v4011_v60  ;;  %v4070_v60 = vld [vmem:[#allocation6 + $0x280] sm:$0xff] }
 0x354   : > { %3714 = vmatprep.subr.bf16.mxu0 %v5802_v63  ;;  %3757 = vmatprep.subr.bf16.mxu1 %v5804_v1  ;;  %v3998_v63 = vld [vmem:[#allocation6 + $0x40] sm:$0xff] }
 0x355   : > { %v4002_v1 = vld [vmem:[#allocation6 + $0x60] sm:$0xff] }
 0x356   : > { %v5890_v32 = vcombine.high %v3998_v63, %v4002_v1  ;;  %v5889_v7 = vcombine.low %v3998_v63, %v4002_v1  ;;  %v4075_v63 = vld [vmem:[#allocation6 + $0x2a8] sm:$0xff] }
 0x357   : > { %3715 = vmatpush2.bf16.msra.mxu0 %v5801_v18  ;;  %3758 = vmatpush2.bf16.msra.mxu1 %v5803_v8  ;;  %v5891_v18 = vcombine.low %v3999_v5, %v4003_v6  ;;  %v5892_v8 = vcombine.high %v3999_v5, %v4003_v6  ;;  %v4062_v6 = vld [vmem:[#allocation6 + $0x240] sm:$0xff] }
 0x358   : > { %3716 = vmatprep.subr.bf16.mxu0 %v5794_v48  ;;  %3759 = vmatprep.subr.bf16.mxu1 %v5796_v10  ;;  %v3990_v48 = vld [vmem:[#allocation6] sm:$0xff] }
 0x359   : > { %v3994_v10 = vld [vmem:[#allocation6 + $0x20] sm:$0xff] }
 0x35a   : > { %v5881_v16 = vcombine.low %v3990_v48, %v3994_v10 }
 0x35b   : > { %3717 = vmatpush2.bf16.msra.mxu0 %v5793_v12  ;;  %3760 = vmatpush2.bf16.msra.mxu1 %v5795_v14  ;;  %v3991_v12 = vld [vmem:[#allocation6 + $0x8] sm:$0xff]  ;;  %v5882_v14 = vcombine.high %v3990_v48, %v3994_v10  ;;  %v5853_v10 = vld [vmem:[%s6745_s7 + $0x40] sm:$0xff] }
 0x35c   : > { %4758 = vmatprep.subr.bf16.mxu0 %v5938_v58  ;;  %4801 = vmatprep.subr.bf16.mxu1 %v5940_v19  ;;  %v5883_v13 = vcombine.low %v3991_v12, %v3995_v15  ;;  %v5884_v17 = vcombine.high %v3991_v12, %v3995_v15  ;;  %v4114_v58 = vld [vmem:[#allocation6 + $0x3e0] sm:$0xff]  ;;  %v4067_v48 = vld [vmem:[#allocation6 + $0x268] sm:$0xff] }
 0x35e   : > { %3719 = vmatmul.mubr.bf16.vlgmr.msra.gmra.mxu0 %v6976_v55  ;;  %3762 = vmatmul.mubr.bf16.vlgmr.msra.gmra.mxu1 %v6976_v55  ;;  %v5932_v55 = vcombine.high %v4039_v23, %v4043_v11 }
 0x35f   : > { %4759 = vmatpush1.bf16.msra.mxu0 %v5937_v21  ;;  %4802 = vmatpush1.bf16.msra.mxu1 %v5939_v22  ;;  %v4110_v21 = vld [vmem:[#allocation6 + $0x3c0] sm:$0xff]  ;;  %v4111_v22 = vld [vmem:[#allocation6 + $0x3c8] sm:$0xff] }
 0x360   : > { %4760 = vmatprep.subr.bf16.mxu0 %v5930_v28  ;;  %4803 = vmatprep.subr.bf16.mxu1 %v5932_v55  ;;  %v6002_v19 = vcombine.high %v4110_v21, %v4114_v58  ;;  %v6001_v2 = vcombine.low %v4110_v21, %v4114_v58  ;;  %v6003_v23 = vcombine.low %v4111_v22, %v4115_v20  ;;  %v4106_v28 = vld [vmem:[#allocation6 + $0x3a0] sm:$0xff]  ;;  %v3777_v21 = vunpack.c.l.bf16 %v5853_v10 }
 0x361   : > { %v6004_v11 = vcombine.high %v4111_v22, %v4115_v20  ;;  %v4059_v22 = vld [vmem:[#allocation6 + $0x228] sm:$0xff] }
 0x363   : > { %4761 = vmatpush1.bf16.msra.mxu0 %v5929_v27  ;;  %4804 = vmatpush1.bf16.msra.mxu1 %v5931_v34  ;;  %v4102_v27 = vld [vmem:[#allocation6 + $0x380] sm:$0xff]  ;;  %v4103_v34 = vld [vmem:[#allocation6 + $0x388] sm:$0xff] }
 0x364   : > { %4762 = vmatprep.subr.bf16.mxu0 %v5922_v24  ;;  %4805 = vmatprep.subr.bf16.mxu1 %v5924_v37  ;;  %v5994_v55 = vcombine.high %v4102_v27, %v4106_v28  ;;  %v5993_v25 = vcombine.low %v4102_v27, %v4106_v28  ;;  %v5995_v26 = vcombine.low %v4103_v34, %v4107_v35  ;;  %v6991_v28 = vld [vmem:[#allocation6 + $0x1d0] sm:$0xff] }
 0x365   : > { %v5996_v24 = vcombine.high %v4103_v34, %v4107_v35  ;;  %v6993_v34 = vld [vmem:[#allocation6 + $0x1f0] sm:$0xff] }
 0x367   : > { %4763 = vmatpush1.bf16.msra.mxu0 %v5921_v31  ;;  %4806 = vmatpush1.bf16.msra.mxu1 %v5923_v36  ;;  %v4098_v31 = vld [vmem:[#allocation6 + $0x360] sm:$0xff]  ;;  %v4095_v36 = vld [vmem:[#allocation6 + $0x348] sm:$0xff] }
 0x368   : > { %4764 = vmatprep.subr.bf16.mxu0 %v5914_v42  ;;  %4807 = vmatprep.subr.bf16.mxu1 %v5916_v45  ;;  %v5986_v37 = vcombine.high %v4094_v30, %v4098_v31  ;;  %v5985_v40 = vcombine.low %v4094_v30, %v4098_v31  ;;  %v5987_v41 = vcombine.low %v4095_v36, %v4099_v39  ;;  %v6999_v30 = vld [vmem:[#allocation6 + $0x1f8] sm:$0xff] }
 0x369   : > { %v5988_v42 = vcombine.high %v4095_v36, %v4099_v39  ;;  %v5942_v36 = vcombine.high %v6991_v28, %v6993_v34 }
 0x36b   : > { %4765 = vmatpush1.bf16.msra.mxu0 %v5913_v33  ;;  %4808 = vmatpush1.bf16.msra.mxu1 %v5915_v43  ;;  %v4090_v33 = vld [vmem:[#allocation6 + $0x320] sm:$0xff]  ;;  %v4087_v43 = vld [vmem:[#allocation6 + $0x308] sm:$0xff] }
 0x36c   : > { %4766 = vmatprep.subr.bf16.mxu0 %v5906_v50  ;;  %4809 = vmatprep.subr.bf16.mxu1 %v5908_v53  ;;  %v5978_v45 = vcombine.high %v4086_v29, %v4090_v33  ;;  %v5977_v3 = vcombine.low %v4086_v29, %v4090_v33  ;;  %v5979_v49 = vcombine.low %v4087_v43, %v4091_v46 }
 0x36d   : > { %v5980_v50 = vcombine.high %v4087_v43, %v4091_v46 }
 0x36f   : > { %4767 = vmatpush1.bf16.msra.mxu0 %v5905_v52  ;;  %4810 = vmatpush1.bf16.msra.mxu1 %v5907_v4  ;;  %v4082_v52 = vld [vmem:[#allocation6 + $0x2e0] sm:$0xff]  ;;  %v4079_v4 = vld [vmem:[#allocation6 + $0x2c8] sm:$0xff] }
 0x370   : > { %4768 = vmatprep.subr.bf16.mxu0 %v5898_v59  ;;  %4811 = vmatprep.subr.bf16.mxu1 %v5900_v62  ;;  %v5970_v53 = vcombine.high %v4078_v0, %v4082_v52  ;;  %v5969_v56 = vcombine.low %v4078_v0, %v4082_v52  ;;  %v5971_v57 = vcombine.low %v4079_v4, %v4083_v54 }
 0x371   : > { %v5972_v59 = vcombine.high %v4079_v4, %v4083_v54 }
 0x373   : > { %4769 = vmatpush1.bf16.msra.mxu0 %v5897_v38  ;;  %4812 = vmatpush1.bf16.msra.mxu1 %v5899_v61  ;;  %v4074_v38 = vld [vmem:[#allocation6 + $0x2a0] sm:$0xff]  ;;  %v4071_v61 = vld [vmem:[#allocation6 + $0x288] sm:$0xff] }
 0x374   : > { %4770 = vmatprep.subr.bf16.mxu0 %v5890_v32  ;;  %4813 = vmatprep.subr.bf16.mxu1 %v5892_v8  ;;  %v5962_v62 = vcombine.high %v4070_v60, %v4074_v38  ;;  %v5961_v1 = vcombine.low %v4070_v60, %v4074_v38  ;;  %v5963_v5 = vcombine.low %v4071_v61, %v4075_v63 }
 0x375   : > { %v5964_v32 = vcombine.high %v4071_v61, %v4075_v63 }
 0x377   : > { %4771 = vmatpush1.bf16.msra.mxu0 %v5889_v7  ;;  %4814 = vmatpush1.bf16.msra.mxu1 %v5891_v18  ;;  %v4066_v7 = vld [vmem:[#allocation6 + $0x260] sm:$0xff]  ;;  %v4063_v18 = vld [vmem:[#allocation6 + $0x248] sm:$0xff] }
 0x378   : > { %4772 = vmatprep.subr.bf16.mxu0 %v5882_v14  ;;  %4815 = vmatprep.subr.bf16.mxu1 %v5884_v17  ;;  %v5954_v8 = vcombine.high %v4062_v6, %v4066_v7  ;;  %v5953_v12 = vcombine.low %v4062_v6, %v4066_v7  ;;  %v5955_v14 = vcombine.low %v4063_v18, %v4067_v48  ;;  %v4055_v17 = vld [vmem:[#allocation6 + $0x208] sm:$0xff] }
 0x379   : > { %v5956_v15 = vcombine.high %v4063_v18, %v4067_v48 }
 0x37b   : > { %4773 = vmatpush1.bf16.msra.mxu0 %v5881_v16  ;;  %4816 = vmatpush1.bf16.msra.mxu1 %v5883_v13  ;;  %v4054_v16 = vld [vmem:[#allocation6 + $0x200] sm:$0xff] }
 0x37c   : > { %4774 = vmatprep.subr.bf16.mxu0 %v6002_v19  ;;  %4817 = vmatprep.subr.bf16.mxu1 %v6004_v11  ;;  %v4058_v13 = vld [vmem:[#allocation6 + $0x220] sm:$0xff]  ;;  %v5855_v19 = vld [vmem:[%s6745_s7 + $0x50] sm:$0xff]  ;;  %v3778_v11 = vunpack.c.h.bf16 %v5853_v10 }
 0x37d   : > { %v5946_v58 = vcombine.high %v4054_v16, %v4058_v13  ;;  %v5945_v20 = vcombine.low %v4054_v16, %v4058_v13 }
 0x37f   : > { %4775 = vmatpush2.bf16.msra.mxu0 %v6001_v2  ;;  %4818 = vmatpush2.bf16.msra.mxu1 %v6003_v23  ;;  %v5947_v2 = vcombine.low %v4055_v17, %v4059_v22  ;;  %v5948_v23 = vcombine.high %v4055_v17, %v4059_v22  ;;  %v2826_v17 = vld [vmem:[#allocation3] sm:$0xff]  ;;  %v7011_v22 = vpop.permute.xlu1 %3955 }
 0x380   : > { %4776 = vmatprep.subr.bf16.mxu0 %v5994_v55  ;;  %4819 = vmatprep.subr.bf16.mxu1 %v5996_v24  ;;  %v6995_v55 = vld [vmem:[#allocation6 + $0x1d8] sm:$0xff]  ;;  %v5941_v24 = vcombine.low %v6991_v28, %v6993_v34  ;;  %vm3958_vm11 = vcmp.eq.s32.totalorder %v7011_v22, 1 }
 0x381   : > { %v5944_v39 = vcombine.high %v6995_v55, %v6999_v30 }
 0x383   : > { %4777 = vmatpush2.bf16.msra.mxu0 %v5993_v25  ;;  %4820 = vmatpush2.bf16.msra.mxu1 %v5995_v26  ;;  %v3781_v26 = vunpack.c.l.bf16 %v5855_v19 }
 0x384   : > { %4778 = vmatprep.subr.bf16.mxu0 %v5986_v37  ;;  %4821 = vmatprep.subr.bf16.mxu1 %v5988_v42  ;;  %v5943_v37 = vcombine.low %v6995_v55, %v6999_v30  ;;  %v3782_v42 = vunpack.c.h.bf16 %v5855_v19  ;;  %v4016_v30 = vld [vmem:[#allocation6 + $0xd0] sm:$0xff] }
 0x387   : > { %4779 = vmatpush2.bf16.msra.mxu0 %v5985_v40  ;;  %4822 = vmatpush2.bf16.msra.mxu1 %v5987_v41 }
 0x388   : > { %4780 = vmatprep.subr.bf16.mxu0 %v5978_v45  ;;  %4823 = vmatprep.subr.bf16.mxu1 %v5980_v50 }
 0x38b   : > { %4781 = vmatpush2.bf16.msra.mxu0 %v5977_v3  ;;  %4824 = vmatpush2.bf16.msra.mxu1 %v5979_v49  ;;  %v5854_v3 = vld [vmem:[%s6745_s7 + $0x48] sm:$0xff] }
 0x38c   : > { %4782 = vmatprep.subr.bf16.mxu0 %v5970_v53  ;;  %4825 = vmatprep.subr.bf16.mxu1 %v5972_v59  ;;  %v3780_v0 = vunpack.c.h.bf16 %v5854_v3  ;;  %v5856_v53 = vld [vmem:[%s6745_s7 + $0x58] sm:$0xff]  ;;  %v3779_v59 = vunpack.c.l.bf16 %v5854_v3 }
 0x38d   : > { %v3783_v63 = vunpack.c.l.bf16 %v5856_v53 }
 0x38f   : > { %4783 = vmatpush2.bf16.msra.mxu0 %v5969_v56  ;;  %4826 = vmatpush2.bf16.msra.mxu1 %v5971_v57  ;;  %v3784_v56 = vunpack.c.h.bf16 %v5856_v53 }
 0x390   : > { %4784 = vmatprep.subr.bf16.mxu0 %v5962_v62  ;;  %4827 = vmatprep.subr.bf16.mxu1 %v5964_v32 }
 0x393   : > { %4785 = vmatpush2.bf16.msra.mxu0 %v5961_v1  ;;  %4828 = vmatpush2.bf16.msra.mxu1 %v5963_v5 }
 0x394   : > { %4786 = vmatprep.subr.bf16.mxu0 %v5954_v8  ;;  %4829 = vmatprep.subr.bf16.mxu1 %v5956_v15 }
 0x397   : > { %4787 = vmatpush2.bf16.msra.mxu0 %v5953_v12  ;;  %4830 = vmatpush2.bf16.msra.mxu1 %v5955_v14  ;;  %v7009_v14 = vpop.permute.xlu0 %3952 }
 0x398   : > { %4788 = vmatprep.subr.bf16.mxu0 %v5946_v58  ;;  %4831 = vmatprep.subr.bf16.mxu1 %v5948_v23  ;;  %vm3957_vm10 = vcmp.eq.s32.totalorder %v7009_v14, 1 }
 0x39b   : > { %4789 = vmatpush2.bf16.msra.mxu0 %v5945_v20  ;;  %4832 = vmatpush2.bf16.msra.mxu1 %v5947_v2 }
 0x39c   : > { %4844 = vmatprep.subr.bf16.mxu0 %v5942_v36  ;;  %4887 = vmatprep.subr.bf16.mxu1 %v5944_v39 }
 0x3de   : > { %v3634_v27 = vpop.f32.mrf.mxu0  ;;  %v3677_v25 = vpop.f32.mrf.mxu1 }
 0x3df   : > { %v3785_v35 = vadd.f32 %v3777_v21, %v3634_v27  ;;  %v3787_v62 = vadd.f32 %v3779_v59, %v3677_v25  ;;  %v2828_v25 = vld [vmem:[#allocation3 + $0x8] sm:$0xff] }
 0x3e0   : > { %v3636_v31 = vpop.f32.mrf.mxu0  ;;  %v3679_v43 = vpop.f32.mrf.mxu1 }
 0x3e1   : > { %v5857_v40 = vmul.f32 -1.442695, %v3785_v35  ;;  %v3786_v41 = vadd.f32 %v3778_v11, %v3636_v31  ;;  %v3788_v54 = vadd.f32 %v3780_v0, %v3679_v43  ;;  %v3849_v11 = vpop.permute.xlu0 %3848 }
 0x3e2   : > { %v3638_v29 = vpop.f32.mrf.mxu0  ;;  %v3681_v52 = vpop.f32.mrf.mxu1  ;;  %vm3853_vm8 = vcmp.eq.s32.totalorder %v3849_v11, 1 }
 0x3e3   : > { %6313 = vpow2.f32 %v5857_v40  ;;  %v5859_v33 = vmul.f32 -1.442695, %v3786_v41  ;;  %v3789_v45 = vadd.f32 %v3781_v26, %v3638_v29  ;;  %v5861_v60 = vmul.f32 -1.442695, %v3788_v54  ;;  %v3852_v40 = vpop.permute.xlu1 %3851 }
 0x3e4   : > { %v3640_v46 = vpop.f32.mrf.mxu0  ;;  %v3683_v57 = vpop.f32.mrf.mxu1  ;;  %v3791_v18 = vadd.f32 %v3783_v63, %v3681_v52  ;;  %vm3854_vm9 = vcmp.eq.s32.totalorder %v3852_v40, 1 }
 0x3e5   : > { %6315 = vpow2.f32 %v5859_v33  ;;  %v5858_v49 = vmul.f32 -1.442695, %v3789_v45  ;;  %v3790_v50 = vadd.f32 %v3782_v42, %v3640_v46  ;;  %v3792_v38 = vadd.f32 %v3784_v56, %v3683_v57  ;;  %v5869_v56 = vld [vmem:[%s6747_s28 + $0x30] sm:$0xff] }
 0x3e7   : > { %6317 = vpow2.f32 %v5858_v49  ;;  %v5860_v4 = vmul.f32 -1.442695, %v3790_v50  ;;  %v5862_v32 = vmul.f32 -1.442695, %v3792_v38  ;;  %v5867_v49 = vld [vmem:[%s6747_s28 + $0x20] sm:$0xff] }
 0x3e8   : > { %v3881_v53 = vunpack.c.l.bf16 %v5867_v49  ;;  %v3882_v57 = vunpack.c.h.bf16 %v5867_v49 }
 0x3e9   : > { %6319 = vpow2.f32 %v5860_v4 }
 0x3ea   : > { %6321 = vpow2.f32 %v5861_v60 }
 0x3f0   : > { %v6314_v61 = vpop.eup %6313 }
 0x3f1   : > { %v3799_v1 = vadd.f32 1.0, %v6314_v61 }
 0x3f2   : > { %v6316_v5 = vpop.eup %6315 }
 0x3f3   : > { %6323 = vrcp.f32 %v3799_v1  ;;  %v3811_v6 = vadd.f32 1.0, %v6316_v5  ;;  %v3886_v1 = vunpack.c.h.bf16 %v5869_v56 }
 0x3f4   : > { %v6318_v7 = vpop.eup %6317  ;;  %6325 = vtanh.f32 %v3787_v62 }
 0x3f5   : > { %6327 = vrcp.f32 %v3811_v6  ;;  %v3800_v8 = vadd.f32 1.0, %v6318_v7 }
 0x3f6   : > { %v6320_v48 = vpop.eup %6319  ;;  %6329 = vpow2.f32 %v5862_v32 }
 0x3f7   : > { %6331 = vrcp.f32 %v3800_v8  ;;  %v3812_v10 = vadd.f32 1.0, %v6320_v48  ;;  %v6322_v12 = vpop.eup %6321  ;;  %v5868_v48 = vld [vmem:[%s6747_s28 + $0x28] sm:$0xff] }
 0x3f8   : > { %6333 = vtanh.f32 %v3791_v18  ;;  %v3825_v21 = vadd.f32 1.0, %v6322_v12 }
 0x3f9   : > { %6335 = vrcp.f32 %v3812_v10 }
 0x3fa   : > { %6337 = vrcp.f32 %v3825_v21 }
 0x400   : > { %v6324_v15 = vpop.eup %6323 }
 0x401   : > { %v6326_v16 = vpop.eup %6325 }
 0x402   : > { %v6328_v13 = vpop.eup %6327  ;;  %v3833_v19 = vmul.f32 %v6326_v16, %v6324_v15  ;;  %v3884_v15 = vunpack.c.h.bf16 %v5868_v48  ;;  %v5870_v16 = vld [vmem:[%s6747_s28 + $0x38] sm:$0xff] }
 0x403   : > { %v6330_v58 = vpop.eup %6329  ;;  %v3831_v20 = vmul.f32 %v6328_v13, %v2826_v17  ;;  %v3883_v13 = vunpack.c.l.bf16 %v5868_v48  ;;  %v3887_v11 = vunpack.c.l.bf16 %v5870_v16 }
 0x404   : > { %v6332_v2 = vpop.eup %6331  ;;  %v3826_v26 = vadd.f32 1.0, %v6330_v58 }
 0x405   : > { %v6334_v23 = vpop.eup %6333  ;;  %v3835_v27 = vadd.f32 %v3833_v19, %v3831_v20 }
 0x406   : > { %v6336_v35 = vpop.eup %6335  ;;  %v3834_v36 = vmul.f32 %v6334_v23, %v6332_v2 }
 0x407   : > { %6339 = vtanh.f32 %v3835_v27  ;;  %v3859_v31 = vsel %vm3853_vm8, %v3835_v27, %v2826_v17  ;;  %v3832_v39 = vmul.f32 %v6336_v35, %v2828_v25  ;;  %v6338_v29 = vpop.eup %6337  ;;  %v3888_v17 = vunpack.c.h.bf16 %v5870_v16 }
 0x408   : > { %3861 = vst [vmem:[#allocation3] sm:$0xff] %v3859_v31  ;;  %6341 = vrcp.f32 %v3826_v26 }
 0x409   : > { %v3836_v41 = vadd.f32 %v3834_v36, %v3832_v39 }
 0x40b   : > { %6343 = vtanh.f32 %v3836_v41  ;;  %v3860_v42 = vsel %vm3854_vm9, %v3836_v41, %v2828_v25 }
 0x40c   : > { %3862 = vst [vmem:[#allocation3 + $0x8] sm:$0xff] %v3860_v42 }
 0x414   : > { %v6340_v33 = vpop.eup %6339 }
 0x415   : > { %v3839_v43 = vmul.f32 %v6340_v33, %v6338_v29  ;;  %v6342_v45 = vpop.eup %6341 }
 0x417   : > { %v7016_v46 = vsel %vm3853_vm8, %v3839_v43, %v6943_v47  ;;  %v3863_v0 = vsel %vm3853_vm8, %v3839_v43, 0.0  ;;  %v3885_v47 = vunpack.c.l.bf16 %v5869_v56 }
 0x418   : > { %v6344_v3 = vpop.eup %6343 }
 0x419   : > { %v3840_v50 = vmul.f32 %v6344_v3, %v6342_v45  ;;  %v2827_v45 = vld [vmem:[#allocation3 + $0x18] sm:$0xff] }
 0x41b   : > { %v7021_v52 = vsel %vm3854_vm9, %v3840_v50, %v6948_v51  ;;  %v3864_v4 = vsel %vm3854_vm9, %v3840_v50, 0.0 }
 0x41c   : > { %v6080_v54 = vpack.c.bf16 %v3864_v4, %v3863_v0 }
 0x41e   : > { %6100 = vst [vmem:[%s6766_s16 + $0x10] sm:$0xff] %v6080_v54   ;;  %v3720_v59 = vpop.f32.mrf.mxu0  ;;  %v3763_v38 = vpop.f32.mrf.mxu1 }
 0x41f   : > { %v3889_v60 = vadd.f32 %v3881_v53, %v3720_v59  ;;  %v3891_v19 = vadd.f32 %v3883_v13, %v3763_v38 }
 0x420   : > { %v3722_v61 = vpop.f32.mrf.mxu0  ;;  %v3765_v32 = vpop.f32.mrf.mxu1 }
 0x421   : > { %v5871_v62 = vmul.f32 -1.442695, %v3889_v60  ;;  %v3890_v63 = vadd.f32 %v3882_v57, %v3722_v61  ;;  %v3892_v58 = vadd.f32 %v3884_v15, %v3765_v32  ;;  %v2829_v57 = vld [vmem:[#allocation3 + $0x10] sm:$0xff]  ;;  %v4045_v15 = vld [vmem:[#allocation6 + $0x1b8] sm:$0xff] }
 0x422   : > { %v3724_v5 = vpop.f32.mrf.mxu0  ;;  %v3767_v10 = vpop.f32.mrf.mxu1 }
 0x423   : > { %6345 = vpow2.f32 %v5871_v62  ;;  %v5873_v51 = vmul.f32 -1.442695, %v3890_v63  ;;  %v3893_v6 = vadd.f32 %v3885_v47, %v3724_v5  ;;  %v5875_v23 = vmul.f32 -1.442695, %v3892_v58  ;;  %v4033_v58 = vld [vmem:[#allocation6 + $0x158] sm:$0xff] }
 0x424   : > { %v3726_v7 = vpop.f32.mrf.mxu0  ;;  %v3769_v21 = vpop.f32.mrf.mxu1  ;;  %v3895_v36 = vadd.f32 %v3887_v11, %v3767_v10  ;;  %v4044_v10 = vld [vmem:[#allocation6 + $0x1b0] sm:$0xff] }
 0x425   : > { %6347 = vpow2.f32 %v5873_v51  ;;  %v5872_v18 = vmul.f32 -1.442695, %v3893_v6  ;;  %v3894_v8 = vadd.f32 %v3886_v1, %v3726_v7  ;;  %v3896_v20 = vadd.f32 %v3888_v17, %v3769_v21  ;;  %v4040_v7 = vld [vmem:[#allocation6 + $0x190] sm:$0xff] }
 0x426   : > { %v7045_v17 = vpack.c.bf16 %v7021_v52, %v7016_v46  ;;  %v5934_v14 = vcombine.high %v4040_v7, %v4044_v10 }
 0x427   : > { %6349 = vpow2.f32 %v5872_v18  ;;  %v5874_v12 = vmul.f32 -1.442695, %v3894_v8  ;;  %v5876_v25 = vmul.f32 -1.442695, %v3896_v20  ;;  %v5933_v20 = vcombine.low %v4040_v7, %v4044_v10  ;;  %v4116_v7 = vld [vmem:[#allocation6 + $0x3f0] sm:$0xff] }
 0x429   : > { %6351 = vpow2.f32 %v5874_v12  ;;  %v4041_v12 = vld [vmem:[#allocation6 + $0x198] sm:$0xff] }
 0x42a   : > { %6353 = vtanh.f32 %v3891_v19  ;;  %v5936_v21 = vcombine.high %v4041_v12, %v4045_v15  ;;  %v4037_v19 = vld [vmem:[#allocation6 + $0x178] sm:$0xff] }
 0x42b   : > { %v5928_v11 = vcombine.high %v4033_v58, %v4037_v19  ;;  %v5927_v34 = vcombine.low %v4033_v58, %v4037_v19 }
 0x430   : > { %v6346_v2 = vpop.eup %6345 }
 0x431   : > { %v3903_v27 = vadd.f32 1.0, %v6346_v2  ;;  %v5935_v2 = vcombine.low %v4041_v12, %v4045_v15 }
 0x432   : > { %v6348_v35 = vpop.eup %6347 }
 0x433   : > { %6355 = vrcp.f32 %v3903_v27  ;;  %v3915_v26 = vadd.f32 1.0, %v6348_v35  ;;  %v4024_v27 = vld [vmem:[#allocation6 + $0x110] sm:$0xff] }
 0x434   : > { %v6350_v31 = vpop.eup %6349  ;;  %6357 = vpow2.f32 %v5875_v23  ;;  %v4028_v35 = vld [vmem:[#allocation6 + $0x130] sm:$0xff] }
 0x435   : > { %6359 = vrcp.f32 %v3915_v26  ;;  %v3904_v39 = vadd.f32 1.0, %v6350_v31  ;;  %v4029_v26 = vld [vmem:[#allocation6 + $0x138] sm:$0xff]  ;;  %v5918_v55 = vcombine.high %v4024_v27, %v4028_v35 }
 0x436   : > { %v6352_v40 = vpop.eup %6351  ;;  %6361 = vpow2.f32 %v5876_v25  ;;  %v4025_v25 = vld [vmem:[#allocation6 + $0x118] sm:$0xff] }
 0x437   : > { %6363 = vrcp.f32 %v3904_v39  ;;  %v3916_v41 = vadd.f32 1.0, %v6352_v40  ;;  %v6354_v42 = vpop.eup %6353  ;;  %v4017_v31 = vld [vmem:[#allocation6 + $0xd8] sm:$0xff]  ;;  %v5917_v39 = vcombine.low %v4024_v27, %v4028_v35  ;;  %v5919_v40 = vcombine.low %v4025_v25, %v4029_v26 }
 0x438   : > { %6365 = vtanh.f32 %v3895_v36  ;;  %v4021_v36 = vld [vmem:[#allocation6 + $0xf8] sm:$0xff] }
 0x439   : > { %6367 = vrcp.f32 %v3916_v41  ;;  %v4101_v27 = vld [vmem:[#allocation6 + $0x378] sm:$0xff] }
 0x440   : > { %v6356_v29 = vpop.eup %6355 }
 0x441   : > { %v6358_v33 = vpop.eup %6357  ;;  %v3937_v49 = vmul.f32 %v6356_v29, %v6354_v42  ;;  %v5912_v42 = vcombine.high %v4017_v31, %v4021_v36  ;;  %v4008_v29 = vld [vmem:[#allocation6 + $0x90] sm:$0xff] }
 0x442   : > { %v6360_v43 = vpop.eup %6359  ;;  %v3929_v54 = vadd.f32 1.0, %v6358_v33  ;;  %v4012_v33 = vld [vmem:[#allocation6 + $0xb0] sm:$0xff] }
 0x443   : > { %v6362_v3 = vpop.eup %6361  ;;  %v3935_v50 = vmul.f32 %v6360_v43, %v2827_v45  ;;  %v4009_v43 = vld [vmem:[#allocation6 + $0x98] sm:$0xff] }
 0x444   : > { %v6364_v0 = vpop.eup %6363  ;;  %v3930_v59 = vadd.f32 1.0, %v6362_v3 }
 0x445   : > { %v6366_v4 = vpop.eup %6365  ;;  %v3939_v53 = vadd.f32 %v3937_v49, %v3935_v50  ;;  %v5911_v49 = vcombine.low %v4017_v31, %v4021_v36  ;;  %v5902_v50 = vcombine.high %v4008_v29, %v4012_v33 }
 0x446   : > { %v6368_v56 = vpop.eup %6367  ;;  %v3938_v38 = vmul.f32 %v6366_v4, %v6364_v0  ;;  %v4000_v4 = vld [vmem:[#allocation6 + $0x50] sm:$0xff] }
 0x447   : > { %6369 = vtanh.f32 %v3939_v53  ;;  %v3963_v60 = vsel %vm3957_vm10, %v3939_v53, %v2827_v45  ;;  %v3936_v47 = vmul.f32 %v6368_v56, %v2829_v57  ;;  %v4013_v45 = vld [vmem:[#allocation6 + $0xb8] sm:$0xff]  ;;  %v4004_v53 = vld [vmem:[#allocation6 + $0x70] sm:$0xff] }
 0x448   : > { %3965 = vst [vmem:[#allocation3 + $0x18] sm:$0xff] %v3963_v60  ;;  %6371 = vrcp.f32 %v3929_v54  ;;  %v5904_v0 = vcombine.high %v4009_v43, %v4013_v45  ;;  %v4001_v54 = vld [vmem:[#allocation6 + $0x58] sm:$0xff]  ;;  %v5894_v60 = vcombine.high %v4000_v4, %v4004_v53 }
 0x449   : > { %v3940_v61 = vadd.f32 %v3938_v38, %v3936_v47  ;;  %6373 = vrcp.f32 %v3930_v59  ;;  %v4005_v56 = vld [vmem:[#allocation6 + $0x78] sm:$0xff]  ;;  %v5903_v59 = vcombine.low %v4009_v43, %v4013_v45  ;;  %v3992_v47 = vld [vmem:[#allocation6 + $0x10] sm:$0xff] }
 0x44a   : > { %v5896_v38 = vcombine.high %v4001_v54, %v4005_v56 }
 0x44b   : > { %6375 = vtanh.f32 %v3940_v61  ;;  %v3964_v62 = vsel %vm3958_vm11, %v3940_v61, %v2829_v57  ;;  %v5901_v57 = vcombine.low %v4008_v29, %v4012_v33  ;;  %v3996_v61 = vld [vmem:[#allocation6 + $0x30] sm:$0xff]  ;;  %v4085_v29 = vld [vmem:[#allocation6 + $0x2f8] sm:$0xff] }
 0x44c   : > { %3966 = vst [vmem:[#allocation3 + $0x10] sm:$0xff] %v3964_v62  ;;  %v3993_v62 = vld [vmem:[#allocation6 + $0x18] sm:$0xff]  ;;  %v5885_v10 = vcombine.low %v3992_v47, %v3996_v61 }
 0x454   : > { %v6370_v63 = vpop.eup %6369 }
 0x455   : > { %v6372_v1 = vpop.eup %6371 }
 0x456   : > { %v6374_v5 = vpop.eup %6373  ;;  %v3943_v51 = vmul.f32 %v6372_v1, %v6370_v63  ;;  %v3997_v63 = vld [vmem:[#allocation6 + $0x38] sm:$0xff]  ;;  %v5893_v1 = vcombine.low %v4000_v4, %v4004_v53 }
 0x457   : > { %v5887_v12 = vcombine.low %v3993_v62, %v3997_v63  ;;  %v4077_v4 = vld [vmem:[#allocation6 + $0x2b8] sm:$0xff] }
 0x458   : > { %v6376_v32 = vpop.eup %6375  ;;  %v7034_v18 = vsel %vm3957_vm10, %v3943_v51, %v6965_v44  ;;  %v3967_v22 = vsel %vm3957_vm10, %v3943_v51, 0.0  ;;  %v4032_v44 = vld [vmem:[#allocation6 + $0x150] sm:$0xff]  ;;  %v5886_v51 = vcombine.high %v3992_v47, %v3996_v61  ;;  %v4069_v47 = vld [vmem:[#allocation6 + $0x278] sm:$0xff] }
 0x459   : > { %v3944_v6 = vmul.f32 %v6376_v32, %v6374_v5  ;;  %v5895_v5 = vcombine.low %v4001_v54, %v4005_v56  ;;  %v5888_v32 = vcombine.high %v3993_v62, %v3997_v63 }
 0x45b   : > { %v7039_v8 = vsel %vm3958_vm11, %v3944_v6, %v6970_v9  ;;  %v3968_v48 = vsel %vm3958_vm11, %v3944_v6, 0.0  ;;  %v4036_v9 = vld [vmem:[#allocation6 + $0x170] sm:$0xff] }
 0x45c   : > { %v6085_v16 = vpack.c.bf16 %v3968_v48, %v3967_v22  ;;  %v3989_v13 = vpack.c.bf16 %v7039_v8, %v7034_v18  ;;  %v5926_v23 = vcombine.high %v4032_v44, %v4036_v9  ;;  %v5925_v28 = vcombine.low %v4032_v44, %v4036_v9  ;;  %v4112_v6 = vld [vmem:[#allocation6 + $0x3d0] sm:$0xff]  ;;  %v4113_v22 = vld [vmem:[#allocation6 + $0x3d8] sm:$0xff] }
 0x45d   : > { %v4117_v48 = vld [vmem:[#allocation6 + $0x3f8] sm:$0xff]  ;;  %v6006_v15 = vcombine.high %v4112_v6, %v4116_v7  ;;  %v4108_v44 = vld [vmem:[#allocation6 + $0x3b0] sm:$0xff]  ;;  %v6005_v9 = vcombine.low %v4112_v6, %v4116_v7 }
 0x45e   : > { %6101 = vst [vmem:[%s6781_s23 + $0x8] sm:$0xff] %v6085_v16   ;;  %4790 = vmatprep.mubr.bf16.mxu0 %v3989_v13  ;;  %4833 = vmatprep.mubr.bf16.mxu1 %v3989_v13  ;;  %v6008_v16 = vcombine.high %v4113_v22, %v4117_v48  ;;  %v6007_v58 = vcombine.low %v4113_v22, %v4117_v48  ;;  %v4061_v6 = vld [vmem:[#allocation6 + $0x238] sm:$0xff] }
 0x45f   : > { %4791 = vmatmul.mubr.bf16.vlgmr.msra.gmra.mxu0 %v7045_v17  ;;  %4834 = vmatmul.mubr.bf16.vlgmr.msra.gmra.mxu1 %v7045_v17 }
 0x460   : > { %4845 = vmatpush1.bf16.msra.mxu0 %v5941_v24  ;;  %4888 = vmatpush1.bf16.msra.mxu1 %v5943_v37  ;;  %v5920_v24 = vcombine.high %v4025_v25, %v4029_v26  ;;  %v4020_v37 = vld [vmem:[#allocation6 + $0xf0] sm:$0xff] }
 0x461   : > { %4876 = vmatprep.mubr.bf16.mxu0 %v3989_v13  ;;  %4919 = vmatprep.mubr.bf16.mxu1 %v3989_v13  ;;  %v5910_v41 = vcombine.high %v4016_v30, %v4020_v37  ;;  %v5909_v3 = vcombine.low %v4016_v30, %v4020_v37  ;;  %v4104_v13 = vld [vmem:[#allocation6 + $0x390] sm:$0xff]  ;;  %v4093_v30 = vld [vmem:[#allocation6 + $0x338] sm:$0xff] }
 0x462   : > { %4846 = vmatprep.subr.bf16.mxu0 %v5934_v14  ;;  %4889 = vmatprep.subr.bf16.mxu1 %v5936_v21  ;;  %v4105_v14 = vld [vmem:[#allocation6 + $0x398] sm:$0xff]  ;;  %v5998_v19 = vcombine.high %v4104_v13, %v4108_v44  ;;  %v5997_v35 = vcombine.low %v4104_v13, %v4108_v44  ;;  %v6011_v44 = vld [vmem:[%s6745_s7 + $0x70] sm:$0xff] }
 0x463   : > { %v4109_v21 = vld [vmem:[#allocation6 + $0x3b8] sm:$0xff] }
 0x464   : > { %4847 = vmatpush1.bf16.msra.mxu0 %v5933_v20  ;;  %4890 = vmatpush1.bf16.msra.mxu1 %v5935_v2  ;;  %v6000_v20 = vcombine.high %v4105_v14, %v4109_v21  ;;  %v4096_v2 = vld [vmem:[#allocation6 + $0x350] sm:$0xff]  ;;  %v5999_v25 = vcombine.low %v4105_v14, %v4109_v21 }
 0x465   : > { %4848 = vmatprep.subr.bf16.mxu0 %v5926_v23  ;;  %4891 = vmatprep.subr.bf16.mxu1 %v5928_v11  ;;  %v4100_v23 = vld [vmem:[#allocation6 + $0x370] sm:$0xff]  ;;  %v4097_v11 = vld [vmem:[#allocation6 + $0x358] sm:$0xff] }
 0x466   : > { %v5990_v26 = vcombine.high %v4096_v2, %v4100_v23  ;;  %v5989_v37 = vcombine.low %v4096_v2, %v4100_v23  ;;  %v5991_v31 = vcombine.low %v4097_v11, %v4101_v27 }
 0x468   : > { %4849 = vmatpush1.bf16.msra.mxu0 %v5925_v28  ;;  %4892 = vmatpush1.bf16.msra.mxu1 %v5927_v34  ;;  %v5992_v28 = vcombine.high %v4097_v11, %v4101_v27  ;;  %v4088_v34 = vld [vmem:[#allocation6 + $0x310] sm:$0xff]  ;;  %v4940_v11 = vunpack.c.h.bf16 %v6011_v44 }
 0x469   : > { %4850 = vmatprep.subr.bf16.mxu0 %v5918_v55  ;;  %4893 = vmatprep.subr.bf16.mxu1 %v5920_v24  ;;  %v4092_v55 = vld [vmem:[#allocation6 + $0x330] sm:$0xff]  ;;  %v4089_v24 = vld [vmem:[#allocation6 + $0x318] sm:$0xff] }
 0x46a   : > { %v5982_v36 = vcombine.high %v4088_v34, %v4092_v55  ;;  %v5981_v33 = vcombine.low %v4088_v34, %v4092_v55  ;;  %v5983_v43 = vcombine.low %v4089_v24, %v4093_v30 }
 0x46c   : > { %4851 = vmatpush1.bf16.msra.mxu0 %v5917_v39  ;;  %4894 = vmatpush1.bf16.msra.mxu1 %v5919_v40  ;;  %v5984_v39 = vcombine.high %v4089_v24, %v4093_v30  ;;  %v4080_v40 = vld [vmem:[#allocation6 + $0x2d0] sm:$0xff] }
 0x46d   : > { %4852 = vmatprep.subr.bf16.mxu0 %v5910_v41  ;;  %4895 = vmatprep.subr.bf16.mxu1 %v5912_v42  ;;  %v4084_v41 = vld [vmem:[#allocation6 + $0x2f0] sm:$0xff]  ;;  %v4081_v42 = vld [vmem:[#allocation6 + $0x2d8] sm:$0xff] }
 0x46e   : > { %v5974_v45 = vcombine.high %v4080_v40, %v4084_v41  ;;  %v5973_v53 = vcombine.low %v4080_v40, %v4084_v41  ;;  %v5975_v54 = vcombine.low %v4081_v42, %v4085_v29 }
 0x470   : > { %4853 = vmatpush1.bf16.msra.mxu0 %v5909_v3  ;;  %4896 = vmatpush1.bf16.msra.mxu1 %v5911_v49  ;;  %v5976_v3 = vcombine.high %v4081_v42, %v4085_v29  ;;  %v4072_v49 = vld [vmem:[#allocation6 + $0x290] sm:$0xff] }
 0x471   : > { %4854 = vmatprep.subr.bf16.mxu0 %v5902_v50  ;;  %4897 = vmatprep.subr.bf16.mxu1 %v5904_v0  ;;  %v4076_v50 = vld [vmem:[#allocation6 + $0x2b0] sm:$0xff]  ;;  %v4073_v0 = vld [vmem:[#allocation6 + $0x298] sm:$0xff] }
 0x472   : > { %v5966_v56 = vcombine.high %v4072_v49, %v4076_v50  ;;  %v5965_v61 = vcombine.low %v4072_v49, %v4076_v50  ;;  %v5967_v62 = vcombine.low %v4073_v0, %v4077_v4 }
 0x474   : > { %4855 = vmatpush1.bf16.msra.mxu0 %v5901_v57  ;;  %4898 = vmatpush1.bf16.msra.mxu1 %v5903_v59  ;;  %v5968_v57 = vcombine.high %v4073_v0, %v4077_v4  ;;  %v4064_v59 = vld [vmem:[#allocation6 + $0x250] sm:$0xff] }
 0x475   : > { %4856 = vmatprep.subr.bf16.mxu0 %v5894_v60  ;;  %4899 = vmatprep.subr.bf16.mxu1 %v5896_v38  ;;  %v4068_v60 = vld [vmem:[#allocation6 + $0x270] sm:$0xff]  ;;  %v4065_v38 = vld [vmem:[#allocation6 + $0x258] sm:$0xff] }
 0x476   : > { %v5958_v63 = vcombine.high %v4064_v59, %v4068_v60  ;;  %v5957_v7 = vcombine.low %v4064_v59, %v4068_v60  ;;  %v5959_v22 = vcombine.low %v4065_v38, %v4069_v47 }
 0x478   : > { %4857 = vmatpush1.bf16.msra.mxu0 %v5893_v1  ;;  %4900 = vmatpush1.bf16.msra.mxu1 %v5895_v5  ;;  %v5960_v1 = vcombine.high %v4065_v38, %v4069_v47  ;;  %v4056_v5 = vld [vmem:[#allocation6 + $0x210] sm:$0xff] }
 0x479   : > { %4858 = vmatprep.subr.bf16.mxu0 %v5886_v51  ;;  %4901 = vmatprep.subr.bf16.mxu1 %v5888_v32  ;;  %v4060_v51 = vld [vmem:[#allocation6 + $0x230] sm:$0xff]  ;;  %v4057_v32 = vld [vmem:[#allocation6 + $0x218] sm:$0xff] }
 0x47a   : > { %v5950_v48 = vcombine.high %v4056_v5, %v4060_v51 }
 0x47c   : > { %4859 = vmatpush1.bf16.msra.mxu0 %v5885_v10  ;;  %4902 = vmatpush1.bf16.msra.mxu1 %v5887_v12  ;;  %v5952_v10 = vcombine.high %v4057_v32, %v4061_v6  ;;  %v5949_v12 = vcombine.low %v4056_v5, %v4060_v51 }
 0x47d   : > { %4860 = vmatprep.subr.bf16.mxu0 %v6006_v15  ;;  %4903 = vmatprep.subr.bf16.mxu1 %v6008_v16  ;;  %v5951_v15 = vcombine.low %v4057_v32, %v4061_v6  ;;  %v6009_v16 = vld [vmem:[%s6745_s7 + $0x60] sm:$0xff]  ;;  %v5007_v6 = vpop.permute.xlu0 %5006 }
 0x47e   : > { %v4935_v13 = vunpack.c.l.bf16 %v6009_v16  ;;  %v4936_v14 = vunpack.c.h.bf16 %v6009_v16  ;;  %vm5011_vm12 = vcmp.eq.s32.totalorder %v5007_v6, 1 }
 0x480   : > { %4861 = vmatpush2.bf16.msra.mxu0 %v6005_v9  ;;  %4904 = vmatpush2.bf16.msra.mxu1 %v6007_v58 }
 0x481   : > { %4862 = vmatprep.subr.bf16.mxu0 %v5998_v19  ;;  %4905 = vmatprep.subr.bf16.mxu1 %v6000_v20  ;;  %v4939_v19 = vunpack.c.l.bf16 %v6011_v44 }
 0x484   : > { %4863 = vmatpush2.bf16.msra.mxu0 %v5997_v35  ;;  %4906 = vmatpush2.bf16.msra.mxu1 %v5999_v25 }
 0x485   : > { %4864 = vmatprep.subr.bf16.mxu0 %v5990_v26  ;;  %4907 = vmatprep.subr.bf16.mxu1 %v5992_v28  ;;  %v6010_v28 = vld [vmem:[%s6745_s7 + $0x68] sm:$0xff] }
 0x486   : > { %v4938_v24 = vunpack.c.h.bf16 %v6010_v28  ;;  %v4937_v41 = vunpack.c.l.bf16 %v6010_v28  ;;  %v5036_v28 = vld [vmem:[%s6747_s28 + $0x10] sm:$0xff] }
 0x488   : > { %4865 = vmatpush2.bf16.msra.mxu0 %v5989_v37  ;;  %4908 = vmatpush2.bf16.msra.mxu1 %v5991_v31  ;;  %v6012_v31 = vld [vmem:[%s6745_s7 + $0x78] sm:$0xff] }
 0x489   : > { %4866 = vmatprep.subr.bf16.mxu0 %v5982_v36  ;;  %4909 = vmatprep.subr.bf16.mxu1 %v5984_v39  ;;  %v4942_v39 = vunpack.c.h.bf16 %v6012_v31 }
 0x48c   : > { %4867 = vmatpush2.bf16.msra.mxu0 %v5981_v33  ;;  %4910 = vmatpush2.bf16.msra.mxu1 %v5983_v43 }
 0x48d   : > { %4868 = vmatprep.subr.bf16.mxu0 %v5974_v45  ;;  %4911 = vmatprep.subr.bf16.mxu1 %v5976_v3  ;;  %v4941_v45 = vunpack.c.l.bf16 %v6012_v31 }
 0x490   : > { %4869 = vmatpush2.bf16.msra.mxu0 %v5973_v53  ;;  %4912 = vmatpush2.bf16.msra.mxu1 %v5975_v54 }
 0x491   : > { %4870 = vmatprep.subr.bf16.mxu0 %v5966_v56  ;;  %4913 = vmatprep.subr.bf16.mxu1 %v5968_v57 }
 0x494   : > { %4871 = vmatpush2.bf16.msra.mxu0 %v5965_v61  ;;  %4914 = vmatpush2.bf16.msra.mxu1 %v5967_v62  ;;  %v3984_v61 = vld [vmem:[#allocation3] sm:$0xff] }
 0x495   : > { %4872 = vmatprep.subr.bf16.mxu0 %v5958_v63  ;;  %4915 = vmatprep.subr.bf16.mxu1 %v5960_v1 }
 0x498   : > { %4873 = vmatpush2.bf16.msra.mxu0 %v5957_v7  ;;  %4916 = vmatpush2.bf16.msra.mxu1 %v5959_v22 }
 0x499   : > { %4874 = vmatprep.subr.bf16.mxu0 %v5950_v48  ;;  %4917 = vmatprep.subr.bf16.mxu1 %v5952_v10  ;;  %v3986_v48 = vld [vmem:[#allocation3 + $0x8] sm:$0xff] }
 0x49c   : > { %4875 = vmatpush2.bf16.msra.mxu0 %v5949_v12  ;;  %4918 = vmatpush2.bf16.msra.mxu1 %v5951_v15 }
 0x49f   : > { %4877 = vmatmul.mubr.bf16.vlgmr.msra.gmra.mxu0 %v7045_v17  ;;  %4920 = vmatmul.mubr.bf16.vlgmr.msra.gmra.mxu1 %v7045_v17 }
 0x51f   : > { %v4792_v21 = vpop.f32.mrf.mxu0  ;;  %v4835_v58 = vpop.f32.mrf.mxu1 }
 0x520   : > { %v4943_v9 = vadd.f32 %v4935_v13, %v4792_v21  ;;  %v4945_v43 = vadd.f32 %v4937_v41, %v4835_v58  ;;  %v5010_v13 = vpop.permute.xlu1 %5009 }
 0x521   : > { %v4794_v20 = vpop.f32.mrf.mxu0  ;;  %v4837_v25 = vpop.f32.mrf.mxu1  ;;  %vm5012_vm13 = vcmp.eq.s32.totalorder %v5010_v13, 1 }
 0x522   : > { %v6013_v2 = vmul.f32 -1.442695, %v4943_v9  ;;  %v4944_v23 = vadd.f32 %v4936_v14, %v4794_v20  ;;  %v4946_v36 = vadd.f32 %v4938_v24, %v4837_v25 }
 0x523   : > { %v4796_v27 = vpop.f32.mrf.mxu0  ;;  %v4839_v30 = vpop.f32.mrf.mxu1 }
 0x524   : > { %6377 = vpow2.f32 %v6013_v2  ;;  %v6015_v35 = vmul.f32 -1.442695, %v4944_v23  ;;  %v4947_v26 = vadd.f32 %v4939_v19, %v4796_v27  ;;  %v6017_v42 = vmul.f32 -1.442695, %v4946_v36  ;;  %v5034_v23 = vld [vmem:[%s6747_s28] sm:$0xff] }
 0x525   : > { %v4798_v17 = vpop.f32.mrf.mxu0  ;;  %v4841_v40 = vpop.f32.mrf.mxu1  ;;  %v4949_v53 = vadd.f32 %v4941_v45, %v4839_v30  ;;  %v5042_v30 = vunpack.c.l.bf16 %v5036_v28 }
 0x526   : > { %6379 = vpow2.f32 %v6015_v35  ;;  %v6014_v34 = vmul.f32 -1.442695, %v4947_v26  ;;  %v4948_v55 = vadd.f32 %v4940_v11, %v4798_v17  ;;  %v4950_v29 = vadd.f32 %v4942_v39, %v4841_v40 }
 0x527   : > { %v5038_v26 = vunpack.c.l.bf16 %v5034_v23  ;;  %v5043_v39 = vunpack.c.h.bf16 %v5036_v28 }
 0x528   : > { %6381 = vpow2.f32 %v6014_v34  ;;  %v6016_v37 = vmul.f32 -1.442695, %v4948_v55  ;;  %v6018_v50 = vmul.f32 -1.442695, %v4950_v29  ;;  %v5039_v34 = vunpack.c.h.bf16 %v5034_v23 }
 0x52a   : > { %6383 = vpow2.f32 %v6016_v37 }
 0x52b   : > { %6385 = vpow2.f32 %v6017_v42 }
 0x531   : > { %v6378_v33 = vpop.eup %6377 }
 0x532   : > { %v4957_v3 = vadd.f32 1.0, %v6378_v33  ;;  %v5035_v33 = vld [vmem:[%s6747_s28 + $0x8] sm:$0xff] }
 0x533   : > { %v6380_v49 = vpop.eup %6379 }
 0x534   : > { %6387 = vrcp.f32 %v4957_v3  ;;  %v4969_v0 = vadd.f32 1.0, %v6380_v49  ;;  %v5041_v3 = vunpack.c.h.bf16 %v5035_v33 }
 0x535   : > { %v6382_v4 = vpop.eup %6381  ;;  %6389 = vtanh.f32 %v4945_v43 }
 0x536   : > { %6391 = vrcp.f32 %v4969_v0  ;;  %v4958_v54 = vadd.f32 1.0, %v6382_v4  ;;  %v5037_v0 = vld [vmem:[%s6747_s28 + $0x18] sm:$0xff] }
 0x537   : > { %v6384_v56 = vpop.eup %6383  ;;  %6393 = vpow2.f32 %v6018_v50 }
 0x538   : > { %6395 = vrcp.f32 %v4958_v54  ;;  %v4970_v57 = vadd.f32 1.0, %v6384_v56  ;;  %v6386_v59 = vpop.eup %6385  ;;  %v5040_v56 = vunpack.c.l.bf16 %v5035_v33 }
 0x539   : > { %6397 = vtanh.f32 %v4949_v53  ;;  %v4983_v62 = vadd.f32 1.0, %v6386_v59  ;;  %v5045_v53 = vunpack.c.h.bf16 %v5037_v0 }
 0x53a   : > { %6399 = vrcp.f32 %v4970_v57 }
 0x53b   : > { %6401 = vrcp.f32 %v4983_v62 }
 0x541   : > { %v6388_v60 = vpop.eup %6387 }
 0x542   : > { %v6390_v38 = vpop.eup %6389 }
 0x543   : > { %v6392_v47 = vpop.eup %6391  ;;  %v4991_v1 = vmul.f32 %v6390_v38, %v6388_v60 }
 0x544   : > { %v6394_v63 = vpop.eup %6393  ;;  %v4989_v5 = vmul.f32 %v6392_v47, %v3984_v61  ;;  %v5044_v47 = vunpack.c.l.bf16 %v5037_v0 }
 0x545   : > { %v6396_v51 = vpop.eup %6395  ;;  %v4984_v10 = vadd.f32 1.0, %v6394_v63 }
 0x546   : > { %v6398_v32 = vpop.eup %6397  ;;  %v4993_v7 = vadd.f32 %v4991_v1, %v4989_v5 }
 0x547   : > { %v6400_v22 = vpop.eup %6399  ;;  %v4992_v15 = vmul.f32 %v6398_v32, %v6396_v51 }
 0x548   : > { %6403 = vtanh.f32 %v4993_v7  ;;  %v5017_v12 = vsel %vm5011_vm12, %v4993_v7, %v3984_v61  ;;  %v4990_v16 = vmul.f32 %v6400_v22, %v3986_v48  ;;  %v6402_v21 = vpop.eup %6401 }
 0x549   : > { %5019 = vst [vmem:[#allocation3] sm:$0xff] %v5017_v12  ;;  %6405 = vrcp.f32 %v4984_v10 }
 0x54a   : > { %v4994_v44 = vadd.f32 %v4992_v15, %v4990_v16  ;;  %v3985_v15 = vld [vmem:[#allocation3 + $0x18] sm:$0xff] }
 0x54c   : > { %6407 = vtanh.f32 %v4994_v44  ;;  %v5018_v14 = vsel %vm5012_vm13, %v4994_v44, %v3986_v48  ;;  %v5109_v44 = vpop.permute.xlu0 %5108 }
 0x54d   : > { %5020 = vst [vmem:[#allocation3 + $0x8] sm:$0xff] %v5018_v14  ;;  %vm5113_vm14 = vcmp.eq.s32.totalorder %v5109_v44, 1 }
 0x555   : > { %v6404_v9 = vpop.eup %6403 }
 0x556   : > { %v4997_v58 = vmul.f32 %v6404_v9, %v6402_v21  ;;  %v6406_v19 = vpop.eup %6405 }
 0x558   : > { %v5013_v20 = vsel %vm5011_vm12, %v4997_v58, %v7016_v46  ;;  %v5021_v27 = vsel %vm5011_vm12, %v4997_v58, 0.0 }
 0x559   : > { %v6408_v2 = vpop.eup %6407  ;;  %5015 = vst [vmem:[#allocation2 + $0x10] sm:$0xff] %v5013_v20 }
 0x55a   : > { %v4998_v11 = vmul.f32 %v6408_v2, %v6406_v19  ;;  %v3987_v2 = vld [vmem:[#allocation3 + $0x10] sm:$0xff] }
 0x55c   : > { %v5014_v35 = vsel %vm5012_vm13, %v4998_v11, %v7021_v52  ;;  %v5022_v25 = vsel %vm5012_vm13, %v4998_v11, 0.0  ;;  %v5112_v11 = vpop.permute.xlu1 %5111 }
 0x55d   : > { %5016 = vst [vmem:[#allocation2 + $0x18] sm:$0xff] %v5014_v35  ;;  %v6090_v17 = vpack.c.bf16 %v5022_v25, %v5021_v27  ;;  %vm5114_vm15 = vcmp.eq.s32.totalorder %v5112_v11, 1 }
 0x55f   : > { %6102 = vst [vmem:[%s6766_s16 + $0x18] sm:$0xff] %v6090_v17   ;;  %v4878_v55 = vpop.f32.mrf.mxu0  ;;  %v4921_v24 = vpop.f32.mrf.mxu1 }
 0x560   : > { %v5046_v46 = vadd.f32 %v5038_v26, %v4878_v55  ;;  %v5048_v38 = vadd.f32 %v5040_v56, %v4921_v24 }
 0x561   : > { %v4880_v37 = vpop.f32.mrf.mxu0  ;;  %v4923_v41 = vpop.f32.mrf.mxu1 }
 0x562   : > { %v6023_v31 = vmul.f32 -1.442695, %v5046_v46  ;;  %v5047_v36 = vadd.f32 %v5039_v34, %v4880_v37  ;;  %v5049_v4 = vadd.f32 %v5041_v3, %v4923_v41 }
 0x563   : > { %v4882_v40 = vpop.f32.mrf.mxu0  ;;  %v4925_v49 = vpop.f32.mrf.mxu1 }
 0x564   : > { %6409 = vpow2.f32 %v6023_v31  ;;  %v6025_v52 = vmul.f32 -1.442695, %v5047_v36  ;;  %v5050_v42 = vadd.f32 %v5042_v30, %v4882_v40  ;;  %v6027_v57 = vmul.f32 -1.442695, %v5049_v4 }
 0x565   : > { %v4884_v29 = vpop.f32.mrf.mxu0  ;;  %v4927_v54 = vpop.f32.mrf.mxu1  ;;  %v5052_v51 = vadd.f32 %v5044_v47, %v4925_v49 }
 0x566   : > { %6411 = vpow2.f32 %v6025_v52  ;;  %v6024_v43 = vmul.f32 -1.442695, %v5050_v42  ;;  %v5051_v45 = vadd.f32 %v5043_v39, %v4884_v29  ;;  %v5053_v59 = vadd.f32 %v5045_v53, %v4927_v54 }
 0x568   : > { %6413 = vpow2.f32 %v6024_v43  ;;  %v6026_v50 = vmul.f32 -1.442695, %v5051_v45  ;;  %v6028_v63 = vmul.f32 -1.442695, %v5053_v59 }
 0x56a   : > { %6415 = vpow2.f32 %v6026_v50 }
 0x56b   : > { %6417 = vpow2.f32 %v6027_v57 }
 0x571   : > { %v6410_v60 = vpop.eup %6409 }
 0x572   : > { %v5060_v61 = vadd.f32 1.0, %v6410_v60 }
 0x573   : > { %v6412_v62 = vpop.eup %6411 }
 0x574   : > { %6419 = vrcp.f32 %v5060_v61  ;;  %v5072_v1 = vadd.f32 1.0, %v6412_v62 }
 0x575   : > { %v6414_v5 = vpop.eup %6413  ;;  %6421 = vtanh.f32 %v5048_v38 }
 0x576   : > { %6423 = vrcp.f32 %v5072_v1  ;;  %v5061_v32 = vadd.f32 1.0, %v6414_v5 }
 0x577   : > { %v6416_v6 = vpop.eup %6415  ;;  %6425 = vpow2.f32 %v6028_v63 }
 0x578   : > { %6427 = vrcp.f32 %v5061_v32  ;;  %v5073_v7 = vadd.f32 1.0, %v6416_v6  ;;  %v6418_v22 = vpop.eup %6417 }
 0x579   : > { %6429 = vtanh.f32 %v5052_v51  ;;  %v5086_v16 = vadd.f32 1.0, %v6418_v22 }
 0x57a   : > { %6431 = vrcp.f32 %v5073_v7 }
 0x57b   : > { %6433 = vrcp.f32 %v5086_v16 }
 0x581   : > { %v6420_v48 = vpop.eup %6419 }
 0x582   : > { %v6422_v10 = vpop.eup %6421 }
 0x583   : > { %v6424_v12 = vpop.eup %6423  ;;  %v5094_v14 = vmul.f32 %v6422_v10, %v6420_v48 }
 0x584   : > { %v6426_v13 = vpop.eup %6425  ;;  %v5092_v21 = vmul.f32 %v6424_v12, %v3985_v15 }
 0x585   : > { %v6428_v9 = vpop.eup %6427  ;;  %v5087_v23 = vadd.f32 1.0, %v6426_v13 }
 0x586   : > { %v6430_v58 = vpop.eup %6429  ;;  %v5096_v19 = vadd.f32 %v5094_v14, %v5092_v21 }
 0x587   : > { %v6432_v20 = vpop.eup %6431  ;;  %v5095_v35 = vmul.f32 %v6430_v58, %v6428_v9 }
 0x588   : > { %6435 = vtanh.f32 %v5096_v19  ;;  %v5119_v27 = vsel %vm5113_vm14, %v5096_v19, %v3985_v15  ;;  %v5093_v25 = vmul.f32 %v6432_v20, %v3987_v2  ;;  %v6434_v28 = vpop.eup %6433 }
 0x589   : > { %5121 = vst [vmem:[#allocation3 + $0x18] sm:$0xff] %v5119_v27  ;;  %6437 = vrcp.f32 %v5087_v23 }
 0x58a   : > { %v5097_v26 = vadd.f32 %v5095_v35, %v5093_v25 }
 0x58c   : > { %6439 = vtanh.f32 %v5097_v26  ;;  %v5120_v17 = vsel %vm5114_vm15, %v5097_v26, %v3987_v2 }
 0x58d   : > { %5122 = vst [vmem:[#allocation3 + $0x10] sm:$0xff] %v5120_v17 }
 0x595   : > { %v6436_v34 = vpop.eup %6435 }
 0x596   : > { %v5100_v55 = vmul.f32 %v6436_v34, %v6434_v28  ;;  %v6438_v46 = vpop.eup %6437 }
 0x598   : > { %v5115_v24 = vsel %vm5113_vm14, %v5100_v55, %v7034_v18  ;;  %v5123_v31 = vsel %vm5113_vm14, %v5100_v55, 0.0 }
 0x599   : > { %v6440_v30 = vpop.eup %6439  ;;  %5117 = vst [vmem:[#allocation2] sm:$0xff] %v5115_v24 }
 0x59a   : > { %v5101_v37 = vmul.f32 %v6440_v30, %v6438_v46 }
 0x59b   : > { %5138 = sbr.rel (%p6031_p12) target bundleno = 1446 (0x5a6), region = 94 }
 0x59c   : > { %v5116_v36 = vsel %vm5114_vm15, %v5101_v37, %v7039_v8  ;;  %v5124_v39 = vsel %vm5114_vm15, %v5101_v37, 0.0 }
 0x59d   : > { %5118 = vst [vmem:[#allocation2 + $0x8] sm:$0xff] %v5116_v36  ;;  %v6095_v40 = vpack.c.bf16 %v5124_v39, %v5123_v31 }
 0x59f   : > { %6096 = vst [vmem:[%s6781_s23] sm:$0xff] %v6095_v40  }
 0x5a0   : > { %v5139_v52 = vld [vmem:[#allocation2 + $0x10] sm:$0xff]  ;;  %v5140_v41 = vld [vmem:[#allocation2] sm:$0xff]  ;;  %v5141_v42 = vld [vmem:[#allocation2 + $0x18] sm:$0xff] }
 0x5a1   : > { %5143 = vst [vmem:[#allocation9] sm:$0xff] %v5139_v52  ;;  %5144 = vst [vmem:[#allocation9 + $0x8] sm:$0xff] %v5140_v41 }
 0x5a2   : > { %5145 = vst [vmem:[#allocation9 + $0x10] sm:$0xff] %v5141_v42 }
 0x5a4   : > { %v5142_v18 = vld [vmem:[#allocation2 + $0x8] sm:$0xff] }
 0x5a5   : > { %5146 = vst [vmem:[#allocation9 + $0x18] sm:$0xff] %v5142_v18 }
 0x5a6 PF: > { %s7137_s7 = sadd.s32 4294967295, %s6555_s27   ;;  %s6562_s17 = smov [#allocation9]  }
 0x5a7   : > { %p7084_p13 = scmp.eq.s32.totalorder %s7137_s7, 1  ;;  %s5189_s21 = sshll.u32 %s6562_s17, 4  ;;  %s5190_s21 = int_to_ptr.vmem [resolvable:$true] %s5189_s21 }
 0x5a8   : > { %s6469_s25 = scalar_lea.vmem %s5190_s21, 512  ;;  %p6476_p4 = scmp.lt.s32.totalorder %s5190_s21, %s5190_s21 }
 0x5a9   : > { %p6470_p0 = scmp.ne.s32.totalorder %s5190_s21, %s6469_s25  ;;  %p6477_p5 = scmp.lt.s32.totalorder %s6469_s25, %s6469_s25 }
 0x5ab   : > { %p6471_p1 = pnand %p6470_p0, %p7084_p13  ;;  %p6478_p6 = por %p6477_p5, %p6476_p4 }
 0x5ad   : > { %p6472_p2 = pneg %p6471_p1 }
 0x5af   : > { %p6479_p7 = pnand %p6478_p6, %p6472_p2 }
 0x5b1   : > { %6482 = shalt.err (!%p6479_p7)
}
 0x5b2   : > { %s6563_s16 = smov 256   ;;  %s6564_s15 = smov 16  }
 0x5b3   : > { %6108 = dma.vmem_to_hbm [thread:$0]  (%p7084_p13), %s5190_s21, 512, %s7126_s6, [#allocation8], %s6563_s16, %s6563_s16, %s6564_s15  }
 0x5b4   : > { %6526 = dma.done.wait (%p7084_p13), [#allocation8], 512  }
 0x5b5   : > { %6528 = vsyncadd (%p7084_p13), [#allocation8], 4294966784 }
 0x5b6 PF: > { %s19_s27 = sadd.s32 1, %s6555_s27   ;;  %s7139_s20 = sld [smem:[#allocation12_spill]] }
 0x5b7   : > { %p16_p8 = scmp.ge.s32.totalorder %s19_s27, 4   ;;  %s7140_s21 = smov %s6535_s22 }
 0x5b8   : > { %s7141_s22 = smov %s6660_s14  ;;  %s7142_s23 = smov %s6543_s24 }
 0x5b9   : > { %s7143_s24 = smov %s6657_s13  ;;  %s7144_s25 = smov %s6551_s26 }
 0x5ba   :  { %18 = sbr.rel (!%p16_p8) target bundleno = 5 (0x5), region = 175 }
 0x5bc   : > { %s7145_s26 = smov %s7139_s20 }
 0x5bf   :  { %5232 = vsyncpa [#allocation7], 1 }
 0x5c0   :  { %5234 = vsyncpa [#allocation7 + $0x1], 1 }
 0x5c1   :  { %5235 = vsyncpa [#allocation8], 1 }
 0x5c2   :  { %5237 = vsyncpa [#allocation8 + $0x1], 1 }

</bundles_post_ra>
